<compile_context>
chip_gen: v5e
topology: v5e:2x2
jax: 0.10.0
libtpu: 0.0.40
codegen_flags: <defaults>
</compile_context>

<pallas_src>
import numpy as np
import jax
import jax.numpy as jnp
from jax import lax
from jax.experimental import pallas as pl
from jax.experimental.pallas import tpu as pltpu


# ----------------------------------------------------------------------------
# Host-side helpers
# ----------------------------------------------------------------------------
def _interp_matrix(out_size, in_size):
    """align_corners=True bilinear interpolation matrix (out_size, in_size)."""
    m = np.zeros((out_size, in_size), dtype=np.float32)
    if in_size == 1:
        m[:, 0] = 1.0
        return m
    scale = (in_size - 1) / (out_size - 1)
    for i in range(out_size):
        src = i * scale
        i0 = min(int(np.floor(src)), in_size - 1)
        i1 = min(i0 + 1, in_size - 1)
        w1 = src - i0
        m[i, i0] += 1.0 - w1
        m[i, i1] += w1
    return m


def _round_up(x, m):
    return (x + m - 1) // m * m


# ----------------------------------------------------------------------------
# Fused UpBlock forward (single Pallas kernel)
# ----------------------------------------------------------------------------
def up_block_forward(down_input, skip_input, params, eps=1e-5):
    N, Cd, H, W = down_input.shape
    Ns, Cs, H2, W2 = skip_input.shape
    assert Ns == N and H2 == 2 * H and W2 == 2 * W
    Cin = Cd + Cs
    Cout = params["w1"].shape[0]

    # Padded-frame geometry: every image lives in a (Hp, Wp) zero-padded frame,
    # flattened row-major onto the lane axis.  A 3x3 tap is then a constant flat
    # shift kh*Wp + kw, i.e. a contiguous lane slice.
    Hp, Wp = H2 + 2, W2 + 2
    P = Hp * Wp
    NPix = N * P
    Lacc = _round_up(NPix, 128)       # lane-dense accumulator / output width
    Ltot = Lacc + 128                 # + head-room for tap offsets (<= 2*Wp + 2)
    cnt = float(N * H2 * W2)          # BN population per channel

    # --- constants -----------------------------------------------------------
    # Upsample straight into the padded frame with one matmul:
    #   down_flat (N*Cd, H*W) @ upmat (H*W, P) -> per-image padded upsampled images.
    wh = _interp_matrix(H2, H)                              # (H2, H)
    ww = _interp_matrix(W2, W)                              # (W2, W)
    whp = np.zeros((Hp, H), np.float32); whp[1:1 + H2] = wh
    wwp = np.zeros((Wp, W), np.float32); wwp[1:1 + W2] = ww
    upmat = np.kron(whp, wwp).T.astype(np.float32)          # (H*W, P)

    # Valid-output mask in the padded-flat frame (valid outputs sit at the
    # top-left H2 x W2 corner of each padded image block).
    b = np.arange(Lacc)
    r = b % P
    valid = (b < NPix) & ((r // Wp) < H2) & ((r % Wp) < W2)
    mask = valid.astype(np.float32)[None, :]                 # (1, Lacc)

    # --- tiny layout glue (pure data movement on <100 KB tensors) -----------
    down_flat = down_input.reshape(N * Cd, H * W).astype(jnp.float32)
    skipp = jnp.pad(skip_input.astype(jnp.float32),
                    ((0, 0), (0, 0), (1, 1), (1, 1)))        # (N, Cs, Hp, Wp)
    skip_flat = jnp.transpose(skipp, (1, 0, 2, 3)).reshape(Cs, NPix)
    skip_flat = jnp.pad(skip_flat, ((0, 0), (0, Ltot - NPix)))

    # Conv weights (Cout, Cin, 3, 3) -> (9, Cout, Cin), tap index t = kh*3 + kw.
    w1_k = jnp.transpose(params["w1"], (2, 3, 0, 1)).reshape(9, Cout, Cin)
    w2_k = jnp.transpose(params["w2"], (2, 3, 0, 1)).reshape(9, Cout, Cout)
    g1 = params["g1"].reshape(Cout, 1).astype(jnp.float32)
    be1 = params["be1"].reshape(Cout, 1).astype(jnp.float32)
    g2 = params["g2"].reshape(Cout, 1).astype(jnp.float32)
    be2 = params["be2"].reshape(Cout, 1).astype(jnp.float32)
    # NOTE: conv biases b1/b2 are intentionally dropped: the train-mode BatchNorm
    # immediately after each conv subtracts the batch mean, so a per-channel bias
    # cancels exactly (output is bit-for-bit the same transformation).

    offs = tuple(kh * Wp + kw for kh in range(3) for kw in range(3))

    # ------------------------------------------------------------------------
    def kernel(down_ref, upmat_ref, skip_ref, w1_ref, w2_ref,
               g1_ref, be1_ref, g2_ref, be2_ref, mask_ref,
               o_ref, xp_ref, h1p_ref):
        f32 = jnp.float32
        msk = mask_ref[...]                                   # (1, Lacc)

        # ---- stage 1: bilinear x2 upsample + channel concat, written directly
        #      in the padded-flat frame (channels on sublanes, spatial on lanes).
        xp_ref[...] = jnp.zeros_like(xp_ref)
        xp_ref[Cd:Cin, :] = skip_ref[...]                     # skip channels
        up = jnp.dot(down_ref[...], upmat_ref[...],
                     preferred_element_type=f32)              # (N*Cd, P), rows (n, c)
        for n in range(N):                                    # place per image
            xp_ref[0:Cd, n * P:(n + 1) * P] = up[n * Cd:(n + 1) * Cd, :]
        xv = xp_ref[...]                                      # (Cin, Ltot)

        def conv_bn_relu(av, w_ref, g_ref, b_ref):
            # 3x3 conv (pad=1, no bias): 9 shifted lane slices x (Cout, Cin) taps.
            acc = jnp.zeros((Cout, Lacc), f32)
            for t, off in enumerate(offs):
                acc = acc + jnp.dot(w_ref[t], av[:, off:off + Lacc],
                                    preferred_element_type=f32)
            # train-mode BatchNorm over valid positions (centered two-pass var).
            mean = jnp.sum(acc * msk, axis=1, keepdims=True) * (1.0 / cnt)
            cen = (acc - mean) * msk
            var = jnp.sum(cen * cen, axis=1, keepdims=True) * (1.0 / cnt)
            scale = g_ref[...] * lax.rsqrt(var + eps)
            shift = b_ref[...] - mean * scale
            return jnp.maximum(acc * scale + shift, 0.0)

        # ---- stage 2: conv1 + BN1 + ReLU ----
        h1 = conv_bn_relu(xv, w1_ref, g1_ref, be1_ref) * msk   # zero non-valid cols
        # Re-embed into the padded frame for conv2: logical (y, x) -> padded
        # (y+1, x+1) is a single flat shift by Wp + 1 into a zeroed buffer.
        h1p_ref[...] = jnp.zeros_like(h1p_ref)
        h1p_ref[:, Wp + 1:Wp + 1 + Lacc] = h1
        hv = h1p_ref[...]                                      # (Cout, Ltot)

        # ---- stage 3: conv2 + BN2 + ReLU -> lane-dense output store ----
        o_ref[...] = conv_bn_relu(hv, w2_ref, g2_ref, be2_ref)

    # ------------------------------------------------------------------------
    def full_spec(shape):
        zeros = (0,) * len(shape)
        return pl.BlockSpec(shape, lambda i: zeros)

    ins = (down_flat, jnp.asarray(upmat), skip_flat, w1_k, w2_k,
           g1, be1, g2, be2, jnp.asarray(mask))
    out = pl.pallas_call(
        kernel,
        out_shape=jax.ShapeDtypeStruct((Cout, Lacc), jnp.float32),
        grid=(1,),
        in_specs=[full_spec(x.shape) for x in ins],
        out_specs=full_spec((Cout, Lacc)),
        scratch_shapes=[pltpu.VMEM((Cin, Ltot), jnp.float32),
                        pltpu.VMEM((Cout, Ltot), jnp.float32)],
        compiler_params=pltpu.CompilerParams(
            dimension_semantics=("arbitrary",)),
    )(*ins)

    # Extract the valid H2 x W2 corner of each padded image block, back to NCHW.
    o = out[:, :NPix].reshape(Cout, N, Hp, Wp)[:, :, :H2, :W2]
    return jnp.transpose(o, (1, 0, 2, 3))


# ----------------------------------------------------------------------------
# Pure-JAX reference (for a sanity check against the Pallas path)
# ----------------------------------------------------------------------------
def reference_forward(down_input, skip_input, params, eps=1e-5):
    N, Cd, H, W = down_input.shape
    wh = jnp.asarray(_interp_matrix(2 * H, H))
    ww = jnp.asarray(_interp_matrix(2 * W, W))
    up = jnp.einsum("oh,nchw,pw->ncop", wh, down_input, ww,
                    precision=lax.Precision.HIGHEST)
    x = jnp.concatenate([up, skip_input], axis=1)

    def cbr(x, w_ochw, b, gamma, beta):
        z = lax.conv_general_dilated(
            x, w_ochw, (1, 1), ((1, 1), (1, 1)),
            dimension_numbers=("NCHW", "OIHW", "NCHW"),
            precision=lax.Precision.HIGHEST)
        z = z + b.reshape(1, -1, 1, 1)
        mean = z.mean(axis=(0, 2, 3), keepdims=True)
        var = z.var(axis=(0, 2, 3), keepdims=True)
        zn = (z - mean) / jnp.sqrt(var + eps)
        return jnp.maximum(zn * gamma.reshape(1, -1, 1, 1)
                           + beta.reshape(1, -1, 1, 1), 0.0)

    h = cbr(x, params["w1"], params["b1"], params["g1"], params["be1"])
    h = cbr(h, params["w2"], params["b2"], params["g2"], params["be2"])
    return h


# ----------------------------------------------------------------------------
if __name__ == "__main__":
    key = jax.random.PRNGKey(0)
    ks = jax.random.split(key, 10)

    N, Cd, H, W = 2, 4, 16, 16
    Cs = 4
    in_ch, out_ch = Cd + Cs, 4          # UpBlock(in_channels=8, out_channels=4)

    down_input = jax.random.normal(ks[0], (N, Cd, H, W), jnp.float32)
    skip_input = jax.random.normal(ks[1], (N, Cs, 2 * H, 2 * W), jnp.float32)

    params = {
        "w1": 0.1 * jax.random.normal(ks[2], (out_ch, in_ch, 3, 3), jnp.float32),
        "b1": 0.1 * jax.random.normal(ks[3], (out_ch,), jnp.float32),
        "g1": 1.0 + 0.1 * jax.random.normal(ks[4], (out_ch,), jnp.float32),
        "be1": 0.1 * jax.random.normal(ks[5], (out_ch,), jnp.float32),
        "w2": 0.1 * jax.random.normal(ks[6], (out_ch, out_ch, 3, 3), jnp.float32),
        "b2": 0.1 * jax.random.normal(ks[7], (out_ch,), jnp.float32),
        "g2": 1.0 + 0.1 * jax.random.normal(ks[8], (out_ch,), jnp.float32),
        "be2": 0.1 * jax.random.normal(ks[9], (out_ch,), jnp.float32),
    }

    out = up_block_forward(down_input, skip_input, params)
    out = jax.block_until_ready(out)
    assert out.shape == (N, out_ch, 2 * H, 2 * W)

    ref = jax.block_until_ready(reference_forward(down_input, skip_input, params))
    assert np.allclose(np.asarray(out), np.asarray(ref), rtol=1e-2, atol=1e-2)

    print("KERNEL_OK")
</pallas_src>

<mosaic_0001>
module attributes {stable_mosaic.version = 11 : i64} {
  func.func @kernel(%arg0: i32, %arg1: memref<8x256xf32, #tpu.memory_space<vmem>>, %arg2: memref<256x1156xf32, #tpu.memory_space<vmem>>, %arg3: memref<4x2560xf32, #tpu.memory_space<vmem>>, %arg4: memref<9x4x8xf32, #tpu.memory_space<vmem>>, %arg5: memref<9x4x4xf32, #tpu.memory_space<vmem>>, %arg6: memref<4x1xf32, #tpu.memory_space<vmem>>, %arg7: memref<4x1xf32, #tpu.memory_space<vmem>>, %arg8: memref<4x1xf32, #tpu.memory_space<vmem>>, %arg9: memref<4x1xf32, #tpu.memory_space<vmem>>, %arg10: memref<1x2432xf32, #tpu.memory_space<vmem>>, %arg11: memref<4x2432xf32, #tpu.memory_space<vmem>>, %arg12: memref<8x2560xf32, #tpu.memory_space<vmem>>, %arg13: memref<4x2560xf32, #tpu.memory_space<vmem>>) attributes {dimension_semantics = [#tpu.dimension_semantics<arbitrary>], iteration_bounds = array<i64: 1>, scalar_prefetch = 0 : i64, scratch_operands = 2 : i64, tpu.core_type = #tpu.core_type<tc>, window_params = [{pipeline_mode = #tpu.pipeline_mode<synchronous>, transform_indices = @transform_0, window_bounds = array<i64: 8, 256>}, {pipeline_mode = #tpu.pipeline_mode<synchronous>, transform_indices = @transform_1, window_bounds = array<i64: 256, 1156>}, {pipeline_mode = #tpu.pipeline_mode<synchronous>, transform_indices = @transform_2, window_bounds = array<i64: 4, 2560>}, {pipeline_mode = #tpu.pipeline_mode<synchronous>, transform_indices = @transform_3, window_bounds = array<i64: 9, 4, 8>}, {pipeline_mode = #tpu.pipeline_mode<synchronous>, transform_indices = @transform_4, window_bounds = array<i64: 9, 4, 4>}, {pipeline_mode = #tpu.pipeline_mode<synchronous>, transform_indices = @transform_5, window_bounds = array<i64: 4, 1>}, {pipeline_mode = #tpu.pipeline_mode<synchronous>, transform_indices = @transform_6, window_bounds = array<i64: 4, 1>}, {pipeline_mode = #tpu.pipeline_mode<synchronous>, transform_indices = @transform_7, window_bounds = array<i64: 4, 1>}, {pipeline_mode = #tpu.pipeline_mode<synchronous>, transform_indices = @transform_8, window_bounds = array<i64: 4, 1>}, {pipeline_mode = #tpu.pipeline_mode<synchronous>, transform_indices = @transform_9, window_bounds = array<i64: 1, 2432>}, {pipeline_mode = #tpu.pipeline_mode<synchronous>, transform_indices = @transform_10, window_bounds = array<i64: 4, 2432>}]} {
    %c0 = arith.constant 0 : index
    %c0_0 = arith.constant 0 : index
    %0 = vector.load %arg10[%c0, %c0_0] : memref<1x2432xf32, #tpu.memory_space<vmem>>, vector<1x2432xf32>
    %cst = arith.constant 0.000000e+00 : f32
    %1 = vector.broadcast %cst : f32 to vector<8x2560xf32>
    %c0_1 = arith.constant 0 : index
    %c0_2 = arith.constant 0 : index
    %2 = vector.load %arg12[%c0_1, %c0_2] : memref<8x2560xf32, #tpu.memory_space<vmem>>, vector<8x2560xf32>
    tpu.vector_store %arg12[%c0_1, %c0_2], %1 {strides = array<i32>} : memref<8x2560xf32, #tpu.memory_space<vmem>>, vector<8x2560xf32>,
    %c0_3 = arith.constant 0 : index
    %c0_4 = arith.constant 0 : index
    %3 = vector.load %arg3[%c0_3, %c0_4] : memref<4x2560xf32, #tpu.memory_space<vmem>>, vector<4x2560xf32>
    %c4 = arith.constant 4 : index
    %c0_5 = arith.constant 0 : index
    %4 = vector.load %arg12[%c4, %c0_5] : memref<8x2560xf32, #tpu.memory_space<vmem>>, vector<4x2560xf32>
    tpu.vector_store %arg12[%c4, %c0_5], %3 {strides = array<i32>} : memref<8x2560xf32, #tpu.memory_space<vmem>>, vector<4x2560xf32>,
    %c0_6 = arith.constant 0 : index
    %c0_7 = arith.constant 0 : index
    %5 = vector.load %arg1[%c0_6, %c0_7] : memref<8x256xf32, #tpu.memory_space<vmem>>, vector<8x256xf32>
    %c0_8 = arith.constant 0 : index
    %c0_9 = arith.constant 0 : index
    %6 = vector.load %arg2[%c0_8, %c0_9] : memref<256x1156xf32, #tpu.memory_space<vmem>>, vector<256x1156xf32>
    %cst_10 = arith.constant dense<0.000000e+00> : vector<8x1156xf32>
    %7 = tpu.matmul %5, %6, %cst_10 {dimension_numbers = #tpu.dot_dimension_numbers<[1], [0], [0], [1], [0, 0, 1, 1], [], []>} : vector<8x256xf32>, vector<256x1156xf32>, vector<8x1156xf32> -> vector<8x1156xf32>
    %8 = vector.extract_strided_slice %7 {offsets = [0, 0], sizes = [4, 1156], strides = [1, 1]} : vector<8x1156xf32> to vector<4x1156xf32>
    %c0_11 = arith.constant 0 : index
    %c0_12 = arith.constant 0 : index
    %9 = vector.load %arg12[%c0_11, %c0_12] : memref<8x2560xf32, #tpu.memory_space<vmem>>, vector<4x1156xf32>
    tpu.vector_store %arg12[%c0_11, %c0_12], %8 {strides = array<i32>} : memref<8x2560xf32, #tpu.memory_space<vmem>>, vector<4x1156xf32>,
    %10 = vector.extract_strided_slice %7 {offsets = [4, 0], sizes = [4, 1156], strides = [1, 1]} : vector<8x1156xf32> to vector<4x1156xf32>
    %c0_13 = arith.constant 0 : index
    %c1156 = arith.constant 1156 : index
    %11 = vector.load %arg12[%c0_13, %c1156] : memref<8x2560xf32, #tpu.memory_space<vmem>>, vector<4x1156xf32>
    tpu.vector_store %arg12[%c0_13, %c1156], %10 {strides = array<i32>} : memref<8x2560xf32, #tpu.memory_space<vmem>>, vector<4x1156xf32>,
    %c0_14 = arith.constant 0 : index
    %c0_15 = arith.constant 0 : index
    %12 = vector.load %arg12[%c0_14, %c0_15] : memref<8x2560xf32, #tpu.memory_space<vmem>>, vector<8x2560xf32>
    %cst_16 = arith.constant 0.000000e+00 : f32
    %13 = vector.broadcast %cst_16 : f32 to vector<4x2432xf32>
    %c0_17 = arith.constant 0 : index
    %c0_18 = arith.constant 0 : index
    %c0_19 = arith.constant 0 : index
    %14 = vector.load %arg4[%c0_17, %c0_18, %c0_19] : memref<9x4x8xf32, #tpu.memory_space<vmem>>, vector<1x4x8xf32>
    %15 = vector.shape_cast %14 : vector<1x4x8xf32> to vector<4x8xf32>
    %16 = vector.extract_strided_slice %12 {offsets = [0, 0], sizes = [8, 2432], strides = [1, 1]} : vector<8x2560xf32> to vector<8x2432xf32>
    %cst_20 = arith.constant dense<0.000000e+00> : vector<4x2432xf32>
    %17 = tpu.matmul %15, %16, %cst_20 {dimension_numbers = #tpu.dot_dimension_numbers<[1], [0], [0], [1], [0, 0, 1, 1], [], []>} : vector<4x8xf32>, vector<8x2432xf32>, vector<4x2432xf32> -> vector<4x2432xf32>
    %18 = arith.addf %13, %17 : vector<4x2432xf32>
    %c1 = arith.constant 1 : index
    %c0_21 = arith.constant 0 : index
    %c0_22 = arith.constant 0 : index
    %19 = vector.load %arg4[%c1, %c0_21, %c0_22] : memref<9x4x8xf32, #tpu.memory_space<vmem>>, vector<1x4x8xf32>
    %20 = vector.shape_cast %19 : vector<1x4x8xf32> to vector<4x8xf32>
    %21 = vector.extract_strided_slice %12 {offsets = [0, 1], sizes = [8, 2432], strides = [1, 1]} : vector<8x2560xf32> to vector<8x2432xf32>
    %cst_23 = arith.constant dense<0.000000e+00> : vector<4x2432xf32>
    %22 = tpu.matmul %20, %21, %cst_23 {dimension_numbers = #tpu.dot_dimension_numbers<[1], [0], [0], [1], [0, 0, 1, 1], [], []>} : vector<4x8xf32>, vector<8x2432xf32>, vector<4x2432xf32> -> vector<4x2432xf32>
    %23 = arith.addf %18, %22 : vector<4x2432xf32>
    %c2 = arith.constant 2 : index
    %c0_24 = arith.constant 0 : index
    %c0_25 = arith.constant 0 : index
    %24 = vector.load %arg4[%c2, %c0_24, %c0_25] : memref<9x4x8xf32, #tpu.memory_space<vmem>>, vector<1x4x8xf32>
    %25 = vector.shape_cast %24 : vector<1x4x8xf32> to vector<4x8xf32>
    %26 = vector.extract_strided_slice %12 {offsets = [0, 2], sizes = [8, 2432], strides = [1, 1]} : vector<8x2560xf32> to vector<8x2432xf32>
    %cst_26 = arith.constant dense<0.000000e+00> : vector<4x2432xf32>
    %27 = tpu.matmul %25, %26, %cst_26 {dimension_numbers = #tpu.dot_dimension_numbers<[1], [0], [0], [1], [0, 0, 1, 1], [], []>} : vector<4x8xf32>, vector<8x2432xf32>, vector<4x2432xf32> -> vector<4x2432xf32>
    %28 = arith.addf %23, %27 : vector<4x2432xf32>
    %c3 = arith.constant 3 : index
    %c0_27 = arith.constant 0 : index
    %c0_28 = arith.constant 0 : index
    %29 = vector.load %arg4[%c3, %c0_27, %c0_28] : memref<9x4x8xf32, #tpu.memory_space<vmem>>, vector<1x4x8xf32>
    %30 = vector.shape_cast %29 : vector<1x4x8xf32> to vector<4x8xf32>
    %31 = vector.extract_strided_slice %12 {offsets = [0, 34], sizes = [8, 2432], strides = [1, 1]} : vector<8x2560xf32> to vector<8x2432xf32>
    %cst_29 = arith.constant dense<0.000000e+00> : vector<4x2432xf32>
    %32 = tpu.matmul %30, %31, %cst_29 {dimension_numbers = #tpu.dot_dimension_numbers<[1], [0], [0], [1], [0, 0, 1, 1], [], []>} : vector<4x8xf32>, vector<8x2432xf32>, vector<4x2432xf32> -> vector<4x2432xf32>
    %33 = arith.addf %28, %32 : vector<4x2432xf32>
    %c4_30 = arith.constant 4 : index
    %c0_31 = arith.constant 0 : index
    %c0_32 = arith.constant 0 : index
    %34 = vector.load %arg4[%c4_30, %c0_31, %c0_32] : memref<9x4x8xf32, #tpu.memory_space<vmem>>, vector<1x4x8xf32>
    %35 = vector.shape_cast %34 : vector<1x4x8xf32> to vector<4x8xf32>
    %36 = vector.extract_strided_slice %12 {offsets = [0, 35], sizes = [8, 2432], strides = [1, 1]} : vector<8x2560xf32> to vector<8x2432xf32>
    %cst_33 = arith.constant dense<0.000000e+00> : vector<4x2432xf32>
    %37 = tpu.matmul %35, %36, %cst_33 {dimension_numbers = #tpu.dot_dimension_numbers<[1], [0], [0], [1], [0, 0, 1, 1], [], []>} : vector<4x8xf32>, vector<8x2432xf32>, vector<4x2432xf32> -> vector<4x2432xf32>
    %38 = arith.addf %33, %37 : vector<4x2432xf32>
    %c5 = arith.constant 5 : index
    %c0_34 = arith.constant 0 : index
    %c0_35 = arith.constant 0 : index
    %39 = vector.load %arg4[%c5, %c0_34, %c0_35] : memref<9x4x8xf32, #tpu.memory_space<vmem>>, vector<1x4x8xf32>
    %40 = vector.shape_cast %39 : vector<1x4x8xf32> to vector<4x8xf32>
    %41 = vector.extract_strided_slice %12 {offsets = [0, 36], sizes = [8, 2432], strides = [1, 1]} : vector<8x2560xf32> to vector<8x2432xf32>
    %cst_36 = arith.constant dense<0.000000e+00> : vector<4x2432xf32>
    %42 = tpu.matmul %40, %41, %cst_36 {dimension_numbers = #tpu.dot_dimension_numbers<[1], [0], [0], [1], [0, 0, 1, 1], [], []>} : vector<4x8xf32>, vector<8x2432xf32>, vector<4x2432xf32> -> vector<4x2432xf32>
    %43 = arith.addf %38, %42 : vector<4x2432xf32>
    %c6 = arith.constant 6 : index
    %c0_37 = arith.constant 0 : index
    %c0_38 = arith.constant 0 : index
    %44 = vector.load %arg4[%c6, %c0_37, %c0_38] : memref<9x4x8xf32, #tpu.memory_space<vmem>>, vector<1x4x8xf32>
    %45 = vector.shape_cast %44 : vector<1x4x8xf32> to vector<4x8xf32>
    %46 = vector.extract_strided_slice %12 {offsets = [0, 68], sizes = [8, 2432], strides = [1, 1]} : vector<8x2560xf32> to vector<8x2432xf32>
    %cst_39 = arith.constant dense<0.000000e+00> : vector<4x2432xf32>
    %47 = tpu.matmul %45, %46, %cst_39 {dimension_numbers = #tpu.dot_dimension_numbers<[1], [0], [0], [1], [0, 0, 1, 1], [], []>} : vector<4x8xf32>, vector<8x2432xf32>, vector<4x2432xf32> -> vector<4x2432xf32>
    %48 = arith.addf %43, %47 : vector<4x2432xf32>
    %c7 = arith.constant 7 : index
    %c0_40 = arith.constant 0 : index
    %c0_41 = arith.constant 0 : index
    %49 = vector.load %arg4[%c7, %c0_40, %c0_41] : memref<9x4x8xf32, #tpu.memory_space<vmem>>, vector<1x4x8xf32>
    %50 = vector.shape_cast %49 : vector<1x4x8xf32> to vector<4x8xf32>
    %51 = vector.extract_strided_slice %12 {offsets = [0, 69], sizes = [8, 2432], strides = [1, 1]} : vector<8x2560xf32> to vector<8x2432xf32>
    %cst_42 = arith.constant dense<0.000000e+00> : vector<4x2432xf32>
    %52 = tpu.matmul %50, %51, %cst_42 {dimension_numbers = #tpu.dot_dimension_numbers<[1], [0], [0], [1], [0, 0, 1, 1], [], []>} : vector<4x8xf32>, vector<8x2432xf32>, vector<4x2432xf32> -> vector<4x2432xf32>
    %53 = arith.addf %48, %52 : vector<4x2432xf32>
    %c8 = arith.constant 8 : index
    %c0_43 = arith.constant 0 : index
    %c0_44 = arith.constant 0 : index
    %54 = vector.load %arg4[%c8, %c0_43, %c0_44] : memref<9x4x8xf32, #tpu.memory_space<vmem>>, vector<1x4x8xf32>
    %55 = vector.shape_cast %54 : vector<1x4x8xf32> to vector<4x8xf32>
    %56 = vector.extract_strided_slice %12 {offsets = [0, 70], sizes = [8, 2432], strides = [1, 1]} : vector<8x2560xf32> to vector<8x2432xf32>
    %cst_45 = arith.constant dense<0.000000e+00> : vector<4x2432xf32>
    %57 = tpu.matmul %55, %56, %cst_45 {dimension_numbers = #tpu.dot_dimension_numbers<[1], [0], [0], [1], [0, 0, 1, 1], [], []>} : vector<4x8xf32>, vector<8x2432xf32>, vector<4x2432xf32> -> vector<4x2432xf32>
    %58 = arith.addf %53, %57 : vector<4x2432xf32>
    %59 = vector.broadcast %0 : vector<1x2432xf32> to vector<4x2432xf32>
    %60 = arith.mulf %58, %59 : vector<4x2432xf32>
    %cst_46 = arith.constant dense<0.000000e+00> : vector<4xf32>
    %61 = vector.multi_reduction <add>, %60, %cst_46 [1] : vector<4x2432xf32> to vector<4xf32>
    %62 = vector.shape_cast %61 : vector<4xf32> to vector<4x1xf32>
    %cst_47 = arith.constant 4.8828125E-4 : f32
    %63 = vector.broadcast %cst_47 : f32 to vector<4x1xf32>
    %64 = arith.mulf %62, %63 : vector<4x1xf32>
    %65 = vector.broadcast %64 : vector<4x1xf32> to vector<4x2432xf32>
    %66 = arith.subf %58, %65 : vector<4x2432xf32>
    %67 = vector.broadcast %0 : vector<1x2432xf32> to vector<4x2432xf32>
    %68 = arith.mulf %66, %67 : vector<4x2432xf32>
    %69 = arith.mulf %68, %68 : vector<4x2432xf32>
    %cst_48 = arith.constant dense<0.000000e+00> : vector<4xf32>
    %70 = vector.multi_reduction <add>, %69, %cst_48 [1] : vector<4x2432xf32> to vector<4xf32>
    %71 = vector.shape_cast %70 : vector<4xf32> to vector<4x1xf32>
    %cst_49 = arith.constant 4.8828125E-4 : f32
    %72 = vector.broadcast %cst_49 : f32 to vector<4x1xf32>
    %73 = arith.mulf %71, %72 : vector<4x1xf32>
    %c0_50 = arith.constant 0 : index
    %c0_51 = arith.constant 0 : index
    %74 = vector.load %arg6[%c0_50, %c0_51] : memref<4x1xf32, #tpu.memory_space<vmem>>, vector<4x1xf32>
    %cst_52 = arith.constant 9.99999974E-6 : f32
    %75 = vector.broadcast %cst_52 : f32 to vector<4x1xf32>
    %76 = arith.addf %73, %75 : vector<4x1xf32>
    %77 = math.rsqrt %76 : vector<4x1xf32>
    %78 = arith.mulf %74, %77 : vector<4x1xf32>
    %c0_53 = arith.constant 0 : index
    %c0_54 = arith.constant 0 : index
    %79 = vector.load %arg7[%c0_53, %c0_54] : memref<4x1xf32, #tpu.memory_space<vmem>>, vector<4x1xf32>
    %80 = arith.mulf %64, %78 : vector<4x1xf32>
    %81 = arith.subf %79, %80 : vector<4x1xf32>
    %82 = vector.broadcast %78 : vector<4x1xf32> to vector<4x2432xf32>
    %83 = arith.mulf %58, %82 : vector<4x2432xf32>
    %84 = vector.broadcast %81 : vector<4x1xf32> to vector<4x2432xf32>
    %85 = arith.addf %83, %84 : vector<4x2432xf32>
    %cst_55 = arith.constant 0.000000e+00 : f32
    %86 = vector.broadcast %cst_55 : f32 to vector<4x2432xf32>
    %87 = arith.maximumf %85, %86 : vector<4x2432xf32>
    %88 = vector.broadcast %0 : vector<1x2432xf32> to vector<4x2432xf32>
    %89 = arith.mulf %87, %88 : vector<4x2432xf32>
    %cst_56 = arith.constant 0.000000e+00 : f32
    %90 = vector.broadcast %cst_56 : f32 to vector<4x2560xf32>
    %c0_57 = arith.constant 0 : index
    %c0_58 = arith.constant 0 : index
    %91 = vector.load %arg13[%c0_57, %c0_58] : memref<4x2560xf32, #tpu.memory_space<vmem>>, vector<4x2560xf32>
    tpu.vector_store %arg13[%c0_57, %c0_58], %90 {strides = array<i32>} : memref<4x2560xf32, #tpu.memory_space<vmem>>, vector<4x2560xf32>,
    %c0_59 = arith.constant 0 : index
    %c35 = arith.constant 35 : index
    %92 = vector.load %arg13[%c0_59, %c35] : memref<4x2560xf32, #tpu.memory_space<vmem>>, vector<4x2432xf32>
    tpu.vector_store %arg13[%c0_59, %c35], %89 {strides = array<i32>} : memref<4x2560xf32, #tpu.memory_space<vmem>>, vector<4x2432xf32>,
    %c0_60 = arith.constant 0 : index
    %c0_61 = arith.constant 0 : index
    %93 = vector.load %arg13[%c0_60, %c0_61] : memref<4x2560xf32, #tpu.memory_space<vmem>>, vector<4x2560xf32>
    %cst_62 = arith.constant 0.000000e+00 : f32
    %94 = vector.broadcast %cst_62 : f32 to vector<4x2432xf32>
    %c0_63 = arith.constant 0 : index
    %c0_64 = arith.constant 0 : index
    %c0_65 = arith.constant 0 : index
    %95 = vector.load %arg5[%c0_63, %c0_64, %c0_65] : memref<9x4x4xf32, #tpu.memory_space<vmem>>, vector<1x4x4xf32>
    %96 = vector.shape_cast %95 : vector<1x4x4xf32> to vector<4x4xf32>
    %97 = vector.extract_strided_slice %93 {offsets = [0, 0], sizes = [4, 2432], strides = [1, 1]} : vector<4x2560xf32> to vector<4x2432xf32>
    %cst_66 = arith.constant dense<0.000000e+00> : vector<4x2432xf32>
    %98 = tpu.matmul %96, %97, %cst_66 {dimension_numbers = #tpu.dot_dimension_numbers<[1], [0], [0], [1], [0, 0, 1, 1], [], []>} : vector<4x4xf32>, vector<4x2432xf32>, vector<4x2432xf32> -> vector<4x2432xf32>
    %99 = arith.addf %94, %98 : vector<4x2432xf32>
    %c1_67 = arith.constant 1 : index
    %c0_68 = arith.constant 0 : index
    %c0_69 = arith.constant 0 : index
    %100 = vector.load %arg5[%c1_67, %c0_68, %c0_69] : memref<9x4x4xf32, #tpu.memory_space<vmem>>, vector<1x4x4xf32>
    %101 = vector.shape_cast %100 : vector<1x4x4xf32> to vector<4x4xf32>
    %102 = vector.extract_strided_slice %93 {offsets = [0, 1], sizes = [4, 2432], strides = [1, 1]} : vector<4x2560xf32> to vector<4x2432xf32>
    %cst_70 = arith.constant dense<0.000000e+00> : vector<4x2432xf32>
    %103 = tpu.matmul %101, %102, %cst_70 {dimension_numbers = #tpu.dot_dimension_numbers<[1], [0], [0], [1], [0, 0, 1, 1], [], []>} : vector<4x4xf32>, vector<4x2432xf32>, vector<4x2432xf32> -> vector<4x2432xf32>
    %104 = arith.addf %99, %103 : vector<4x2432xf32>
    %c2_71 = arith.constant 2 : index
    %c0_72 = arith.constant 0 : index
    %c0_73 = arith.constant 0 : index
    %105 = vector.load %arg5[%c2_71, %c0_72, %c0_73] : memref<9x4x4xf32, #tpu.memory_space<vmem>>, vector<1x4x4xf32>
    %106 = vector.shape_cast %105 : vector<1x4x4xf32> to vector<4x4xf32>
    %107 = vector.extract_strided_slice %93 {offsets = [0, 2], sizes = [4, 2432], strides = [1, 1]} : vector<4x2560xf32> to vector<4x2432xf32>
    %cst_74 = arith.constant dense<0.000000e+00> : vector<4x2432xf32>
    %108 = tpu.matmul %106, %107, %cst_74 {dimension_numbers = #tpu.dot_dimension_numbers<[1], [0], [0], [1], [0, 0, 1, 1], [], []>} : vector<4x4xf32>, vector<4x2432xf32>, vector<4x2432xf32> -> vector<4x2432xf32>
    %109 = arith.addf %104, %108 : vector<4x2432xf32>
    %c3_75 = arith.constant 3 : index
    %c0_76 = arith.constant 0 : index
    %c0_77 = arith.constant 0 : index
    %110 = vector.load %arg5[%c3_75, %c0_76, %c0_77] : memref<9x4x4xf32, #tpu.memory_space<vmem>>, vector<1x4x4xf32>
    %111 = vector.shape_cast %110 : vector<1x4x4xf32> to vector<4x4xf32>
    %112 = vector.extract_strided_slice %93 {offsets = [0, 34], sizes = [4, 2432], strides = [1, 1]} : vector<4x2560xf32> to vector<4x2432xf32>
    %cst_78 = arith.constant dense<0.000000e+00> : vector<4x2432xf32>
    %113 = tpu.matmul %111, %112, %cst_78 {dimension_numbers = #tpu.dot_dimension_numbers<[1], [0], [0], [1], [0, 0, 1, 1], [], []>} : vector<4x4xf32>, vector<4x2432xf32>, vector<4x2432xf32> -> vector<4x2432xf32>
    %114 = arith.addf %109, %113 : vector<4x2432xf32>
    %c4_79 = arith.constant 4 : index
    %c0_80 = arith.constant 0 : index
    %c0_81 = arith.constant 0 : index
    %115 = vector.load %arg5[%c4_79, %c0_80, %c0_81] : memref<9x4x4xf32, #tpu.memory_space<vmem>>, vector<1x4x4xf32>
    %116 = vector.shape_cast %115 : vector<1x4x4xf32> to vector<4x4xf32>
    %117 = vector.extract_strided_slice %93 {offsets = [0, 35], sizes = [4, 2432], strides = [1, 1]} : vector<4x2560xf32> to vector<4x2432xf32>
    %cst_82 = arith.constant dense<0.000000e+00> : vector<4x2432xf32>
    %118 = tpu.matmul %116, %117, %cst_82 {dimension_numbers = #tpu.dot_dimension_numbers<[1], [0], [0], [1], [0, 0, 1, 1], [], []>} : vector<4x4xf32>, vector<4x2432xf32>, vector<4x2432xf32> -> vector<4x2432xf32>
    %119 = arith.addf %114, %118 : vector<4x2432xf32>
    %c5_83 = arith.constant 5 : index
    %c0_84 = arith.constant 0 : index
    %c0_85 = arith.constant 0 : index
    %120 = vector.load %arg5[%c5_83, %c0_84, %c0_85] : memref<9x4x4xf32, #tpu.memory_space<vmem>>, vector<1x4x4xf32>
    %121 = vector.shape_cast %120 : vector<1x4x4xf32> to vector<4x4xf32>
    %122 = vector.extract_strided_slice %93 {offsets = [0, 36], sizes = [4, 2432], strides = [1, 1]} : vector<4x2560xf32> to vector<4x2432xf32>
    %cst_86 = arith.constant dense<0.000000e+00> : vector<4x2432xf32>
    %123 = tpu.matmul %121, %122, %cst_86 {dimension_numbers = #tpu.dot_dimension_numbers<[1], [0], [0], [1], [0, 0, 1, 1], [], []>} : vector<4x4xf32>, vector<4x2432xf32>, vector<4x2432xf32> -> vector<4x2432xf32>
    %124 = arith.addf %119, %123 : vector<4x2432xf32>
    %c6_87 = arith.constant 6 : index
    %c0_88 = arith.constant 0 : index
    %c0_89 = arith.constant 0 : index
    %125 = vector.load %arg5[%c6_87, %c0_88, %c0_89] : memref<9x4x4xf32, #tpu.memory_space<vmem>>, vector<1x4x4xf32>
    %126 = vector.shape_cast %125 : vector<1x4x4xf32> to vector<4x4xf32>
    %127 = vector.extract_strided_slice %93 {offsets = [0, 68], sizes = [4, 2432], strides = [1, 1]} : vector<4x2560xf32> to vector<4x2432xf32>
    %cst_90 = arith.constant dense<0.000000e+00> : vector<4x2432xf32>
    %128 = tpu.matmul %126, %127, %cst_90 {dimension_numbers = #tpu.dot_dimension_numbers<[1], [0], [0], [1], [0, 0, 1, 1], [], []>} : vector<4x4xf32>, vector<4x2432xf32>, vector<4x2432xf32> -> vector<4x2432xf32>
    %129 = arith.addf %124, %128 : vector<4x2432xf32>
    %c7_91 = arith.constant 7 : index
    %c0_92 = arith.constant 0 : index
    %c0_93 = arith.constant 0 : index
    %130 = vector.load %arg5[%c7_91, %c0_92, %c0_93] : memref<9x4x4xf32, #tpu.memory_space<vmem>>, vector<1x4x4xf32>
    %131 = vector.shape_cast %130 : vector<1x4x4xf32> to vector<4x4xf32>
    %132 = vector.extract_strided_slice %93 {offsets = [0, 69], sizes = [4, 2432], strides = [1, 1]} : vector<4x2560xf32> to vector<4x2432xf32>
    %cst_94 = arith.constant dense<0.000000e+00> : vector<4x2432xf32>
    %133 = tpu.matmul %131, %132, %cst_94 {dimension_numbers = #tpu.dot_dimension_numbers<[1], [0], [0], [1], [0, 0, 1, 1], [], []>} : vector<4x4xf32>, vector<4x2432xf32>, vector<4x2432xf32> -> vector<4x2432xf32>
    %134 = arith.addf %129, %133 : vector<4x2432xf32>
    %c8_95 = arith.constant 8 : index
    %c0_96 = arith.constant 0 : index
    %c0_97 = arith.constant 0 : index
    %135 = vector.load %arg5[%c8_95, %c0_96, %c0_97] : memref<9x4x4xf32, #tpu.memory_space<vmem>>, vector<1x4x4xf32>
    %136 = vector.shape_cast %135 : vector<1x4x4xf32> to vector<4x4xf32>
    %137 = vector.extract_strided_slice %93 {offsets = [0, 70], sizes = [4, 2432], strides = [1, 1]} : vector<4x2560xf32> to vector<4x2432xf32>
    %cst_98 = arith.constant dense<0.000000e+00> : vector<4x2432xf32>
    %138 = tpu.matmul %136, %137, %cst_98 {dimension_numbers = #tpu.dot_dimension_numbers<[1], [0], [0], [1], [0, 0, 1, 1], [], []>} : vector<4x4xf32>, vector<4x2432xf32>, vector<4x2432xf32> -> vector<4x2432xf32>
    %139 = arith.addf %134, %138 : vector<4x2432xf32>
    %140 = vector.broadcast %0 : vector<1x2432xf32> to vector<4x2432xf32>
    %141 = arith.mulf %139, %140 : vector<4x2432xf32>
    %cst_99 = arith.constant dense<0.000000e+00> : vector<4xf32>
    %142 = vector.multi_reduction <add>, %141, %cst_99 [1] : vector<4x2432xf32> to vector<4xf32>
    %143 = vector.shape_cast %142 : vector<4xf32> to vector<4x1xf32>
    %cst_100 = arith.constant 4.8828125E-4 : f32
    %144 = vector.broadcast %cst_100 : f32 to vector<4x1xf32>
    %145 = arith.mulf %143, %144 : vector<4x1xf32>
    %146 = vector.broadcast %145 : vector<4x1xf32> to vector<4x2432xf32>
    %147 = arith.subf %139, %146 : vector<4x2432xf32>
    %148 = vector.broadcast %0 : vector<1x2432xf32> to vector<4x2432xf32>
    %149 = arith.mulf %147, %148 : vector<4x2432xf32>
    %150 = arith.mulf %149, %149 : vector<4x2432xf32>
    %cst_101 = arith.constant dense<0.000000e+00> : vector<4xf32>
    %151 = vector.multi_reduction <add>, %150, %cst_101 [1] : vector<4x2432xf32> to vector<4xf32>
    %152 = vector.shape_cast %151 : vector<4xf32> to vector<4x1xf32>
    %cst_102 = arith.constant 4.8828125E-4 : f32
    %153 = vector.broadcast %cst_102 : f32 to vector<4x1xf32>
    %154 = arith.mulf %152, %153 : vector<4x1xf32>
    %c0_103 = arith.constant 0 : index
    %c0_104 = arith.constant 0 : index
    %155 = vector.load %arg8[%c0_103, %c0_104] : memref<4x1xf32, #tpu.memory_space<vmem>>, vector<4x1xf32>
    %cst_105 = arith.constant 9.99999974E-6 : f32
    %156 = vector.broadcast %cst_105 : f32 to vector<4x1xf32>
    %157 = arith.addf %154, %156 : vector<4x1xf32>
    %158 = math.rsqrt %157 : vector<4x1xf32>
    %159 = arith.mulf %155, %158 : vector<4x1xf32>
    %c0_106 = arith.constant 0 : index
    %c0_107 = arith.constant 0 : index
    %160 = vector.load %arg9[%c0_106, %c0_107] : memref<4x1xf32, #tpu.memory_space<vmem>>, vector<4x1xf32>
    %161 = arith.mulf %145, %159 : vector<4x1xf32>
    %162 = arith.subf %160, %161 : vector<4x1xf32>
    %163 = vector.broadcast %159 : vector<4x1xf32> to vector<4x2432xf32>
    %164 = arith.mulf %139, %163 : vector<4x2432xf32>
    %165 = vector.broadcast %162 : vector<4x1xf32> to vector<4x2432xf32>
    %166 = arith.addf %164, %165 : vector<4x2432xf32>
    %cst_108 = arith.constant 0.000000e+00 : f32
    %167 = vector.broadcast %cst_108 : f32 to vector<4x2432xf32>
    %168 = arith.maximumf %166, %167 : vector<4x2432xf32>
    %c0_109 = arith.constant 0 : index
    %c0_110 = arith.constant 0 : index
    %169 = vector.load %arg11[%c0_109, %c0_110] : memref<4x2432xf32, #tpu.memory_space<vmem>>, vector<4x2432xf32>
    tpu.vector_store %arg11[%c0_109, %c0_110], %168 {strides = array<i32>} : memref<4x2432xf32, #tpu.memory_space<vmem>>, vector<4x2432xf32>,
    return
  }
  func.func @transform_0(%arg0: i32) -> (i32, i32) {
    %c0_i32 = arith.constant 0 : i32
    %c0_i32_0 = arith.constant 0 : i32
    %c0_i32_1 = arith.constant 0 : i32
    return %c0_i32, %c0_i32_0 : i32, i32
  }
  func.func @transform_1(%arg0: i32) -> (i32, i32) {
    %c0_i32 = arith.constant 0 : i32
    %c0_i32_0 = arith.constant 0 : i32
    %c0_i32_1 = arith.constant 0 : i32
    return %c0_i32, %c0_i32_0 : i32, i32
  }
  func.func @transform_2(%arg0: i32) -> (i32, i32) {
    %c0_i32 = arith.constant 0 : i32
    %c0_i32_0 = arith.constant 0 : i32
    %c0_i32_1 = arith.constant 0 : i32
    return %c0_i32, %c0_i32_0 : i32, i32
  }
  func.func @transform_3(%arg0: i32) -> (i32, i32, i32) {
    %c0_i32 = arith.constant 0 : i32
    %c0_i32_0 = arith.constant 0 : i32
    %c0_i32_1 = arith.constant 0 : i32
    %c0_i32_2 = arith.constant 0 : i32
    return %c0_i32, %c0_i32_0, %c0_i32_1 : i32, i32, i32
  }
  func.func @transform_4(%arg0: i32) -> (i32, i32, i32) {
    %c0_i32 = arith.constant 0 : i32
    %c0_i32_0 = arith.constant 0 : i32
    %c0_i32_1 = arith.constant 0 : i32
    %c0_i32_2 = arith.constant 0 : i32
    return %c0_i32, %c0_i32_0, %c0_i32_1 : i32, i32, i32
  }
  func.func @transform_5(%arg0: i32) -> (i32, i32) {
    %c0_i32 = arith.constant 0 : i32
    %c0_i32_0 = arith.constant 0 : i32
    %c0_i32_1 = arith.constant 0 : i32
    return %c0_i32, %c0_i32_0 : i32, i32
  }
  func.func @transform_6(%arg0: i32) -> (i32, i32) {
    %c0_i32 = arith.constant 0 : i32
    %c0_i32_0 = arith.constant 0 : i32
    %c0_i32_1 = arith.constant 0 : i32
    return %c0_i32, %c0_i32_0 : i32, i32
  }
  func.func @transform_7(%arg0: i32) -> (i32, i32) {
    %c0_i32 = arith.constant 0 : i32
    %c0_i32_0 = arith.constant 0 : i32
    %c0_i32_1 = arith.constant 0 : i32
    return %c0_i32, %c0_i32_0 : i32, i32
  }
  func.func @transform_8(%arg0: i32) -> (i32, i32) {
    %c0_i32 = arith.constant 0 : i32
    %c0_i32_0 = arith.constant 0 : i32
    %c0_i32_1 = arith.constant 0 : i32
    return %c0_i32, %c0_i32_0 : i32, i32
  }
  func.func @transform_9(%arg0: i32) -> (i32, i32) {
    %c0_i32 = arith.constant 0 : i32
    %c0_i32_0 = arith.constant 0 : i32
    %c0_i32_1 = arith.constant 0 : i32
    return %c0_i32, %c0_i32_0 : i32, i32
  }
  func.func @transform_10(%arg0: i32) -> (i32, i32) {
    %c0_i32 = arith.constant 0 : i32
    %c0_i32_0 = arith.constant 0 : i32
    %c0_i32_1 = arith.constant 0 : i32
    return %c0_i32, %c0_i32_0 : i32, i32
  }
}

</mosaic_0001>

<bundles_post_ra>
// kernel: tpu_custom_call.1
= control target key start
LH: loop header
LB: loop body
LE: loop exit
PB: predicated region body
PF: predicated region fallthrough
CT: control target
= control target key end

     0   :  { %s16741_s0 = inlined_call_operand.vmem [shape: f32[8,256], index: 0, kind: input, shape index: {}]   ;;  %s16742_s1 = inlined_call_operand.vmem [shape: f32[256,1156], index: 1, kind: input, shape index: {}]   ;;  %s16743_s2 = inlined_call_operand.vmem [shape: f32[4,2560], index: 2, kind: input, shape index: {}]   ;;  %s16744_s3 = inlined_call_operand.vmem [shape: f32[9,4,8], index: 3, kind: input, shape index: {}]   ;;  %s16745_s4 = inlined_call_operand.vmem [shape: f32[9,4,4], index: 4, kind: input, shape index: {}]   ;;  %s16746_s5 = inlined_call_operand.vmem [shape: f32[4,1], index: 5, kind: input, shape index: {}]   ;;  %s16747_s6 = inlined_call_operand.vmem [shape: f32[4,1], index: 6, kind: input, shape index: {}]   ;;  %s16748_s7 = inlined_call_operand.vmem [shape: f32[4,1], index: 7, kind: input, shape index: {}]   ;;  %s16749_s8 = inlined_call_operand.vmem [shape: f32[4,1], index: 8, kind: input, shape index: {}]   ;;  %s16750_s9 = inlined_call_operand.vmem [shape: f32[1,2432], index: 9, kind: input, shape index: {}]   ;;  %s16751_s10 = inlined_call_operand.hbm [shape: f32[4,2432], index: 10, kind: output, shape index: {}]  }
   0x1   :  { %v305_v0 = vld [vmem:[%s16742_s1 + $0x4b0] sm:$0xff]  ;;  %v306_v2 = vld [vmem:[%s16742_s1 + $0x4b8] sm:$0xff]  ;;  %v295_v4 = vld [vmem:[%s16742_s1 + $0x460] sm:$0xff] }
   0x2   :  { %v465_v1 = vld [vmem:[%s16742_s1 + $0x9b0] sm:$0xff]  ;;  %475 = vmatpush.msra.mxu0 %v305_v0  ;;  %v466_v3 = vld [vmem:[%s16742_s1 + $0x9b8] sm:$0xff]  ;;  %v455_v5 = vld [vmem:[%s16742_s1 + $0x960] sm:$0xff]  ;;  %515 = vmatpush.msra.mxu2 %v306_v2 }
   0x3   :  { %495 = vmatpush.msra.mxu1 %v465_v1  ;;  %535 = vmatpush.msra.mxu3 %v466_v3  ;;  %v296_v6 = vld [vmem:[%s16742_s1 + $0x468] sm:$0xff]  ;;  %v285_v8 = vld [vmem:[%s16742_s1 + $0x410] sm:$0xff]  ;;  %v286_v10 = vld [vmem:[%s16742_s1 + $0x418] sm:$0xff] }
   0x4   :  { %v456_v7 = vld [vmem:[%s16742_s1 + $0x968] sm:$0xff]  ;;  %476 = vmatpush.msra.mxu0 %v295_v4  ;;  %v445_v9 = vld [vmem:[%s16742_s1 + $0x910] sm:$0xff]  ;;  %v446_v11 = vld [vmem:[%s16742_s1 + $0x918] sm:$0xff]  ;;  %516 = vmatpush.msra.mxu2 %v296_v6 }
   0x5   :  { %496 = vmatpush.msra.mxu1 %v455_v5  ;;  %536 = vmatpush.msra.mxu3 %v456_v7  ;;  %v275_v12 = vld [vmem:[%s16742_s1 + $0x3c0] sm:$0xff]  ;;  %v276_v14 = vld [vmem:[%s16742_s1 + $0x3c8] sm:$0xff]  ;;  %v265_v16 = vld [vmem:[%s16742_s1 + $0x370] sm:$0xff] }
   0x6   :  { %v435_v13 = vld [vmem:[%s16742_s1 + $0x8c0] sm:$0xff]  ;;  %477 = vmatpush.msra.mxu0 %v285_v8  ;;  %v436_v15 = vld [vmem:[%s16742_s1 + $0x8c8] sm:$0xff]  ;;  %517 = vmatpush.msra.mxu2 %v286_v10  ;;  %v425_v17 = vld [vmem:[%s16742_s1 + $0x870] sm:$0xff] }
   0x7   :  { %497 = vmatpush.msra.mxu1 %v445_v9  ;;  %537 = vmatpush.msra.mxu3 %v446_v11  ;;  %v266_v18 = vld [vmem:[%s16742_s1 + $0x378] sm:$0xff]  ;;  %v255_v20 = vld [vmem:[%s16742_s1 + $0x320] sm:$0xff]  ;;  %v256_v22 = vld [vmem:[%s16742_s1 + $0x328] sm:$0xff] }
   0x8   :  { %478 = vmatpush.msra.mxu0 %v275_v12  ;;  %v426_v19 = vld [vmem:[%s16742_s1 + $0x878] sm:$0xff]  ;;  %518 = vmatpush.msra.mxu2 %v276_v14  ;;  %v415_v21 = vld [vmem:[%s16742_s1 + $0x820] sm:$0xff]  ;;  %v416_v23 = vld [vmem:[%s16742_s1 + $0x828] sm:$0xff] }
   0x9   :  { %498 = vmatpush.msra.mxu1 %v435_v13  ;;  %538 = vmatpush.msra.mxu3 %v436_v15  ;;  %v245_v24 = vld [vmem:[%s16742_s1 + $0x2d0] sm:$0xff]  ;;  %v246_v26 = vld [vmem:[%s16742_s1 + $0x2d8] sm:$0xff]  ;;  %v235_v28 = vld [vmem:[%s16742_s1 + $0x280] sm:$0xff] }
   0xa   :  { %479 = vmatpush.msra.mxu0 %v265_v16  ;;  %519 = vmatpush.msra.mxu2 %v266_v18  ;;  %v405_v25 = vld [vmem:[%s16742_s1 + $0x7d0] sm:$0xff]  ;;  %v406_v27 = vld [vmem:[%s16742_s1 + $0x7d8] sm:$0xff]  ;;  %v395_v29 = vld [vmem:[%s16742_s1 + $0x780] sm:$0xff] }
   0xb   :  { %499 = vmatpush.msra.mxu1 %v425_v17  ;;  %539 = vmatpush.msra.mxu3 %v426_v19  ;;  %v236_v30 = vld [vmem:[%s16742_s1 + $0x288] sm:$0xff]  ;;  %v225_v32 = vld [vmem:[%s16742_s1 + $0x230] sm:$0xff]  ;;  %v226_v34 = vld [vmem:[%s16742_s1 + $0x238] sm:$0xff] }
   0xc   :  { %480 = vmatpush.msra.mxu0 %v255_v20  ;;  %520 = vmatpush.msra.mxu2 %v256_v22  ;;  %v396_v31 = vld [vmem:[%s16742_s1 + $0x788] sm:$0xff]  ;;  %v385_v33 = vld [vmem:[%s16742_s1 + $0x730] sm:$0xff]  ;;  %v386_v35 = vld [vmem:[%s16742_s1 + $0x738] sm:$0xff] }
   0xd   :  { %500 = vmatpush.msra.mxu1 %v415_v21  ;;  %540 = vmatpush.msra.mxu3 %v416_v23  ;;  %v215_v36 = vld [vmem:[%s16742_s1 + $0x1e0] sm:$0xff]  ;;  %v216_v38 = vld [vmem:[%s16742_s1 + $0x1e8] sm:$0xff]  ;;  %v205_v40 = vld [vmem:[%s16742_s1 + $0x190] sm:$0xff] }
   0xe   :  { %481 = vmatpush.msra.mxu0 %v245_v24  ;;  %521 = vmatpush.msra.mxu2 %v246_v26  ;;  %v375_v37 = vld [vmem:[%s16742_s1 + $0x6e0] sm:$0xff]  ;;  %v376_v39 = vld [vmem:[%s16742_s1 + $0x6e8] sm:$0xff]  ;;  %v365_v41 = vld [vmem:[%s16742_s1 + $0x690] sm:$0xff] }
   0xf   :  { %501 = vmatpush.msra.mxu1 %v405_v25  ;;  %541 = vmatpush.msra.mxu3 %v406_v27  ;;  %v206_v42 = vld [vmem:[%s16742_s1 + $0x198] sm:$0xff]  ;;  %v195_v44 = vld [vmem:[%s16742_s1 + $0x140] sm:$0xff]  ;;  %v196_v46 = vld [vmem:[%s16742_s1 + $0x148] sm:$0xff] }
  0x10   :  { %482 = vmatpush.msra.mxu0 %v235_v28  ;;  %522 = vmatpush.msra.mxu2 %v236_v30  ;;  %v366_v43 = vld [vmem:[%s16742_s1 + $0x698] sm:$0xff]  ;;  %v355_v45 = vld [vmem:[%s16742_s1 + $0x640] sm:$0xff]  ;;  %v356_v47 = vld [vmem:[%s16742_s1 + $0x648] sm:$0xff] }
  0x11   :  { %502 = vmatpush.msra.mxu1 %v395_v29  ;;  %542 = vmatpush.msra.mxu3 %v396_v31  ;;  %v185_v48 = vld [vmem:[%s16742_s1 + $0xf0] sm:$0xff]  ;;  %v186_v50 = vld [vmem:[%s16742_s1 + $0xf8] sm:$0xff]  ;;  %v175_v52 = vld [vmem:[%s16742_s1 + $0xa0] sm:$0xff] }
  0x12   :  { %483 = vmatpush.msra.mxu0 %v225_v32  ;;  %523 = vmatpush.msra.mxu2 %v226_v34  ;;  %v345_v49 = vld [vmem:[%s16742_s1 + $0x5f0] sm:$0xff]  ;;  %v346_v51 = vld [vmem:[%s16742_s1 + $0x5f8] sm:$0xff]  ;;  %v335_v53 = vld [vmem:[%s16742_s1 + $0x5a0] sm:$0xff] }
  0x13   :  { %503 = vmatpush.msra.mxu1 %v385_v33  ;;  %543 = vmatpush.msra.mxu3 %v386_v35  ;;  %v176_v54 = vld [vmem:[%s16742_s1 + $0xa8] sm:$0xff]  ;;  %v165_v56 = vld [vmem:[%s16742_s1 + $0x50] sm:$0xff]  ;;  %v166_v58 = vld [vmem:[%s16742_s1 + $0x58] sm:$0xff] }
  0x14   :  { %484 = vmatpush.msra.mxu0 %v215_v36  ;;  %524 = vmatpush.msra.mxu2 %v216_v38  ;;  %v336_v55 = vld [vmem:[%s16742_s1 + $0x5a8] sm:$0xff]  ;;  %v325_v57 = vld [vmem:[%s16742_s1 + $0x550] sm:$0xff]  ;;  %v326_v59 = vld [vmem:[%s16742_s1 + $0x558] sm:$0xff] }
  0x15   :  { %504 = vmatpush.msra.mxu1 %v375_v37  ;;  %544 = vmatpush.msra.mxu3 %v376_v39  ;;  %v155_v60 = vld [vmem:[%s16742_s1] sm:$0xff]  ;;  %v156_v62 = vld [vmem:[%s16742_s1 + $0x8] sm:$0xff]  ;;  %v297_v4 = vld [vmem:[%s16742_s1 + $0x470] sm:$0xff] }
  0x16   :  { %485 = vmatpush.msra.mxu0 %v205_v40  ;;  %525 = vmatpush.msra.mxu2 %v206_v42  ;;  %v315_v61 = vld [vmem:[%s16742_s1 + $0x500] sm:$0xff]  ;;  %v316_v63 = vld [vmem:[%s16742_s1 + $0x508] sm:$0xff]  ;;  %v457_v5 = vld [vmem:[%s16742_s1 + $0x970] sm:$0xff] }
  0x17   :  { %505 = vmatpush.msra.mxu1 %v365_v41  ;;  %545 = vmatpush.msra.mxu3 %v366_v43  ;;  %v307_v0 = vld [vmem:[%s16742_s1 + $0x4c0] sm:$0xff]  ;;  %v308_v2 = vld [vmem:[%s16742_s1 + $0x4c8] sm:$0xff]  ;;  %v298_v6 = vld [vmem:[%s16742_s1 + $0x478] sm:$0xff] }
  0x18   :  { %486 = vmatpush.msra.mxu0 %v195_v44  ;;  %526 = vmatpush.msra.mxu2 %v196_v46  ;;  %v467_v1 = vld [vmem:[%s16742_s1 + $0x9c0] sm:$0xff]  ;;  %v468_v3 = vld [vmem:[%s16742_s1 + $0x9c8] sm:$0xff]  ;;  %v458_v7 = vld [vmem:[%s16742_s1 + $0x978] sm:$0xff] }
  0x19   :  { %506 = vmatpush.msra.mxu1 %v355_v45  ;;  %546 = vmatpush.msra.mxu3 %v356_v47  ;;  %v287_v8 = vld [vmem:[%s16742_s1 + $0x420] sm:$0xff]  ;;  %v288_v10 = vld [vmem:[%s16742_s1 + $0x428] sm:$0xff]  ;;  %v277_v14 = vld [vmem:[%s16742_s1 + $0x3d0] sm:$0xff] }
  0x1a   :  { %487 = vmatpush.msra.mxu0 %v185_v48  ;;  %527 = vmatpush.msra.mxu2 %v186_v50  ;;  %v447_v9 = vld [vmem:[%s16742_s1 + $0x920] sm:$0xff]  ;;  %v448_v11 = vld [vmem:[%s16742_s1 + $0x928] sm:$0xff]  ;;  %v437_v15 = vld [vmem:[%s16742_s1 + $0x8d0] sm:$0xff] }
  0x1b   :  { %507 = vmatpush.msra.mxu1 %v345_v49  ;;  %547 = vmatpush.msra.mxu3 %v346_v51  ;;  %v11964_v12 = vld [vmem:[%s16741_s0] sm:$0xff]  ;;  %v11969_v13 = vld [vmem:[%s16741_s0 + $0x8] sm:$0xff]  ;;  %v278_v16 = vld [vmem:[%s16742_s1 + $0x3d8] sm:$0xff] }
  0x1c   :  { %488 = vmatpush.msra.mxu0 %v175_v52  ;;  %528 = vmatpush.msra.mxu2 %v176_v54  ;;  %v438_v17 = vld [vmem:[%s16742_s1 + $0x8d8] sm:$0xff]  ;;  %v267_v18 = vld [vmem:[%s16742_s1 + $0x380] sm:$0xff]  ;;  %v268_v20 = vld [vmem:[%s16742_s1 + $0x388] sm:$0xff] }
  0x1d   :  { %508 = vmatpush.msra.mxu1 %v335_v53  ;;  %548 = vmatpush.msra.mxu3 %v336_v55  ;;  %v427_v19 = vld [vmem:[%s16742_s1 + $0x880] sm:$0xff]  ;;  %v428_v21 = vld [vmem:[%s16742_s1 + $0x888] sm:$0xff]  ;;  %v257_v22 = vld [vmem:[%s16742_s1 + $0x330] sm:$0xff] }
  0x1e   :  { %489 = vmatpush.msra.mxu0 %v165_v56  ;;  %529 = vmatpush.msra.mxu2 %v166_v58  ;;  %v417_v23 = vld [vmem:[%s16742_s1 + $0x830] sm:$0xff]  ;;  %v258_v24 = vld [vmem:[%s16742_s1 + $0x338] sm:$0xff]  ;;  %v247_v26 = vld [vmem:[%s16742_s1 + $0x2e0] sm:$0xff] }
  0x1f   :  { %509 = vmatpush.msra.mxu1 %v325_v57  ;;  %549 = vmatpush.msra.mxu3 %v326_v59  ;;  %v418_v25 = vld [vmem:[%s16742_s1 + $0x838] sm:$0xff]  ;;  %v407_v27 = vld [vmem:[%s16742_s1 + $0x7e0] sm:$0xff]  ;;  %v248_v28 = vld [vmem:[%s16742_s1 + $0x2e8] sm:$0xff] }
  0x20   :  { %490 = vmatpush.msra.mxu0 %v155_v60  ;;  %530 = vmatpush.msra.mxu2 %v156_v62  ;;  %v408_v29 = vld [vmem:[%s16742_s1 + $0x7e8] sm:$0xff]  ;;  %v237_v30 = vld [vmem:[%s16742_s1 + $0x290] sm:$0xff]  ;;  %v238_v32 = vld [vmem:[%s16742_s1 + $0x298] sm:$0xff] }
  0x21   :  { %510 = vmatpush.msra.mxu1 %v315_v61  ;;  %550 = vmatpush.msra.mxu3 %v316_v63  ;;  %v397_v31 = vld [vmem:[%s16742_s1 + $0x790] sm:$0xff]  ;;  %v398_v33 = vld [vmem:[%s16742_s1 + $0x798] sm:$0xff]  ;;  %v227_v34 = vld [vmem:[%s16742_s1 + $0x240] sm:$0xff] }
  0x22   :  { %555 = vmatpush.msrb.mxu0 %v307_v0  ;;  %595 = vmatpush.msrb.mxu2 %v308_v2  ;;  %v387_v35 = vld [vmem:[%s16742_s1 + $0x740] sm:$0xff]  ;;  %v228_v36 = vld [vmem:[%s16742_s1 + $0x248] sm:$0xff]  ;;  %v217_v38 = vld [vmem:[%s16742_s1 + $0x1f0] sm:$0xff] }
  0x23   :  { %575 = vmatpush.msrb.mxu1 %v467_v1  ;;  %615 = vmatpush.msrb.mxu3 %v468_v3  ;;  %v388_v37 = vld [vmem:[%s16742_s1 + $0x748] sm:$0xff]  ;;  %v377_v39 = vld [vmem:[%s16742_s1 + $0x6f0] sm:$0xff]  ;;  %v218_v40 = vld [vmem:[%s16742_s1 + $0x1f8] sm:$0xff] }
  0x24   :  { %556 = vmatpush.msrb.mxu0 %v297_v4  ;;  %596 = vmatpush.msrb.mxu2 %v298_v6  ;;  %v378_v41 = vld [vmem:[%s16742_s1 + $0x6f8] sm:$0xff]  ;;  %v207_v42 = vld [vmem:[%s16742_s1 + $0x1a0] sm:$0xff]  ;;  %v208_v44 = vld [vmem:[%s16742_s1 + $0x1a8] sm:$0xff] }
  0x25   :  { %576 = vmatpush.msrb.mxu1 %v457_v5  ;;  %616 = vmatpush.msrb.mxu3 %v458_v7  ;;  %v367_v43 = vld [vmem:[%s16742_s1 + $0x6a0] sm:$0xff]  ;;  %v368_v45 = vld [vmem:[%s16742_s1 + $0x6a8] sm:$0xff]  ;;  %v197_v46 = vld [vmem:[%s16742_s1 + $0x150] sm:$0xff] }
  0x26   :  { %557 = vmatpush.msrb.mxu0 %v287_v8  ;;  %597 = vmatpush.msrb.mxu2 %v288_v10  ;;  %v357_v47 = vld [vmem:[%s16742_s1 + $0x650] sm:$0xff]  ;;  %v198_v48 = vld [vmem:[%s16742_s1 + $0x158] sm:$0xff]  ;;  %v187_v50 = vld [vmem:[%s16742_s1 + $0x100] sm:$0xff] }
  0x27   :  { %577 = vmatpush.msrb.mxu1 %v447_v9  ;;  %617 = vmatpush.msrb.mxu3 %v448_v11  ;;  %v358_v49 = vld [vmem:[%s16742_s1 + $0x658] sm:$0xff]  ;;  %v347_v51 = vld [vmem:[%s16742_s1 + $0x600] sm:$0xff]  ;;  %v188_v52 = vld [vmem:[%s16742_s1 + $0x108] sm:$0xff] }
  0x28   :  { %491 = vmatmul.f32.vlgmr.msra.gmra.mxu0 %v11964_v12  ;;  %511 = vmatmul.f32.vlgmr.msra.gmra.mxu1 %v11969_v13  ;;  %v348_v53 = vld [vmem:[%s16742_s1 + $0x608] sm:$0xff]  ;;  %v177_v54 = vld [vmem:[%s16742_s1 + $0xb0] sm:$0xff] }
  0x29   :  { %558 = vmatpush.msrb.mxu0 %v277_v14  ;;  %578 = vmatpush.msrb.mxu1 %v437_v15  ;;  %v337_v55 = vld [vmem:[%s16742_s1 + $0x5b0] sm:$0xff] }
  0x2a   :  { %598 = vmatpush.msrb.mxu2 %v278_v16  ;;  %618 = vmatpush.msrb.mxu3 %v438_v17 }
  0x2b   :  { %531 = vmatmul.f32.vlgmr.msra.gmra.mxu2 %v11964_v12  ;;  %551 = vmatmul.f32.vlgmr.msra.gmra.mxu3 %v11969_v13 }
  0x2c   :  { %559 = vmatpush.msrb.mxu0 %v267_v18  ;;  %579 = vmatpush.msrb.mxu1 %v427_v19 }
  0x2d   :  { %599 = vmatpush.msrb.mxu2 %v268_v20  ;;  %619 = vmatpush.msrb.mxu3 %v428_v21 }
  0x2e   :  { %560 = vmatpush.msrb.mxu0 %v257_v22  ;;  %580 = vmatpush.msrb.mxu1 %v417_v23 }
  0x2f   :  { %600 = vmatpush.msrb.mxu2 %v258_v24  ;;  %620 = vmatpush.msrb.mxu3 %v418_v25 }
  0x30   :  { %561 = vmatpush.msrb.mxu0 %v247_v26  ;;  %581 = vmatpush.msrb.mxu1 %v407_v27 }
  0x31   :  { %601 = vmatpush.msrb.mxu2 %v248_v28  ;;  %621 = vmatpush.msrb.mxu3 %v408_v29 }
  0x32   :  { %562 = vmatpush.msrb.mxu0 %v237_v30  ;;  %582 = vmatpush.msrb.mxu1 %v397_v31 }
  0x33   :  { %602 = vmatpush.msrb.mxu2 %v238_v32  ;;  %622 = vmatpush.msrb.mxu3 %v398_v33 }
  0x34   :  { %563 = vmatpush.msrb.mxu0 %v227_v34  ;;  %583 = vmatpush.msrb.mxu1 %v387_v35 }
  0x35   :  { %603 = vmatpush.msrb.mxu2 %v228_v36  ;;  %623 = vmatpush.msrb.mxu3 %v388_v37 }
  0x36   :  { %564 = vmatpush.msrb.mxu0 %v217_v38  ;;  %584 = vmatpush.msrb.mxu1 %v377_v39 }
  0x37   :  { %604 = vmatpush.msrb.mxu2 %v218_v40  ;;  %624 = vmatpush.msrb.mxu3 %v378_v41 }
  0x38   :  { %565 = vmatpush.msrb.mxu0 %v207_v42  ;;  %585 = vmatpush.msrb.mxu1 %v367_v43 }
  0x39   :  { %605 = vmatpush.msrb.mxu2 %v208_v44  ;;  %625 = vmatpush.msrb.mxu3 %v368_v45 }
  0x3a   :  { %566 = vmatpush.msrb.mxu0 %v197_v46  ;;  %586 = vmatpush.msrb.mxu1 %v357_v47 }
  0x3b   :  { %606 = vmatpush.msrb.mxu2 %v198_v48  ;;  %626 = vmatpush.msrb.mxu3 %v358_v49 }
  0x3c   :  { %15 = vsyncpa [#allocation5], 0  ;;  %567 = vmatpush.msrb.mxu0 %v187_v50  ;;  %587 = vmatpush.msrb.mxu1 %v347_v51  ;;  %v178_v56 = vld [vmem:[%s16742_s1 + $0xb8] sm:$0xff]  ;;  %v167_v58 = vld [vmem:[%s16742_s1 + $0x60] sm:$0xff]  ;;  %s11667_s14 = smov 127   ;;  %vm926_vm0 = vcmask 31744  }
  0x3d   :  { %v338_v57 = vld [vmem:[%s16742_s1 + $0x5b8] sm:$0xff]  ;;  %607 = vmatpush.msrb.mxu2 %v188_v52  ;;  %627 = vmatpush.msrb.mxu3 %v348_v53  ;;  %v327_v59 = vld [vmem:[%s16742_s1 + $0x560] sm:$0xff]  ;;  %v168_v60 = vld [vmem:[%s16742_s1 + $0x68] sm:$0xff]  ;;  %vm884_vm1 = vcmask 27648   ;;  %vm946_vm2 = vcmask 1043488   ;;  %vm1041_vm3 = vcmask 1039360  }
  0x3e   :  { %568 = vmatpush.msrb.mxu0 %v177_v54  ;;  %588 = vmatpush.msrb.mxu1 %v337_v55  ;;  %v328_v61 = vld [vmem:[%s16742_s1 + $0x568] sm:$0xff]  ;;  %v157_v62 = vld [vmem:[%s16742_s1 + $0x10] sm:$0xff]  ;;  %v158_v0 = vld [vmem:[%s16742_s1 + $0x18] sm:$0xff]  ;;  %vm956_vm4 = vcmask 60416   ;;  %vm1080_vm5 = vcmask 64512   ;;  %s11669_s23 = smov 94  }
  0x3f   :  { %608 = vmatpush.msrb.mxu2 %v178_v56  ;;  %628 = vmatpush.msrb.mxu3 %v338_v57  ;;  %v317_v63 = vld [vmem:[%s16742_s1 + $0x510] sm:$0xff]  ;;  %v318_v1 = vld [vmem:[%s16742_s1 + $0x518] sm:$0xff]  ;;  %v299_v6 = vld [vmem:[%s16742_s1 + $0x480] sm:$0xff]  ;;  %s11670_s24 = smov 93   ;;  %s11673_s25 = smov 59   ;;  %vm1889_vm6 = vcmask 1031168  }
  0x40   :  { %569 = vmatpush.msrb.mxu0 %v167_v58  ;;  %589 = vmatpush.msrb.mxu1 %v327_v59  ;;  %v309_v2 = vld [vmem:[%s16742_s1 + $0x4d0] sm:$0xff]  ;;  %v310_v4 = vld [vmem:[%s16742_s1 + $0x4d8] sm:$0xff]  ;;  %v459_v7 = vld [vmem:[%s16742_s1 + $0x980] sm:$0xff]  ;;  %s11674_s28 = smov 58   ;;  %vm2372_vm7 = vcmask 769024   ;;  %vm2855_vm8 = vcmask 760832  }
  0x41   :  { %609 = vmatpush.msrb.mxu2 %v168_v60  ;;  %629 = vmatpush.msrb.mxu3 %v328_v61  ;;  %v469_v3 = vld [vmem:[%s16742_s1 + $0x9d0] sm:$0xff]  ;;  %v470_v5 = vld [vmem:[%s16742_s1 + $0x9d8] sm:$0xff]  ;;  %v300_v8 = vld [vmem:[%s16742_s1 + $0x488] sm:$0xff]  ;;  %vm3338_vm9 = vcmask 752640   ;;  %vm3821_vm10 = vcmask 490496   ;;  %vm4304_vm11 = vcmask 482304  }
  0x42   :  { %570 = vmatpush.msrb.mxu0 %v157_v62  ;;  %590 = vmatpush.msrb.mxu1 %v317_v63  ;;  %v460_v9 = vld [vmem:[%s16742_s1 + $0x988] sm:$0xff]  ;;  %v289_v10 = vld [vmem:[%s16742_s1 + $0x430] sm:$0xff]  ;;  %v290_v14 = vld [vmem:[%s16742_s1 + $0x438] sm:$0xff]  ;;  %vm4787_vm12 = vcmask 474112   ;;  %vm5288_vm13 = vcmask 1043456   ;;  %s10678_s13 = sshll.u32 %s16751_s10, 4  ;;  %s10679_s13 = int_to_ptr.hbm [resolvable:$true] %s10678_s13 }
  0x43   :  { %610 = vmatpush.msrb.mxu2 %v158_v0  ;;  %630 = vmatpush.msrb.mxu3 %v318_v1  ;;  %v449_v11 = vld [vmem:[%s16742_s1 + $0x930] sm:$0xff]  ;;  %v450_v15 = vld [vmem:[%s16742_s1 + $0x938] sm:$0xff]  ;;  %v279_v16 = vld [vmem:[%s16742_s1 + $0x3e0] sm:$0xff] }
  0x44   :  { %571 = vmatmul.f32.vlgmr.msrb.gmra.mxu0 %v11964_v12  ;;  %591 = vmatmul.f32.vlgmr.msrb.gmra.mxu1 %v11969_v13  ;;  %v439_v17 = vld [vmem:[%s16742_s1 + $0x8e0] sm:$0xff]  ;;  %v280_v18 = vld [vmem:[%s16742_s1 + $0x3e8] sm:$0xff]  ;;  %v269_v20 = vld [vmem:[%s16742_s1 + $0x390] sm:$0xff] }
  0x45   :  { %635 = vmatpush.msra.mxu0 %v309_v2  ;;  %655 = vmatpush.msra.mxu1 %v469_v3  ;;  %v440_v19 = vld [vmem:[%s16742_s1 + $0x8e8] sm:$0xff]  ;;  %v429_v21 = vld [vmem:[%s16742_s1 + $0x890] sm:$0xff]  ;;  %v270_v22 = vld [vmem:[%s16742_s1 + $0x398] sm:$0xff] }
  0x46   :  { %675 = vmatpush.msra.mxu2 %v310_v4  ;;  %695 = vmatpush.msra.mxu3 %v470_v5  ;;  %v430_v23 = vld [vmem:[%s16742_s1 + $0x898] sm:$0xff]  ;;  %v259_v24 = vld [vmem:[%s16742_s1 + $0x340] sm:$0xff]  ;;  %v260_v26 = vld [vmem:[%s16742_s1 + $0x348] sm:$0xff] }
  0x47   :  { %611 = vmatmul.f32.vlgmr.msrb.gmra.mxu2 %v11964_v12  ;;  %631 = vmatmul.f32.vlgmr.msrb.gmra.mxu3 %v11969_v13  ;;  %v419_v25 = vld [vmem:[%s16742_s1 + $0x840] sm:$0xff]  ;;  %v420_v27 = vld [vmem:[%s16742_s1 + $0x848] sm:$0xff]  ;;  %v249_v28 = vld [vmem:[%s16742_s1 + $0x2f0] sm:$0xff] }
  0x48   :  { %636 = vmatpush.msra.mxu0 %v299_v6  ;;  %656 = vmatpush.msra.mxu1 %v459_v7  ;;  %v409_v29 = vld [vmem:[%s16742_s1 + $0x7f0] sm:$0xff]  ;;  %v250_v30 = vld [vmem:[%s16742_s1 + $0x2f8] sm:$0xff]  ;;  %v239_v32 = vld [vmem:[%s16742_s1 + $0x2a0] sm:$0xff] }
  0x49   :  { %676 = vmatpush.msra.mxu2 %v300_v8  ;;  %696 = vmatpush.msra.mxu3 %v460_v9  ;;  %v410_v31 = vld [vmem:[%s16742_s1 + $0x7f8] sm:$0xff]  ;;  %v399_v33 = vld [vmem:[%s16742_s1 + $0x7a0] sm:$0xff]  ;;  %v240_v34 = vld [vmem:[%s16742_s1 + $0x2a8] sm:$0xff] }
  0x4a   :  { %637 = vmatpush.msra.mxu0 %v289_v10  ;;  %657 = vmatpush.msra.mxu1 %v449_v11  ;;  %v400_v35 = vld [vmem:[%s16742_s1 + $0x7a8] sm:$0xff]  ;;  %v229_v36 = vld [vmem:[%s16742_s1 + $0x250] sm:$0xff]  ;;  %v230_v38 = vld [vmem:[%s16742_s1 + $0x258] sm:$0xff] }
  0x4b   :  { %677 = vmatpush.msra.mxu2 %v290_v14  ;;  %697 = vmatpush.msra.mxu3 %v450_v15  ;;  %v389_v37 = vld [vmem:[%s16742_s1 + $0x750] sm:$0xff]  ;;  %v390_v39 = vld [vmem:[%s16742_s1 + $0x758] sm:$0xff]  ;;  %v219_v40 = vld [vmem:[%s16742_s1 + $0x200] sm:$0xff] }
  0x4c   :  { %638 = vmatpush.msra.mxu0 %v279_v16  ;;  %658 = vmatpush.msra.mxu1 %v439_v17  ;;  %v379_v41 = vld [vmem:[%s16742_s1 + $0x700] sm:$0xff]  ;;  %v220_v42 = vld [vmem:[%s16742_s1 + $0x208] sm:$0xff]  ;;  %v209_v44 = vld [vmem:[%s16742_s1 + $0x1b0] sm:$0xff] }
  0x4d   :  { %678 = vmatpush.msra.mxu2 %v280_v18  ;;  %698 = vmatpush.msra.mxu3 %v440_v19  ;;  %v380_v43 = vld [vmem:[%s16742_s1 + $0x708] sm:$0xff]  ;;  %v369_v45 = vld [vmem:[%s16742_s1 + $0x6b0] sm:$0xff]  ;;  %v210_v46 = vld [vmem:[%s16742_s1 + $0x1b8] sm:$0xff] }
  0x4e   :  { %639 = vmatpush.msra.mxu0 %v269_v20  ;;  %659 = vmatpush.msra.mxu1 %v429_v21  ;;  %v370_v47 = vld [vmem:[%s16742_s1 + $0x6b8] sm:$0xff]  ;;  %v199_v48 = vld [vmem:[%s16742_s1 + $0x160] sm:$0xff]  ;;  %v200_v50 = vld [vmem:[%s16742_s1 + $0x168] sm:$0xff] }
  0x4f   :  { %679 = vmatpush.msra.mxu2 %v270_v22  ;;  %699 = vmatpush.msra.mxu3 %v430_v23  ;;  %v359_v49 = vld [vmem:[%s16742_s1 + $0x660] sm:$0xff]  ;;  %v360_v51 = vld [vmem:[%s16742_s1 + $0x668] sm:$0xff]  ;;  %v189_v52 = vld [vmem:[%s16742_s1 + $0x110] sm:$0xff] }
  0x50   :  { %640 = vmatpush.msra.mxu0 %v259_v24  ;;  %660 = vmatpush.msra.mxu1 %v419_v25  ;;  %v349_v53 = vld [vmem:[%s16742_s1 + $0x610] sm:$0xff]  ;;  %v190_v54 = vld [vmem:[%s16742_s1 + $0x118] sm:$0xff]  ;;  %v179_v56 = vld [vmem:[%s16742_s1 + $0xc0] sm:$0xff] }
  0x51   :  { %680 = vmatpush.msra.mxu2 %v260_v26  ;;  %700 = vmatpush.msra.mxu3 %v420_v27  ;;  %v350_v55 = vld [vmem:[%s16742_s1 + $0x618] sm:$0xff]  ;;  %v339_v57 = vld [vmem:[%s16742_s1 + $0x5c0] sm:$0xff]  ;;  %v180_v58 = vld [vmem:[%s16742_s1 + $0xc8] sm:$0xff] }
  0x52   :  { %641 = vmatpush.msra.mxu0 %v249_v28  ;;  %661 = vmatpush.msra.mxu1 %v409_v29  ;;  %v340_v59 = vld [vmem:[%s16742_s1 + $0x5c8] sm:$0xff]  ;;  %v169_v60 = vld [vmem:[%s16742_s1 + $0x70] sm:$0xff]  ;;  %v170_v62 = vld [vmem:[%s16742_s1 + $0x78] sm:$0xff] }
  0x53   :  { %681 = vmatpush.msra.mxu2 %v250_v30  ;;  %701 = vmatpush.msra.mxu3 %v410_v31  ;;  %v329_v61 = vld [vmem:[%s16742_s1 + $0x570] sm:$0xff]  ;;  %v330_v63 = vld [vmem:[%s16742_s1 + $0x578] sm:$0xff]  ;;  %v159_v0 = vld [vmem:[%s16742_s1 + $0x20] sm:$0xff] }
  0x54   :  { %642 = vmatpush.msra.mxu0 %v239_v32  ;;  %662 = vmatpush.msra.mxu1 %v399_v33  ;;  %v319_v1 = vld [vmem:[%s16742_s1 + $0x520] sm:$0xff]  ;;  %v160_v2 = vld [vmem:[%s16742_s1 + $0x28] sm:$0xff]  ;;  %v301_v8 = vld [vmem:[%s16742_s1 + $0x490] sm:$0xff] }
  0x55   :  { %682 = vmatpush.msra.mxu2 %v240_v34  ;;  %702 = vmatpush.msra.mxu3 %v400_v35  ;;  %v320_v3 = vld [vmem:[%s16742_s1 + $0x528] sm:$0xff]  ;;  %v311_v4 = vld [vmem:[%s16742_s1 + $0x4e0] sm:$0xff]  ;;  %v461_v9 = vld [vmem:[%s16742_s1 + $0x990] sm:$0xff] }
  0x56   :  { %643 = vmatpush.msra.mxu0 %v229_v36  ;;  %663 = vmatpush.msra.mxu1 %v389_v37  ;;  %v471_v5 = vld [vmem:[%s16742_s1 + $0x9e0] sm:$0xff]  ;;  %v312_v6 = vld [vmem:[%s16742_s1 + $0x4e8] sm:$0xff]  ;;  %v302_v10 = vld [vmem:[%s16742_s1 + $0x498] sm:$0xff] }
  0x57   :  { %683 = vmatpush.msra.mxu2 %v230_v38  ;;  %703 = vmatpush.msra.mxu3 %v390_v39  ;;  %v472_v7 = vld [vmem:[%s16742_s1 + $0x9e8] sm:$0xff]  ;;  %v462_v11 = vld [vmem:[%s16742_s1 + $0x998] sm:$0xff]  ;;  %v291_v14 = vld [vmem:[%s16742_s1 + $0x440] sm:$0xff] }
  0x58   :  { %644 = vmatpush.msra.mxu0 %v219_v40  ;;  %664 = vmatpush.msra.mxu1 %v379_v41  ;;  %v451_v15 = vld [vmem:[%s16742_s1 + $0x940] sm:$0xff]  ;;  %v292_v16 = vld [vmem:[%s16742_s1 + $0x448] sm:$0xff]  ;;  %v281_v18 = vld [vmem:[%s16742_s1 + $0x3f0] sm:$0xff] }
  0x59   :  { %684 = vmatpush.msra.mxu2 %v220_v42  ;;  %704 = vmatpush.msra.mxu3 %v380_v43  ;;  %v452_v17 = vld [vmem:[%s16742_s1 + $0x948] sm:$0xff]  ;;  %v441_v19 = vld [vmem:[%s16742_s1 + $0x8f0] sm:$0xff]  ;;  %v282_v20 = vld [vmem:[%s16742_s1 + $0x3f8] sm:$0xff] }
  0x5a   :  { %645 = vmatpush.msra.mxu0 %v209_v44  ;;  %665 = vmatpush.msra.mxu1 %v369_v45  ;;  %v442_v21 = vld [vmem:[%s16742_s1 + $0x8f8] sm:$0xff]  ;;  %v271_v22 = vld [vmem:[%s16742_s1 + $0x3a0] sm:$0xff]  ;;  %v272_v24 = vld [vmem:[%s16742_s1 + $0x3a8] sm:$0xff] }
  0x5b   :  { %685 = vmatpush.msra.mxu2 %v210_v46  ;;  %705 = vmatpush.msra.mxu3 %v370_v47  ;;  %v431_v23 = vld [vmem:[%s16742_s1 + $0x8a0] sm:$0xff]  ;;  %v432_v25 = vld [vmem:[%s16742_s1 + $0x8a8] sm:$0xff]  ;;  %v261_v26 = vld [vmem:[%s16742_s1 + $0x350] sm:$0xff] }
  0x5c   :  { %646 = vmatpush.msra.mxu0 %v199_v48  ;;  %666 = vmatpush.msra.mxu1 %v359_v49  ;;  %v421_v27 = vld [vmem:[%s16742_s1 + $0x850] sm:$0xff]  ;;  %v262_v28 = vld [vmem:[%s16742_s1 + $0x358] sm:$0xff]  ;;  %v251_v30 = vld [vmem:[%s16742_s1 + $0x300] sm:$0xff] }
  0x5d   :  { %686 = vmatpush.msra.mxu2 %v200_v50  ;;  %706 = vmatpush.msra.mxu3 %v360_v51  ;;  %v422_v29 = vld [vmem:[%s16742_s1 + $0x858] sm:$0xff]  ;;  %v411_v31 = vld [vmem:[%s16742_s1 + $0x800] sm:$0xff]  ;;  %v252_v32 = vld [vmem:[%s16742_s1 + $0x308] sm:$0xff] }
  0x5e   :  { %647 = vmatpush.msra.mxu0 %v189_v52  ;;  %667 = vmatpush.msra.mxu1 %v349_v53  ;;  %v412_v33 = vld [vmem:[%s16742_s1 + $0x808] sm:$0xff]  ;;  %v241_v34 = vld [vmem:[%s16742_s1 + $0x2b0] sm:$0xff]  ;;  %v242_v36 = vld [vmem:[%s16742_s1 + $0x2b8] sm:$0xff] }
  0x5f   :  { %687 = vmatpush.msra.mxu2 %v190_v54  ;;  %707 = vmatpush.msra.mxu3 %v350_v55  ;;  %v401_v35 = vld [vmem:[%s16742_s1 + $0x7b0] sm:$0xff]  ;;  %v402_v37 = vld [vmem:[%s16742_s1 + $0x7b8] sm:$0xff]  ;;  %v231_v38 = vld [vmem:[%s16742_s1 + $0x260] sm:$0xff] }
  0x60   :  { %648 = vmatpush.msra.mxu0 %v179_v56  ;;  %668 = vmatpush.msra.mxu1 %v339_v57  ;;  %v391_v39 = vld [vmem:[%s16742_s1 + $0x760] sm:$0xff]  ;;  %v232_v40 = vld [vmem:[%s16742_s1 + $0x268] sm:$0xff]  ;;  %v221_v42 = vld [vmem:[%s16742_s1 + $0x210] sm:$0xff] }
  0x61   :  { %688 = vmatpush.msra.mxu2 %v180_v58  ;;  %708 = vmatpush.msra.mxu3 %v340_v59  ;;  %v392_v41 = vld [vmem:[%s16742_s1 + $0x768] sm:$0xff]  ;;  %v381_v43 = vld [vmem:[%s16742_s1 + $0x710] sm:$0xff]  ;;  %v222_v44 = vld [vmem:[%s16742_s1 + $0x218] sm:$0xff] }
  0x62   :  { %649 = vmatpush.msra.mxu0 %v169_v60  ;;  %669 = vmatpush.msra.mxu1 %v329_v61  ;;  %v382_v45 = vld [vmem:[%s16742_s1 + $0x718] sm:$0xff]  ;;  %v211_v46 = vld [vmem:[%s16742_s1 + $0x1c0] sm:$0xff]  ;;  %v212_v48 = vld [vmem:[%s16742_s1 + $0x1c8] sm:$0xff] }
  0x63   :  { %689 = vmatpush.msra.mxu2 %v170_v62  ;;  %709 = vmatpush.msra.mxu3 %v330_v63  ;;  %v371_v47 = vld [vmem:[%s16742_s1 + $0x6c0] sm:$0xff]  ;;  %v372_v49 = vld [vmem:[%s16742_s1 + $0x6c8] sm:$0xff]  ;;  %v201_v50 = vld [vmem:[%s16742_s1 + $0x170] sm:$0xff] }
  0x64   :  { %650 = vmatpush.msra.mxu0 %v159_v0  ;;  %670 = vmatpush.msra.mxu1 %v319_v1  ;;  %v361_v51 = vld [vmem:[%s16742_s1 + $0x670] sm:$0xff]  ;;  %v202_v52 = vld [vmem:[%s16742_s1 + $0x178] sm:$0xff]  ;;  %v191_v54 = vld [vmem:[%s16742_s1 + $0x120] sm:$0xff] }
  0x65   :  { %690 = vmatpush.msra.mxu2 %v160_v2  ;;  %710 = vmatpush.msra.mxu3 %v320_v3  ;;  %v362_v53 = vld [vmem:[%s16742_s1 + $0x678] sm:$0xff]  ;;  %v351_v55 = vld [vmem:[%s16742_s1 + $0x620] sm:$0xff]  ;;  %v192_v56 = vld [vmem:[%s16742_s1 + $0x128] sm:$0xff] }
  0x66   :  { %651 = vmatmul.f32.vlgmr.msra.gmra.mxu0 %v11964_v12  ;;  %671 = vmatmul.f32.vlgmr.msra.gmra.mxu1 %v11969_v13  ;;  %v352_v57 = vld [vmem:[%s16742_s1 + $0x628] sm:$0xff]  ;;  %v181_v58 = vld [vmem:[%s16742_s1 + $0xd0] sm:$0xff]  ;;  %v182_v60 = vld [vmem:[%s16742_s1 + $0xd8] sm:$0xff] }
  0x67   :  { %691 = vmatmul.f32.vlgmr.msra.gmra.mxu2 %v11964_v12  ;;  %711 = vmatmul.f32.vlgmr.msra.gmra.mxu3 %v11969_v13  ;;  %v341_v59 = vld [vmem:[%s16742_s1 + $0x5d0] sm:$0xff]  ;;  %v342_v61 = vld [vmem:[%s16742_s1 + $0x5d8] sm:$0xff]  ;;  %v171_v62 = vld [vmem:[%s16742_s1 + $0x80] sm:$0xff] }
  0x68   :  { %715 = vmatpush.msrb.mxu0 %v311_v4  ;;  %735 = vmatpush.msrb.mxu1 %v471_v5  ;;  %v331_v63 = vld [vmem:[%s16742_s1 + $0x580] sm:$0xff]  ;;  %v172_v0 = vld [vmem:[%s16742_s1 + $0x88] sm:$0xff]  ;;  %v161_v2 = vld [vmem:[%s16742_s1 + $0x30] sm:$0xff] }
  0x69   :  { %755 = vmatpush.msrb.mxu2 %v312_v6  ;;  %775 = vmatpush.msrb.mxu3 %v472_v7  ;;  %v332_v1 = vld [vmem:[%s16742_s1 + $0x588] sm:$0xff]  ;;  %v321_v3 = vld [vmem:[%s16742_s1 + $0x530] sm:$0xff]  ;;  %v162_v4 = vld [vmem:[%s16742_s1 + $0x38] sm:$0xff] }
  0x6a   :  { %716 = vmatpush.msrb.mxu0 %v301_v8  ;;  %736 = vmatpush.msrb.mxu1 %v461_v9  ;;  %v322_v5 = vld [vmem:[%s16742_s1 + $0x538] sm:$0xff]  ;;  %v313_v6 = vld [vmem:[%s16742_s1 + $0x4f0] sm:$0xff] }
  0x6b   :  { %756 = vmatpush.msrb.mxu2 %v302_v10  ;;  %776 = vmatpush.msrb.mxu3 %v462_v11  ;;  %v473_v7 = vld [vmem:[%s16742_s1 + $0x9f0] sm:$0xff]  ;;  %v314_v8 = vld [vmem:[%s16742_s1 + $0x4f8] sm:$0xff]  ;;  %v303_v10 = vld [vmem:[%s16742_s1 + $0x4a0] sm:$0xff] }
  0x6c   :  { %717 = vmatpush.msrb.mxu0 %v291_v14  ;;  %737 = vmatpush.msrb.mxu1 %v451_v15  ;;  %v474_v9 = vld [vmem:[%s16742_s1 + $0x9f8] sm:$0xff]  ;;  %v463_v11 = vld [vmem:[%s16742_s1 + $0x9a0] sm:$0xff]  ;;  %v304_v14 = vld [vmem:[%s16742_s1 + $0x4a8] sm:$0xff] }
  0x6d   :  { %757 = vmatpush.msrb.mxu2 %v292_v16  ;;  %777 = vmatpush.msrb.mxu3 %v452_v17  ;;  %v453_v15 = vld [vmem:[%s16742_s1 + $0x950] sm:$0xff]  ;;  %v59_v16 = vld [vmem:[%s16743_s2] sm:$0xff]  ;;  %v294_v17 = vld [vmem:[%s16742_s1 + $0x458] sm:$0xff] }
  0x6e   :  { %718 = vmatpush.msrb.mxu0 %v281_v18  ;;  %738 = vmatpush.msrb.mxu1 %v441_v19  ;;  %v454_v18 = vld [vmem:[%s16742_s1 + $0x958] sm:$0xff]  ;;  %v11665_v19 = vmov 0.0   ;;  %80 = vst [vmem:[#allocation1 + $0x1] ss:$2 sm:$0xff] %v59_v16  ;;  %v11637_v16 = vld [vmem:[%s16741_s0 + $0x8] sm:$0xff] }
  0x6f   :  { %758 = vmatpush.msrb.mxu2 %v282_v20  ;;  %778 = vmatpush.msrb.mxu3 %v442_v21  ;;  %39 = vst [vmem:[#allocation2] sm:$0xff] %v11665_v19  ;;  %v283_v20 = vld [vmem:[%s16742_s1 + $0x400] sm:$0xff] }
  0x70   :  { %719 = vmatpush.msrb.mxu0 %v271_v22  ;;  %739 = vmatpush.msrb.mxu1 %v431_v23  ;;  %v443_v21 = vld [vmem:[%s16742_s1 + $0x900] sm:$0xff]  ;;  %v284_v22 = vld [vmem:[%s16742_s1 + $0x408] sm:$0xff]  ;;  %40 = vst [vmem:[#allocation2 + $0x8] sm:$0xff] %v11665_v19 }
  0x71   :  { %759 = vmatpush.msrb.mxu2 %v272_v24  ;;  %779 = vmatpush.msrb.mxu3 %v432_v25  ;;  %v444_v23 = vld [vmem:[%s16742_s1 + $0x908] sm:$0xff]  ;;  %v273_v24 = vld [vmem:[%s16742_s1 + $0x3b0] sm:$0xff]  ;;  %41 = vst [vmem:[#allocation2 + $0x10] sm:$0xff] %v11665_v19 }
  0x72   :  { %720 = vmatpush.msrb.mxu0 %v261_v26  ;;  %740 = vmatpush.msrb.mxu1 %v421_v27  ;;  %v433_v25 = vld [vmem:[%s16742_s1 + $0x8b0] sm:$0xff]  ;;  %v274_v26 = vld [vmem:[%s16742_s1 + $0x3b8] sm:$0xff]  ;;  %42 = vst [vmem:[#allocation2 + $0x18] sm:$0xff] %v11665_v19 }
  0x73   :  { %760 = vmatpush.msrb.mxu2 %v262_v28  ;;  %780 = vmatpush.msrb.mxu3 %v422_v29  ;;  %v434_v27 = vld [vmem:[%s16742_s1 + $0x8b8] sm:$0xff]  ;;  %v263_v28 = vld [vmem:[%s16742_s1 + $0x360] sm:$0xff]  ;;  %43 = vst [vmem:[#allocation2 + $0x20] sm:$0xff] %v11665_v19 }
  0x74   :  { %721 = vmatpush.msrb.mxu0 %v251_v30  ;;  %741 = vmatpush.msrb.mxu1 %v411_v31  ;;  %v423_v29 = vld [vmem:[%s16742_s1 + $0x860] sm:$0xff]  ;;  %v264_v30 = vld [vmem:[%s16742_s1 + $0x368] sm:$0xff]  ;;  %44 = vst [vmem:[#allocation2 + $0x28] sm:$0xff] %v11665_v19 }
  0x75   :  { %761 = vmatpush.msrb.mxu2 %v252_v32  ;;  %781 = vmatpush.msrb.mxu3 %v412_v33  ;;  %v424_v31 = vld [vmem:[%s16742_s1 + $0x868] sm:$0xff]  ;;  %v253_v32 = vld [vmem:[%s16742_s1 + $0x310] sm:$0xff]  ;;  %45 = vst [vmem:[#allocation2 + $0x30] sm:$0xff] %v11665_v19 }
  0x76   :  { %722 = vmatpush.msrb.mxu0 %v241_v34  ;;  %742 = vmatpush.msrb.mxu1 %v401_v35  ;;  %v413_v33 = vld [vmem:[%s16742_s1 + $0x810] sm:$0xff]  ;;  %v254_v34 = vld [vmem:[%s16742_s1 + $0x318] sm:$0xff]  ;;  %46 = vst [vmem:[#allocation2 + $0x38] sm:$0xff] %v11665_v19 }
  0x77   :  { %762 = vmatpush.msrb.mxu2 %v242_v36  ;;  %782 = vmatpush.msrb.mxu3 %v402_v37  ;;  %v414_v35 = vld [vmem:[%s16742_s1 + $0x818] sm:$0xff]  ;;  %v87_v36 = vld.sshfl [vmem:[#allocation1] sm:$0xff pattern:$0x75316420]  ;;  %47 = vst [vmem:[#allocation2 + $0x40] sm:$0xff] %v11665_v19 }
  0x78   :  { %723 = vmatpush.msrb.mxu0 %v231_v38  ;;  %743 = vmatpush.msrb.mxu1 %v391_v39  ;;  %v243_v37 = vld [vmem:[%s16742_s1 + $0x2c0] sm:$0xff]  ;;  %133 = vst [vmem:[#allocation2] sm:$0xf0] %v87_v36  ;;  %v244_v39 = vld [vmem:[%s16742_s1 + $0x2c8] sm:$0xff] }
  0x79   :  { %763 = vmatpush.msrb.mxu2 %v232_v40  ;;  %783 = vmatpush.msrb.mxu3 %v392_v41  ;;  %v403_v38 = vld [vmem:[%s16742_s1 + $0x7c0] sm:$0xff]  ;;  %v404_v40 = vld [vmem:[%s16742_s1 + $0x7c8] sm:$0xff]  ;;  %v233_v41 = vld [vmem:[%s16742_s1 + $0x270] sm:$0xff]  ;;  %48 = vst [vmem:[#allocation2 + $0x48] sm:$0xff] %v11665_v19 }
  0x7a   :  { %724 = vmatpush.msrb.mxu0 %v221_v42  ;;  %744 = vmatpush.msrb.mxu1 %v381_v43  ;;  %v393_v42 = vld [vmem:[%s16742_s1 + $0x770] sm:$0xff]  ;;  %v234_v43 = vld [vmem:[%s16742_s1 + $0x278] sm:$0xff]  ;;  %49 = vst [vmem:[#allocation2 + $0x50] sm:$0xff] %v11665_v19 }
  0x7b   :  { %764 = vmatpush.msrb.mxu2 %v222_v44  ;;  %784 = vmatpush.msrb.mxu3 %v382_v45  ;;  %v394_v44 = vld [vmem:[%s16742_s1 + $0x778] sm:$0xff]  ;;  %v223_v45 = vld [vmem:[%s16742_s1 + $0x220] sm:$0xff]  ;;  %50 = vst [vmem:[#allocation2 + $0x58] sm:$0xff] %v11665_v19 }
  0x7c   :  { %725 = vmatpush.msrb.mxu0 %v211_v46  ;;  %745 = vmatpush.msrb.mxu1 %v371_v47  ;;  %v383_v46 = vld [vmem:[%s16742_s1 + $0x720] sm:$0xff]  ;;  %v224_v47 = vld [vmem:[%s16742_s1 + $0x228] sm:$0xff]  ;;  %51 = vst [vmem:[#allocation2 + $0x60] sm:$0xff] %v11665_v19 }
  0x7d   :  { %765 = vmatpush.msrb.mxu2 %v212_v48  ;;  %785 = vmatpush.msrb.mxu3 %v372_v49  ;;  %v384_v48 = vld [vmem:[%s16742_s1 + $0x728] sm:$0xff]  ;;  %v213_v49 = vld [vmem:[%s16742_s1 + $0x1d0] sm:$0xff]  ;;  %52 = vst [vmem:[#allocation2 + $0x68] sm:$0xff] %v11665_v19 }
  0x7e   :  { %726 = vmatpush.msrb.mxu0 %v201_v50  ;;  %746 = vmatpush.msrb.mxu1 %v361_v51  ;;  %v373_v50 = vld [vmem:[%s16742_s1 + $0x6d0] sm:$0xff]  ;;  %v214_v51 = vld [vmem:[%s16742_s1 + $0x1d8] sm:$0xff]  ;;  %53 = vst [vmem:[#allocation2 + $0x70] sm:$0xff] %v11665_v19 }
  0x7f   :  { %766 = vmatpush.msrb.mxu2 %v202_v52  ;;  %786 = vmatpush.msrb.mxu3 %v362_v53  ;;  %v374_v52 = vld [vmem:[%s16742_s1 + $0x6d8] sm:$0xff]  ;;  %v203_v53 = vld [vmem:[%s16742_s1 + $0x180] sm:$0xff]  ;;  %54 = vst [vmem:[#allocation2 + $0x78] sm:$0xff] %v11665_v19 }
  0x80   :  { %727 = vmatpush.msrb.mxu0 %v191_v54  ;;  %747 = vmatpush.msrb.mxu1 %v351_v55  ;;  %v363_v54 = vld [vmem:[%s16742_s1 + $0x680] sm:$0xff]  ;;  %v204_v55 = vld [vmem:[%s16742_s1 + $0x188] sm:$0xff]  ;;  %55 = vst [vmem:[#allocation2 + $0x80] sm:$0xff] %v11665_v19 }
  0x81   :  { %767 = vmatpush.msrb.mxu2 %v192_v56  ;;  %787 = vmatpush.msrb.mxu3 %v352_v57  ;;  %v364_v56 = vld [vmem:[%s16742_s1 + $0x688] sm:$0xff]  ;;  %v193_v57 = vld [vmem:[%s16742_s1 + $0x130] sm:$0xff]  ;;  %56 = vst [vmem:[#allocation2 + $0x88] sm:$0xff] %v11665_v19 }
  0x82   :  { %728 = vmatpush.msrb.mxu0 %v181_v58  ;;  %748 = vmatpush.msrb.mxu1 %v341_v59  ;;  %v353_v58 = vld [vmem:[%s16742_s1 + $0x630] sm:$0xff]  ;;  %v194_v59 = vld [vmem:[%s16742_s1 + $0x138] sm:$0xff]  ;;  %57 = vst [vmem:[#allocation2 + $0x90] sm:$0xff] %v11665_v19 }
  0x83   :  { %768 = vmatpush.msrb.mxu2 %v182_v60  ;;  %788 = vmatpush.msrb.mxu3 %v342_v61  ;;  %v354_v60 = vld [vmem:[%s16742_s1 + $0x638] sm:$0xff]  ;;  %v183_v61 = vld [vmem:[%s16742_s1 + $0xe0] sm:$0xff]  ;;  %58 = vst [vmem:[#allocation2 + $0x98] sm:$0xff] %v11665_v19 }
  0x84   :  { %729 = vmatpush.msrb.mxu0 %v171_v62  ;;  %749 = vmatpush.msrb.mxu1 %v331_v63  ;;  %v343_v62 = vld [vmem:[%s16742_s1 + $0x5e0] sm:$0xff]  ;;  %v88_v63 = vld.sshfl [vmem:[#allocation1 + $0x8] sm:$0xff pattern:$0x75316420]  ;;  %5528 = vst [vmem:[#allocation3] sm:$0xff] %v11665_v19 }
  0x85   :  { %769 = vmatpush.msrb.mxu2 %v172_v0  ;;  %789 = vmatpush.msrb.mxu3 %v332_v1  ;;  %v184_v0 = vld [vmem:[%s16742_s1 + $0xe8] sm:$0xff]  ;;  %5537 = vst [vmem:[#allocation3 + $0x48] sm:$0xff] %v11665_v19 }
  0x86   :  { %730 = vmatpush.msrb.mxu0 %v161_v2  ;;  %750 = vmatpush.msrb.mxu1 %v321_v3  ;;  %v344_v1 = vld [vmem:[%s16742_s1 + $0x5e8] sm:$0xff]  ;;  %v173_v3 = vld [vmem:[%s16742_s1 + $0x90] sm:$0xff]  ;;  %134 = vst [vmem:[#allocation2 + $0x8] sm:$0xf0] %v88_v63 }
  0x87   :  { %770 = vmatpush.msrb.mxu2 %v162_v4  ;;  %790 = vmatpush.msrb.mxu3 %v322_v5  ;;  %v60_v2 = vld [vmem:[%s16743_s2 + $0x8] sm:$0xff]  ;;  %v333_v4 = vld [vmem:[%s16742_s1 + $0x590] sm:$0xff]  ;;  %v174_v5 = vld [vmem:[%s16742_s1 + $0x98] sm:$0xff] }
  0x88   :  { %731 = vmatmul.f32.vlgmr.msrb.gmra.mxu0 %v11964_v12  ;;  %751 = vmatmul.f32.vlgmr.msrb.gmra.mxu1 %v11969_v13  ;;  %82 = vst [vmem:[#allocation1 + $0x11] ss:$2 sm:$0xff] %v60_v2 }
  0x89   :  { %771 = vmatmul.f32.vlgmr.msrb.gmra.mxu2 %v11964_v12  ;;  %791 = vmatmul.f32.vlgmr.msrb.gmra.mxu3 %v11969_v13  ;;  %v464_v12 = vld [vmem:[%s16742_s1 + $0x9a8] sm:$0xff]  ;;  %v293_v13 = vld [vmem:[%s16742_s1 + $0x450] sm:$0xff] }
  0x8a   :  { %795 = vmatpush.msra.mxu0 %v313_v6  ;;  %815 = vmatpush.msra.mxu1 %v473_v7  ;;  %v334_v6 = vld [vmem:[%s16742_s1 + $0x598] sm:$0xff]  ;;  %v163_v7 = vld [vmem:[%s16742_s1 + $0x40] sm:$0xff] }
  0x8b   :  { %835 = vmatpush.msra.mxu2 %v314_v8  ;;  %855 = vmatpush.msra.mxu3 %v474_v9  ;;  %v323_v8 = vld [vmem:[%s16742_s1 + $0x540] sm:$0xff] }
  0x8c   :  { %796 = vmatpush.msra.mxu0 %v303_v10  ;;  %816 = vmatpush.msra.mxu1 %v463_v11  ;;  %v164_v11 = vld [vmem:[%s16742_s1 + $0x48] sm:$0xff] }
  0x8d   :  { %836 = vmatpush.msra.mxu2 %v304_v14  ;;  %856 = vmatpush.msra.mxu3 %v464_v12  ;;  %v324_v14 = vld [vmem:[%s16742_s1 + $0x548] sm:$0xff]  ;;  %s11666_s1 = smov 4  }
  0x8e   :  { %797 = vmatpush.msra.mxu0 %v293_v13  ;;  %817 = vmatpush.msra.mxu1 %v453_v15  ;;  %v11636_v15 = vld [vmem:[%s16741_s0] sm:$0xff]  ;;  %s11672_s0 = smov 60  }
  0x8f   :  { %837 = vmatpush.msra.mxu2 %v294_v17  ;;  %857 = vmatpush.msra.mxu3 %v454_v18  ;;  %v89_v17 = vld.sshfl [vmem:[#allocation1 + $0x10] sm:$0xff pattern:$0x75316420]  ;;  %v90_v18 = vld.sshfl [vmem:[#allocation1 + $0x18] sm:$0xff pattern:$0x75316420] }
  0x90   :  { %798 = vmatpush.msra.mxu0 %v283_v20  ;;  %818 = vmatpush.msra.mxu1 %v443_v21  ;;  %135 = vst [vmem:[#allocation2 + $0x10] sm:$0xf0] %v89_v17 }
  0x91   :  { %838 = vmatpush.msra.mxu2 %v284_v22  ;;  %858 = vmatpush.msra.mxu3 %v444_v23  ;;  %136 = vst [vmem:[#allocation2 + $0x18] sm:$0xf0] %v90_v18 }
  0x92   :  { %799 = vmatpush.msra.mxu0 %v273_v24  ;;  %819 = vmatpush.msra.mxu1 %v433_v25 }
  0x93   :  { %839 = vmatpush.msra.mxu2 %v274_v26  ;;  %859 = vmatpush.msra.mxu3 %v434_v27  ;;  %v61_v26 = vld [vmem:[%s16743_s2 + $0x10] sm:$0xff] }
  0x94   :  { %800 = vmatpush.msra.mxu0 %v263_v28  ;;  %820 = vmatpush.msra.mxu1 %v423_v29  ;;  %84 = vst [vmem:[#allocation1 + $0x21] ss:$2 sm:$0xff] %v61_v26 }
  0x95   :  { %840 = vmatpush.msra.mxu2 %v264_v30  ;;  %860 = vmatpush.msra.mxu3 %v424_v31 }
  0x96   :  { %801 = vmatpush.msra.mxu0 %v253_v32  ;;  %821 = vmatpush.msra.mxu1 %v413_v33 }
  0x97   :  { %841 = vmatpush.msra.mxu2 %v254_v34  ;;  %861 = vmatpush.msra.mxu3 %v414_v35 }
  0x98   :  { %802 = vmatpush.msra.mxu0 %v243_v37  ;;  %822 = vmatpush.msra.mxu1 %v403_v38  ;;  %v62_v37 = vld [vmem:[%s16743_s2 + $0x18] sm:$0xff] }
  0x99   :  { %842 = vmatpush.msra.mxu2 %v244_v39  ;;  %862 = vmatpush.msra.mxu3 %v404_v40  ;;  %86 = vst [vmem:[#allocation1 + $0x31] ss:$2 sm:$0xff] %v62_v37 }
  0x9a   :  { %803 = vmatpush.msra.mxu0 %v233_v41  ;;  %823 = vmatpush.msra.mxu1 %v393_v42 }
  0x9b   :  { %843 = vmatpush.msra.mxu2 %v234_v43  ;;  %863 = vmatpush.msra.mxu3 %v394_v44  ;;  %v91_v31 = vld.sshfl [vmem:[#allocation1 + $0x20] sm:$0xff pattern:$0x75316420]  ;;  %v92_v32 = vld.sshfl [vmem:[#allocation1 + $0x28] sm:$0xff pattern:$0x75316420] }
  0x9c   :  { %804 = vmatpush.msra.mxu0 %v223_v45  ;;  %824 = vmatpush.msra.mxu1 %v383_v46  ;;  %137 = vst [vmem:[#allocation2 + $0x20] sm:$0xf0] %v91_v31  ;;  %v63_v45 = vld [vmem:[%s16743_s2 + $0x20] sm:$0xff] }
  0x9d   :  { %844 = vmatpush.msra.mxu2 %v224_v47  ;;  %864 = vmatpush.msra.mxu3 %v384_v48  ;;  %138 = vst [vmem:[#allocation2 + $0x28] sm:$0xf0] %v92_v32 }
  0x9e   :  { %805 = vmatpush.msra.mxu0 %v213_v49  ;;  %825 = vmatpush.msra.mxu1 %v373_v50  ;;  %95 = vst [vmem:[#allocation1 + $0x1] ss:$2 sm:$0xff] %v63_v45 }
  0x9f   :  { %845 = vmatpush.msra.mxu2 %v214_v51  ;;  %865 = vmatpush.msra.mxu3 %v374_v52  ;;  %v64_v51 = vld [vmem:[%s16743_s2 + $0x28] sm:$0xff] }
  0xa0   :  { %806 = vmatpush.msra.mxu0 %v203_v53  ;;  %826 = vmatpush.msra.mxu1 %v363_v54  ;;  %v93_v43 = vld.sshfl [vmem:[#allocation1 + $0x30] sm:$0xff pattern:$0x75316420]  ;;  %v94_v44 = vld.sshfl [vmem:[#allocation1 + $0x38] sm:$0xff pattern:$0x75316420] }
  0xa1   :  { %846 = vmatpush.msra.mxu2 %v204_v55  ;;  %866 = vmatpush.msra.mxu3 %v364_v56  ;;  %139 = vst [vmem:[#allocation2 + $0x30] sm:$0xf0] %v93_v43 }
  0xa2   :  { %807 = vmatpush.msra.mxu0 %v193_v57  ;;  %827 = vmatpush.msra.mxu1 %v353_v58  ;;  %140 = vst [vmem:[#allocation2 + $0x38] sm:$0xf0] %v94_v44  ;;  %v68_v57 = vld [vmem:[%s16743_s2 + $0x48] sm:$0xff] }
  0xa3   :  { %847 = vmatpush.msra.mxu2 %v194_v59  ;;  %867 = vmatpush.msra.mxu3 %v354_v60  ;;  %96 = vst [vmem:[#allocation1 + $0x11] ss:$2 sm:$0xff] %v64_v51 }
  0xa4   :  { %808 = vmatpush.msra.mxu0 %v183_v61  ;;  %828 = vmatpush.msra.mxu1 %v343_v62 }
  0xa5   :  { %848 = vmatpush.msra.mxu2 %v184_v0  ;;  %868 = vmatpush.msra.mxu3 %v344_v1  ;;  %v492_v9 = vpop.f32.mrf.mxu0  ;;  %v512_v10 = vpop.f32.mrf.mxu1  ;;  %v99_v50 = vld.sshfl [vmem:[#allocation1] sm:$0xff pattern:$0x75316420]  ;;  %v100_v55 = vld.sshfl [vmem:[#allocation1 + $0x8] sm:$0xff pattern:$0x75316420] }
  0xa6   :  { %809 = vmatpush.msra.mxu0 %v173_v3  ;;  %829 = vmatpush.msra.mxu1 %v333_v4  ;;  %v513_v12 = vadd.f32 %v512_v10, %v492_v9  ;;  %141 = vst [vmem:[#allocation2 + $0x40] sm:$0xf0] %v99_v50  ;;  %v65_v3 = vld [vmem:[%s16743_s2 + $0x30] sm:$0xff] }
  0xa7   :  { %849 = vmatpush.msra.mxu2 %v174_v5  ;;  %869 = vmatpush.msra.mxu3 %v334_v6  ;;  %142 = vst [vmem:[#allocation2 + $0x48] sm:$0xf0] %v100_v55 }
  0xa8   :  { %810 = vmatpush.msra.mxu0 %v163_v7  ;;  %830 = vmatpush.msra.mxu1 %v323_v8  ;;  %875 = vst [vmem:[#allocation2] sm:$0xf] %v513_v12  ;;  %v896_v13 = vrot.slane %v513_v12, 4 }
  0xa9   :  { %850 = vmatpush.msra.mxu2 %v164_v11  ;;  %870 = vmatpush.msra.mxu3 %v324_v14  ;;  %97 = vst [vmem:[#allocation1 + $0x21] ss:$2 sm:$0xff] %v65_v3  ;;  %v66_v14 = vld [vmem:[%s16743_s2 + $0x38] sm:$0xff] }
  0xaa   :  { %811 = vmatmul.f32.vlgmr.msra.gmra.mxu0 %v11636_v15  ;;  %831 = vmatmul.f32.vlgmr.msra.gmra.mxu1 %v11637_v16  ;;  %v101_v58 = vld.sshfl [vmem:[#allocation1 + $0x10] sm:$0xff pattern:$0x75316420]  ;;  %v102_v59 = vld.sshfl [vmem:[#allocation1 + $0x18] sm:$0xff pattern:$0x75316420] }
  0xab   :  { %851 = vmatmul.f32.vlgmr.msra.gmra.mxu2 %v11636_v15  ;;  %871 = vmatmul.f32.vlgmr.msra.gmra.mxu3 %v11637_v16  ;;  %108 = vst [vmem:[#allocation1 + $0x11] ss:$2 sm:$0xff] %v68_v57 }
  0xac   :  { %906 = vrot.lane.b32.xlu0 %v896_v13, %s11666_s1  ;;  %143 = vst [vmem:[#allocation2 + $0x50] sm:$0xf0] %v101_v58 }
  0xad   :  { %144 = vst [vmem:[#allocation2 + $0x58] sm:$0xf0] %v102_v59 }
  0xae   :  { %v532_v19 = vpop.f32.mrf.mxu2  ;;  %v552_v20 = vpop.f32.mrf.mxu3  ;;  %98 = vst [vmem:[#allocation1 + $0x31] ss:$2 sm:$0xff] %v66_v14 }
  0xaf   :  { %v553_v21 = vadd.f32 %v552_v20, %v532_v19  ;;  %v12804_v16 = vld [vmem:[#allocation2] sm:$0xff] }
  0xb0   :  { %v103_v10 = vld.sshfl [vmem:[#allocation1 + $0x20] sm:$0xff pattern:$0x75316420]  ;;  %v104_v11 = vld.sshfl [vmem:[#allocation1 + $0x28] sm:$0xff pattern:$0x75316420] }
  0xb1   :  { %876 = vst [vmem:[#allocation2 + $0x8] sm:$0xf] %v553_v21  ;;  %v897_v22 = vrot.slane %v553_v21, 4 }
  0xb2   :  { %145 = vst [vmem:[#allocation2 + $0x60] sm:$0xf0] %v103_v10  ;;  %v112_v45 = vld.sshfl [vmem:[#allocation1 + $0x18] sm:$0xff pattern:$0x75316420] }
  0xb3   :  { %146 = vst [vmem:[#allocation2 + $0x68] sm:$0xf0] %v104_v11 }
  0xb4   :  { %908 = vrot.lane.b32.xlu0 %v897_v22, %s11666_s1  ;;  %152 = vst [vmem:[#allocation2 + $0x98] sm:$0xf0] %v112_v45 }
  0xb5   :  { %v105_v20 = vld.sshfl [vmem:[#allocation1 + $0x30] sm:$0xff pattern:$0x75316420] }
  0xb6   :  { %147 = vst [vmem:[#allocation2 + $0x70] sm:$0xf0] %v105_v20 }
  0xb8   :  { %v12806_v17 = vld [vmem:[#allocation2 + $0x8] sm:$0xff] }
  0xb9   :  { %v12810_v19 = vpack.i.bf16 %v12806_v17, %v12804_v16 }
  0xbb   :  { %v12875_v59 = vld [vmem:[#allocation2 + $0x98] sm:$0xff] }
  0xc1   :  { %v572_v23 = vpop.f32.mrf.mxu0  ;;  %v592_v24 = vpop.f32.mrf.mxu1 }
  0xc2   :  { %v593_v25 = vadd.f32 %v592_v24, %v572_v23 }
  0xc4   :  { %877 = vst [vmem:[#allocation2 + $0x10] sm:$0xf] %v593_v25  ;;  %v898_v27 = vrot.slane %v593_v25, 4 }
  0xc6   :  { %910 = vrot.lane.b32.xlu1 %v898_v27, %s11666_s1 }
  0xca   :  { %v612_v28 = vpop.f32.mrf.mxu2  ;;  %v632_v29 = vpop.f32.mrf.mxu3 }
  0xcb   :  { %v633_v30 = vadd.f32 %v632_v29, %v612_v28  ;;  %v12776_v60 = vld [vmem:[#allocation2 + $0x10] sm:$0xff] }
  0xcd   :  { %878 = vst [vmem:[#allocation2 + $0x18] sm:$0xf] %v633_v30  ;;  %v899_v33 = vrot.slane %v633_v30, 4 }
  0xcf   :  { %912 = vrot.lane.b32.xlu1 %v899_v33, %s11666_s1 }
  0xd4   :  { %v12778_v61 = vld [vmem:[#allocation2 + $0x18] sm:$0xff] }
  0xd5   :  { %v12782_v62 = vpack.i.bf16 %v12778_v61, %v12776_v60 }
  0xe3   :  { %v652_v34 = vpop.f32.mrf.mxu0  ;;  %v672_v35 = vpop.f32.mrf.mxu1 }
  0xe4   :  { %v673_v36 = vadd.f32 %v672_v35, %v652_v34 }
  0xe6   :  { %879 = vst [vmem:[#allocation2 + $0x20] sm:$0xf] %v673_v36  ;;  %v900_v38 = vrot.slane %v673_v36, 4 }
  0xe8   :  { %914 = vrot.lane.b32.xlu2 %v900_v38, %s11666_s1 }
  0xea   :  { %v692_v39 = vpop.f32.mrf.mxu2  ;;  %v712_v40 = vpop.f32.mrf.mxu3 }
  0xeb   :  { %v713_v41 = vadd.f32 %v712_v40, %v692_v39 }
  0xed   :  { %880 = vst [vmem:[#allocation2 + $0x28] sm:$0xf] %v713_v41  ;;  %v901_v42 = vrot.slane %v713_v41, 4  ;;  %v12819_v23 = vld [vmem:[#allocation2 + $0x20] sm:$0xff] }
  0xee   :  { %v106_v41 = vld.sshfl [vmem:[#allocation1 + $0x38] sm:$0xff pattern:$0x75316420] }
  0xef   :  { %148 = vst [vmem:[#allocation2 + $0x78] sm:$0xf0] %v106_v41 }
  0xf0   :  { %916 = vrot.lane.b32.xlu2 %v901_v42, %s11666_s1  ;;  %v67_v42 = vld [vmem:[%s16743_s2 + $0x40] sm:$0xff]  ;;  %s11668_s2 = smov 126  }
  0xf1   :  { %107 = vst [vmem:[#allocation1 + $0x1] ss:$2 sm:$0xff] %v67_v42 }
  0xf4   :  { %v12788_v0 = vld [vmem:[#allocation2 + $0x28] sm:$0xff] }
  0xf5   :  { %v12896_v11 = vpack.i.bf16 %v12778_v61, %v12788_v0 }
  0xf8   :  { %v109_v43 = vld.sshfl [vmem:[#allocation1] sm:$0xff pattern:$0x75316420]  ;;  %v110_v44 = vld.sshfl [vmem:[#allocation1 + $0x8] sm:$0xff pattern:$0x75316420] }
  0xf9   :  { %149 = vst [vmem:[#allocation2 + $0x80] sm:$0xf0] %v109_v43 }
  0xfa   :  { %150 = vst [vmem:[#allocation2 + $0x88] sm:$0xf0] %v110_v44 }
 0x105   :  { %v732_v46 = vpop.f32.mrf.mxu0  ;;  %v752_v47 = vpop.f32.mrf.mxu1 }
 0x106   :  { %v753_v48 = vadd.f32 %v752_v47, %v732_v46 }
 0x108   :  { %881 = vst [vmem:[#allocation2 + $0x30] sm:$0xf] %v753_v48  ;;  %v902_v49 = vrot.slane %v753_v48, 4 }
 0x10a   :  { %918 = vrot.lane.b32.xlu0 %v902_v49, %s11666_s1 }
 0x10c   :  { %v772_v52 = vpop.f32.mrf.mxu2  ;;  %v792_v53 = vpop.f32.mrf.mxu3 }
 0x10d   :  { %v793_v54 = vadd.f32 %v792_v53, %v772_v52  ;;  %v111_v52 = vld.sshfl [vmem:[#allocation1 + $0x10] sm:$0xff pattern:$0x75316420] }
 0x10e   :  { %151 = vst [vmem:[#allocation2 + $0x90] sm:$0xf0] %v111_v52 }
 0x10f   :  { %882 = vst [vmem:[#allocation2 + $0x38] sm:$0xf] %v793_v54  ;;  %v903_v56 = vrot.slane %v793_v54, 4  ;;  %v12821_v24 = vld [vmem:[#allocation2 + $0x30] sm:$0xff] }
 0x110   :  { %v12829_v27 = vpack.i.bf16 %v12821_v24, %v12819_v23 }
 0x111   :  { %920 = vrot.lane.b32.xlu1 %v903_v56, %s11666_s1 }
 0x116   :  { %v12786_v63 = vld [vmem:[#allocation2 + $0x38] sm:$0xff] }
 0x117   :  { %v12792_v2 = vpack.i.bf16 %v12788_v0, %v12786_v63 }
 0x119   :  { %11230 = vrot.lane.b32.xlu1 %v12782_v62, %s11667_s14 }
 0x11e   :  { %v907_v1 = vpop.permute.xlu0 %906 }
 0x121   :  { %11245 = vrot.lane.b32.xlu1 %v12792_v2, %s11667_s14 }
 0x126   :  { %v909_v4 = vpop.permute.xlu0 %908 }
 0x127   :  { %v812_v5 = vpop.f32.mrf.mxu0  ;;  %v832_v6 = vpop.f32.mrf.mxu1  ;;  %v927_v7 = vsel %vm926_vm0, %v907_v1, %v909_v4 }
 0x128   :  { %v833_v8 = vadd.f32 %v832_v6, %v812_v5  ;;  %948 = vst [vmem:[#allocation2 + $0x50] sm:$0xf] %v927_v7 }
 0x12a   :  { %883 = vst [vmem:[#allocation2 + $0x40] sm:$0xf] %v833_v8  ;;  %v904_v9 = vrot.slane %v833_v8, 4 }
 0x12c   :  { %922 = vrot.lane.b32.xlu2 %v904_v9, %s11666_s1 }
 0x12e   :  { %v852_v12 = vpop.f32.mrf.mxu2  ;;  %v872_v13 = vpop.f32.mrf.mxu3 }
 0x12f   :  { %v873_v15 = vadd.f32 %v872_v13, %v852_v12  ;;  %v12815_v21 = vld [vmem:[#allocation2 + $0x50] sm:$0xff]  ;;  %v12917_v13 = vld [vmem:[%s16744_s3 + $0x4] sm:$0xf] }
 0x131   :  { %885 = vst.msk [vmem:[#allocation2 + $0x48] sm:$0xf] %vm884_vm1, %v873_v15  ;;  %v905_v18 = vrot.slane %v873_v15, 4  ;;  %v12817_v22 = vld [vmem:[#allocation2 + $0x40] sm:$0xff] }
 0x132   :  { %947 = vst.msk [vmem:[#allocation2 + $0x48] sm:$0xf] %vm946_vm2, %v907_v1  ;;  %v12825_v25 = vpack.i.bf16 %v12815_v21, %v12817_v22  ;;  %v12892_v10 = vpack.i.bf16 %v12817_v22, %v12821_v24  ;;  %vm5635_vm2 = vcmask 1043736  }
 0x133   :  { %924 = vrot.lane.b32.xlu0 %v905_v18, %s11666_s1  ;;  %s11671_s1 = smov 92  }
 0x134   :  { %11235 = vrot.lane.b32.xlu2 %v12810_v19, %s11667_s14 }
 0x138   :  { %v911_v26 = vpop.permute.xlu1 %910 }
 0x139   :  { %v928_v28 = vsel %vm926_vm0, %v909_v4, %v911_v26  ;;  %v12836_v30 = vld [vmem:[#allocation2 + $0x48] sm:$0xff] }
 0x13a   :  { %949 = vst [vmem:[#allocation2 + $0x58] sm:$0xf] %v928_v28 }
 0x13b   :  { %11240 = vrot.lane.b32.xlu0 %v12829_v27, %s11667_s14 }
 0x13c   :  { %11250 = vrot.lane.b32.xlu2 %v12825_v25, %s11667_s14 }
 0x141   :  { %v913_v29 = vpop.permute.xlu1 %912  ;;  %v12838_v31 = vld [vmem:[#allocation2 + $0x58] sm:$0xff] }
 0x142   :  { %v915_v32 = vpop.permute.xlu2 %914  ;;  %v929_v33 = vsel %vm926_vm0, %v911_v26, %v913_v29  ;;  %v12843_v34 = vpack.i.bf16 %v12836_v30, %v12838_v31 }
 0x143   :  { %v930_v35 = vsel %vm926_vm0, %v913_v29, %v915_v32  ;;  %950 = vst [vmem:[#allocation2 + $0x60] sm:$0xf] %v929_v33 }
 0x144   :  { %951 = vst [vmem:[#allocation2 + $0x68] sm:$0xf] %v930_v35  ;;  %11255 = vrot.lane.b32.xlu0 %v12843_v34, %s11667_s14 }
 0x14a   :  { %v917_v36 = vpop.permute.xlu2 %916  ;;  %v12849_v38 = vld [vmem:[#allocation2 + $0x60] sm:$0xff] }
 0x14b   :  { %v931_v37 = vsel %vm926_vm0, %v915_v32, %v917_v36  ;;  %v12864_v50 = vld [vmem:[#allocation2 + $0x68] sm:$0xff]  ;;  %v12908_v12 = vpack.i.bf16 %v12849_v38, %v12815_v21 }
 0x14c   :  { %952 = vst [vmem:[#allocation2 + $0x70] sm:$0xf] %v931_v37  ;;  %v12904_v14 = vpack.i.bf16 %v12838_v31, %v12864_v50 }
 0x153   :  { %v12851_v39 = vld [vmem:[#allocation2 + $0x70] sm:$0xff] }
 0x154   :  { %v12855_v40 = vpack.i.bf16 %v12851_v39, %v12849_v38 }
 0x156   :  { %11260 = vrot.lane.b32.xlu1 %v12855_v40, %s11667_s14 }
 0x17c   :  { %v919_v46 = vpop.permute.xlu0 %918 }
 0x17d   :  { %v932_v47 = vsel %vm926_vm0, %v917_v36, %v919_v46 }
 0x17e   :  { %953 = vst [vmem:[#allocation2 + $0x78] sm:$0xf] %v932_v47 }
 0x183   :  { %v921_v48 = vpop.permute.xlu1 %920 }
 0x184   :  { %v933_v49 = vsel %vm926_vm0, %v919_v46, %v921_v48 }
 0x185   :  { %954 = vst [vmem:[#allocation2 + $0x80] sm:$0xf] %v933_v49  ;;  %v12866_v51 = vld [vmem:[#allocation2 + $0x78] sm:$0xff]  ;;  %v12954_v49 = vpack.i.bf16 %v12804_v16, %v12778_v61 }
 0x186   :  { %v923_v53 = vpop.permute.xlu2 %922  ;;  %v12870_v54 = vpack.i.bf16 %v12864_v50, %v12866_v51 }
 0x187   :  { %v934_v55 = vsel %vm926_vm0, %v921_v48, %v923_v53 }
 0x188   :  { %955 = vst [vmem:[#allocation2 + $0x88] sm:$0xf] %v934_v55  ;;  %11265 = vrot.lane.b32.xlu2 %v12870_v54, %s11667_s14 }
 0x18b   :  { %v11231_v56 = vpop.permute.xlu1 %11230 }
 0x18c   :  { %v11233_v57 = vunpack.i.h.bf16 %v11231_v56  ;;  %v11232_v58 = vunpack.i.l.bf16 %v11231_v56  ;;  %v12932_v37 = vld [vmem:[#allocation2 + $0x80] sm:$0xff]  ;;  %v12969_v56 = vpack.i.bf16 %v12819_v23, %v12776_v60 }
 0x18e   :  { %v11236_v1 = vpop.permute.xlu2 %11235  ;;  %v1044_v3 = vsel %vm1041_vm3, %v11232_v58, %v11233_v57 }
 0x18f   :  { %v11238_v4 = vunpack.i.h.bf16 %v11236_v1  ;;  %v11237_v5 = vunpack.i.l.bf16 %v11236_v1  ;;  %1139 = vmatpush.msrb.mxu2 %v1044_v3  ;;  %v12878_v6 = vld [vmem:[#allocation2 + $0x88] sm:$0xff]  ;;  %v12973_v1 = vpack.i.bf16 %v12821_v24, %v12788_v0 }
 0x190   :  { %v12882_v7 = vpack.i.bf16 %v12878_v6, %v12875_v59  ;;  %11280 = vrot.lane.b32.xlu2 %v12810_v19, %s11668_s2  ;;  %10690 = vmatmul.msk.f32.vlgmr.msrb.gmra.mxu2 %vm1080_vm5, %v12917_v13  ;;  %v12928_v20 = vpack.i.bf16 %v12866_v51, %v12878_v6 }
 0x191   :  { %v1042_v8 = vsel %vm1041_vm3, %v11237_v5, %v11238_v4  ;;  %v1043_v9 = vsel %vm1041_vm3, %v11238_v4, %v11232_v58 }
 0x192   :  { %11275 = vrot.lane.b32.xlu1 %v12882_v7, %s11667_s14  ;;  %1099 = vmatpush.msrb.mxu0 %v1042_v8  ;;  %v12984_v8 = vpack.i.bf16 %v12815_v21, %v12836_v30 }
 0x193   :  { %1119 = vmatpush.msrb.mxu1 %v1043_v9  ;;  %10688 = vmatmul.msk.f32.vlgmr.msrb.gmra.mxu0 %vm1080_vm5, %v12917_v13  ;;  %v11246_v26 = vpop.permute.xlu1 %11245  ;;  %v12998_v9 = vpack.i.bf16 %v12786_v63, %v12836_v30 }
 0x194   :  { %10689 = vmatmul.msk.f32.vlgmr.msrb.gmra.mxu1 %vm1080_vm5, %v12917_v13  ;;  %v11248_v32 = vunpack.i.h.bf16 %v11246_v26  ;;  %v11247_v33 = vunpack.i.l.bf16 %v11246_v26  ;;  %v11314_v26 = vpack.i.bf16 %v12932_v37, %v12851_v39 }
 0x196   :  { %v11251_v28 = vpop.permute.xlu2 %11250 }
 0x197   :  { %v11252_v42 = vunpack.i.l.bf16 %v11251_v28  ;;  %v11253_v55 = vunpack.i.h.bf16 %v11251_v28 }
 0x198   :  { %11295 = vrot.lane.b32.xlu2 %v12892_v10, %s11668_s2 }
 0x199   :  { %v1049_v52 = vsel %vm1041_vm3, %v11247_v33, %v11252_v42 }
 0x19a   :  { %11290 = vrot.lane.b32.xlu1 %v12896_v11, %s11668_s2 }
 0x1a0   :  { %11310 = vrot.lane.b32.xlu2 %v12904_v14, %s11668_s2 }
 0x1a2   :  { %11305 = vrot.lane.b32.xlu1 %v12908_v12, %s11668_s2 }
 0x1a5   :  { %v925_v15 = vpop.permute.xlu0 %924 }
 0x1a6   :  { %v935_v18 = vsel %vm926_vm0, %v923_v53, %v925_v15  ;;  %v13002_v15 = vpack.i.bf16 %v12838_v31, %v12817_v22 }
 0x1a7   :  { %957 = vst.msk [vmem:[#allocation2 + $0x90] sm:$0xf] %vm956_vm4, %v935_v18  ;;  %v13010_v18 = vpack.i.bf16 %v12866_v51, %v12849_v38  ;;  %vm5636_vm4 = vcmask 1047556  }
 0x1aa   :  { %11320 = vrot.lane.b32.xlu1 %v12928_v20, %s11668_s2 }
 0x1ad   :  { %v11241_v29 = vpop.permute.xlu0 %11240 }
 0x1ae   :  { %v11243_v35 = vunpack.i.h.bf16 %v11241_v29  ;;  %v11242_v36 = vunpack.i.l.bf16 %v11241_v29  ;;  %v12934_v41 = vld [vmem:[#allocation2 + $0x90] sm:$0xff] }
 0x1af   :  { %v12938_v43 = vpack.i.bf16 %v12934_v41, %v12932_v37  ;;  %v12942_v44 = vpack.i.bf16 %v12875_v59, %v12934_v41  ;;  %v13018_v28 = vpack.i.bf16 %v12934_v41, %v12878_v6 }
 0x1b0   :  { %v1045_v45 = vsel %vm1041_vm3, %v11233_v57, %v11242_v36  ;;  %v1048_v46 = vsel %vm1041_vm3, %v11243_v35, %v11247_v33  ;;  %v1046_v47 = vsel %vm1041_vm3, %v11242_v36, %v11248_v32  ;;  %v1047_v48 = vsel %vm1041_vm3, %v11248_v32, %v11243_v35 }
 0x1b1   :  { %11270 = vrot.lane.b32.xlu0 %v12938_v43, %s11667_s14  ;;  %1159 = vmatpush.msrb.mxu3 %v1045_v45  ;;  %v11329_v35 = vpack.i.bf16 %v12776_v60, %v12806_v17  ;;  %v11344_v36 = vpack.i.bf16 %v12786_v63, %v12819_v23 }
 0x1b2   :  { %1219 = vmatpush.msra.mxu2 %v1048_v46  ;;  %11325 = vrot.lane.b32.xlu2 %v12942_v44, %s11668_s2 }
 0x1b3   :  { %1179 = vmatpush.msra.mxu0 %v1046_v47  ;;  %1199 = vmatpush.msra.mxu1 %v1047_v48 }
 0x1b4   :  { %1239 = vmatpush.msra.mxu3 %v1049_v52  ;;  %11335 = vrot.lane.b32.xlu1 %v12954_v49, %s11669_s23 }
 0x1b5   :  { %10691 = vmatmul.msk.f32.vlgmr.msrb.gmra.mxu3 %vm1080_vm5, %v12917_v13  ;;  %10692 = vmatmul.msk.f32.vlgmr.msra.gmra.mxu0 %vm1080_vm5, %v12917_v13 }
 0x1b6   :  { %v11256_v53 = vpop.permute.xlu0 %11255  ;;  %10693 = vmatmul.msk.f32.vlgmr.msra.gmra.mxu1 %vm1080_vm5, %v12917_v13  ;;  %10694 = vmatmul.msk.f32.vlgmr.msra.gmra.mxu2 %vm1080_vm5, %v12917_v13 }
 0x1b7   :  { %v11258_v57 = vunpack.i.h.bf16 %v11256_v53  ;;  %v11257_v58 = vunpack.i.l.bf16 %v11256_v53 }
 0x1b9   :  { %11285 = vrot.lane.b32.xlu0 %v12969_v56, %s11668_s2  ;;  %v1050_v3 = vsel %vm1041_vm3, %v11252_v42, %v11258_v57  ;;  %v1051_v4 = vsel %vm1041_vm3, %v11258_v57, %v11253_v55  ;;  %v1052_v5 = vsel %vm1041_vm3, %v11253_v55, %v11257_v58  ;;  %v13044_v42 = vpack.i.bf16 %v12851_v39, %v12864_v50 }
 0x1ba   :  { %11340 = vrot.lane.b32.xlu2 %v12973_v1, %s11669_s23  ;;  %1259 = vmatpush.msrb.mxu0 %v1050_v3  ;;  %v13057_v57 = vpack.i.bf16 %v12875_v59, %v12932_v37  ;;  %v11439_v59 = vpack.i.bf16 %v12788_v0, %v12776_v60  ;;  %v11454_v3 = vpack.i.bf16 %v12849_v38, %v12838_v31 }
 0x1bb   :  { %1279 = vmatpush.msrb.mxu1 %v1051_v4  ;;  %1299 = vmatpush.msrb.mxu2 %v1052_v5  ;;  %v11459_v4 = vpack.i.bf16 %v12864_v50, %v12815_v21  ;;  %v11469_v5 = vpack.i.bf16 %v12878_v6, %v12851_v39 }
 0x1bc   :  { %11350 = vrot.lane.b32.xlu1 %v12984_v8, %s11669_s23 }
 0x1bd   :  { %10695 = vmatmul.msk.f32.vlgmr.msra.gmra.mxu3 %vm1080_vm5, %v12917_v13  ;;  %10696 = vmatmul.msk.f32.vlgmr.msrb.gmra.mxu0 %vm1080_vm5, %v12917_v13 }
 0x1be   :  { %10697 = vmatmul.msk.f32.vlgmr.msrb.gmra.mxu1 %vm1080_vm5, %v12917_v13  ;;  %10698 = vmatmul.msk.f32.vlgmr.msrb.gmra.mxu2 %vm1080_vm5, %v12917_v13 }
 0x1c1   :  { %11300 = vrot.lane.b32.xlu0 %v12998_v9, %s11668_s2 }
 0x1c2   :  { %11355 = vrot.lane.b32.xlu2 %v13002_v15, %s11669_s23 }
 0x1c4   :  { %11365 = vrot.lane.b32.xlu1 %v13010_v18, %s11669_s23 }
 0x1c8   :  { %v11261_v29 = vpop.permute.xlu1 %11260 }
 0x1c9   :  { %11315 = vrot.lane.b32.xlu0 %v11314_v26, %s11668_s2  ;;  %v11262_v32 = vunpack.i.l.bf16 %v11261_v29  ;;  %v11263_v45 = vunpack.i.h.bf16 %v11261_v29  ;;  %v11434_v29 = vpack.i.bf16 %v12819_v23, %v12778_v61 }
 0x1ca   :  { %11370 = vrot.lane.b32.xlu2 %v13018_v28, %s11669_s23 }
 0x1cb   :  { %v1053_v33 = vsel %vm1041_vm3, %v11257_v58, %v11262_v32  ;;  %v11444_v58 = vpack.i.bf16 %v12817_v22, %v12786_v63 }
 0x1cc   :  { %11380 = vrot.lane.b32.xlu1 %v12782_v62, %s11670_s24  ;;  %1319 = vmatpush.msrb.mxu3 %v1053_v33 }
 0x1cd   :  { %10699 = vmatmul.msk.f32.vlgmr.msrb.gmra.mxu3 %vm1080_vm5, %v12917_v13 }
 0x1d1   :  { %11330 = vrot.lane.b32.xlu0 %v11329_v35, %s11669_s23 }
 0x1d2   :  { %11385 = vrot.lane.b32.xlu2 %v12810_v19, %s11670_s24 }
 0x1d4   :  { %11395 = vrot.lane.b32.xlu1 %v12792_v2, %s11670_s24 }
 0x1d9   :  { %11345 = vrot.lane.b32.xlu0 %v11344_v36, %s11669_s23 }
 0x1da   :  { %11400 = vrot.lane.b32.xlu2 %v12825_v25, %s11670_s24 }
 0x1dc   :  { %11410 = vrot.lane.b32.xlu1 %v12855_v40, %s11670_s24 }
 0x1e1   :  { %11360 = vrot.lane.b32.xlu0 %v13044_v42, %s11669_s23 }
 0x1e2   :  { %11415 = vrot.lane.b32.xlu2 %v12870_v54, %s11670_s24  ;;  %v11266_v46 = vpop.permute.xlu2 %11265 }
 0x1e3   :  { %v11268_v47 = vunpack.i.h.bf16 %v11266_v46  ;;  %v11267_v48 = vunpack.i.l.bf16 %v11266_v46 }
 0x1e4   :  { %11425 = vrot.lane.b32.xlu1 %v12882_v7, %s11670_s24 }
 0x1e5   :  { %v1054_v52 = vsel %vm1041_vm3, %v11262_v32, %v11268_v47  ;;  %v1055_v53 = vsel %vm1041_vm3, %v11268_v47, %v11263_v45  ;;  %v1056_v55 = vsel %vm1041_vm3, %v11263_v45, %v11267_v48  ;;  %v11449_v32 = vpack.i.bf16 %v12836_v30, %v12821_v24 }
 0x1e6   :  { %1339 = vmatpush.msra.mxu0 %v1054_v52  ;;  %1359 = vmatpush.msra.mxu1 %v1055_v53 }
 0x1e7   :  { %1379 = vmatpush.msra.mxu2 %v1056_v55  ;;  %10700 = vmatmul.msk.f32.vlgmr.msra.gmra.mxu0 %vm1080_vm5, %v12917_v13 }
 0x1e8   :  { %10701 = vmatmul.msk.f32.vlgmr.msra.gmra.mxu1 %vm1080_vm5, %v12917_v13  ;;  %10702 = vmatmul.msk.f32.vlgmr.msra.gmra.mxu2 %vm1080_vm5, %v12917_v13 }
 0x1e9   :  { %11375 = vrot.lane.b32.xlu0 %v13057_v57, %s11669_s23 }
 0x1ea   :  { %11430 = vrot.lane.b32.xlu2 %v12810_v19, %s11671_s1 }
 0x1ec   :  { %11440 = vrot.lane.b32.xlu1 %v11439_v59, %s11671_s1 }
 0x1f1   :  { %11390 = vrot.lane.b32.xlu0 %v12829_v27, %s11670_s24 }
 0x1f2   :  { %11445 = vrot.lane.b32.xlu2 %v11444_v58, %s11671_s1 }
 0x1f4   :  { %11455 = vrot.lane.b32.xlu1 %v11454_v3, %s11671_s1 }
 0x1f9   :  { %11405 = vrot.lane.b32.xlu0 %v12843_v34, %s11670_s24 }
 0x1fa   :  { %11460 = vrot.lane.b32.xlu2 %v11459_v4, %s11671_s1 }
 0x1fc   :  { %11470 = vrot.lane.b32.xlu1 %v11469_v5, %s11671_s1 }
 0x201   :  { %11420 = vrot.lane.b32.xlu0 %v12938_v43, %s11670_s24 }
 0x202   :  { %11475 = vrot.lane.b32.xlu2 %v12810_v19, %s11672_s0 }
 0x204   :  { %11480 = vrot.lane.b32.xlu1 %v12969_v56, %s11672_s0  ;;  %v11464_v56 = vpack.i.bf16 %v12932_v37, %v12866_v51 }
 0x209   :  { %11435 = vrot.lane.b32.xlu0 %v11434_v29, %s11671_s1 }
 0x20a   :  { %11485 = vrot.lane.b32.xlu2 %v12896_v11, %s11672_s0  ;;  %v11276_v11 = vpop.permute.xlu1 %11275 }
 0x20c   :  { %11500 = vrot.lane.b32.xlu1 %v12998_v9, %s11672_s0  ;;  %v11278_v9 = vunpack.i.h.bf16 %v11276_v11 }
 0x211   :  { %11450 = vrot.lane.b32.xlu0 %v11449_v32, %s11671_s1 }
 0x212   :  { %11505 = vrot.lane.b32.xlu2 %v12908_v12, %s11672_s0 }
 0x214   :  { %11515 = vrot.lane.b32.xlu1 %v11314_v26, %s11672_s0  ;;  %v11277_v26 = vunpack.i.l.bf16 %v11276_v11 }
 0x219   :  { %11465 = vrot.lane.b32.xlu0 %v11464_v56, %s11671_s1 }
 0x21a   :  { %11520 = vrot.lane.b32.xlu2 %v12928_v20, %s11672_s0 }
 0x21c   :  { %11530 = vrot.lane.b32.xlu1 %v11329_v35, %s11673_s25 }
 0x221   :  { %11490 = vrot.lane.b32.xlu0 %v12942_v44, %s11671_s1 }
 0x222   :  { %11535 = vrot.lane.b32.xlu2 %v12954_v49, %s11673_s25 }
 0x223   :  { %v11271_v12 = vpop.permute.xlu0 %11270 }
 0x224   :  { %v11273_v33 = vunpack.i.h.bf16 %v11271_v12  ;;  %v11272_v45 = vunpack.i.l.bf16 %v11271_v12  ;;  %11545 = vrot.lane.b32.xlu1 %v11344_v36, %s11673_s25 }
 0x226   :  { %v1057_v46 = vsel %vm1041_vm3, %v11267_v48, %v11272_v45  ;;  %v1058_v20 = vsel %vm1041_vm3, %v11272_v45, %v11278_v9  ;;  %v1059_v35 = vsel %vm1041_vm3, %v11278_v9, %v11273_v33  ;;  %v1060_v47 = vsel %vm1041_vm3, %v11273_v33, %v11277_v26 }
 0x227   :  { %1399 = vmatpush.msra.mxu3 %v1057_v46  ;;  %1419 = vmatpush.msrb.mxu0 %v1058_v20 }
 0x228   :  { %1439 = vmatpush.msrb.mxu1 %v1059_v35  ;;  %1459 = vmatpush.msrb.mxu2 %v1060_v47 }
 0x229   :  { %10703 = vmatmul.msk.f32.vlgmr.msra.gmra.mxu3 %vm1080_vm5, %v12917_v13  ;;  %10704 = vmatmul.msk.f32.vlgmr.msrb.gmra.mxu0 %vm1080_vm5, %v12917_v13 }
 0x22a   :  { %10705 = vmatmul.msk.f32.vlgmr.msrb.gmra.mxu1 %vm1080_vm5, %v12917_v13  ;;  %10706 = vmatmul.msk.f32.vlgmr.msrb.gmra.mxu2 %vm1080_vm5, %v12917_v13 }
 0x22b   :  { %1482 = vmatpush.msrb.mxu3 %v12804_v16  ;;  %1502 = vmatpush.msra.mxu0 %v12806_v17  ;;  %v13143_v16 = vld [vmem:[%s16744_s3] sm:$0xf]  ;;  %v11291_v17 = vpop.permute.xlu1 %11290 }
 0x22c   :  { %1522 = vmatpush.msra.mxu1 %v12776_v60  ;;  %1542 = vmatpush.msra.mxu2 %v12778_v61  ;;  %v11281_v60 = vpop.permute.xlu2 %11280 }
 0x22d   :  { %11495 = vrot.lane.b32.xlu0 %v12892_v10, %s11672_s0  ;;  %11550 = vrot.lane.b32.xlu2 %v12984_v8, %s11673_s25  ;;  %v11283_v61 = vunpack.i.h.bf16 %v11281_v60 }
 0x22e   :  { %1562 = vmatpush.msra.mxu3 %v12819_v23  ;;  %1582 = vmatpush.msrb.mxu0 %v12788_v0  ;;  %v11286_v0 = vpop.permute.xlu0 %11285  ;;  %v11293_v23 = vunpack.i.h.bf16 %v11291_v17 }
 0x22f   :  { %1602 = vmatpush.msrb.mxu1 %v12821_v24  ;;  %1622 = vmatpush.msrb.mxu2 %v12786_v63  ;;  %v11282_v63 = vunpack.i.l.bf16 %v11281_v60  ;;  %v11292_v24 = vunpack.i.l.bf16 %v11291_v17 }
 0x230   :  { %11560 = vrot.lane.b32.xlu1 %v13044_v42, %s11673_s25 }
 0x231   :  { %10707 = vmatmul.msk.f32.vlgmr.msrb.gmra.mxu3 %vm1080_vm5, %v13143_v16  ;;  %10708 = vmatmul.msk.f32.vlgmr.msra.gmra.mxu0 %vm1080_vm5, %v13143_v16 }
 0x232   :  { %10709 = vmatmul.msk.f32.vlgmr.msra.gmra.mxu1 %vm1080_vm5, %v13143_v16  ;;  %10710 = vmatmul.msk.f32.vlgmr.msra.gmra.mxu2 %vm1080_vm5, %v13143_v16 }
 0x233   :  { %1642 = vmatpush.msrb.mxu3 %v12817_v22  ;;  %1662 = vmatpush.msra.mxu0 %v12836_v30  ;;  %v11288_v22 = vunpack.i.h.bf16 %v11286_v0 }
 0x234   :  { %1682 = vmatpush.msra.mxu1 %v12815_v21  ;;  %1702 = vmatpush.msra.mxu2 %v12838_v31  ;;  %v11287_v21 = vunpack.i.l.bf16 %v11286_v0  ;;  %v11296_v30 = vpop.permute.xlu2 %11295 }
 0x235   :  { %11510 = vrot.lane.b32.xlu0 %v12904_v14, %s11672_s0  ;;  %11565 = vrot.lane.b32.xlu2 %v13010_v18, %s11673_s25  ;;  %v11298_v10 = vunpack.i.h.bf16 %v11296_v30  ;;  %v11306_v14 = vpop.permute.xlu1 %11305 }
 0x236   :  { %v11301_v31 = vpop.permute.xlu0 %11300  ;;  %v11308_v49 = vunpack.i.h.bf16 %v11306_v14 }
 0x238   :  { %11575 = vrot.lane.b32.xlu1 %v13057_v57, %s11673_s25 }
 0x239   :  { %10711 = vmatmul.msk.f32.vlgmr.msra.gmra.mxu3 %vm1080_vm5, %v13143_v16  ;;  %10712 = vmatmul.msk.f32.vlgmr.msrb.gmra.mxu0 %vm1080_vm5, %v13143_v16 }
 0x23a   :  { %10713 = vmatmul.msk.f32.vlgmr.msrb.gmra.mxu1 %vm1080_vm5, %v13143_v16  ;;  %10714 = vmatmul.msk.f32.vlgmr.msrb.gmra.mxu2 %vm1080_vm5, %v13143_v16 }
 0x23b   :  { %1722 = vmatpush.msra.mxu3 %v12849_v38  ;;  %1742 = vmatpush.msrb.mxu0 %v12864_v50  ;;  %v1894_v38 = vsel %vm1889_vm6, %v11288_v22, %v11292_v24  ;;  %v11302_v50 = vunpack.i.l.bf16 %v11301_v31 }
 0x23c   :  { %1762 = vmatpush.msrb.mxu1 %v12851_v39  ;;  %1782 = vmatpush.msrb.mxu2 %v12866_v51  ;;  %v11303_v39 = vunpack.i.h.bf16 %v11301_v31  ;;  %v13222_v51 = vld [vmem:[%s16744_s3 + $0x8] sm:$0xf] }
 0x23d   :  { %11525 = vrot.lane.b32.xlu0 %v12942_v44, %s11672_s0  ;;  %11580 = vrot.lane.b32.xlu2 %v12782_v62, %s11674_s28  ;;  %v1890_v62 = vsel %vm1889_vm6, %v11282_v63, %v11283_v61  ;;  %v11307_v44 = vunpack.i.l.bf16 %v11306_v14  ;;  %v11321_v42 = vpop.permute.xlu1 %11320  ;;  %v13315_v14 = vpop.f32.mrf.mxu1 }
 0x23e   :  { %v11323_v53 = vunpack.i.h.bf16 %v11321_v42  ;;  %v11322_v57 = vunpack.i.l.bf16 %v11321_v42 }
 0x23f   :  { %v1899_v18 = vsel %vm1889_vm6, %v11302_v50, %v11307_v44 }
 0x240   :  { %11590 = vrot.lane.b32.xlu1 %v12829_v27, %s11674_s28  ;;  %v1892_v27 = vsel %vm1889_vm6, %v11287_v21, %v11293_v23 }
 0x241   :  { %10715 = vmatmul.msk.f32.vlgmr.msrb.gmra.mxu3 %vm1080_vm5, %v13143_v16  ;;  %10716 = vmatmul.msk.f32.vlgmr.msra.gmra.mxu0 %vm1080_vm5, %v13143_v16 }
 0x242   :  { %10717 = vmatmul.msk.f32.vlgmr.msra.gmra.mxu1 %vm1080_vm5, %v13143_v16  ;;  %10718 = vmatmul.msk.f32.vlgmr.msra.gmra.mxu2 %vm1080_vm5, %v13143_v16 }
 0x243   :  { %1802 = vmatpush.msrb.mxu3 %v12932_v37  ;;  %1822 = vmatpush.msra.mxu0 %v12878_v6  ;;  %v11297_v6 = vunpack.i.l.bf16 %v11296_v30  ;;  %v1897_v37 = vsel %vm1889_vm6, %v11303_v39, %v11298_v10 }
 0x244   :  { %1842 = vmatpush.msra.mxu1 %v12934_v41  ;;  %1946 = vmatpush.msra.mxu2 %v1890_v62  ;;  %v1898_v41 = vsel %vm1889_vm6, %v11298_v10, %v11302_v50  ;;  %v13313_v50 = vpop.f32.mrf.mxu0 }
 0x245   :  { %11540 = vrot.lane.b32.xlu0 %v12973_v1, %s11673_s25  ;;  %11595 = vrot.lane.b32.xlu2 %v12792_v2, %s11674_s28  ;;  %v1891_v2 = vsel %vm1889_vm6, %v11283_v61, %v11287_v21  ;;  %v1896_v13 = vsel %vm1889_vm6, %v11297_v6, %v11303_v39  ;;  %v11316_v1 = vpop.permute.xlu0 %11315  ;;  %v11336_v32 = vpop.permute.xlu1 %11335 }
 0x246   :  { %v11317_v48 = vunpack.i.l.bf16 %v11316_v1  ;;  %v11318_v52 = vunpack.i.h.bf16 %v11316_v1  ;;  %v11338_v12 = vunpack.i.h.bf16 %v11336_v32  ;;  %v13343_v42 = vpop.f32.mrf.mxu1 }
 0x248   :  { %11605 = vrot.lane.b32.xlu1 %v12843_v34, %s11674_s28  ;;  %v1893_v34 = vsel %vm1889_vm6, %v11293_v23, %v11288_v22  ;;  %v1904_v58 = vsel %vm1889_vm6, %v11317_v48, %v11323_v53  ;;  %v1905_v3 = vsel %vm1889_vm6, %v11323_v53, %v11318_v52  ;;  %v1906_v4 = vsel %vm1889_vm6, %v11318_v52, %v11322_v57  ;;  %v13299_v23 = vld [vmem:[%s16744_s3 + $0xc] sm:$0xf] }
 0x249   :  { %10719 = vmatmul.msk.f32.vlgmr.msra.gmra.mxu3 %vm1080_vm5, %v13143_v16  ;;  %10720 = vmatmul.msk.f32.vlgmr.msrb.gmra.mxu0 %vm1080_vm5, %v13143_v16 }
 0x24a   :  { %10721 = vmatmul.msk.f32.vlgmr.msrb.gmra.mxu1 %vm1080_vm5, %v13143_v16  ;;  %10722 = vmatmul.msk.f32.vlgmr.msrb.gmra.mxu2 %vm1080_vm5, %v13143_v16 }
 0x24b   :  { %1966 = vmatpush.msra.mxu3 %v1891_v2  ;;  %1986 = vmatpush.msrb.mxu0 %v1892_v27 }
 0x24c   :  { %2006 = vmatpush.msrb.mxu1 %v1893_v34  ;;  %2026 = vmatpush.msrb.mxu2 %v1894_v38 }
 0x24d   :  { %11555 = vrot.lane.b32.xlu0 %v13002_v15, %s11673_s25  ;;  %11610 = vrot.lane.b32.xlu2 %v12855_v40, %s11674_s28  ;;  %v1895_v40 = vsel %vm1889_vm6, %v11292_v24, %v11297_v6  ;;  %v11331_v59 = vpop.permute.xlu0 %11330  ;;  %v11351_v60 = vpop.permute.xlu1 %11350 }
 0x24e   :  { %v11333_v56 = vunpack.i.h.bf16 %v11331_v59  ;;  %v11332_v11 = vunpack.i.l.bf16 %v11331_v59  ;;  %v11353_v21 = vunpack.i.h.bf16 %v11351_v60  ;;  %v11352_v22 = vunpack.i.l.bf16 %v11351_v60 }
 0x250   :  { %11620 = vrot.lane.b32.xlu1 %v12938_v43, %s11674_s28  ;;  %v11311_v43 = vpop.permute.xlu2 %11310  ;;  %v2373_v45 = vsel %vm2372_vm7, %v11338_v12, %v11332_v11  ;;  %v2374_v46 = vsel %vm2372_vm7, %v11332_v11, %v11333_v56  ;;  %v2382_v38 = vsel %vm2372_vm7, %v11352_v22, %v11353_v21 }
 0x251   :  { %10723 = vmatmul.msk.f32.vlgmr.msrb.gmra.mxu3 %vm1080_vm5, %v13143_v16  ;;  %10724 = vmatmul.msk.f32.vlgmr.msra.gmra.mxu0 %vm1080_vm5, %v13143_v16  ;;  %v11313_v8 = vunpack.i.h.bf16 %v11311_v43  ;;  %v11312_v15 = vunpack.i.l.bf16 %v11311_v43 }
 0x252   :  { %10725 = vmatmul.msk.f32.vlgmr.msra.gmra.mxu1 %vm1080_vm5, %v13143_v16  ;;  %10727 = vmatmul.msk.f32.vlgmr.msra.gmra.mxu2 %vm1080_vm5, %v13222_v51  ;;  %v11337_v16 = vunpack.i.l.bf16 %v11336_v32 }
 0x253   :  { %2046 = vmatpush.msrb.mxu3 %v1895_v40  ;;  %2066 = vmatpush.msra.mxu0 %v1896_v13  ;;  %v1902_v36 = vsel %vm1889_vm6, %v11308_v49, %v11312_v15 }
 0x254   :  { %2086 = vmatpush.msra.mxu1 %v1897_v37  ;;  %2106 = vmatpush.msra.mxu2 %v1898_v41  ;;  %v2375_v61 = vsel %vm2372_vm7, %v11333_v56, %v11337_v16 }
 0x255   :  { %11570 = vrot.lane.b32.xlu0 %v13018_v28, %s11673_s25  ;;  %11625 = vrot.lane.b32.xlu2 %v12882_v7, %s11674_s28  ;;  %v1900_v7 = vsel %vm1889_vm6, %v11307_v44, %v11313_v8  ;;  %v1901_v28 = vsel %vm1889_vm6, %v11313_v8, %v11308_v49  ;;  %v11346_v33 = vpop.permute.xlu0 %11345  ;;  %v11366_v31 = vpop.permute.xlu1 %11365 }
 0x256   :  { %v11347_v20 = vunpack.i.l.bf16 %v11346_v33  ;;  %v11348_v17 = vunpack.i.h.bf16 %v11346_v33  ;;  %v11367_v39 = vunpack.i.l.bf16 %v11366_v31  ;;  %v13329_v49 = vpop.f32.mrf.mxu2 }
 0x258   :  { %v11326_v55 = vpop.permute.xlu2 %11325 }
 0x259   :  { %10728 = vmatmul.msk.f32.vlgmr.msra.gmra.mxu3 %vm1080_vm5, %v13222_v51  ;;  %10729 = vmatmul.msk.f32.vlgmr.msrb.gmra.mxu0 %vm1080_vm5, %v13222_v51  ;;  %v11328_v5 = vunpack.i.h.bf16 %v11326_v55  ;;  %v11327_v29 = vunpack.i.l.bf16 %v11326_v55 }
 0x25a   :  { %10730 = vmatmul.msk.f32.vlgmr.msrb.gmra.mxu1 %vm1080_vm5, %v13222_v51  ;;  %10731 = vmatmul.msk.f32.vlgmr.msrb.gmra.mxu2 %vm1080_vm5, %v13222_v51 }
 0x25b   :  { %2126 = vmatpush.msra.mxu3 %v1899_v18  ;;  %2146 = vmatpush.msrb.mxu0 %v1900_v7  ;;  %v1908_v9 = vsel %vm1889_vm6, %v11327_v29, %v11328_v5  ;;  %v11368_v18 = vunpack.i.h.bf16 %v11366_v31  ;;  %v13331_v7 = vpop.f32.mrf.mxu0 }
 0x25c   :  { %2166 = vmatpush.msrb.mxu1 %v1901_v28  ;;  %2186 = vmatpush.msrb.mxu2 %v1902_v36 }
 0x25d   :  { %11585 = vrot.lane.b32.xlu0 %v12810_v19, %s11674_s28  ;;  %v1903_v19 = vsel %vm1889_vm6, %v11312_v15, %v11317_v48  ;;  %v11361_v2 = vpop.permute.xlu0 %11360  ;;  %v11381_v52 = vpop.permute.xlu1 %11380 }
 0x25e   :  { %v11362_v6 = vunpack.i.l.bf16 %v11361_v2  ;;  %v13349_v5 = vpop.f32.mrf.mxu2 }
 0x260   :  { %v11341_v26 = vpop.permute.xlu2 %11340  ;;  %v2385_v43 = vsel %vm2372_vm7, %v11367_v39, %v11362_v6 }
 0x261   :  { %10732 = vmatmul.msk.f32.vlgmr.msrb.gmra.mxu3 %vm1080_vm5, %v13222_v51  ;;  %10733 = vmatmul.msk.f32.vlgmr.msra.gmra.mxu0 %vm1080_vm5, %v13222_v51  ;;  %v11343_v35 = vunpack.i.h.bf16 %v11341_v26  ;;  %v11342_v47 = vunpack.i.l.bf16 %v11341_v26 }
 0x262   :  { %10734 = vmatmul.msk.f32.vlgmr.msra.gmra.mxu1 %vm1080_vm5, %v13222_v51  ;;  %10735 = vmatmul.msk.f32.vlgmr.msra.gmra.mxu2 %vm1080_vm5, %v13222_v51 }
 0x263   :  { %2206 = vmatpush.msrb.mxu3 %v1903_v19  ;;  %2226 = vmatpush.msra.mxu0 %v1904_v58  ;;  %v2377_v63 = vsel %vm2372_vm7, %v11347_v20, %v11342_v47  ;;  %v2378_v0 = vsel %vm2372_vm7, %v11342_v47, %v11343_v35  ;;  %v2379_v27 = vsel %vm2372_vm7, %v11343_v35, %v11348_v17  ;;  %v13347_v58 = vpop.f32.mrf.mxu3  ;;  %v13361_v11 = vpop.f32.mrf.mxu0 }
 0x264   :  { %2246 = vmatpush.msra.mxu1 %v1905_v3  ;;  %2266 = vmatpush.msra.mxu2 %v1906_v4  ;;  %v11383_v3 = vunpack.i.h.bf16 %v11381_v52  ;;  %v11382_v4 = vunpack.i.l.bf16 %v11381_v52 }
 0x265   :  { %11600 = vrot.lane.b32.xlu0 %v12825_v25, %s11674_s28  ;;  %v1907_v25 = vsel %vm1889_vm6, %v11322_v57, %v11327_v29  ;;  %v11376_v41 = vpop.permute.xlu0 %11375  ;;  %v11396_v26 = vpop.permute.xlu1 %11395 }
 0x266   :  { %v11377_v1 = vunpack.i.l.bf16 %v11376_v41  ;;  %v11378_v19 = vunpack.i.h.bf16 %v11376_v41  ;;  %v11397_v35 = vunpack.i.l.bf16 %v11396_v26  ;;  %v13373_v47 = vpop.f32.mrf.mxu2 }
 0x268   :  { %v11356_v62 = vpop.permute.xlu2 %11355  ;;  %v2388_v36 = vsel %vm2372_vm7, %v11368_v18, %v11377_v1 }
 0x269   :  { %10736 = vmatmul.msk.f32.vlgmr.msra.gmra.mxu3 %vm1080_vm5, %v13222_v51  ;;  %10737 = vmatmul.msk.f32.vlgmr.msrb.gmra.mxu0 %vm1080_vm5, %v13222_v51  ;;  %v11357_v24 = vunpack.i.l.bf16 %v11356_v62  ;;  %v11358_v10 = vunpack.i.h.bf16 %v11356_v62 }
 0x26a   :  { %10738 = vmatmul.msk.f32.vlgmr.msrb.gmra.mxu1 %vm1080_vm5, %v13222_v51  ;;  %10739 = vmatmul.msk.f32.vlgmr.msrb.gmra.mxu2 %vm1080_vm5, %v13222_v51 }
 0x26b   :  { %2286 = vmatpush.msra.mxu3 %v1907_v25  ;;  %2306 = vmatpush.msrb.mxu0 %v1908_v9  ;;  %v2380_v30 = vsel %vm2372_vm7, %v11348_v17, %v11357_v24  ;;  %v2381_v34 = vsel %vm2372_vm7, %v11357_v24, %v11352_v22  ;;  %v2383_v13 = vsel %vm2372_vm7, %v11353_v21, %v11358_v10  ;;  %v13365_v9 = vpop.f32.mrf.mxu1  ;;  %v13383_v62 = vpop.f32.mrf.mxu0  ;;  %v13390_v22 = vld [vmem:[%s16744_s3 + $0x10] sm:$0xf] }
 0x26c   :  { %2429 = vmatpush.msrb.mxu1 %v2373_v45  ;;  %2449 = vmatpush.msrb.mxu2 %v2374_v46  ;;  %v2384_v37 = vsel %vm2372_vm7, %v11358_v10, %v11367_v39  ;;  %v2858_v25 = vsel %vm2855_vm8, %v11382_v4, %v11383_v3  ;;  %v11398_v46 = vunpack.i.h.bf16 %v11396_v26 }
 0x26d   :  { %11615 = vrot.lane.b32.xlu0 %v12870_v54, %s11674_s28  ;;  %v2376_v54 = vsel %vm2372_vm7, %v11337_v16, %v11347_v20  ;;  %v11391_v29 = vpop.permute.xlu0 %11390  ;;  %v13367_v20 = vpop.f32.mrf.mxu3 }
 0x26e   :  { %v11392_v33 = vunpack.i.l.bf16 %v11391_v29  ;;  %v11393_v45 = vunpack.i.h.bf16 %v11391_v29  ;;  %v11411_v24 = vpop.permute.xlu1 %11410 }
 0x26f   :  { %v11412_v10 = vunpack.i.l.bf16 %v11411_v24 }
 0x270   :  { %v11371_v40 = vpop.permute.xlu2 %11370  ;;  %v2859_v16 = vsel %vm2855_vm8, %v11383_v3, %v11392_v33  ;;  %v2860_v60 = vsel %vm2855_vm8, %v11392_v33, %v11398_v46 }
 0x271   :  { %10740 = vmatmul.msk.f32.vlgmr.msrb.gmra.mxu3 %vm1080_vm5, %v13222_v51  ;;  %10741 = vmatmul.msk.f32.vlgmr.msra.gmra.mxu0 %vm1080_vm5, %v13222_v51  ;;  %v11373_v8 = vunpack.i.h.bf16 %v11371_v40  ;;  %v11372_v15 = vunpack.i.l.bf16 %v11371_v40 }
 0x272   :  { %10742 = vmatmul.msk.f32.vlgmr.msra.gmra.mxu1 %vm1080_vm5, %v13222_v51  ;;  %10743 = vmatmul.msk.f32.vlgmr.msra.gmra.mxu2 %vm1080_vm5, %v13222_v51 }
 0x273   :  { %2469 = vmatpush.msrb.mxu3 %v2375_v61  ;;  %2489 = vmatpush.msra.mxu0 %v2376_v54  ;;  %v2389_v53 = vsel %vm2372_vm7, %v11377_v1, %v11372_v15  ;;  %v2390_v55 = vsel %vm2372_vm7, %v11372_v15, %v11373_v8  ;;  %v2391_v32 = vsel %vm2372_vm7, %v11373_v8, %v11378_v19  ;;  %v13385_v21 = vpop.f32.mrf.mxu1 }
 0x274   :  { %2509 = vmatpush.msra.mxu1 %v2377_v63  ;;  %2529 = vmatpush.msra.mxu2 %v2378_v0  ;;  %v2861_v63 = vsel %vm2855_vm8, %v11398_v46, %v11393_v45  ;;  %v2862_v0 = vsel %vm2855_vm8, %v11393_v45, %v11397_v35 }
 0x275   :  { %v11406_v54 = vpop.permute.xlu0 %11405 }
 0x276   :  { %v11408_v17 = vunpack.i.h.bf16 %v11406_v54  ;;  %v11426_v1 = vpop.permute.xlu1 %11425 }
 0x277   :  { %v11427_v3 = vunpack.i.l.bf16 %v11426_v1 }
 0x278   :  { %v11386_v48 = vpop.permute.xlu2 %11385 }
 0x279   :  { %10744 = vmatmul.msk.f32.vlgmr.msra.gmra.mxu3 %vm1080_vm5, %v13222_v51  ;;  %10745 = vmatmul.msk.f32.vlgmr.msrb.gmra.mxu0 %vm1080_vm5, %v13222_v51  ;;  %v11363_v51 = vunpack.i.h.bf16 %v11361_v2  ;;  %v11388_v57 = vunpack.i.h.bf16 %v11386_v48  ;;  %v11387_v59 = vunpack.i.l.bf16 %v11386_v48  ;;  %v11407_v2 = vunpack.i.l.bf16 %v11406_v54 }
 0x27a   :  { %10747 = vmatmul.msk.f32.vlgmr.msrb.gmra.mxu1 %vm1080_vm5, %v13299_v23  ;;  %10748 = vmatmul.msk.f32.vlgmr.msrb.gmra.mxu2 %vm1080_vm5, %v13299_v23 }
 0x27b   :  { %2549 = vmatpush.msra.mxu3 %v2379_v27  ;;  %2569 = vmatpush.msrb.mxu0 %v2380_v30  ;;  %v2386_v44 = vsel %vm2372_vm7, %v11362_v6, %v11363_v51  ;;  %v2387_v28 = vsel %vm2372_vm7, %v11363_v51, %v11368_v18  ;;  %v2856_v56 = vsel %vm2855_vm8, %v11387_v59, %v11388_v57  ;;  %v13406_v51 = vpop.f32.mrf.mxu2 }
 0x27c   :  { %2589 = vmatpush.msrb.mxu1 %v2381_v34  ;;  %2609 = vmatpush.msrb.mxu2 %v2382_v38  ;;  %v2857_v12 = vsel %vm2855_vm8, %v11388_v57, %v11382_v4  ;;  %v13402_v38 = vpop.f32.mrf.mxu3  ;;  %v2867_v8 = vsel %vm2855_vm8, %v11407_v2, %v11412_v10  ;;  %v11428_v57 = vunpack.i.h.bf16 %v11426_v1 }
 0x280   :  { %v11401_v61 = vpop.permute.xlu2 %11400 }
 0x281   :  { %10749 = vmatmul.msk.f32.vlgmr.msrb.gmra.mxu3 %vm1080_vm5, %v13299_v23  ;;  %10750 = vmatmul.msk.f32.vlgmr.msra.gmra.mxu0 %vm1080_vm5, %v13299_v23  ;;  %v11402_v27 = vunpack.i.l.bf16 %v11401_v61  ;;  %v11403_v30 = vunpack.i.h.bf16 %v11401_v61 }
 0x282   :  { %10751 = vmatmul.msk.f32.vlgmr.msra.gmra.mxu1 %vm1080_vm5, %v13299_v23  ;;  %10752 = vmatmul.msk.f32.vlgmr.msra.gmra.mxu2 %vm1080_vm5, %v13299_v23 }
 0x283   :  { %2629 = vmatpush.msrb.mxu3 %v2383_v13  ;;  %2649 = vmatpush.msra.mxu0 %v2384_v37  ;;  %v2863_v31 = vsel %vm2855_vm8, %v11397_v35, %v11402_v27  ;;  %v2864_v34 = vsel %vm2855_vm8, %v11402_v27, %v11408_v17  ;;  %v2865_v39 = vsel %vm2855_vm8, %v11408_v17, %v11403_v30  ;;  %v11413_v13 = vunpack.i.h.bf16 %v11411_v24  ;;  %v11421_v37 = vpop.permute.xlu0 %11420 }
 0x284   :  { %2669 = vmatpush.msra.mxu1 %v2385_v43  ;;  %2689 = vmatpush.msra.mxu2 %v2386_v44  ;;  %v11422_v52 = vunpack.i.l.bf16 %v11421_v37 }
 0x288   :  { %v11416_v6 = vpop.permute.xlu2 %11415 }
 0x289   :  { %10753 = vmatmul.msk.f32.vlgmr.msra.gmra.mxu3 %vm1080_vm5, %v13299_v23  ;;  %10754 = vmatmul.msk.f32.vlgmr.msrb.gmra.mxu0 %vm1080_vm5, %v13299_v23  ;;  %v11418_v41 = vunpack.i.h.bf16 %v11416_v6  ;;  %v11417_v44 = vunpack.i.l.bf16 %v11416_v6 }
 0x28a   :  { %10755 = vmatmul.msk.f32.vlgmr.msrb.gmra.mxu1 %vm1080_vm5, %v13299_v23  ;;  %10756 = vmatmul.msk.f32.vlgmr.msrb.gmra.mxu2 %vm1080_vm5, %v13299_v23 }
 0x28b   :  { %2709 = vmatpush.msra.mxu3 %v2387_v28  ;;  %2729 = vmatpush.msrb.mxu0 %v2388_v36  ;;  %v2868_v15 = vsel %vm2855_vm8, %v11412_v10, %v11418_v41  ;;  %v2869_v18 = vsel %vm2855_vm8, %v11418_v41, %v11413_v13  ;;  %v2870_v28 = vsel %vm2855_vm8, %v11413_v13, %v11417_v44  ;;  %v11436_v4 = vpop.permute.xlu0 %11435 }
 0x28c   :  { %2749 = vmatpush.msrb.mxu1 %v2389_v53  ;;  %2769 = vmatpush.msrb.mxu2 %v2390_v55  ;;  %v11423_v55 = vunpack.i.h.bf16 %v11421_v37  ;;  %v2871_v29 = vsel %vm2855_vm8, %v11417_v44, %v11422_v52  ;;  %v11437_v61 = vunpack.i.l.bf16 %v11436_v4 }
 0x290   :  { %v11431_v19 = vpop.permute.xlu2 %11430 }
 0x291   :  { %10757 = vmatmul.msk.f32.vlgmr.msrb.gmra.mxu3 %vm1080_vm5, %v13299_v23  ;;  %10758 = vmatmul.msk.f32.vlgmr.msra.gmra.mxu0 %vm1080_vm5, %v13299_v23  ;;  %v11433_v45 = vunpack.i.h.bf16 %v11431_v19  ;;  %v11432_v46 = vunpack.i.l.bf16 %v11431_v19 }
 0x292   :  { %10759 = vmatmul.msk.f32.vlgmr.msra.gmra.mxu1 %vm1080_vm5, %v13299_v23  ;;  %10760 = vmatmul.msk.f32.vlgmr.msra.gmra.mxu2 %vm1080_vm5, %v13299_v23 }
 0x293   :  { %2789 = vmatpush.msrb.mxu3 %v2391_v32  ;;  %2912 = vmatpush.msra.mxu0 %v2856_v56  ;;  %v2872_v32 = vsel %vm2855_vm8, %v11422_v52, %v11428_v57  ;;  %v11441_v56 = vpop.permute.xlu1 %11440  ;;  %v11451_v24 = vpop.permute.xlu0 %11450 }
 0x294   :  { %2932 = vmatpush.msra.mxu1 %v2857_v12  ;;  %2952 = vmatpush.msra.mxu2 %v2858_v25  ;;  %v2873_v12 = vsel %vm2855_vm8, %v11428_v57, %v11423_v55  ;;  %v2874_v25 = vsel %vm2855_vm8, %v11423_v55, %v11427_v3  ;;  %v11442_v35 = vunpack.i.l.bf16 %v11441_v56  ;;  %v11443_v10 = vunpack.i.h.bf16 %v11441_v56  ;;  %v13494_v57 = vld [vmem:[%s16744_s3 + $0x14] sm:$0xf] }
 0x295   :  { %v11453_v52 = vunpack.i.h.bf16 %v11451_v24 }
 0x298   :  { %v11446_v17 = vpop.permute.xlu2 %11445 }
 0x299   :  { %10761 = vmatmul.msk.f32.vlgmr.msra.gmra.mxu3 %vm1080_vm5, %v13299_v23  ;;  %10762 = vmatmul.msk.f32.vlgmr.msrb.gmra.mxu0 %vm1080_vm5, %v13299_v23  ;;  %v11447_v6 = vunpack.i.l.bf16 %v11446_v17 }
 0x29a   :  { %10763 = vmatmul.msk.f32.vlgmr.msrb.gmra.mxu1 %vm1080_vm5, %v13299_v23  ;;  %10764 = vmatmul.msk.f32.vlgmr.msrb.gmra.mxu2 %vm1080_vm5, %v13299_v23 }
 0x29b   :  { %2972 = vmatpush.msra.mxu3 %v2859_v16  ;;  %2992 = vmatpush.msrb.mxu0 %v2860_v60  ;;  %v11438_v60 = vunpack.i.h.bf16 %v11436_v4  ;;  %v11456_v37 = vpop.permute.xlu1 %11455 }
 0x29c   :  { %3012 = vmatpush.msrb.mxu1 %v2861_v63  ;;  %3032 = vmatpush.msrb.mxu2 %v2862_v0  ;;  %v3339_v63 = vsel %vm3338_vm9, %v11432_v46, %v11433_v45  ;;  %v3340_v0 = vsel %vm3338_vm9, %v11433_v45, %v11442_v35  ;;  %v11458_v19 = vunpack.i.h.bf16 %v11456_v37  ;;  %v11457_v3 = vunpack.i.l.bf16 %v11456_v37 }
 0x29d   :  { %v3342_v27 = vsel %vm3338_vm9, %v11437_v61, %v11438_v60  ;;  %v3343_v41 = vsel %vm3338_vm9, %v11438_v60, %v11443_v10 }
 0x29e   :  { %v3350_v45 = vsel %vm3338_vm9, %v11457_v3, %v11458_v19 }
 0x2a1   :  { %10765 = vmatmul.msk.f32.vlgmr.msrb.gmra.mxu3 %vm1080_vm5, %v13299_v23  ;;  %10767 = vmatmul.msk.f32.vlgmr.msra.gmra.mxu0 %vm1080_vm5, %v13390_v22  ;;  %v2866_v23 = vsel %vm2855_vm8, %v11403_v30, %v11407_v2  ;;  %v3341_v2 = vsel %vm3338_vm9, %v11442_v35, %v11437_v61 }
 0x2a2   :  { %10768 = vmatmul.msk.f32.vlgmr.msra.gmra.mxu1 %vm1080_vm5, %v13390_v22  ;;  %10769 = vmatmul.msk.f32.vlgmr.msra.gmra.mxu2 %vm1080_vm5, %v13390_v22 }
 0x2a3   :  { %3052 = vmatpush.msrb.mxu3 %v2863_v31  ;;  %3072 = vmatpush.msra.mxu0 %v2864_v34  ;;  %v11452_v34 = vunpack.i.l.bf16 %v11451_v24 }
 0x2a4   :  { %3092 = vmatpush.msra.mxu1 %v2865_v39  ;;  %3112 = vmatpush.msra.mxu2 %v2866_v23  ;;  %v11448_v23 = vunpack.i.h.bf16 %v11446_v17 }
 0x2a5   :  { %v3344_v44 = vsel %vm3338_vm9, %v11443_v10, %v11452_v34  ;;  %v3345_v1 = vsel %vm3338_vm9, %v11452_v34, %v11447_v6 }
 0x2a6   :  { %v13408_v40 = vpop.f32.mrf.mxu0 }
 0x2a7   :  { %v13410_v43 = vpop.f32.mrf.mxu1 }
 0x2a9   :  { %10770 = vmatmul.msk.f32.vlgmr.msra.gmra.mxu3 %vm1080_vm5, %v13390_v22  ;;  %10771 = vmatmul.msk.f32.vlgmr.msrb.gmra.mxu0 %vm1080_vm5, %v13390_v22 }
 0x2aa   :  { %10772 = vmatmul.msk.f32.vlgmr.msrb.gmra.mxu1 %vm1080_vm5, %v13390_v22  ;;  %10773 = vmatmul.msk.f32.vlgmr.msrb.gmra.mxu2 %vm1080_vm5, %v13390_v22 }
 0x2ab   :  { %3132 = vmatpush.msra.mxu3 %v2867_v8  ;;  %3152 = vmatpush.msrb.mxu0 %v2868_v15  ;;  %v3346_v8 = vsel %vm3338_vm9, %v11447_v6, %v11448_v23 }
 0x2ac   :  { %3172 = vmatpush.msrb.mxu1 %v2869_v18  ;;  %3192 = vmatpush.msrb.mxu2 %v2870_v28  ;;  %v13424_v36 = vpop.f32.mrf.mxu3  ;;  %v11461_v18 = vpop.permute.xlu2 %11460 }
 0x2ad   :  { %v13426_v48 = vpop.f32.mrf.mxu2  ;;  %v11462_v4 = vunpack.i.l.bf16 %v11461_v18 }
 0x2ae   :  { %v13428_v53 = vpop.f32.mrf.mxu0 }
 0x2af   :  { %v13430_v59 = vpop.f32.mrf.mxu1  ;;  %v3348_v56 = vsel %vm3338_vm9, %v11453_v52, %v11462_v4 }
 0x2b1   :  { %10774 = vmatmul.msk.f32.vlgmr.msrb.gmra.mxu3 %vm1080_vm5, %v13390_v22  ;;  %10775 = vmatmul.msk.f32.vlgmr.msra.gmra.mxu0 %vm1080_vm5, %v13390_v22 }
 0x2b2   :  { %10776 = vmatmul.msk.f32.vlgmr.msra.gmra.mxu1 %vm1080_vm5, %v13390_v22  ;;  %10777 = vmatmul.msk.f32.vlgmr.msra.gmra.mxu2 %vm1080_vm5, %v13390_v22 }
 0x2b3   :  { %3212 = vmatpush.msrb.mxu3 %v2871_v29  ;;  %3232 = vmatpush.msra.mxu0 %v2872_v32  ;;  %v11466_v32 = vpop.permute.xlu0 %11465 }
 0x2b4   :  { %3252 = vmatpush.msra.mxu1 %v2873_v12  ;;  %3272 = vmatpush.msra.mxu2 %v2874_v25  ;;  %v13444_v26 = vpop.f32.mrf.mxu3  ;;  %v11471_v12 = vpop.permute.xlu1 %11470  ;;  %v3349_v25 = vsel %vm3338_vm9, %v11462_v4, %v11457_v3  ;;  %v11468_v17 = vunpack.i.h.bf16 %v11466_v32  ;;  %v11467_v24 = vunpack.i.l.bf16 %v11466_v32 }
 0x2b5   :  { %v13446_v33 = vpop.f32.mrf.mxu2  ;;  %v11472_v61 = vunpack.i.l.bf16 %v11471_v12  ;;  %v11476_v34 = vpop.permute.xlu2 %11475  ;;  %v1485_v37 = vadd.f32 %v13444_v26, %v13313_v50  ;;  %v11473_v4 = vunpack.i.h.bf16 %v11471_v12 }
 0x2b6   :  { %v13448_v16 = vpop.f32.mrf.mxu0  ;;  %v3354_v10 = vsel %vm3338_vm9, %v11467_v24, %v11468_v17 }
 0x2b7   :  { %v13450_v54 = vpop.f32.mrf.mxu1  ;;  %v3353_v6 = vsel %vm3338_vm9, %v11472_v61, %v11467_v24  ;;  %v3355_v50 = vsel %vm3338_vm9, %v11468_v17, %v11473_v4 }
 0x2b9   :  { %10778 = vmatmul.msk.f32.vlgmr.msra.gmra.mxu3 %vm1080_vm5, %v13390_v22  ;;  %10779 = vmatmul.msk.f32.vlgmr.msrb.gmra.mxu0 %vm1080_vm5, %v13390_v22 }
 0x2ba   :  { %10780 = vmatmul.msk.f32.vlgmr.msrb.gmra.mxu1 %vm1080_vm5, %v13390_v22  ;;  %10781 = vmatmul.msk.f32.vlgmr.msrb.gmra.mxu2 %vm1080_vm5, %v13390_v22 }
 0x2bb   :  { %3395 = vmatpush.msra.mxu3 %v3339_v63  ;;  %3415 = vmatpush.msrb.mxu0 %v3340_v0 }
 0x2bc   :  { %3435 = vmatpush.msrb.mxu1 %v3341_v2  ;;  %3455 = vmatpush.msrb.mxu2 %v3342_v27  ;;  %v13464_v30 = vpop.f32.mrf.mxu3  ;;  %v11463_v2 = vunpack.i.h.bf16 %v11461_v18  ;;  %v11481_v26 = vpop.permute.xlu1 %11480 }
 0x2bd   :  { %v13466_v31 = vpop.f32.mrf.mxu2  ;;  %v1565_v12 = vadd.f32 %v13464_v30, %v13331_v7  ;;  %v11483_v24 = vunpack.i.h.bf16 %v11481_v26 }
 0x2be   :  { %v13468_v39 = vpop.f32.mrf.mxu0 }
 0x2bf   :  { %v13470_v13 = vpop.f32.mrf.mxu1 }
 0x2c1   :  { %10782 = vmatmul.msk.f32.vlgmr.msrb.gmra.mxu3 %vm1080_vm5, %v13390_v22  ;;  %10783 = vmatmul.msk.f32.vlgmr.msra.gmra.mxu0 %vm1080_vm5, %v13390_v22 }
 0x2c2   :  { %10784 = vmatmul.msk.f32.vlgmr.msra.gmra.mxu1 %vm1080_vm5, %v13390_v22  ;;  %10785 = vmatmul.msk.f32.vlgmr.msra.gmra.mxu2 %vm1080_vm5, %v13390_v22 }
 0x2c3   :  { %3475 = vmatpush.msrb.mxu3 %v3343_v41  ;;  %3495 = vmatpush.msra.mxu0 %v3344_v44 }
 0x2c4   :  { %3515 = vmatpush.msra.mxu1 %v3345_v1  ;;  %3535 = vmatpush.msra.mxu2 %v3346_v8  ;;  %v13484_v15 = vpop.f32.mrf.mxu3 }
 0x2c5   :  { %v1704_v28 = vpop.f32.mrf.mxu2 }
 0x2c6   :  { %v13487_v55 = vadd.f32 %v1704_v28, %v13402_v38  ;;  %v13489_v22 = vpop.f32.mrf.mxu0  ;;  %v3347_v38 = vsel %vm3338_vm9, %v11448_v23, %v11453_v52  ;;  %v11491_v23 = vpop.permute.xlu0 %11490  ;;  %v11478_v52 = vunpack.i.h.bf16 %v11476_v34 }
 0x2c7   :  { %v13496_v29 = vpop.f32.mrf.mxu1  ;;  %v11492_v8 = vunpack.i.l.bf16 %v11491_v23  ;;  %v11493_v3 = vunpack.i.h.bf16 %v11491_v23 }
 0x2c9   :  { %10787 = vmatmul.msk.f32.vlgmr.msra.gmra.mxu3 %vm1080_vm5, %v13494_v57  ;;  %10788 = vmatmul.msk.f32.vlgmr.msrb.gmra.mxu0 %vm1080_vm5, %v13494_v57 }
 0x2ca   :  { %10789 = vmatmul.msk.f32.vlgmr.msrb.gmra.mxu1 %vm1080_vm5, %v13494_v57  ;;  %10790 = vmatmul.msk.f32.vlgmr.msrb.gmra.mxu2 %vm1080_vm5, %v13494_v57 }
 0x2cb   :  { %3555 = vmatpush.msra.mxu3 %v3347_v38  ;;  %3575 = vmatpush.msrb.mxu0 %v3348_v56  ;;  %v3357_v38 = vsel %vm3338_vm9, %v11492_v8, %v11493_v3 }
 0x2cc   :  { %3595 = vmatpush.msrb.mxu1 %v3349_v25  ;;  %3615 = vmatpush.msrb.mxu2 %v3350_v45  ;;  %v1724_v46 = vpop.f32.mrf.mxu3  ;;  %v11486_v45 = vpop.permute.xlu2 %11485 }
 0x2cd   :  { %v13511_v35 = vadd.f32 %v1724_v46, %v13383_v62  ;;  %v1784_v60 = vpop.f32.mrf.mxu2  ;;  %v3351_v62 = vsel %vm3338_vm9, %v11458_v19, %v11463_v2  ;;  %v11477_v19 = vunpack.i.l.bf16 %v11476_v34 }
 0x2ce   :  { %v13514_v63 = vadd.f32 %v1784_v60, %v13424_v36  ;;  %v13516_v0 = vpop.f32.mrf.mxu0  ;;  %v3352_v36 = vsel %vm3338_vm9, %v11463_v2, %v11472_v61  ;;  %v11482_v60 = vunpack.i.l.bf16 %v11481_v26  ;;  %v11488_v2 = vunpack.i.h.bf16 %v11486_v45  ;;  %v11496_v34 = vpop.permute.xlu0 %11495 }
 0x2cf   :  { %v13518_v27 = vpop.f32.mrf.mxu1  ;;  %v3822_v56 = vsel %vm3821_vm10, %v11477_v19, %v11478_v52  ;;  %v11498_v3 = vunpack.i.h.bf16 %v11496_v34 }
 0x2d0   :  { %v3823_v7 = vsel %vm3821_vm10, %v11478_v52, %v11482_v60  ;;  %v3824_v30 = vsel %vm3821_vm10, %v11482_v60, %v11488_v2  ;;  %v3825_v23 = vsel %vm3821_vm10, %v11488_v2, %v11483_v24 }
 0x2d1   :  { %10791 = vmatmul.msk.f32.vlgmr.msrb.gmra.mxu3 %vm1080_vm5, %v13494_v57  ;;  %10792 = vmatmul.msk.f32.vlgmr.msra.gmra.mxu0 %vm1080_vm5, %v13494_v57 }
 0x2d2   :  { %10793 = vmatmul.msk.f32.vlgmr.msra.gmra.mxu1 %vm1080_vm5, %v13494_v57  ;;  %10794 = vmatmul.msk.f32.vlgmr.msra.gmra.mxu2 %vm1080_vm5, %v13494_v57 }
 0x2d3   :  { %3635 = vmatpush.msrb.mxu3 %v3351_v62  ;;  %3655 = vmatpush.msra.mxu0 %v3352_v36  ;;  %v11487_v36 = vunpack.i.l.bf16 %v11486_v45 }
 0x2d4   :  { %3675 = vmatpush.msra.mxu1 %v3353_v6  ;;  %3695 = vmatpush.msra.mxu2 %v3354_v10  ;;  %v1804_v41 = vpop.f32.mrf.mxu3  ;;  %v1645_v10 = vadd.f32 %v13484_v15, %v13361_v11  ;;  %v11506_v15 = vpop.permute.xlu2 %11505 }
 0x2d5   :  { %v13535_v44 = vadd.f32 %v1804_v41, %v13408_v40  ;;  %v1948_v1 = vpop.f32.mrf.mxu2  ;;  %v3356_v40 = vsel %vm3338_vm9, %v11473_v4, %v11492_v8  ;;  %v3826_v6 = vsel %vm3821_vm10, %v11483_v24, %v11487_v36  ;;  %v11501_v41 = vpop.permute.xlu1 %11500  ;;  %v11497_v8 = vunpack.i.l.bf16 %v11496_v34  ;;  %v13588_v4 = vld [vmem:[%s16744_s3 + $0x18] sm:$0xf] }
 0x2d6   :  { %v13537_v18 = vadd.f32 %v1948_v1, %v1485_v37  ;;  %v13539_v28 = vpop.f32.mrf.mxu0  ;;  %v11502_v11 = vunpack.i.l.bf16 %v11501_v41 }
 0x2d7   :  { %v13541_v32 = vpop.f32.mrf.mxu1  ;;  %v3827_v26 = vsel %vm3821_vm10, %v11487_v36, %v11497_v8 }
 0x2d8   :  { %v3830_v45 = vsel %vm3821_vm10, %v11498_v3, %v11502_v11 }
 0x2d9   :  { %10795 = vmatmul.msk.f32.vlgmr.msra.gmra.mxu3 %vm1080_vm5, %v13494_v57  ;;  %10796 = vmatmul.msk.f32.vlgmr.msrb.gmra.mxu0 %vm1080_vm5, %v13494_v57 }
 0x2da   :  { %10797 = vmatmul.msk.f32.vlgmr.msrb.gmra.mxu1 %vm1080_vm5, %v13494_v57  ;;  %10798 = vmatmul.msk.f32.vlgmr.msrb.gmra.mxu2 %vm1080_vm5, %v13494_v57 }
 0x2db   :  { %3715 = vmatpush.msra.mxu3 %v3355_v50  ;;  %3735 = vmatpush.msrb.mxu0 %v3356_v40  ;;  %v11503_v50 = vunpack.i.h.bf16 %v11501_v41 }
 0x2dc   :  { %3755 = vmatpush.msrb.mxu1 %v3357_v38  ;;  %3878 = vmatpush.msrb.mxu2 %v3822_v56  ;;  %v13557_v25 = vpop.f32.mrf.mxu3  ;;  %v11511_v56 = vpop.permute.xlu0 %11510 }
 0x2dd   :  { %v2028_v46 = vpop.f32.mrf.mxu2  ;;  %v3828_v38 = vsel %vm3821_vm10, %v11497_v8, %v11503_v50  ;;  %v11516_v36 = vpop.permute.xlu1 %11515  ;;  %v11512_v34 = vunpack.i.l.bf16 %v11511_v56 }
 0x2de   :  { %v13559_v61 = vadd.f32 %v2028_v46, %v1565_v12  ;;  %v13561_v17 = vpop.f32.mrf.mxu0  ;;  %v3829_v12 = vsel %vm3821_vm10, %v11503_v50, %v11498_v3  ;;  %v11521_v8 = vpop.permute.xlu2 %11520 }
 0x2df   :  { %v13563_v62 = vpop.f32.mrf.mxu1 }
 0x2e1   :  { %10799 = vmatmul.msk.f32.vlgmr.msrb.gmra.mxu3 %vm1080_vm5, %v13494_v57  ;;  %10800 = vmatmul.msk.f32.vlgmr.msra.gmra.mxu0 %vm1080_vm5, %v13494_v57 }
 0x2e2   :  { %10801 = vmatmul.msk.f32.vlgmr.msra.gmra.mxu1 %vm1080_vm5, %v13494_v57  ;;  %10802 = vmatmul.msk.f32.vlgmr.msra.gmra.mxu2 %vm1080_vm5, %v13494_v57 }
 0x2e3   :  { %3898 = vmatpush.msrb.mxu3 %v3823_v7  ;;  %3918 = vmatpush.msra.mxu0 %v3824_v30  ;;  %v11507_v7 = vunpack.i.l.bf16 %v11506_v15 }
 0x2e4   :  { %3938 = vmatpush.msra.mxu1 %v3825_v23  ;;  %3958 = vmatpush.msra.mxu2 %v3826_v6  ;;  %v13579_v37 = vpop.f32.mrf.mxu3  ;;  %v11508_v23 = vunpack.i.h.bf16 %v11506_v15 }
 0x2e5   :  { %v2108_v1 = vpop.f32.mrf.mxu2 }
 0x2e6   :  { %v13581_v19 = vadd.f32 %v2108_v1, %v1645_v10  ;;  %v13583_v52 = vpop.f32.mrf.mxu0  ;;  %v1745_v10 = vadd.f32 %v13489_v22, %v13385_v21  ;;  %v3834_v1 = vsel %vm3821_vm10, %v11508_v23, %v11512_v34  ;;  %v11518_v21 = vunpack.i.h.bf16 %v11516_v36  ;;  %v11526_v22 = vpop.permute.xlu0 %11525 }
 0x2e7   :  { %v13590_v40 = vpop.f32.mrf.mxu1 }
 0x2e9   :  { %10803 = vmatmul.msk.f32.vlgmr.msra.gmra.mxu3 %vm1080_vm5, %v13494_v57  ;;  %10804 = vmatmul.msk.f32.vlgmr.msrb.gmra.mxu0 %vm1080_vm5, %v13494_v57 }
 0x2ea   :  { %10805 = vmatmul.msk.f32.vlgmr.msrb.gmra.mxu1 %vm1080_vm5, %v13494_v57  ;;  %10807 = vmatmul.msk.f32.vlgmr.msrb.gmra.mxu2 %vm1080_vm5, %v13588_v4  ;;  %v11513_v57 = vunpack.i.h.bf16 %v11511_v56  ;;  %v11523_v56 = vunpack.i.h.bf16 %v11521_v8 }
 0x2eb   :  { %3978 = vmatpush.msra.mxu3 %v3827_v26  ;;  %3998 = vmatpush.msrb.mxu0 %v3828_v38  ;;  %v11517_v26 = vunpack.i.l.bf16 %v11516_v36 }
 0x2ec   :  { %4018 = vmatpush.msrb.mxu1 %v3829_v12  ;;  %4038 = vmatpush.msrb.mxu2 %v3830_v45  ;;  %v13604_v46 = vpop.f32.mrf.mxu3  ;;  %v3832_v6 = vsel %vm3821_vm10, %v11507_v7, %v11513_v57  ;;  %v3833_v41 = vsel %vm3821_vm10, %v11513_v57, %v11508_v23  ;;  %v11522_v45 = vunpack.i.l.bf16 %v11521_v8  ;;  %v1505_v57 = vadd.f32 %v13428_v53, %v13315_v14 }
 0x2ed   :  { %v2188_v60 = vpop.f32.mrf.mxu2  ;;  %v3836_v36 = vsel %vm3821_vm10, %v11517_v26, %v11523_v56  ;;  %v3837_v23 = vsel %vm3821_vm10, %v11523_v56, %v11518_v21 }
 0x2ee   :  { %v13607_v24 = vadd.f32 %v2188_v60, %v13511_v35  ;;  %v13609_v2 = vpop.f32.mrf.mxu0  ;;  %v3831_v35 = vsel %vm3821_vm10, %v11502_v11, %v11507_v7  ;;  %v11531_v60 = vpop.permute.xlu1 %11530  ;;  %v1825_v7 = vadd.f32 %v13516_v0, %v13410_v43  ;;  %v2312_v14 = vadd.f32 %v13557_v25, %v1505_v57 }
 0x2ef   :  { %v13611_v30 = vpop.f32.mrf.mxu1  ;;  %v11533_v0 = vunpack.i.h.bf16 %v11531_v60  ;;  %v1585_v25 = vadd.f32 %v13448_v16, %v13343_v42 }
 0x2f1   :  { %10808 = vmatmul.msk.f32.vlgmr.msrb.gmra.mxu3 %vm1080_vm5, %v13588_v4  ;;  %10809 = vmatmul.msk.f32.vlgmr.msra.gmra.mxu0 %vm1080_vm5, %v13588_v4  ;;  %v2316_v42 = vadd.f32 %v13579_v37, %v1585_v25  ;;  %v1665_v37 = vadd.f32 %v13468_v39, %v13365_v9 }
 0x2f2   :  { %10810 = vmatmul.msk.f32.vlgmr.msra.gmra.mxu1 %vm1080_vm5, %v13588_v4  ;;  %10811 = vmatmul.msk.f32.vlgmr.msra.gmra.mxu2 %vm1080_vm5, %v13588_v4 }
 0x2f3   :  { %4058 = vmatpush.msrb.mxu3 %v3831_v35  ;;  %4078 = vmatpush.msra.mxu0 %v3832_v6  ;;  %v3838_v35 = vsel %vm3821_vm10, %v11518_v21, %v11522_v45  ;;  %v11541_v21 = vpop.permute.xlu0 %11540  ;;  %v2320_v9 = vadd.f32 %v13604_v46, %v1665_v37 }
 0x2f4   :  { %4098 = vmatpush.msra.mxu1 %v3833_v41  ;;  %4118 = vmatpush.msra.mxu2 %v3834_v1  ;;  %v2208_v3 = vpop.f32.mrf.mxu3  ;;  %v11528_v41 = vunpack.i.h.bf16 %v11526_v22  ;;  %v11527_v1 = vunpack.i.l.bf16 %v11526_v22 }
 0x2f5   :  { %v13627_v50 = vadd.f32 %v2208_v3, %v1745_v10  ;;  %v2268_v15 = vpop.f32.mrf.mxu2  ;;  %v11532_v3 = vunpack.i.l.bf16 %v11531_v60 }
 0x2f6   :  { %v13630_v11 = vadd.f32 %v2268_v15, %v13535_v44  ;;  %v13632_v38 = vpop.f32.mrf.mxu0  ;;  %v3835_v44 = vsel %vm3821_vm10, %v11512_v34, %v11517_v26  ;;  %v11536_v34 = vpop.permute.xlu2 %11535  ;;  %v3839_v22 = vsel %vm3821_vm10, %v11522_v45, %v11527_v1  ;;  %v3840_v56 = vsel %vm3821_vm10, %v11527_v1, %v11528_v41 }
 0x2f7   :  { %v13634_v12 = vpop.f32.mrf.mxu1  ;;  %v11538_v26 = vunpack.i.h.bf16 %v11536_v34  ;;  %v11546_v60 = vpop.permute.xlu1 %11545 }
 0x2f9   :  { %10812 = vmatmul.msk.f32.vlgmr.msra.gmra.mxu3 %vm1080_vm5, %v13588_v4  ;;  %10813 = vmatmul.msk.f32.vlgmr.msrb.gmra.mxu0 %vm1080_vm5, %v13588_v4  ;;  %v4305_v57 = vsel %vm4304_vm11, %v11538_v26, %v11532_v3 }
 0x2fa   :  { %10814 = vmatmul.msk.f32.vlgmr.msrb.gmra.mxu1 %vm1080_vm5, %v13588_v4  ;;  %10815 = vmatmul.msk.f32.vlgmr.msrb.gmra.mxu2 %vm1080_vm5, %v13588_v4 }
 0x2fb   :  { %4138 = vmatpush.msra.mxu3 %v3835_v44  ;;  %4158 = vmatpush.msrb.mxu0 %v3836_v36  ;;  %v4306_v44 = vsel %vm4304_vm11, %v11532_v3, %v11533_v0  ;;  %v11556_v3 = vpop.permute.xlu0 %11555 }
 0x2fc   :  { %4178 = vmatpush.msrb.mxu1 %v3837_v23  ;;  %4198 = vmatpush.msrb.mxu2 %v3838_v35  ;;  %v2288_v53 = vpop.f32.mrf.mxu3  ;;  %v11543_v35 = vunpack.i.h.bf16 %v11541_v21 }
 0x2fd   :  { %v13653_v6 = vadd.f32 %v2288_v53, %v1825_v7  ;;  %v2451_v10 = vpop.f32.mrf.mxu2  ;;  %v11547_v7 = vunpack.i.l.bf16 %v11546_v60  ;;  %v11537_v53 = vunpack.i.l.bf16 %v11536_v34 }
 0x2fe   :  { %v13655_v8 = vadd.f32 %v2451_v10, %v2312_v14  ;;  %v13657_v43 = vpop.f32.mrf.mxu0  ;;  %v11542_v14 = vunpack.i.l.bf16 %v11541_v21  ;;  %v11551_v1 = vpop.permute.xlu2 %11550 }
 0x2ff   :  { %v13659_v15 = vpop.f32.mrf.mxu1  ;;  %v4307_v41 = vsel %vm4304_vm11, %v11533_v0, %v11537_v53  ;;  %v4308_v34 = vsel %vm4304_vm11, %v11537_v53, %v11547_v7  ;;  %v11561_v46 = vpop.permute.xlu1 %11560 }
 0x300   :  { %v4309_v26 = vsel %vm4304_vm11, %v11547_v7, %v11542_v14  ;;  %v4310_v21 = vsel %vm4304_vm11, %v11542_v14, %v11543_v35 }
 0x301   :  { %10816 = vmatmul.msk.f32.vlgmr.msrb.gmra.mxu3 %vm1080_vm5, %v13588_v4  ;;  %10817 = vmatmul.msk.f32.vlgmr.msra.gmra.mxu0 %vm1080_vm5, %v13588_v4 }
 0x302   :  { %10818 = vmatmul.msk.f32.vlgmr.msra.gmra.mxu1 %vm1080_vm5, %v13588_v4  ;;  %10819 = vmatmul.msk.f32.vlgmr.msra.gmra.mxu2 %vm1080_vm5, %v13588_v4 }
 0x303   :  { %4218 = vmatpush.msrb.mxu3 %v3839_v22  ;;  %4238 = vmatpush.msra.mxu0 %v3840_v56  ;;  %v11557_v22 = vunpack.i.l.bf16 %v11556_v3 }
 0x304   :  { %4361 = vmatpush.msra.mxu1 %v4305_v57  ;;  %4381 = vmatpush.msra.mxu2 %v4306_v44  ;;  %v13676_v16 = vpop.f32.mrf.mxu3  ;;  %v11553_v57 = vunpack.i.h.bf16 %v11551_v1  ;;  %v11552_v44 = vunpack.i.l.bf16 %v11551_v1  ;;  %v11558_v1 = vunpack.i.h.bf16 %v11556_v3 }
 0x305   :  { %v2531_v36 = vpop.f32.mrf.mxu2 }
 0x306   :  { %v13678_v23 = vadd.f32 %v2531_v36, %v2316_v42  ;;  %v13680_v45 = vpop.f32.mrf.mxu0  ;;  %v13708_v42 = vld [vmem:[%s16744_s3 + $0x1c] sm:$0xf]  ;;  %v11548_v36 = vunpack.i.h.bf16 %v11546_v60  ;;  %v4313_v60 = vsel %vm4304_vm11, %v11557_v22, %v11552_v44  ;;  %v4314_v37 = vsel %vm4304_vm11, %v11552_v44, %v11553_v57 }
 0x307   :  { %v13682_v10 = vpop.f32.mrf.mxu1  ;;  %v1765_v44 = vadd.f32 %v13496_v29, %v13406_v51 }
 0x308   :  { %v4311_v14 = vsel %vm4304_vm11, %v11543_v35, %v11548_v36  ;;  %v4312_v53 = vsel %vm4304_vm11, %v11548_v36, %v11557_v22  ;;  %v11563_v35 = vunpack.i.h.bf16 %v11561_v46  ;;  %v11571_v22 = vpop.permute.xlu0 %11570 }
 0x309   :  { %10820 = vmatmul.msk.f32.vlgmr.msra.gmra.mxu3 %vm1080_vm5, %v13588_v4  ;;  %10821 = vmatmul.msk.f32.vlgmr.msrb.gmra.mxu0 %vm1080_vm5, %v13588_v4 }
 0x30a   :  { %10822 = vmatmul.msk.f32.vlgmr.msrb.gmra.mxu1 %vm1080_vm5, %v13588_v4  ;;  %10823 = vmatmul.msk.f32.vlgmr.msrb.gmra.mxu2 %vm1080_vm5, %v13588_v4 }
 0x30b   :  { %4401 = vmatpush.msra.mxu3 %v4307_v41  ;;  %4421 = vmatpush.msrb.mxu0 %v4308_v34 }
 0x30c   :  { %4441 = vmatpush.msrb.mxu1 %v4309_v26  ;;  %4461 = vmatpush.msrb.mxu2 %v4310_v21  ;;  %v13699_v39 = vpop.f32.mrf.mxu3 }
 0x30d   :  { %v2611_v25 = vpop.f32.mrf.mxu2 }
 0x30e   :  { %v13701_v56 = vadd.f32 %v2611_v25, %v2320_v9  ;;  %v13703_v0 = vpop.f32.mrf.mxu0  ;;  %v11562_v9 = vunpack.i.l.bf16 %v11561_v46  ;;  %v11576_v46 = vpop.permute.xlu1 %11575 }
 0x30f   :  { %v13710_v7 = vpop.f32.mrf.mxu1 }
 0x310   :  { %16790 = vst [vmem:[#allocation7_spill] sm:$0xff] %v13701_v56  ;;  %v4318_v29 = vsel %vm4304_vm11, %v11562_v9, %v11563_v35 }
 0x311   :  { %10824 = vmatmul.msk.f32.vlgmr.msrb.gmra.mxu3 %vm1080_vm5, %v13588_v4  ;;  %10825 = vmatmul.msk.f32.vlgmr.msra.gmra.mxu0 %vm1080_vm5, %v13588_v4  ;;  %v11566_v4 = vpop.permute.xlu2 %11565 }
 0x312   :  { %10827 = vmatmul.msk.f32.vlgmr.msra.gmra.mxu1 %vm1080_vm5, %v13708_v42  ;;  %10828 = vmatmul.msk.f32.vlgmr.msra.gmra.mxu2 %vm1080_vm5, %v13708_v42  ;;  %v11567_v25 = vunpack.i.l.bf16 %v11566_v4 }
 0x313   :  { %4481 = vmatpush.msrb.mxu3 %v4311_v14  ;;  %4501 = vmatpush.msra.mxu0 %v4312_v53  ;;  %v2325_v14 = vadd.f32 %v13609_v2, %v1765_v44  ;;  %v11572_v2 = vunpack.i.l.bf16 %v11571_v22  ;;  %v11568_v44 = vunpack.i.h.bf16 %v11566_v4  ;;  %v11586_v4 = vpop.permute.xlu0 %11585 }
 0x314   :  { %4521 = vmatpush.msra.mxu1 %v4313_v60  ;;  %4541 = vmatpush.msra.mxu2 %v4314_v37  ;;  %v13724_v41 = vpop.f32.mrf.mxu3  ;;  %v4316_v3 = vsel %vm4304_vm11, %v11558_v1, %v11567_v25  ;;  %v4317_v51 = vsel %vm4304_vm11, %v11567_v25, %v11562_v9 }
 0x315   :  { %v2691_v34 = vpop.f32.mrf.mxu2 }
 0x316   :  { %v13727_v26 = vadd.f32 %v2691_v34, %v13627_v50  ;;  %v13729_v21 = vpop.f32.mrf.mxu0  ;;  %v4315_v50 = vsel %vm4304_vm11, %v11553_v57, %v11558_v1  ;;  %v11577_v34 = vunpack.i.l.bf16 %v11576_v46 }
 0x317   :  { %v13731_v36 = vpop.f32.mrf.mxu1 }
 0x318   :  { %16791 = vst [vmem:[#allocation8_spill] sm:$0xff] %v13727_v26  ;;  %v11573_v26 = vunpack.i.h.bf16 %v11571_v22  ;;  %v4320_v9 = vsel %vm4304_vm11, %v11568_v44, %v11577_v34  ;;  %v4321_v22 = vsel %vm4304_vm11, %v11577_v34, %v11572_v2 }
 0x319   :  { %10829 = vmatmul.msk.f32.vlgmr.msra.gmra.mxu3 %vm1080_vm5, %v13708_v42  ;;  %10830 = vmatmul.msk.f32.vlgmr.msrb.gmra.mxu0 %vm1080_vm5, %v13708_v42  ;;  %v11581_v25 = vpop.permute.xlu2 %11580 }
 0x31a   :  { %10831 = vmatmul.msk.f32.vlgmr.msrb.gmra.mxu1 %vm1080_vm5, %v13708_v42  ;;  %10832 = vmatmul.msk.f32.vlgmr.msrb.gmra.mxu2 %vm1080_vm5, %v13708_v42 }
 0x31b   :  { %4561 = vmatpush.msra.mxu3 %v4315_v50  ;;  %4581 = vmatpush.msrb.mxu0 %v4316_v3  ;;  %v4322_v3 = vsel %vm4304_vm11, %v11572_v2, %v11573_v26 }
 0x31c   :  { %4601 = vmatpush.msrb.mxu1 %v4317_v51  ;;  %4621 = vmatpush.msrb.mxu2 %v4318_v29  ;;  %v2711_v53 = vpop.f32.mrf.mxu3  ;;  %v11588_v29 = vunpack.i.h.bf16 %v11586_v4 }
 0x31d   :  { %v13748_v60 = vadd.f32 %v2711_v53, %v2325_v14  ;;  %v2771_v37 = vpop.f32.mrf.mxu2  ;;  %v11587_v53 = vunpack.i.l.bf16 %v11586_v4 }
 0x31e   :  { %v13751_v57 = vadd.f32 %v2771_v37, %v13653_v6  ;;  %v13753_v1 = vpop.f32.mrf.mxu0  ;;  %v4319_v6 = vsel %vm4304_vm11, %v11563_v35, %v11568_v44  ;;  %v11583_v35 = vunpack.i.h.bf16 %v11581_v25  ;;  %v11582_v44 = vunpack.i.l.bf16 %v11581_v25 }
 0x31f   :  { %16792 = vst [vmem:[#allocation9_spill] sm:$0xff] %v13748_v60  ;;  %v13755_v50 = vpop.f32.mrf.mxu1  ;;  %v4788_v2 = vsel %vm4787_vm12, %v11587_v53, %v11588_v29 }
 0x320   :  { %16793 = vst [vmem:[#allocation10_spill] sm:$0xff] %v13751_v57  ;;  %v11578_v57 = vunpack.i.h.bf16 %v11576_v46  ;;  %v11591_v46 = vpop.permute.xlu1 %11590 }
 0x321   :  { %10833 = vmatmul.msk.f32.vlgmr.msrb.gmra.mxu3 %vm1080_vm5, %v13708_v42  ;;  %10834 = vmatmul.msk.f32.vlgmr.msra.gmra.mxu0 %vm1080_vm5, %v13708_v42  ;;  %v11596_v4 = vpop.permute.xlu2 %11595 }
 0x322   :  { %10835 = vmatmul.msk.f32.vlgmr.msra.gmra.mxu1 %vm1080_vm5, %v13708_v42  ;;  %10836 = vmatmul.msk.f32.vlgmr.msra.gmra.mxu2 %vm1080_vm5, %v13708_v42  ;;  %v4323_v34 = vsel %vm4304_vm11, %v11573_v26, %v11578_v57  ;;  %v11593_v26 = vunpack.i.h.bf16 %v11591_v46  ;;  %v11598_v57 = vunpack.i.h.bf16 %v11596_v4 }
 0x323   :  { %4641 = vmatpush.msrb.mxu3 %v4319_v6  ;;  %4661 = vmatpush.msra.mxu0 %v4320_v9  ;;  %v4789_v6 = vsel %vm4787_vm12, %v11588_v29, %v11582_v44  ;;  %v4790_v9 = vsel %vm4787_vm12, %v11582_v44, %v11583_v35 }
 0x324   :  { %4681 = vmatpush.msra.mxu1 %v4321_v22  ;;  %4701 = vmatpush.msra.mxu2 %v4322_v3  ;;  %v13769_v14 = vpop.f32.mrf.mxu3  ;;  %v11592_v3 = vunpack.i.l.bf16 %v11591_v46  ;;  %v4793_v46 = vsel %vm4787_vm12, %v11598_v57, %v11593_v26 }
 0x325   :  { %v13771_v51 = vpop.f32.mrf.mxu2 }
 0x326   :  { %v13773_v37 = vpop.f32.mrf.mxu0  ;;  %v4791_v29 = vsel %vm4787_vm12, %v11583_v35, %v11592_v3  ;;  %v4792_v44 = vsel %vm4787_vm12, %v11592_v3, %v11598_v57  ;;  %v13818_v35 = vld [vmem:[%s16744_s3 + $0x20] sm:$0xf] }
 0x327   :  { %v13775_v60 = vpop.f32.mrf.mxu1 }
 0x328   :  { %16794 = vst [vmem:[#allocation11_spill] sm:$0xff] %v13775_v60 }
 0x329   :  { %10837 = vmatmul.msk.f32.vlgmr.msra.gmra.mxu3 %vm1080_vm5, %v13708_v42  ;;  %10838 = vmatmul.msk.f32.vlgmr.msrb.gmra.mxu0 %vm1080_vm5, %v13708_v42 }
 0x32a   :  { %10839 = vmatmul.msk.f32.vlgmr.msrb.gmra.mxu1 %vm1080_vm5, %v13708_v42  ;;  %10840 = vmatmul.msk.f32.vlgmr.msrb.gmra.mxu2 %vm1080_vm5, %v13708_v42 }
 0x32b   :  { %4721 = vmatpush.msra.mxu3 %v4323_v34  ;;  %4844 = vmatpush.msrb.mxu0 %v4788_v2  ;;  %v11597_v34 = vunpack.i.l.bf16 %v11596_v4  ;;  %v11601_v2 = vpop.permute.xlu0 %11600  ;;  %v11606_v4 = vpop.permute.xlu1 %11605 }
 0x32c   :  { %4864 = vmatpush.msrb.mxu1 %v4789_v6  ;;  %4884 = vmatpush.msrb.mxu2 %v4790_v9  ;;  %v13789_v25 = vpop.f32.mrf.mxu3  ;;  %v11603_v3 = vunpack.i.h.bf16 %v11601_v2 }
 0x32d   :  { %16795 = vst [vmem:[#allocation12_spill] sm:$0xff] %v13789_v25  ;;  %v13791_v22 = vpop.f32.mrf.mxu2  ;;  %v4794_v6 = vsel %vm4787_vm12, %v11593_v26, %v11597_v34  ;;  %v11607_v26 = vunpack.i.l.bf16 %v11606_v4 }
 0x32e   :  { %16796 = vst [vmem:[#allocation13_spill] sm:$0xff] %v13791_v22  ;;  %v13793_v56 = vpop.f32.mrf.mxu0 }
 0x32f   :  { %16797 = vst [vmem:[#allocation14_spill] sm:$0xff] %v13793_v56  ;;  %v13795_v53 = vpop.f32.mrf.mxu1  ;;  %v11602_v56 = vunpack.i.l.bf16 %v11601_v2 }
 0x330   :  { %16798 = vst [vmem:[#allocation15_spill] sm:$0xff] %v13795_v53 }
 0x331   :  { %10841 = vmatmul.msk.f32.vlgmr.msrb.gmra.mxu3 %vm1080_vm5, %v13708_v42  ;;  %10842 = vmatmul.msk.f32.vlgmr.msra.gmra.mxu0 %vm1080_vm5, %v13708_v42 }
 0x332   :  { %10843 = vmatmul.msk.f32.vlgmr.msra.gmra.mxu1 %vm1080_vm5, %v13708_v42  ;;  %10844 = vmatmul.msk.f32.vlgmr.msra.gmra.mxu2 %vm1080_vm5, %v13708_v42 }
 0x333   :  { %4904 = vmatpush.msrb.mxu3 %v4791_v29  ;;  %4924 = vmatpush.msra.mxu0 %v4792_v44  ;;  %v11608_v29 = vunpack.i.h.bf16 %v11606_v4  ;;  %v4795_v44 = vsel %vm4787_vm12, %v11597_v34, %v11602_v56 }
 0x334   :  { %4944 = vmatpush.msra.mxu1 %v4793_v46  ;;  %4964 = vmatpush.msra.mxu2 %v4794_v6  ;;  %v13809_v9 = vpop.f32.mrf.mxu3  ;;  %v11611_v46 = vpop.permute.xlu2 %11610 }
 0x335   :  { %16799 = vst [vmem:[#allocation16_spill] sm:$0xff] %v13809_v9  ;;  %v13811_v53 = vpop.f32.mrf.mxu2  ;;  %v4796_v2 = vsel %vm4787_vm12, %v11602_v56, %v11608_v29  ;;  %v11616_v6 = vpop.permute.xlu0 %11615  ;;  %v4797_v4 = vsel %vm4787_vm12, %v11608_v29, %v11603_v3  ;;  %v11612_v25 = vunpack.i.l.bf16 %v11611_v46  ;;  %v11613_v60 = vunpack.i.h.bf16 %v11611_v46 }
 0x336   :  { %16800 = vst [vmem:[#allocation17_spill] sm:$0xff] %v13811_v53  ;;  %v13813_v22 = vpop.f32.mrf.mxu0  ;;  %v11618_v53 = vunpack.i.h.bf16 %v11616_v6  ;;  %v11617_v34 = vunpack.i.l.bf16 %v11616_v6 }
 0x337   :  { %16801 = vst [vmem:[#allocation18_spill] sm:$0xff] %v13813_v22  ;;  %v13820_v57 = vpop.f32.mrf.mxu1 }
 0x338   :  { %16802 = vst [vmem:[#allocation19_spill] sm:$0xff] %v13820_v57  ;;  %v4800_v29 = vsel %vm4787_vm12, %v11612_v25, %v11618_v53  ;;  %v4802_v46 = vsel %vm4787_vm12, %v11613_v60, %v11617_v34 }
 0x339   :  { %10845 = vmatmul.msk.f32.vlgmr.msra.gmra.mxu3 %vm1080_vm5, %v13708_v42  ;;  %10847 = vmatmul.msk.f32.vlgmr.msrb.gmra.mxu0 %vm1080_vm5, %v13818_v35  ;;  %v4798_v42 = vsel %vm4787_vm12, %v11603_v3, %v11607_v26  ;;  %v4799_v3 = vsel %vm4787_vm12, %v11607_v26, %v11612_v25 }
 0x33a   :  { %10848 = vmatmul.msk.f32.vlgmr.msrb.gmra.mxu1 %vm1080_vm5, %v13818_v35  ;;  %10849 = vmatmul.msk.f32.vlgmr.msrb.gmra.mxu2 %vm1080_vm5, %v13818_v35 }
 0x33b   :  { %4984 = vmatpush.msra.mxu3 %v4795_v44  ;;  %5004 = vmatpush.msrb.mxu0 %v4796_v2  ;;  %v11621_v44 = vpop.permute.xlu1 %11620  ;;  %v4801_v2 = vsel %vm4787_vm12, %v11618_v53, %v11613_v60 }
 0x33c   :  { %5024 = vmatpush.msrb.mxu1 %v4797_v4  ;;  %5044 = vmatpush.msrb.mxu2 %v4798_v42  ;;  %v13834_v57 = vpop.f32.mrf.mxu3  ;;  %v11626_v4 = vpop.permute.xlu2 %11625  ;;  %v11623_v26 = vunpack.i.h.bf16 %v11621_v44 }
 0x33d   :  { %16803 = vst [vmem:[#allocation20_spill] sm:$0xff] %v13834_v57  ;;  %v13836_v22 = vpop.f32.mrf.mxu2 }
 0x33e   :  { %16804 = vst [vmem:[#allocation21_spill] sm:$0xff] %v13836_v22  ;;  %v13838_v9 = vpop.f32.mrf.mxu0  ;;  %v11628_v22 = vunpack.i.h.bf16 %v11626_v4 }
 0x33f   :  { %16805 = vst [vmem:[#allocation22_spill] sm:$0xff] %v13838_v9  ;;  %v13840_v56 = vpop.f32.mrf.mxu1 }
 0x340   :  { %16806 = vst [vmem:[#allocation23_spill] sm:$0xff] %v13840_v56  ;;  %v11622_v56 = vunpack.i.l.bf16 %v11621_v44 }
 0x341   :  { %10850 = vmatmul.msk.f32.vlgmr.msrb.gmra.mxu3 %vm1080_vm5, %v13818_v35  ;;  %10851 = vmatmul.msk.f32.vlgmr.msra.gmra.mxu0 %vm1080_vm5, %v13818_v35 }
 0x342   :  { %10852 = vmatmul.msk.f32.vlgmr.msra.gmra.mxu1 %vm1080_vm5, %v13818_v35  ;;  %10853 = vmatmul.msk.f32.vlgmr.msra.gmra.mxu2 %vm1080_vm5, %v13818_v35  ;;  %v4803_v60 = vsel %vm4787_vm12, %v11617_v34, %v11622_v56  ;;  %v4804_v53 = vsel %vm4787_vm12, %v11622_v56, %v11628_v22 }
 0x343   :  { %5064 = vmatpush.msrb.mxu3 %v4799_v3  ;;  %5084 = vmatpush.msra.mxu0 %v4800_v29  ;;  %v11627_v3 = vunpack.i.l.bf16 %v11626_v4  ;;  %v4805_v29 = vsel %vm4787_vm12, %v11628_v22, %v11623_v26 }
 0x344   :  { %5104 = vmatpush.msra.mxu1 %v4801_v2  ;;  %5124 = vmatpush.msra.mxu2 %v4802_v46  ;;  %v13854_v6 = vpop.f32.mrf.mxu3 }
 0x345   :  { %16807 = vst [vmem:[#allocation24_spill] sm:$0xff] %v13854_v6  ;;  %v13856_v42 = vpop.f32.mrf.mxu2  ;;  %v4806_v44 = vsel %vm4787_vm12, %v11623_v26, %v11627_v3 }
 0x346   :  { %16808 = vst [vmem:[#allocation25_spill] sm:$0xff] %v13856_v42  ;;  %v13858_v9 = vpop.f32.mrf.mxu0 }
 0x347   :  { %v13860_v25 = vpop.f32.mrf.mxu1 }
 0x349   :  { %10854 = vmatmul.msk.f32.vlgmr.msra.gmra.mxu3 %vm1080_vm5, %v13818_v35  ;;  %10855 = vmatmul.msk.f32.vlgmr.msrb.gmra.mxu0 %vm1080_vm5, %v13818_v35 }
 0x34a   :  { %10856 = vmatmul.msk.f32.vlgmr.msrb.gmra.mxu1 %vm1080_vm5, %v13818_v35  ;;  %10857 = vmatmul.msk.f32.vlgmr.msrb.gmra.mxu2 %vm1080_vm5, %v13818_v35 }
 0x34b   :  { %5144 = vmatpush.msra.mxu3 %v4803_v60  ;;  %5164 = vmatpush.msrb.mxu0 %v4804_v53 }
 0x34c   :  { %5184 = vmatpush.msrb.mxu1 %v4805_v29  ;;  %5204 = vmatpush.msrb.mxu2 %v4806_v44  ;;  %v13874_v2 = vpop.f32.mrf.mxu3 }
 0x34d   :  { %v13876_v46 = vpop.f32.mrf.mxu2 }
 0x34e   :  { %16809 = vst [vmem:[#allocation26_spill] sm:$0xff] %v13876_v46  ;;  %v13878_v4 = vpop.f32.mrf.mxu0 }
 0x34f   :  { %16810 = vst [vmem:[#allocation27_spill] sm:$0xff] %v13878_v4  ;;  %v13880_v42 = vpop.f32.mrf.mxu1 }
 0x350   :  { %16811 = vst [vmem:[#allocation28_spill] sm:$0xff] %v13880_v42 }
 0x351   :  { %10858 = vmatmul.msk.f32.vlgmr.msrb.gmra.mxu3 %vm1080_vm5, %v13818_v35  ;;  %10859 = vmatmul.msk.f32.vlgmr.msra.gmra.mxu0 %vm1080_vm5, %v13818_v35 }
 0x352   :  { %10860 = vmatmul.msk.f32.vlgmr.msra.gmra.mxu1 %vm1080_vm5, %v13818_v35  ;;  %10861 = vmatmul.msk.f32.vlgmr.msra.gmra.mxu2 %vm1080_vm5, %v13818_v35 }
 0x354   :  { %v13890_v22 = vpop.f32.mrf.mxu3 }
 0x355   :  { %16812 = vst [vmem:[#allocation29_spill] sm:$0xff] %v13890_v22  ;;  %v13892_v34 = vpop.f32.mrf.mxu2 }
 0x356   :  { %16813 = vst [vmem:[#allocation30_spill] sm:$0xff] %v13892_v34  ;;  %v13894_v56 = vpop.f32.mrf.mxu0 }
 0x357   :  { %16814 = vst [vmem:[#allocation31_spill] sm:$0xff] %v13894_v56  ;;  %v13896_v26 = vpop.f32.mrf.mxu1 }
 0x358   :  { %16815 = vst [vmem:[#allocation32_spill] sm:$0xff] %v13896_v26 }
 0x359   :  { %10862 = vmatmul.msk.f32.vlgmr.msra.gmra.mxu3 %vm1080_vm5, %v13818_v35  ;;  %10863 = vmatmul.msk.f32.vlgmr.msrb.gmra.mxu0 %vm1080_vm5, %v13818_v35 }
 0x35a   :  { %10864 = vmatmul.msk.f32.vlgmr.msrb.gmra.mxu1 %vm1080_vm5, %v13818_v35  ;;  %10865 = vmatmul.msk.f32.vlgmr.msrb.gmra.mxu2 %vm1080_vm5, %v13818_v35  ;;  %vm5605_vm5 = vcmask 285696  }
 0x35c   :  { %v13906_v3 = vpop.f32.mrf.mxu3 }
 0x35d   :  { %16816 = vst [vmem:[#allocation33_spill] sm:$0xff] %v13906_v3  ;;  %v13908_v60 = vpop.f32.mrf.mxu2 }
 0x35e   :  { %16817 = vst [vmem:[#allocation34_spill] sm:$0xff] %v13908_v60  ;;  %v13910_v53 = vpop.f32.mrf.mxu0 }
 0x35f   :  { %16818 = vst [vmem:[#allocation35_spill] sm:$0xff] %v13910_v53  ;;  %v13912_v29 = vpop.f32.mrf.mxu1 }
 0x360   :  { %16819 = vst [vmem:[#allocation36_spill] sm:$0xff] %v13912_v29 }
 0x364   :  { %v13914_v44 = vpop.f32.mrf.mxu3 }
 0x365   :  { %16820 = vst [vmem:[#allocation37_spill] sm:$0xff] %v13914_v44  ;;  %v13916_v26 = vpop.f32.mrf.mxu2 }
 0x366   :  { %16821 = vst [vmem:[#allocation38_spill] sm:$0xff] %v13916_v26  ;;  %v13918_v56 = vpop.f32.mrf.mxu0 }
 0x367   :  { %16822 = vst [vmem:[#allocation39_spill] sm:$0xff] %v13918_v56  ;;  %v13920_v34 = vpop.f32.mrf.mxu1 }
 0x368   :  { %16823 = vst [vmem:[#allocation40_spill] sm:$0xff] %v13920_v34 }
 0x36c   :  { %v13922_v6 = vpop.f32.mrf.mxu3 }
 0x36d   :  { %16824 = vst [vmem:[#allocation41_spill] sm:$0xff] %v13922_v6  ;;  %v13924_v42 = vpop.f32.mrf.mxu2 }
 0x36e   :  { %v13926_v35 = vpop.f32.mrf.mxu0 }
 0x36f   :  { %16825 = vst [vmem:[#allocation42_spill] sm:$0xff] %v13926_v35  ;;  %v13928_v3 = vpop.f32.mrf.mxu1 }
 0x370   :  { %16826 = vst [vmem:[#allocation43_spill] sm:$0xff] %v13928_v3 }
 0x374   :  { %v13930_v60 = vpop.f32.mrf.mxu3 }
 0x375   :  { %v13932_v53 = vpop.f32.mrf.mxu2 }
 0x376   :  { %16827 = vst [vmem:[#allocation44_spill] sm:$0xff] %v13932_v53  ;;  %v13934_v29 = vpop.f32.mrf.mxu0 }
 0x377   :  { %16828 = vst [vmem:[#allocation45_spill] sm:$0xff] %v13934_v29  ;;  %v13936_v44 = vpop.f32.mrf.mxu1 }
 0x378   :  { %16829 = vst [vmem:[#allocation46_spill] sm:$0xff] %v13936_v44 }
 0x37c   :  { %v13938_v26 = vpop.f32.mrf.mxu3 }
 0x37d   :  { %16830 = vst [vmem:[#allocation47_spill] sm:$0xff] %v13938_v26  ;;  %v13940_v56 = vpop.f32.mrf.mxu2 }
 0x37e   :  { %16831 = vst [vmem:[#allocation48_spill] sm:$0xff] %v13940_v56  ;;  %v13942_v34 = vpop.f32.mrf.mxu0 }
 0x37f   :  { %16832 = vst [vmem:[#allocation49_spill] sm:$0xff] %v13942_v34  ;;  %v13944_v6 = vpop.f32.mrf.mxu1 }
 0x380   :  { %16833 = vst [vmem:[#allocation50_spill] sm:$0xff] %v13944_v6 }
 0x384   :  { %v13946_v4 = vpop.f32.mrf.mxu3 }
 0x385   :  { %16834 = vst [vmem:[#allocation51_spill] sm:$0xff] %v13946_v4  ;;  %v13948_v46 = vpop.f32.mrf.mxu2 }
 0x386   :  { %16835 = vst [vmem:[#allocation52_spill] sm:$0xff] %v13948_v46  ;;  %v13950_v3 = vpop.f32.mrf.mxu0 }
 0x387   :  { %16836 = vst [vmem:[#allocation53_spill] sm:$0xff] %v13950_v3  ;;  %v13952_v22 = vpop.f32.mrf.mxu1 }
 0x388   :  { %16837 = vst [vmem:[#allocation54_spill] sm:$0xff] %v13952_v22 }
 0x38c   :  { %v13954_v53 = vpop.f32.mrf.mxu3 }
 0x38d   :  { %16838 = vst [vmem:[#allocation55_spill] sm:$0xff] %v13954_v53  ;;  %v13956_v29 = vpop.f32.mrf.mxu2 }
 0x38e   :  { %16839 = vst [vmem:[#allocation56_spill] sm:$0xff] %v13956_v29  ;;  %v13958_v44 = vpop.f32.mrf.mxu0 }
 0x38f   :  { %16840 = vst [vmem:[#allocation57_spill] sm:$0xff] %v13958_v44  ;;  %v4363_v26 = vpop.f32.mrf.mxu1 }
 0x394   :  { %v13960_v56 = vpop.f32.mrf.mxu3 }
 0x395   :  { %16841 = vst [vmem:[#allocation58_spill] sm:$0xff] %v13960_v56  ;;  %v4383_v34 = vpop.f32.mrf.mxu2 }
 0x396   :  { %v13962_v57 = vpop.f32.mrf.mxu0 }
 0x397   :  { %16842 = vst [vmem:[#allocation59_spill] sm:$0xff] %v13962_v57  ;;  %v13964_v6 = vpop.f32.mrf.mxu1 }
 0x398   :  { %16843 = vst [vmem:[#allocation60_spill] sm:$0xff] %v13964_v6 }
 0x39c   :  { %v13966_v4 = vpop.f32.mrf.mxu3 }
 0x39d   :  { %v13968_v46 = vpop.f32.mrf.mxu2 }
 0x39e   :  { %16844 = vst [vmem:[#allocation61_spill] sm:$0xff] %v13968_v46  ;;  %v13970_v3 = vpop.f32.mrf.mxu0  ;;  %v1525_v46 = vadd.f32 %v13430_v59, %v13329_v49  ;;  %v2794_v49 = vadd.f32 %v13634_v12, %v13537_v18 }
 0x39f   :  { %16845 = vst [vmem:[#allocation62_spill] sm:$0xff] %v13970_v3  ;;  %v13972_v22 = vpop.f32.mrf.mxu1  ;;  %v1545_v3 = vadd.f32 %v13446_v33, %v13347_v58  ;;  %v2326_v33 = vadd.f32 %v13611_v30, %v13514_v63  ;;  %v2802_v63 = vadd.f32 %v13682_v10, %v13581_v19  ;;  %v14047_v10 = vld [vmem:[%s16750_s9] sm:$0xff] }
 0x3a0   :  { %16846 = vst [vmem:[#allocation63_spill] sm:$0xff] %v13972_v22  ;;  %v1605_v22 = vadd.f32 %v13450_v54, %v13349_v5  ;;  %v3278_v54 = vadd.f32 %v13755_v50, %v13655_v8 }
 0x3a1   :  { %v2314_v58 = vadd.f32 %v13541_v32, %v1545_v3  ;;  %v2809_v19 = vadd.f32 %v13729_v21, %v2326_v33  ;;  %v16863_v3 = vld [vmem:[#allocation18_spill] sm:$0xff]  ;;  %v16867_v33 = vld [vmem:[#allocation29_spill] sm:$0xff] }
 0x3a2   :  { %v2317_v5 = vadd.f32 %v13561_v17, %v1605_v22  ;;  %v3761_v32 = vadd.f32 %v13858_v9, %v3278_v54  ;;  %v16857_v9 = vld [vmem:[#allocation15_spill] sm:$0xff]  ;;  %v16861_v22 = vld [vmem:[#allocation16_spill] sm:$0xff] }
 0x3a4   :  { %v13974_v53 = vpop.f32.mrf.mxu3 }
 0x3a5   :  { %v13976_v29 = vpop.f32.mrf.mxu2 }
 0x3a6   :  { %v13978_v44 = vpop.f32.mrf.mxu0 }
 0x3a7   :  { %16847 = vst [vmem:[#allocation64_spill] sm:$0xff] %v13978_v44  ;;  %v13980_v56 = vpop.f32.mrf.mxu1  ;;  %v1625_v44 = vadd.f32 %v13466_v31, %v13367_v20 }
 0x3a8   :  { %16848 = vst [vmem:[#allocation65_spill] sm:$0xff] %v13980_v56  ;;  %v1685_v56 = vadd.f32 %v13470_v13, %v13373_v47  ;;  %v2322_v47 = vadd.f32 %v13590_v40, %v13487_v55  ;;  %v2797_v13 = vadd.f32 %v13657_v43, %v2314_v58  ;;  %v4244_v43 = vadd.f32 %v13930_v60, %v3761_v32  ;;  %v16864_v58 = vld [vmem:[#allocation8_spill] sm:$0xff] }
 0x3a9   :  { %v2318_v59 = vadd.f32 %v13563_v62, %v1625_v44 }
 0x3aa   :  { %v2321_v20 = vadd.f32 %v13583_v52, %v1685_v56  ;;  %v2800_v52 = vadd.f32 %v13699_v39, %v2317_v5  ;;  %v2805_v40 = vadd.f32 %v13703_v0, %v2322_v47  ;;  %v16852_v0 = vld [vmem:[#allocation11_spill] sm:$0xff]  ;;  %v4727_v50 = vadd.f32 %v4383_v34, %v4244_v43  ;;  %v16862_v56 = vld [vmem:[#allocation17_spill] sm:$0xff]  ;;  %v16875_v43 = vld [vmem:[#allocation28_spill] sm:$0xff] }
 0x3ab   :  { %v2801_v55 = vadd.f32 %v13680_v45, %v2318_v59  ;;  %v16865_v5 = vld [vmem:[#allocation19_spill] sm:$0xff] }
 0x3ac   :  { %v13982_v35 = vpop.f32.mrf.mxu3  ;;  %v2804_v12 = vadd.f32 %v13724_v41, %v2321_v20  ;;  %v16853_v41 = vld [vmem:[#allocation12_spill] sm:$0xff]  ;;  %v14077_v59 = vadd.f32 %v16865_v5, %v16864_v58 }
 0x3ad   :  { %16849 = vst [vmem:[#allocation66_spill] sm:$0xff] %v13982_v35  ;;  %v13984_v57 = vpop.f32.mrf.mxu2  ;;  %v3280_v21 = vadd.f32 %v16853_v41, %v2797_v13  ;;  %v3284_v34 = vadd.f32 %v16861_v22, %v2801_v55  ;;  %v16866_v20 = vld [vmem:[#allocation20_spill] sm:$0xff]  ;;  %v16869_v13 = vld [vmem:[#allocation9_spill] sm:$0xff]  ;;  %v16871_v55 = vld [vmem:[#allocation26_spill] sm:$0xff] }
 0x3ae   :  { %16850 = vst [vmem:[#allocation67_spill] sm:$0xff] %v13984_v57  ;;  %v13986_v6 = vpop.f32.mrf.mxu0  ;;  %v2313_v57 = vadd.f32 %v13539_v28, %v1525_v46  ;;  %v3288_v47 = vadd.f32 %v16866_v20, %v2805_v40  ;;  %v16874_v40 = vld [vmem:[#allocation44_spill] sm:$0xff]  ;;  %v14124_v20 = vperm.slane %v14047_v10, 3 }
 0x3af   :  { %16851 = vst [vmem:[#allocation68_spill] sm:$0xff] %v13986_v6  ;;  %v13998_v35 = vpop.f32.mrf.mxu1  ;;  %v1845_v6 = vadd.f32 %v13518_v27, %v13426_v48  ;;  %v3277_v48 = vadd.f32 %v13753_v1, %v2794_v49  ;;  %v2798_v27 = vadd.f32 %v13659_v15, %v13559_v61  ;;  %v2806_v61 = vadd.f32 %v13710_v7, %v13607_v24 }
 0x3b0   :  { %v2796_v18 = vadd.f32 %v13676_v16, %v2313_v57  ;;  %v2810_v15 = vadd.f32 %v13731_v36, %v13630_v11  ;;  %v3282_v7 = vadd.f32 %v16852_v0, %v13678_v23  ;;  %v16854_v11 = vld [vmem:[#allocation13_spill] sm:$0xff]  ;;  %v14065_v23 = vperm.slane %v14047_v10, 1  ;;  %v16877_v0 = vld [vmem:[#allocation47_spill] sm:$0xff] }
 0x3b1   :  { %v2329_v31 = vadd.f32 %v13632_v38, %v1845_v6  ;;  %v3760_v17 = vadd.f32 %v13874_v2, %v3277_v48  ;;  %v3281_v45 = vadd.f32 %v13773_v37, %v2798_v27  ;;  %v3283_v36 = vadd.f32 %v16854_v11, %v2800_v52  ;;  %v16856_v37 = vld [vmem:[#allocation7_spill] sm:$0xff]  ;;  %v16858_v6 = vld [vmem:[#allocation42_spill] sm:$0xff]  ;;  %v16870_v27 = vld [vmem:[#allocation21_spill] sm:$0xff] }
 0x3b2   :  { %v3279_v30 = vadd.f32 %v13771_v51, %v2796_v18  ;;  %v3286_v57 = vadd.f32 %v16857_v9, %v16856_v37  ;;  %v14060_v2 = vperm.slane %v14047_v10, 0  ;;  %16860 = vst [vmem:[#allocation12_spill] sm:$0xff] %v14065_v23  ;;  %v14070_v60 = vadd.f32 %v16863_v3, %v2806_v61  ;;  %v16873_v61 = vld [vmem:[#allocation22_spill] sm:$0xff] }
 0x3b3   :  { %v4243_v8 = vadd.f32 %v13924_v42, %v3760_v17  ;;  %v2812_v16 = vadd.f32 %v13769_v14, %v2329_v31  ;;  %v16855_v14 = vld [vmem:[#allocation14_spill] sm:$0xff]  ;;  %v3764_v48 = vadd.f32 %v16867_v33, %v3281_v45  ;;  %v14082_v31 = vperm.slane %v14047_v10, 2  ;;  %16886 = vst [vmem:[#allocation7_spill] sm:$0xff] %v14124_v20  ;;  %v16887_v33 = vld [vmem:[#allocation25_spill] sm:$0xff] }
 0x3b4   :  { %v14021_v28 = vpop.f32.mrf.mxu3  ;;  %v3762_v24 = vadd.f32 %v13860_v25, %v3279_v30  ;;  %v3285_v51 = vadd.f32 %v16855_v14, %v2802_v63  ;;  %16859 = vst [vmem:[#allocation11_spill] sm:$0xff] %v14060_v2  ;;  %v14086_v18 = vadd.f32 %v16870_v27, %v16869_v13  ;;  %v16872_v63 = vld [vmem:[#allocation27_spill] sm:$0xff]  ;;  %v14093_v30 = vadd.f32 %v16873_v61, %v2810_v15  ;;  %v16881_v14 = vld [vmem:[#allocation60_spill] sm:$0xff]  ;;  %v16889_v27 = vld [vmem:[#allocation33_spill] sm:$0xff] }
 0x3b5   :  { %v14028_v62 = vpop.f32.mrf.mxu2  ;;  %v4726_v1 = vadd.f32 %v4363_v26, %v4243_v8  ;;  %v3287_v26 = vadd.f32 %v16862_v56, %v2804_v12  ;;  %16868 = vst [vmem:[#allocation13_spill] sm:$0xff] %v14082_v31  ;;  %v3765_v32 = vadd.f32 %v16872_v63, %v3282_v7  ;;  %v3766_v45 = vadd.f32 %v16875_v43, %v3283_v36  ;;  %v16884_v56 = vld [vmem:[#allocation61_spill] sm:$0xff] }
 0x3b6   :  { %v4846_v38 = vpop.f32.mrf.mxu0  ;;  %v4245_v42 = vadd.f32 %v16858_v6, %v3762_v24  ;;  %v16876_v24 = vld [vmem:[#allocation43_spill] sm:$0xff]  ;;  %v16882_v6 = vld [vmem:[#allocation45_spill] sm:$0xff] }
 0x3b7   :  { %v4866_v39 = vpop.f32.mrf.mxu1  ;;  %v14057_v25 = vadd.f32 %v4846_v38, %v4726_v1  ;;  %v4247_v38 = vadd.f32 %v16874_v40, %v3764_v48  ;;  %v4248_v7 = vadd.f32 %v16877_v0, %v3765_v32  ;;  %v16879_v1 = vld [vmem:[#allocation23_spill] sm:$0xff]  ;;  %v4249_v36 = vadd.f32 %v16882_v6, %v3766_v45  ;;  %v16898_v6 = vld [vmem:[#allocation49_spill] sm:$0xff] }
 0x3b8   :  { %v14062_v46 = vadd.f32 %v4866_v39, %v4727_v50  ;;  %v4728_v44 = vadd.f32 %v13966_v4, %v4245_v42  ;;  %v3763_v4 = vadd.f32 %v16871_v55, %v3280_v21  ;;  %v16878_v21 = vld [vmem:[#allocation10_spill] sm:$0xff]  ;;  %v16880_v50 = vld [vmem:[#allocation24_spill] sm:$0xff]  ;;  %v16883_v42 = vld [vmem:[#allocation59_spill] sm:$0xff]  ;;  %v14127_v48 = vadd.f32 %v16887_v33, %v2812_v16 }
 0x3b9   :  { %v5269_v12 = vmul.f32 %v14060_v2, %v14057_v25  ;;  %v14105_v15 = vadd.f32 %v16879_v1, %v16878_v21  ;;  %v14108_v11 = vadd.f32 %v16880_v50, %v2809_v19  ;;  %v4730_v37 = vadd.f32 %v16881_v14, %v4247_v38  ;;  %v16896_v21 = vld [vmem:[#allocation46_spill] sm:$0xff]  ;;  %v16897_v50 = vld [vmem:[#allocation51_spill] sm:$0xff] }
 0x3ba   :  { %v5270_v8 = vmul.f32 %v14065_v23, %v14062_v46  ;;  %v4246_v39 = vadd.f32 %v16876_v24, %v3763_v4  ;;  %v4731_v3 = vadd.f32 %v16884_v56, %v4248_v7  ;;  %v3768_v55 = vadd.f32 %v16889_v27, %v3285_v51 }
 0x3bb   :  { %v5289_v58 = vsel %vm5288_vm13, %v5269_v12, 0.0  ;;  %v14132_v4 = vperm.slane %v14047_v10, 5  ;;  %v4732_v32 = vadd.f32 %v13974_v53, %v4249_v36  ;;  %v16891_v12 = vld [vmem:[#allocation31_spill] sm:$0xff]  ;;  %v14150_v7 = vperm.slane %v14047_v10, 6 }
 0x3bc   :  { %v14073_v49 = vpop.f32.mrf.mxu3  ;;  %v4729_v22 = vadd.f32 %v16883_v42, %v4246_v39  ;;  %v5290_v5 = vsel %vm5288_vm13, %v5270_v8, 0.0  ;;  %v3769_v16 = vadd.f32 %v16891_v12, %v3286_v57  ;;  %v16892_v8 = vld [vmem:[#allocation32_spill] sm:$0xff]  ;;  %v16899_v42 = vld [vmem:[#allocation63_spill] sm:$0xff] }
 0x3bd   :  { %v4886_v54 = vpop.f32.mrf.mxu2  ;;  %16890 = vst [vmem:[#allocation15_spill] sm:$0xff] %v14132_v4  ;;  %v3770_v43 = vadd.f32 %v16892_v8, %v3287_v26  ;;  %v5291_v51 = vadd.f32 %v5290_v5, %v5289_v58  ;;  %v14155_v57 = vld [vmem:[%s16750_s9 + $0x8] sm:$0xff]  ;;  %v16895_v26 = vld [vmem:[#allocation34_spill] sm:$0xff] }
 0x3be   :  { %v14090_v17 = vadd.f32 %v4886_v54, %v4728_v44  ;;  %v4926_v52 = vpop.f32.mrf.mxu0  ;;  %v14117_v44 = vperm.slane %v14047_v10, 4  ;;  %v16888_v54 = vld [vmem:[#allocation30_spill] sm:$0xff]  ;;  %16894 = vst [vmem:[#allocation42_spill] sm:$0xff] %v14150_v7  ;;  %v4252_v14 = vadd.f32 %v16897_v50, %v3769_v16  ;;  %v14183_v16 = vperm.slane %v14155_v57, 1 }
 0x3bf   :  { %v4946_v41 = vpop.f32.mrf.mxu1  ;;  %v14121_v19 = vadd.f32 %v4926_v52, %v4730_v37  ;;  %v3767_v13 = vadd.f32 %v16888_v54, %v3284_v34  ;;  %v16893_v34 = vld [vmem:[#allocation48_spill] sm:$0xff]  ;;  %v4253_v36 = vadd.f32 %v16898_v6, %v3770_v43  ;;  %v16900_v58 = vld [vmem:[#allocation62_spill] sm:$0xff]  ;;  %v14168_v54 = vperm.slane %v14155_v57, 0 }
 0x3c0   :  { %v5271_v9 = vmul.f32 %v14082_v31, %v14090_v17  ;;  %16885 = vst [vmem:[#allocation14_spill] sm:$0xff] %v14117_v44  ;;  %v14136_v52 = vadd.f32 %v4946_v41, %v4731_v3  ;;  %v4251_v45 = vadd.f32 %v16893_v34, %v3768_v55  ;;  %v3771_v41 = vadd.f32 %v16895_v26, %v3288_v47  ;;  %v16906_v43 = vld [vmem:[#allocation66_spill] sm:$0xff] }
 0x3c1   :  { %v5273_v39 = vmul.f32 %v14117_v44, %v14121_v19  ;;  %v4250_v1 = vadd.f32 %v16896_v21, %v3767_v13  ;;  %v4735_v33 = vadd.f32 %v13976_v29, %v4252_v14  ;;  %16901 = vst [vmem:[#allocation16_spill] sm:$0xff] %v14168_v54  ;;  %v4736_v34 = vadd.f32 %v16906_v43, %v4253_v36  ;;  %v16910_v6 = vld [vmem:[#allocation38_spill] sm:$0xff] }
 0x3c2   :  { %v5292_v61 = vsel %vm5288_vm13, %v5271_v9, 0.0  ;;  %v5274_v56 = vmul.f32 %v14132_v4, %v14136_v52  ;;  %16905 = vst [vmem:[#allocation18_spill] sm:$0xff] %v14183_v16  ;;  %v14195_v21 = vperm.slane %v14155_v57, 2  ;;  %v16911_v36 = vld [vmem:[#allocation50_spill] sm:$0xff] }
 0x3c3   :  { %v5293_v37 = vadd.f32 %v5292_v61, %v5291_v51  ;;  %v4733_v5 = vadd.f32 %v16900_v58, %v4250_v1  ;;  %v5296_v13 = vsel %vm5288_vm13, %v5273_v39, 0.0  ;;  %v16907_v39 = vld [vmem:[#allocation36_spill] sm:$0xff] }
 0x3c4   :  { %v4906_v63 = vpop.f32.mrf.mxu3  ;;  %16909 = vst [vmem:[#allocation8_spill] sm:$0xff] %v14195_v21 }
 0x3c5   :  { %v14138_v40 = vadd.f32 %v4906_v63, %v4729_v22  ;;  %v4966_v38 = vpop.f32.mrf.mxu2  ;;  %v4734_v22 = vadd.f32 %v16899_v42, %v4251_v45  ;;  %v14176_v63 = vperm.slane %v14047_v10, 7  ;;  %v5298_v45 = vsel %vm5288_vm13, %v5274_v56, 0.0 }
 0x3c6   :  { %v5006_v24 = vpop.f32.mrf.mxu0  ;;  %v14147_v0 = vadd.f32 %v4966_v38, %v4732_v32  ;;  %v16903_v32 = vld [vmem:[#allocation35_spill] sm:$0xff]  ;;  %v16904_v38 = vld [vmem:[#allocation37_spill] sm:$0xff]  ;;  %v4254_v42 = vadd.f32 %v16911_v36, %v3771_v41  ;;  %v14216_v41 = vperm.slane %v14155_v57, 4 }
 0x3c7   :  { %v5272_v53 = vmul.f32 %v14124_v20, %v14138_v40  ;;  %v5026_v9 = vpop.f32.mrf.mxu1  ;;  %v14173_v55 = vadd.f32 %v5006_v24, %v4734_v22  ;;  %16902 = vst [vmem:[#allocation17_spill] sm:$0xff] %v14176_v63  ;;  %v3773_v61 = vadd.f32 %v16903_v32, %v14077_v59  ;;  %v3772_v29 = vadd.f32 %v16904_v38, %v14070_v60  ;;  %v16912_v22 = vld [vmem:[#allocation55_spill] sm:$0xff]  ;;  %v16915_v38 = vld [vmem:[#allocation64_spill] sm:$0xff] }
 0x3c8   :  { %v5275_v27 = vmul.f32 %v14150_v7, %v14147_v0  ;;  %v14187_v51 = vadd.f32 %v5026_v9, %v4735_v33  ;;  %v3774_v59 = vadd.f32 %v16907_v39, %v14086_v18  ;;  %v3775_v18 = vadd.f32 %v16910_v6, %v14108_v11  ;;  %16917 = vst [vmem:[#allocation19_spill] sm:$0xff] %v14216_v41 }
 0x3c9   :  { %v5294_v3 = vsel %vm5288_vm13, %v5272_v53, 0.0  ;;  %v16908_v53 = vld [vmem:[#allocation52_spill] sm:$0xff]  ;;  %v5277_v14 = vmul.f32 %v14168_v54, %v14173_v55  ;;  %v4256_v56 = vadd.f32 %v16912_v22, %v3773_v61 }
 0x3ca   :  { %v5295_v47 = vadd.f32 %v5294_v3, %v5293_v37  ;;  %v4255_v26 = vadd.f32 %v16908_v53, %v3772_v29  ;;  %v5300_v50 = vsel %vm5288_vm13, %v5275_v27, 0.0  ;;  %v5278_v27 = vmul.f32 %v14183_v16, %v14187_v51  ;;  %v16923_v22 = vld [vmem:[#allocation56_spill] sm:$0xff] }
 0x3cb   :  { %v4737_v29 = vadd.f32 %v16915_v38, %v4254_v42  ;;  %v5304_v61 = vsel %vm5288_vm13, %v5277_v14, 0.0  ;;  %v16922_v42 = vld [vmem:[#allocation40_spill] sm:$0xff] }
 0x3cc   :  { %v5297_v12 = vadd.f32 %v5296_v13, %v5295_v47  ;;  %v4986_v8 = vpop.f32.mrf.mxu3  ;;  %v16914_v47 = vld [vmem:[#allocation65_spill] sm:$0xff] }
 0x3cd   :  { %v14189_v24 = vadd.f32 %v4986_v8, %v4733_v5  ;;  %v5046_v10 = vpop.f32.mrf.mxu2  ;;  %v16913_v5 = vld [vmem:[#allocation53_spill] sm:$0xff]  ;;  %v4738_v13 = vadd.f32 %v16914_v47, %v4255_v26  ;;  %v16925_v47 = vld [vmem:[#allocation54_spill] sm:$0xff] }
 0x3ce   :  { %v5299_v60 = vadd.f32 %v5298_v45, %v5297_v12  ;;  %v5086_v1 = vpop.f32.mrf.mxu0  ;;  %v14202_v9 = vadd.f32 %v5046_v10, %v4736_v34  ;;  %v4257_v33 = vadd.f32 %v16913_v5, %v3774_v59  ;;  %v16916_v12 = vld [vmem:[#allocation67_spill] sm:$0xff]  ;;  %v14224_v45 = vperm.slane %v14155_v57, 3  ;;  %v16920_v59 = vld [vmem:[#allocation41_spill] sm:$0xff] }
 0x3cf   :  { %v5276_v37 = vmul.f32 %v14176_v63, %v14189_v24  ;;  %v5106_v58 = vpop.f32.mrf.mxu1  ;;  %v4739_v8 = vadd.f32 %v16916_v12, %v4256_v56  ;;  %v14221_v34 = vadd.f32 %v5086_v1, %v4738_v13  ;;  %v16919_v10 = vld [vmem:[#allocation39_spill] sm:$0xff]  ;;  %v3776_v53 = vadd.f32 %v16920_v59, %v14093_v30  ;;  %v16927_v12 = vld [vmem:[#allocation57_spill] sm:$0xff] }
 0x3d0   :  { %v5301_v3 = vadd.f32 %v5300_v50, %v5299_v60  ;;  %v5279_v43 = vmul.f32 %v14195_v21, %v14202_v9  ;;  %16918 = vst [vmem:[#allocation20_spill] sm:$0xff] %v14224_v45  ;;  %v3777_v39 = vadd.f32 %v16919_v10, %v14105_v15  ;;  %v14231_v60 = vperm.slane %v14155_v57, 5  ;;  %v16928_v10 = vld [vmem:[#allocation68_spill] sm:$0xff] }
 0x3d1   :  { %v5302_v32 = vsel %vm5288_vm13, %v5276_v37, 0.0  ;;  %v4740_v14 = vadd.f32 %v14021_v28, %v4257_v33  ;;  %v5306_v37 = vsel %vm5288_vm13, %v5278_v27, 0.0  ;;  %v14235_v1 = vadd.f32 %v5106_v58, %v4739_v8  ;;  %v16926_v27 = vld [vmem:[#allocation58_spill] sm:$0xff] }
 0x3d2   :  { %v5303_v11 = vadd.f32 %v5302_v32, %v5301_v3  ;;  %16921 = vst [vmem:[#allocation29_spill] sm:$0xff] %v14231_v60  ;;  %v3778_v15 = vadd.f32 %v16922_v42, %v14127_v48  ;;  %v4259_v56 = vadd.f32 %v16923_v22, %v3776_v53  ;;  %v14243_v3 = vperm.slane %v14155_v57, 6  ;;  %v38_v48 = vld [vmem:[%s16750_s9 + $0x10] sm:$0x7] }
 0x3d3   :  { %v5308_v5 = vsel %vm5288_vm13, %v5279_v43, 0.0  ;;  %v5281_v28 = vmul.f32 %v14216_v41, %v14221_v34  ;;  %v4258_v13 = vadd.f32 %v16925_v47, %v3775_v18  ;;  %v4260_v32 = vadd.f32 %v16926_v27, %v3777_v39 }
 0x3d4   :  { %v5305_v26 = vadd.f32 %v5304_v61, %v5303_v11  ;;  %v5066_v50 = vpop.f32.mrf.mxu3  ;;  %16924 = vst [vmem:[#allocation9_spill] sm:$0xff] %v14243_v3  ;;  %v4261_v8 = vadd.f32 %v16927_v12, %v3778_v15  ;;  %v4742_v11 = vadd.f32 %v13998_v35, %v4259_v56  ;;  %v5282_v61 = vmul.f32 %v14231_v60, %v14235_v1 }
 0x3d5   :  { %v14237_v6 = vadd.f32 %v5066_v50, %v4737_v29  ;;  %v5126_v36 = vpop.f32.mrf.mxu2  ;;  %v4741_v59 = vadd.f32 %v16928_v10, %v4258_v13  ;;  %v4743_v53 = vadd.f32 %v14028_v62, %v4260_v32  ;;  %v14264_v50 = vperm.slane %v38_v48, 0 }
 0x3d6   :  { %v5307_v30 = vadd.f32 %v5306_v37, %v5305_v26  ;;  %v14250_v33 = vadd.f32 %v5126_v36, %v4740_v14  ;;  %v5166_v29 = vpop.f32.mrf.mxu0  ;;  %v5312_v39 = vsel %vm5288_vm13, %v5281_v28, 0.0  ;;  %v14272_v35 = vperm.slane %v14155_v57, 7 }
 0x3d7   :  { %v5280_v58 = vmul.f32 %v14224_v45, %v14237_v6  ;;  %16929 = vst [vmem:[#allocation21_spill] sm:$0xff] %v14264_v50  ;;  %v5186_v18 = vpop.f32.mrf.mxu1  ;;  %v14269_v37 = vadd.f32 %v5166_v29, %v4742_v11  ;;  %v14274_v42 = vperm.slane %v38_v48, 1  ;;  %v4744_v62 = vadd.f32 %v14073_v49, %v4261_v8 }
 0x3d8   :  { %v5309_v38 = vadd.f32 %v5308_v5, %v5307_v30  ;;  %v5283_v14 = vmul.f32 %v14243_v3, %v14250_v33  ;;  %16930 = vst [vmem:[#allocation26_spill] sm:$0xff] %v14272_v35  ;;  %v5314_v22 = vsel %vm5288_vm13, %v5282_v61, 0.0  ;;  %v14278_v56 = vadd.f32 %v5186_v18, %v4743_v53 }
 0x3d9   :  { %v5310_v43 = vsel %vm5288_vm13, %v5280_v58, 0.0  ;;  %16931 = vst [vmem:[#allocation27_spill] sm:$0xff] %v14274_v42  ;;  %v14282_v58 = vperm.slane %v38_v48, 2  ;;  %v5285_v57 = vmul.f32 %v14264_v50, %v14269_v37 }
 0x3da   :  { %v5311_v26 = vadd.f32 %v5310_v43, %v5309_v38  ;;  %v5316_v47 = vsel %vm5288_vm13, %v5283_v14, 0.0  ;;  %v5286_v32 = vmul.f32 %v14274_v42, %v14278_v56 }
 0x3db   :  { %16932 = vst [vmem:[#allocation22_spill] sm:$0xff] %v14282_v58  ;;  %v5320_v12 = vsel %vm5288_vm13, %v5285_v57, 0.0 }
 0x3dc   :  { %v5313_v36 = vadd.f32 %v5312_v39, %v5311_v26  ;;  %v5146_v15 = vpop.f32.mrf.mxu3  ;;  %v5322_v11 = vsel %vm5288_vm13, %v5286_v32, 0.0 }
 0x3dd   :  { %v14280_v30 = vadd.f32 %v5146_v15, %v4741_v59  ;;  %v5206_v5 = vpop.f32.mrf.mxu2 }
 0x3de   :  { %v5315_v28 = vadd.f32 %v5314_v22, %v5313_v36  ;;  %v14289_v27 = vadd.f32 %v5206_v5, %v4744_v62 }
 0x3df   :  { %v5284_v13 = vmul.f32 %v14272_v35, %v14280_v30 }
 0x3e0   :  { %v5317_v49 = vadd.f32 %v5316_v47, %v5315_v28  ;;  %v5287_v48 = vmul.f32 %v14282_v58, %v14289_v27 }
 0x3e1   :  { %v5318_v38 = vsel %vm5288_vm13, %v5284_v13, 0.0 }
 0x3e2   :  { %v5319_v29 = vadd.f32 %v5318_v38, %v5317_v49  ;;  %v5324_v43 = vsel %vm5288_vm13, %v5287_v48, 0.0 }
 0x3e4   :  { %v5321_v8 = vadd.f32 %v5320_v12, %v5319_v29 }
 0x3e6   :  { %v5323_v61 = vadd.f32 %v5322_v11, %v5321_v8 }
 0x3e8   :  { %v5325_v10 = vadd.f32 %v5324_v43, %v5323_v61 }
 0x3ea   :  { %5326 = vadd.xlane.f32.xlu0 %v5325_v10 }
 0x45d   :  { %v5327_v59 = vpop.xlane.xlu0 %5326 }
 0x45e   :  { %v14299_v53 = vmul.f32 0.00048828125, %v5327_v59 }
 0x460   :  { %v5329_v26 = vsub.f32 %v14057_v25, %v14299_v53  ;;  %v5330_v18 = vsub.f32 %v14062_v46, %v14299_v53  ;;  %v5331_v39 = vsub.f32 %v14090_v17, %v14299_v53  ;;  %v5332_v14 = vsub.f32 %v14138_v40, %v14299_v53 }
 0x461   :  { %v5333_v62 = vsub.f32 %v14121_v19, %v14299_v53  ;;  %v5334_v5 = vsub.f32 %v14136_v52, %v14299_v53  ;;  %v5335_v13 = vsub.f32 %v14147_v0, %v14299_v53  ;;  %v5336_v38 = vsub.f32 %v14189_v24, %v14299_v53 }
 0x462   :  { %v5348_v36 = vmul.f32 %v5329_v26, %v14060_v2  ;;  %v5349_v15 = vmul.f32 %v5330_v18, %v14065_v23  ;;  %v5350_v22 = vmul.f32 %v5331_v39, %v14082_v31  ;;  %v5351_v28 = vmul.f32 %v5332_v14, %v14124_v20 }
 0x463   :  { %v5352_v49 = vmul.f32 %v5333_v62, %v14117_v44  ;;  %v5353_v29 = vmul.f32 %v5334_v5, %v14132_v4  ;;  %v5337_v61 = vsub.f32 %v14173_v55, %v14299_v53  ;;  %v5354_v43 = vmul.f32 %v5335_v13, %v14150_v7 }
 0x464   :  { %v5367_v47 = vmul.f32 %v5348_v36, %v5348_v36  ;;  %v5368_v57 = vmul.f32 %v5349_v15, %v5349_v15  ;;  %v5369_v32 = vmul.f32 %v5350_v22, %v5350_v22  ;;  %v5370_v48 = vmul.f32 %v5351_v28, %v5351_v28 }
 0x465   :  { %v5371_v10 = vmul.f32 %v5352_v49, %v5352_v49  ;;  %v5338_v18 = vsub.f32 %v14187_v51, %v14299_v53  ;;  %v5355_v39 = vmul.f32 %v5336_v38, %v14176_v63  ;;  %v5372_v14 = vmul.f32 %v5353_v29, %v5353_v29 }
 0x466   :  { %v5386_v12 = vsel %vm5288_vm13, %v5367_v47, 0.0  ;;  %v5387_v8 = vsel %vm5288_vm13, %v5368_v57, 0.0  ;;  %v5389_v59 = vsel %vm5288_vm13, %v5369_v32, 0.0  ;;  %v5391_v36 = vsel %vm5288_vm13, %v5370_v48, 0.0 }
 0x467   :  { %v5388_v11 = vadd.f32 %v5387_v8, %v5386_v12  ;;  %v5339_v62 = vsub.f32 %v14202_v9, %v14299_v53  ;;  %v5356_v22 = vmul.f32 %v5337_v61, %v14168_v54  ;;  %v5373_v5 = vmul.f32 %v5354_v43, %v5354_v43 }
 0x468   :  { %v5393_v28 = vsel %vm5288_vm13, %v5371_v10, 0.0  ;;  %v5340_v57 = vsub.f32 %v14237_v6, %v14299_v53  ;;  %v5357_v13 = vmul.f32 %v5338_v18, %v14183_v16  ;;  %v5374_v49 = vmul.f32 %v5355_v39, %v5355_v39 }
 0x469   :  { %v5390_v26 = vadd.f32 %v5389_v59, %v5388_v11  ;;  %v5395_v32 = vsel %vm5288_vm13, %v5372_v14, 0.0  ;;  %v5341_v29 = vsub.f32 %v14221_v34, %v14299_v53  ;;  %v5358_v48 = vmul.f32 %v5339_v62, %v14195_v21 }
 0x46a   :  { %v5375_v12 = vmul.f32 %v5356_v22, %v5356_v22  ;;  %v5397_v8 = vsel %vm5288_vm13, %v5373_v5, 0.0  ;;  %v5342_v61 = vsub.f32 %v14235_v1, %v14299_v53  ;;  %v5359_v43 = vmul.f32 %v5340_v57, %v14224_v45 }
 0x46b   :  { %v5392_v15 = vadd.f32 %v5391_v36, %v5390_v26  ;;  %v5376_v10 = vmul.f32 %v5357_v13, %v5357_v13  ;;  %v5399_v59 = vsel %vm5288_vm13, %v5374_v49, 0.0  ;;  %v5343_v18 = vsub.f32 %v14250_v33, %v14299_v53 }
 0x46c   :  { %v5360_v39 = vmul.f32 %v5341_v29, %v14216_v41  ;;  %v5377_v14 = vmul.f32 %v5358_v48, %v5358_v48  ;;  %v5401_v36 = vsel %vm5288_vm13, %v5375_v12, 0.0  ;;  %v5344_v62 = vsub.f32 %v14280_v30, %v14299_v53 }
 0x46d   :  { %v5394_v47 = vadd.f32 %v5393_v28, %v5392_v15  ;;  %v5361_v22 = vmul.f32 %v5342_v61, %v14231_v60  ;;  %v5378_v5 = vmul.f32 %v5359_v43, %v5359_v43  ;;  %v5403_v28 = vsel %vm5288_vm13, %v5376_v10, 0.0 }
 0x46e   :  { %v5345_v57 = vsub.f32 %v14269_v37, %v14299_v53  ;;  %v5362_v13 = vmul.f32 %v5343_v18, %v14243_v3  ;;  %v5379_v49 = vmul.f32 %v5360_v39, %v5360_v39  ;;  %v5346_v29 = vsub.f32 %v14278_v56, %v14299_v53 }
 0x46f   :  { %v5396_v38 = vadd.f32 %v5395_v32, %v5394_v47  ;;  %v5405_v32 = vsel %vm5288_vm13, %v5377_v14, 0.0  ;;  %v5363_v48 = vmul.f32 %v5344_v62, %v14272_v35  ;;  %v5380_v12 = vmul.f32 %v5361_v22, %v5361_v22 }
 0x470   :  { %v5347_v61 = vsub.f32 %v14289_v27, %v14299_v53  ;;  %v5364_v43 = vmul.f32 %v5345_v57, %v14264_v50  ;;  %v5381_v10 = vmul.f32 %v5362_v13, %v5362_v13  ;;  %v5365_v18 = vmul.f32 %v5346_v29, %v14274_v42 }
 0x471   :  { %v5398_v11 = vadd.f32 %v5397_v8, %v5396_v38  ;;  %v5407_v8 = vsel %vm5288_vm13, %v5378_v5, 0.0  ;;  %v5382_v39 = vmul.f32 %v5363_v48, %v5363_v48  ;;  %v5411_v14 = vsel %vm5288_vm13, %v5380_v12, 0.0 }
 0x472   :  { %v5383_v62 = vmul.f32 %v5364_v43, %v5364_v43  ;;  %v5413_v22 = vsel %vm5288_vm13, %v5381_v10, 0.0 }
 0x473   :  { %v5400_v26 = vadd.f32 %v5399_v59, %v5398_v11  ;;  %v5409_v59 = vsel %vm5288_vm13, %v5379_v49, 0.0 }
 0x474   :  { %v5417_v49 = vsel %vm5288_vm13, %v5383_v62, 0.0 }
 0x475   :  { %v5402_v15 = vadd.f32 %v5401_v36, %v5400_v26 }
 0x477   :  { %v5404_v47 = vadd.f32 %v5403_v28, %v5402_v15  ;;  %v5366_v15 = vmul.f32 %v5347_v61, %v14282_v58  ;;  %v5384_v28 = vmul.f32 %v5365_v18, %v5365_v18 }
 0x479   :  { %v5406_v38 = vadd.f32 %v5405_v32, %v5404_v47  ;;  %v5415_v47 = vsel %vm5288_vm13, %v5382_v39, 0.0  ;;  %v5385_v13 = vmul.f32 %v5366_v15, %v5366_v15 }
 0x47b   :  { %v5408_v11 = vadd.f32 %v5407_v8, %v5406_v38  ;;  %v5419_v38 = vsel %vm5288_vm13, %v5384_v28, 0.0  ;;  %v5421_v48 = vsel %vm5288_vm13, %v5385_v13, 0.0  ;;  %v11675_v8 = vmov 0  }
 0x47c   :  { %11629 = vset.pattern.permute.xlu2 %v11675_v8  ;;  %11630 = vset.pattern.permute.xlu1 %v11675_v8 }
 0x47d   :  { %v5410_v26 = vadd.f32 %v5409_v59, %v5408_v11  ;;  %11631 = vset.pattern.permute.xlu0 %v11675_v8 }
 0x47f   :  { %v5412_v36 = vadd.f32 %v5411_v14, %v5410_v26  ;;  %v5426_v14 = vld [vmem:[%s16746_s5] sm:$0xf]  ;;  %s11676_s5 = smov 35  }
 0x481   :  { %v5414_v5 = vadd.f32 %v5413_v22, %v5412_v36 }
 0x483   :  { %v5416_v57 = vadd.f32 %v5415_v47, %v5414_v5  ;;  %v5439_v5 = vld [vmem:[%s16747_s6] sm:$0xf] }
 0x485   :  { %v5418_v32 = vadd.f32 %v5417_v49, %v5416_v57 }
 0x487   :  { %v5420_v29 = vadd.f32 %v5419_v38, %v5418_v32 }
 0x489   :  { %v5422_v12 = vadd.f32 %v5421_v48, %v5420_v29 }
 0x48b   :  { %5423 = vadd.xlane.f32.xlu1 %v5422_v12 }
 0x4fe   :  { %v5424_v11 = vpop.xlane.xlu1 %5423 }
 0x4ff   :  { %v5425_v61 = vmul.f32 0.00048828125, %v5424_v11 }
 0x501   :  { %v5427_v43 = vadd.f32 1e-05, %v5425_v61 }
 0x503   :  { %11632 = vrsqrt.f32 %v5427_v43  ;;  %vm5434_vm15 = vweird.f32 %v5427_v43 }
 0x509   :  { %v11633_v10 = vpop.eup %11632 }
 0x50a   :  { %v5429_v59 = vmul.f32 %v11633_v10, %v5427_v43  ;;  %vm5435_vm14 = vweird.f32 %v11633_v10 }
 0x50b   :  { %vm5436_vm1 = vmor %vm5434_vm15, %vm5435_vm14  ;;  %vm5647_vm15 = vcmask 285700  }
 0x50c   :  { %v5430_v26 = vmul.f32 %v11633_v10, %v5429_v59  ;;  %vm5637_vm14 = vmor %vm5636_vm4, %vm5635_vm2 }
 0x50e   :  { %v5431_v18 = vmul.f32 0.5, %v5430_v26 }
 0x510   :  { %v5432_v39 = vsub.f32 1.5, %v5431_v18 }
 0x512   :  { %v5433_v36 = vmul.f32 %v11633_v10, %v5432_v39 }
 0x514   :  { %v5437_v15 = vsel %vm5436_vm1, %v11633_v10, %v5433_v36  ;;  %vm5648_vm1 = vmor %vm5647_vm15, %vm5288_vm13 }
 0x515   :  { %v5438_v62 = vmul.f32 %v5437_v15, %v5426_v14 }
 0x517   :  { %5444 = vperm.xlu2 %11629, %v5438_v62   ;;  %v5440_v22 = vmul.f32 %v5438_v62, %v14299_v53 }
 0x519   :  { %v5441_v28 = vsub.f32 %v5439_v5, %v5440_v22 }
 0x51f   :  { %5468 = vperm.xlu2 %11629, %v5441_v28  }
 0x571   :  { %v14384_v47 = vpop.permute.xlu2 %5444 }
 0x572   :  { %v5465_v57 = vmul.f32 %v14384_v47, %v14289_v27  ;;  %v5457_v13 = vmul.f32 %v14384_v47, %v14202_v9  ;;  %v5458_v49 = vmul.f32 %v14384_v47, %v14237_v6  ;;  %v5455_v53 = vmul.f32 %v14384_v47, %v14173_v55 }
 0x573   :  { %v5456_v38 = vmul.f32 %v14384_v47, %v14187_v51  ;;  %v5447_v29 = vmul.f32 %v14384_v47, %v14057_v25  ;;  %v5448_v27 = vmul.f32 %v14384_v47, %v14062_v46  ;;  %v5464_v51 = vmul.f32 %v14384_v47, %v14278_v56 }
 0x574   :  { %v5450_v14 = vmul.f32 %v14384_v47, %v14138_v40  ;;  %v5463_v15 = vmul.f32 %v14384_v47, %v14269_v37  ;;  %v5449_v37 = vmul.f32 %v14384_v47, %v14090_v17 }
 0x579   :  { %v14394_v32 = vpop.permute.xlu2 %5468 }
 0x57a   :  { %v5489_v48 = vadd.f32 %v14394_v32, %v5465_v57  ;;  %v5481_v9 = vadd.f32 %v14394_v32, %v5457_v13  ;;  %v5482_v6 = vadd.f32 %v14394_v32, %v5458_v49  ;;  %v5479_v12 = vadd.f32 %v14394_v32, %v5455_v53 }
 0x57b   :  { %v5480_v55 = vadd.f32 %v14394_v32, %v5456_v38  ;;  %v5472_v8 = vadd.f32 %v14394_v32, %v5448_v27  ;;  %v5471_v46 = vadd.f32 %v14394_v32, %v5447_v29  ;;  %v5488_v26 = vadd.f32 %v14394_v32, %v5464_v51 }
 0x57c   :  { %v5508_v11 = vmax.f32 %v5489_v48, 0.0  ;;  %v5500_v25 = vmax.f32 %v5481_v9, 0.0  ;;  %v5501_v61 = vmax.f32 %v5482_v6, 0.0  ;;  %v5498_v43 = vmax.f32 %v5479_v12, 0.0 }
 0x57d   :  { %v5499_v10 = vmax.f32 %v5480_v55, 0.0  ;;  %v5491_v59 = vmax.f32 %v5472_v8, 0.0  ;;  %v5507_v5 = vmax.f32 %v5488_v26, 0.0  ;;  %v5474_v28 = vadd.f32 %v14394_v32, %v5450_v14 }
 0x57e   :  { %v5527_v18 = vmul.f32 %v5508_v11, %v14282_v58  ;;  %v5520_v39 = vmul.f32 %v5501_v61, %v14224_v45  ;;  %v5519_v62 = vmul.f32 %v5500_v25, %v14195_v21  ;;  %v5517_v57 = vmul.f32 %v5498_v43, %v14168_v54 }
 0x57f   :  { %v5518_v36 = vmul.f32 %v5499_v10, %v14183_v16  ;;  %v5510_v56 = vmul.f32 %v5491_v59, %v14065_v23  ;;  %v5490_v40 = vmax.f32 %v5471_v46, 0.0  ;;  %v5487_v49 = vadd.f32 %v14394_v32, %v5463_v15 }
 0x580   :  { %5593 = vrot.lane.b32.xlu2 %v5527_v18, %s11676_s5  ;;  %v5562_v22 = vrot.slane %v5520_v39, 4  ;;  %v5526_v27 = vmul.f32 %v5507_v5, %v14274_v42  ;;  %v5493_v48 = vmax.f32 %v5474_v28, 0.0  ;;  %v5473_v12 = vadd.f32 %v14394_v32, %v5449_v37 }
 0x581   :  { %v5561_v13 = vrot.slane %v5518_v36, 4  ;;  %v5557_v29 = vrot.slane %v5510_v56, 4  ;;  %v5509_v9 = vmul.f32 %v5490_v40, %v14060_v2  ;;  %v5506_v6 = vmax.f32 %v5487_v49, 0.0 }
 0x582   :  { %v5571_v53 = vsel %vm5288_vm13, %v5519_v62, %v5562_v22  ;;  %v5452_v55 = vmul.f32 %v14384_v47, %v14136_v52  ;;  %v5565_v8 = vrot.slane %v5526_v27, 4  ;;  %v5512_v51 = vmul.f32 %v5493_v48, %v14124_v20 }
 0x583   :  { %5585 = vrot.lane.b32.xlu1 %v5571_v53, %s11676_s5  ;;  %v5570_v38 = vsel %vm5288_vm13, %v5517_v57, %v5561_v13  ;;  %v5566_v17 = vsel %vm5288_vm13, %v5509_v9, %v5557_v29  ;;  %v5525_v25 = vmul.f32 %v5506_v6, %v14264_v50  ;;  %v5492_v61 = vmax.f32 %v5473_v12, 0.0 }
 0x584   :  { %5583 = vrot.lane.b32.xlu0 %v5570_v38, %s11676_s5  ;;  %v5476_v11 = vadd.f32 %v14394_v32, %v5452_v55  ;;  %v5558_v43 = vrot.slane %v5512_v51, 4  ;;  %v5451_v10 = vmul.f32 %v14384_v47, %v14121_v19  ;;  %v5454_v18 = vmul.f32 %v14384_v47, %v14189_v24 }
 0x585   :  { %v5574_v46 = vsel %vm5288_vm13, %v5525_v25, %v5565_v8  ;;  %v5511_v52 = vmul.f32 %v5492_v61, %v14082_v31  ;;  %v5453_v15 = vmul.f32 %v14384_v47, %v14147_v0  ;;  %v5460_v24 = vmul.f32 %v14384_v47, %v14235_v1 }
 0x586   :  { %v5495_v59 = vmax.f32 %v5476_v11, 0.0  ;;  %v5475_v26 = vadd.f32 %v14394_v32, %v5451_v10  ;;  %v5478_v36 = vadd.f32 %v14394_v32, %v5454_v18  ;;  %v5459_v0 = vmul.f32 %v14384_v47, %v14221_v34 }
 0x587   :  { %v5567_v39 = vsel %vm5288_vm13, %v5511_v52, %v5558_v43  ;;  %v5477_v5 = vadd.f32 %v14394_v32, %v5453_v15  ;;  %v5484_v13 = vadd.f32 %v14394_v32, %v5460_v24  ;;  %v5462_v1 = vmul.f32 %v14384_v47, %v14280_v30 }
 0x588   :  { %5575 = vrot.lane.b32.xlu2 %v5566_v17, %s11676_s5  ;;  %v5514_v14 = vmul.f32 %v5495_v59, %v14132_v4  ;;  %v5494_v56 = vmax.f32 %v5475_v26, 0.0  ;;  %v5497_v62 = vmax.f32 %v5478_v36, 0.0  ;;  %v5483_v38 = vadd.f32 %v14394_v32, %v5459_v0 }
 0x589   :  { %v5496_v40 = vmax.f32 %v5477_v5, 0.0  ;;  %v5503_v53 = vmax.f32 %v5484_v13, 0.0  ;;  %v5486_v48 = vadd.f32 %v14394_v32, %v5462_v1  ;;  %v5461_v34 = vmul.f32 %v14384_v47, %v14250_v33 }
 0x58a   :  { %v5559_v19 = vrot.slane %v5514_v14, 4  ;;  %v5513_v22 = vmul.f32 %v5494_v56, %v14117_v44  ;;  %v5516_v57 = vmul.f32 %v5497_v62, %v14176_v63  ;;  %v5502_v9 = vmax.f32 %v5483_v38, 0.0 }
 0x58b   :  { %v5515_v37 = vmul.f32 %v5496_v40, %v14150_v7  ;;  %v5522_v27 = vmul.f32 %v5503_v53, %v14231_v60  ;;  %v5505_v12 = vmax.f32 %v5486_v48, 0.0  ;;  %v5485_v17 = vadd.f32 %v14394_v32, %v5461_v34 }
 0x58c   :  { %5591 = vrot.lane.b32.xlu0 %v5574_v46, %s11676_s5  ;;  %v5568_v28 = vsel %vm5288_vm13, %v5513_v22, %v5559_v19  ;;  %v5560_v49 = vrot.slane %v5516_v57, 4  ;;  %v5521_v55 = vmul.f32 %v5502_v9, %v14216_v41 }
 0x58d   :  { %v5563_v6 = vrot.slane %v5522_v27, 4  ;;  %v5524_v8 = vmul.f32 %v5505_v12, %v14272_v35  ;;  %v5504_v51 = vmax.f32 %v5485_v17, 0.0 }
 0x58e   :  { %v5569_v29 = vsel %vm5288_vm13, %v5515_v37, %v5560_v49 }
 0x58f   :  { %v5572_v30 = vsel %vm5288_vm13, %v5521_v55, %v5563_v6  ;;  %v5564_v11 = vrot.slane %v5524_v8, 4  ;;  %v5523_v25 = vmul.f32 %v5504_v51, %v14243_v3 }
 0x590   :  { %5577 = vrot.lane.b32.xlu2 %v5567_v39, %s11676_s5 }
 0x591   :  { %v5573_v61 = vsel %vm5288_vm13, %v5523_v25, %v5564_v11 }
 0x598   :  { %5579 = vrot.lane.b32.xlu2 %v5568_v28, %s11676_s5 }
 0x5a0   :  { %5581 = vrot.lane.b32.xlu2 %v5569_v29, %s11676_s5 }
 0x5a8   :  { %5587 = vrot.lane.b32.xlu2 %v5572_v30, %s11676_s5 }
 0x5b0   :  { %5589 = vrot.lane.b32.xlu2 %v5573_v61, %s11676_s5 }
 0x5da   :  { %v5594_v33 = vpop.permute.xlu2 %5593 }
 0x5db   :  { %v5604_v29 = vrot.slane %v5594_v33, 4 }
 0x5e2   :  { %v5576_v47 = vpop.permute.xlu2 %5575 }
 0x5e3   :  { %v5595_v32 = vrot.slane %v5576_v47, 4 }
 0x5e5   :  { %v5606_v46 = vsel %vm5605_vm5, %v5595_v32, %v5576_v47 }
 0x5e6   :  { %5638 = vst.msk [vmem:[#allocation3] sm:$0xff] %vm5637_vm14, %v5606_v46 }
 0x5ea   :  { %v5578_v43 = vpop.permute.xlu2 %5577 }
 0x5eb   :  { %v5596_v10 = vrot.slane %v5578_v43, 4 }
 0x5ed   :  { %v14484_v59 = vld [vmem:[#allocation3] sm:$0xff]  ;;  %v5607_v52 = vsel %vm5288_vm13, %v5595_v32, %v5596_v10 }
 0x5ee   :  { %5673 = vst [vmem:[#allocation1] ss:$2 sm:$0xff] %v14484_v59  ;;  %v14489_v26 = vsel %vm5605_vm5, %v5607_v52, %v5578_v43 }
 0x5ef   :  { %5675 = vst [vmem:[#allocation1 + $0x10] ss:$2 sm:$0xff] %v14489_v26 }
 0x5f2   :  { %v5580_v18 = vpop.permute.xlu2 %5579 }
 0x5f3   :  { %v5597_v39 = vrot.slane %v5580_v18, 4 }
 0x5f5   :  { %v5680_v14 = vld.sshfl [vmem:[#allocation1] sm:$0xff pattern:$0x75316420]  ;;  %v5681_v36 = vld.sshfl [vmem:[#allocation1 + $0x8] sm:$0xff pattern:$0x75316420]  ;;  %v5609_v56 = vsel %vm5288_vm13, %v5596_v10, %v5597_v39  ;;  %v5586_v19 = vpop.permute.xlu1 %5585 }
 0x5f6   :  { %v14494_v15 = vsel %vm5605_vm5, %v5609_v56, %v5580_v18  ;;  %v5600_v62 = vrot.slane %v5586_v19, 4  ;;  %v5584_v22 = vpop.permute.xlu0 %5583  ;;  %5708 = vrot.lane.b32.xlu0 %v5681_v36, %s11667_s14  ;;  %5706 = vrot.lane.b32.xlu1 %v5680_v14, %s11667_s14  ;;  %v5683_v5 = vld.sshfl [vmem:[#allocation1 + $0x18] sm:$0xff pattern:$0x75316420] }
 0x5f7   :  { %v5599_v24 = vrot.slane %v5584_v22, 4  ;;  %5712 = vrot.lane.b32.xlu2 %v5683_v5, %s11667_s14  ;;  %5677 = vst [vmem:[#allocation1 + $0x20] ss:$2 sm:$0xff] %v14494_v15  ;;  %v5682_v49 = vld.sshfl [vmem:[#allocation1 + $0x10] sm:$0xff pattern:$0x75316420] }
 0x5f9   :  { %v5615_v28 = vsel %vm5288_vm13, %v5599_v24, %v5600_v62 }
 0x5fa   :  { %v5582_v57 = vpop.permute.xlu2 %5581  ;;  %v14502_v13 = vsel %vm5605_vm5, %v5615_v28, %v5586_v19 }
 0x5fb   :  { %v5598_v40 = vrot.slane %v5582_v57, 4  ;;  %5689 = vst [vmem:[#allocation1 + $0x10] ss:$2 sm:$0xff] %v14502_v13 }
 0x5fd   :  { %v5611_v0 = vsel %vm5288_vm13, %v5597_v39, %v5598_v40  ;;  %v5613_v53 = vsel %vm5288_vm13, %v5598_v40, %v5599_v24 }
 0x5fe   :  { %v14508_v37 = vsel %vm5605_vm5, %v5611_v0, %v5582_v57  ;;  %v14511_v38 = vsel %vm5605_vm5, %v5613_v53, %v5584_v22  ;;  %v5592_v1 = vpop.permute.xlu0 %5591  ;;  %5710 = vrot.lane.b32.xlu0 %v5682_v49, %s11667_s14  ;;  %v5684_v48 = vld.sshfl [vmem:[#allocation1 + $0x20] sm:$0xff pattern:$0x75316420]  ;;  %v5685_v9 = vld.sshfl [vmem:[#allocation1 + $0x28] sm:$0xff pattern:$0x75316420] }
 0x5ff   :  { %v5603_v27 = vrot.slane %v5592_v1, 4  ;;  %5642 = vst [vmem:[#allocation3 + $0x20] sm:$0xff] %v14511_v38  ;;  %5716 = vrot.lane.b32.xlu2 %v5685_v9, %s11667_s14  ;;  %5714 = vrot.lane.b32.xlu1 %v5684_v48, %s11667_s14 }
 0x600   :  { %5679 = vst [vmem:[#allocation1 + $0x30] ss:$2 sm:$0xff] %v14508_v37 }
 0x601   :  { %v5623_v6 = vsel %vm5288_vm13, %v5603_v27, %v5604_v29  ;;  %5688 = vst [vmem:[#allocation1] ss:$2 sm:$0xff] %v14511_v38 }
 0x602   :  { %v5624_v34 = vsel %vm5605_vm5, %v5623_v6, %v5594_v33  ;;  %v5588_v12 = vpop.permute.xlu2 %5587  ;;  %v5694_v61 = vld.sshfl [vmem:[#allocation1 + $0x10] sm:$0xff pattern:$0x75316420]  ;;  %v5695_v47 = vld.sshfl [vmem:[#allocation1 + $0x18] sm:$0xff pattern:$0x75316420] }
 0x603   :  { %v5601_v55 = vrot.slane %v5588_v12, 4  ;;  %5649 = vst.msk [vmem:[#allocation3 + $0x48] sm:$0xff] %vm5648_vm1, %v5624_v34 }
 0x605   :  { %v5617_v17 = vsel %vm5288_vm13, %v5600_v62, %v5601_v55 }
 0x606   :  { %v14524_v30 = vsel %vm5605_vm5, %v5617_v17, %v5588_v12 }
 0x607   :  { %5690 = vst [vmem:[#allocation1 + $0x20] ss:$2 sm:$0xff] %v14524_v30  ;;  %v5686_v8 = vld.sshfl [vmem:[#allocation1 + $0x30] sm:$0xff pattern:$0x75316420] }
 0x608   :  { %v5687_v51 = vld.sshfl [vmem:[#allocation1 + $0x38] sm:$0xff pattern:$0x75316420]  ;;  %v5692_v11 = vld.sshfl [vmem:[#allocation1] sm:$0xff pattern:$0x75316420]  ;;  %5718 = vrot.lane.b32.xlu2 %v5686_v8, %s11667_s14 }
 0x609   :  { %5720 = vrot.lane.b32.xlu1 %v5687_v51, %s11667_s14  ;;  %5722 = vrot.lane.b32.xlu0 %v5692_v11, %s11667_s14  ;;  %v5693_v14 = vld.sshfl [vmem:[#allocation1 + $0x8] sm:$0xff pattern:$0x75316420] }
 0x60a   :  { %v5590_v25 = vpop.permute.xlu2 %5589  ;;  %v14530_v32 = vld [vmem:[#allocation3 + $0x48] sm:$0xff] }
 0x60b   :  { %v5602_v33 = vrot.slane %v5590_v25, 4  ;;  %5701 = vst [vmem:[#allocation1 + $0x10] ss:$2 sm:$0xff] %v14530_v32 }
 0x60d   :  { %v5619_v46 = vsel %vm5288_vm13, %v5601_v55, %v5602_v33  ;;  %v5621_v43 = vsel %vm5288_vm13, %v5602_v33, %v5603_v27 }
 0x60e   :  { %v14536_v10 = vsel %vm5605_vm5, %v5619_v46, %v5590_v25  ;;  %v5696_v52 = vld.sshfl [vmem:[#allocation1 + $0x20] sm:$0xff pattern:$0x75316420]  ;;  %v5697_v18 = vld.sshfl [vmem:[#allocation1 + $0x28] sm:$0xff pattern:$0x75316420]  ;;  %v14539_v39 = vsel %vm5605_vm5, %v5621_v43, %v5592_v1 }
 0x60f   :  { %6190 = vst [vmem:[#allocation1 + $0x20] ss:$2 sm:$0xff] %v14494_v15 }
 0x610   :  { %5730 = vrot.lane.b32.xlu2 %v5696_v52, %s11667_s14  ;;  %5691 = vst [vmem:[#allocation1 + $0x30] ss:$2 sm:$0xff] %v14536_v10 }
 0x611   :  { %5724 = vrot.lane.b32.xlu1 %v5693_v14, %s11667_s14  ;;  %5728 = vrot.lane.b32.xlu0 %v5695_v47, %s11667_s14  ;;  %5700 = vst [vmem:[#allocation1] ss:$2 sm:$0xff] %v14539_v39 }
 0x612   :  { %v5704_v36 = vld.sshfl [vmem:[#allocation1 + $0x10] sm:$0xff pattern:$0x75316420]  ;;  %v5705_v56 = vld.sshfl [vmem:[#allocation1 + $0x18] sm:$0xff pattern:$0x75316420] }
 0x613   :  { %6188 = vst [vmem:[#allocation1 + $0x10] ss:$2 sm:$0xff] %v14489_v26 }
 0x616   :  { %v14548_v19 = vld.sshfl [vmem:[#allocation1 + $0x20] sm:$0xff pattern:$0x75316420]  ;;  %v14550_v62 = vld.sshfl [vmem:[#allocation1 + $0x28] sm:$0xff pattern:$0x75316420] }
 0x617   :  { %6203 = vst [vmem:[#allocation1 + $0x20] ss:$2 sm:$0xff] %v14524_v30  ;;  %v5699_v22 = vld.sshfl [vmem:[#allocation1 + $0x38] sm:$0xff pattern:$0x75316420] }
 0x618   :  { %v5698_v5 = vld.sshfl [vmem:[#allocation1 + $0x30] sm:$0xff pattern:$0x75316420]  ;;  %5736 = vrot.lane.b32.xlu2 %v5699_v22, %s11667_s14  ;;  %v5702_v57 = vld.sshfl [vmem:[#allocation1] sm:$0xff pattern:$0x75316420] }
 0x619   :  { %5726 = vrot.lane.b32.xlu1 %v5694_v61, %s11667_s14  ;;  %5732 = vrot.lane.b32.xlu0 %v5697_v18, %s11667_s14  ;;  %6192 = vst [vmem:[#allocation1 + $0x30] ss:$2 sm:$0xff] %v14508_v37  ;;  %v5703_v40 = vld.sshfl [vmem:[#allocation1 + $0x8] sm:$0xff pattern:$0x75316420] }
 0x61a   :  { %v14557_v24 = vld.sshfl [vmem:[#allocation1 + $0x10] sm:$0xff pattern:$0x75316420]  ;;  %v14559_v28 = vld.sshfl [vmem:[#allocation1 + $0x18] sm:$0xff pattern:$0x75316420] }
 0x61b   :  { %6202 = vst [vmem:[#allocation1 + $0x10] ss:$2 sm:$0xff] %v14502_v13 }
 0x61c   :  { %6186 = vst [vmem:[#allocation1] ss:$2 sm:$0xff] %v14484_v59 }
 0x61e   :  { %v14562_v49 = vld.sshfl [vmem:[#allocation1 + $0x20] sm:$0xff pattern:$0x75316420]  ;;  %v14564_v0 = vld.sshfl [vmem:[#allocation1 + $0x28] sm:$0xff pattern:$0x75316420] }
 0x61f   :  { %6645 = vst [vmem:[#allocation1 + $0x20] ss:$2 sm:$0xff] %v14494_v15 }
 0x620   :  { %v14569_v53 = vld.sshfl [vmem:[#allocation1 + $0x30] sm:$0xff pattern:$0x75316420]  ;;  %v14571_v1 = vld.sshfl [vmem:[#allocation1 + $0x38] sm:$0xff pattern:$0x75316420]  ;;  %5740 = vrot.lane.b32.xlu2 %v5703_v40, %s11667_s14 }
 0x621   :  { %5738 = vrot.lane.b32.xlu1 %v5702_v57, %s11667_s14  ;;  %5734 = vrot.lane.b32.xlu0 %v5698_v5, %s11667_s14  ;;  %6204 = vst [vmem:[#allocation1 + $0x30] ss:$2 sm:$0xff] %v14536_v10 }
 0x622   :  { %v14576_v29 = vld.sshfl [vmem:[#allocation1 + $0x10] sm:$0xff pattern:$0x75316420]  ;;  %v14578_v27 = vld.sshfl [vmem:[#allocation1 + $0x18] sm:$0xff pattern:$0x75316420] }
 0x623   :  { %6214 = vst [vmem:[#allocation1 + $0x10] ss:$2 sm:$0xff] %v14530_v32  ;;  %v14582_v6 = vld.sshfl [vmem:[#allocation1] sm:$0xff pattern:$0x75316420] }
 0x624   :  { %v14584_v34 = vld.sshfl [vmem:[#allocation1 + $0x8] sm:$0xff pattern:$0x75316420] }
 0x625   :  { %6201 = vst [vmem:[#allocation1] ss:$2 sm:$0xff] %v14511_v38 }
 0x626   :  { %v6652_v48 = vld.sshfl [vmem:[#allocation1 + $0x20] sm:$0xff pattern:$0x75316420]  ;;  %v6653_v9 = vld.sshfl [vmem:[#allocation1 + $0x28] sm:$0xff pattern:$0x75316420] }
 0x627   :  { %6658 = vst [vmem:[#allocation1 + $0x20] ss:$2 sm:$0xff] %v14524_v30 }
 0x628   :  { %v14588_v12 = vld.sshfl [vmem:[#allocation1 + $0x30] sm:$0xff pattern:$0x75316420]  ;;  %6682 = vrot.lane.b32.xlu2 %v6652_v48, %s11668_s2  ;;  %v14592_v55 = vld.sshfl [vmem:[#allocation1 + $0x38] sm:$0xff pattern:$0x75316420] }
 0x629   :  { %5742 = vrot.lane.b32.xlu1 %v5704_v36, %s11667_s14  ;;  %5744 = vrot.lane.b32.xlu0 %v5705_v56, %s11667_s14  ;;  %6647 = vst [vmem:[#allocation1 + $0x30] ss:$2 sm:$0xff] %v14508_v37 }
 0x62a   :  { %v14594_v17 = vld.sshfl [vmem:[#allocation1 + $0x10] sm:$0xff pattern:$0x75316420] }
 0x62b   :  { %16933 = vst [vmem:[#allocation44_spill] sm:$0xff] %v14594_v17 }
 0x62c   :  { %6643 = vst [vmem:[#allocation1 + $0x10] ss:$2 sm:$0xff] %v14489_v26  ;;  %v14599_v11 = vld.sshfl [vmem:[#allocation1] sm:$0xff pattern:$0x75316420] }
 0x62d   :  { %v14601_v25 = vld.sshfl [vmem:[#allocation1 + $0x8] sm:$0xff pattern:$0x75316420] }
 0x62e   :  { %v6664_v8 = vld.sshfl [vmem:[#allocation1 + $0x20] sm:$0xff pattern:$0x75316420]  ;;  %v6665_v51 = vld.sshfl [vmem:[#allocation1 + $0x28] sm:$0xff pattern:$0x75316420] }
 0x62f   :  { %7179 = vst [vmem:[#allocation1 + $0x20] ss:$2 sm:$0xff] %v14494_v15 }
 0x630   :  { %6213 = vst [vmem:[#allocation1] ss:$2 sm:$0xff] %v14539_v39  ;;  %6700 = vrot.lane.b32.xlu2 %v6665_v51, %s11668_s2  ;;  %v6654_v61 = vld.sshfl [vmem:[#allocation1 + $0x30] sm:$0xff pattern:$0x75316420] }
 0x631   :  { %6684 = vrot.lane.b32.xlu1 %v6653_v9, %s11668_s2  ;;  %v6655_v33 = vld.sshfl [vmem:[#allocation1 + $0x38] sm:$0xff pattern:$0x75316420]  ;;  %6686 = vrot.lane.b32.xlu0 %v6654_v61, %s11668_s2 }
 0x632   :  { %6659 = vst [vmem:[#allocation1 + $0x30] ss:$2 sm:$0xff] %v14536_v10 }
 0x633   :  { %v6650_v47 = vld.sshfl [vmem:[#allocation1 + $0x10] sm:$0xff pattern:$0x75316420]  ;;  %v6651_v46 = vld.sshfl [vmem:[#allocation1 + $0x18] sm:$0xff pattern:$0x75316420] }
 0x634   :  { %6657 = vst [vmem:[#allocation1 + $0x10] ss:$2 sm:$0xff] %v14502_v13 }
 0x636   :  { %v7186_v43 = vld.sshfl [vmem:[#allocation1 + $0x20] sm:$0xff pattern:$0x75316420]  ;;  %v14609_v52 = vld.sshfl [vmem:[#allocation1 + $0x28] sm:$0xff pattern:$0x75316420] }
 0x637   :  { %7192 = vst [vmem:[#allocation1 + $0x20] ss:$2 sm:$0xff] %v14524_v30  ;;  %v14612_v18 = vld.sshfl [vmem:[#allocation1] sm:$0xff pattern:$0x75316420] }
 0x638   :  { %v14614_v14 = vld.sshfl [vmem:[#allocation1 + $0x8] sm:$0xff pattern:$0x75316420] }
 0x639   :  { %16934 = vst [vmem:[#allocation28_spill] sm:$0xff] %v14614_v14  ;;  %6688 = vrot.lane.b32.xlu1 %v6655_v33, %s11668_s2  ;;  %6698 = vrot.lane.b32.xlu0 %v6664_v8, %s11668_s2  ;;  %v6667_v22 = vld.sshfl [vmem:[#allocation1 + $0x38] sm:$0xff pattern:$0x75316420] }
 0x63a   :  { %6641 = vst [vmem:[#allocation1] ss:$2 sm:$0xff] %v14484_v59  ;;  %6704 = vrot.lane.b32.xlu2 %v6667_v22, %s11668_s2  ;;  %v6666_v40 = vld.sshfl [vmem:[#allocation1 + $0x30] sm:$0xff pattern:$0x75316420] }
 0x63b   :  { %v14618_v36 = vld.sshfl [vmem:[#allocation1 + $0x10] sm:$0xff pattern:$0x75316420]  ;;  %v6663_v56 = vld.sshfl [vmem:[#allocation1 + $0x18] sm:$0xff pattern:$0x75316420] }
 0x63c   :  { %6669 = vst [vmem:[#allocation1 + $0x10] ss:$2 sm:$0xff] %v14530_v32 }
 0x63d   :  { %7181 = vst [vmem:[#allocation1 + $0x30] ss:$2 sm:$0xff] %v14508_v37 }
 0x63e   :  { %v14623_v5 = vld.sshfl [vmem:[#allocation1 + $0x20] sm:$0xff pattern:$0x75316420]  ;;  %v14625_v57 = vld.sshfl [vmem:[#allocation1 + $0x28] sm:$0xff pattern:$0x75316420] }
 0x63f   :  { %7713 = vst [vmem:[#allocation1 + $0x20] ss:$2 sm:$0xff] %v14494_v15 }
 0x641   :  { %v6648_v48 = vld.sshfl [vmem:[#allocation1] sm:$0xff pattern:$0x75316420]  ;;  %v6649_v9 = vld.sshfl [vmem:[#allocation1 + $0x8] sm:$0xff pattern:$0x75316420]  ;;  %6702 = vrot.lane.b32.xlu1 %v6666_v40, %s11668_s2  ;;  %6680 = vrot.lane.b32.xlu0 %v6651_v46, %s11668_s2 }
 0x642   :  { %6656 = vst [vmem:[#allocation1] ss:$2 sm:$0xff] %v14511_v38  ;;  %6676 = vrot.lane.b32.xlu2 %v6649_v9, %s11668_s2 }
 0x643   :  { %v14631_v8 = vld.sshfl [vmem:[#allocation1 + $0x10] sm:$0xff pattern:$0x75316420]  ;;  %v14633_v51 = vld.sshfl [vmem:[#allocation1 + $0x18] sm:$0xff pattern:$0x75316420] }
 0x644   :  { %7177 = vst [vmem:[#allocation1 + $0x10] ss:$2 sm:$0xff] %v14489_v26  ;;  %v7189_v58 = vld.sshfl [vmem:[#allocation1 + $0x38] sm:$0xff pattern:$0x75316420] }
 0x645   :  { %v7188_v42 = vld.sshfl [vmem:[#allocation1 + $0x30] sm:$0xff pattern:$0x75316420] }
 0x646   :  { %v14638_v61 = vld.sshfl [vmem:[#allocation1 + $0x20] sm:$0xff pattern:$0x75316420]  ;;  %v14640_v33 = vld.sshfl [vmem:[#allocation1 + $0x28] sm:$0xff pattern:$0x75316420] }
 0x647   :  { %7726 = vst [vmem:[#allocation1 + $0x20] ss:$2 sm:$0xff] %v14524_v30 }
 0x648   :  { %7193 = vst [vmem:[#allocation1 + $0x30] ss:$2 sm:$0xff] %v14536_v10 }
 0x649   :  { %v6660_v22 = vld.sshfl [vmem:[#allocation1] sm:$0xff pattern:$0x75316420]  ;;  %v6661_v40 = vld.sshfl [vmem:[#allocation1 + $0x8] sm:$0xff pattern:$0x75316420]  ;;  %6678 = vrot.lane.b32.xlu1 %v6650_v47, %s11668_s2  ;;  %7222 = vrot.lane.b32.xlu0 %v7189_v58, %s11669_s23 }
 0x64a   :  { %6668 = vst [vmem:[#allocation1] ss:$2 sm:$0xff] %v14539_v39  ;;  %6674 = vrot.lane.b32.xlu2 %v6648_v48, %s11668_s2 }
 0x64b   :  { %v14645_v50 = vld.sshfl [vmem:[#allocation1 + $0x10] sm:$0xff pattern:$0x75316420]  ;;  %v14647_v46 = vld.sshfl [vmem:[#allocation1 + $0x18] sm:$0xff pattern:$0x75316420] }
 0x64c   :  { %7191 = vst [vmem:[#allocation1 + $0x10] ss:$2 sm:$0xff] %v14502_v13 }
 0x64e   :  { %v14653_v9 = vld.sshfl [vmem:[#allocation1 + $0x20] sm:$0xff pattern:$0x75316420]  ;;  %v14655_v35 = vld.sshfl [vmem:[#allocation1 + $0x28] sm:$0xff pattern:$0x75316420] }
 0x64f   :  { %8247 = vst [vmem:[#allocation1 + $0x20] ss:$2 sm:$0xff] %v14494_v15  ;;  %v7201_v41 = vld.sshfl [vmem:[#allocation1 + $0x38] sm:$0xff pattern:$0x75316420] }
 0x651   :  { %v14658_v47 = vld.sshfl [vmem:[#allocation1] sm:$0xff pattern:$0x75316420]  ;;  %v6671_v3 = vld.sshfl [vmem:[#allocation1 + $0x8] sm:$0xff pattern:$0x75316420]  ;;  %7220 = vrot.lane.b32.xlu1 %v7188_v42, %s11669_s23  ;;  %v14662_v58 = vpop.permute.xlu2 %5712  ;;  %6692 = vrot.lane.b32.xlu0 %v6661_v40, %s11668_s2 }
 0x652   :  { %7175 = vst [vmem:[#allocation1] ss:$2 sm:$0xff] %v14484_v59  ;;  %7216 = vrot.lane.b32.xlu2 %v7186_v43, %s11669_s23  ;;  %v7200_v42 = vld.sshfl [vmem:[#allocation1 + $0x30] sm:$0xff pattern:$0x75316420] }
 0x653   :  { %v14664_v60 = vld.sshfl [vmem:[#allocation1 + $0x10] sm:$0xff pattern:$0x75316420]  ;;  %v14666_v48 = vld.sshfl [vmem:[#allocation1 + $0x18] sm:$0xff pattern:$0x75316420] }
 0x654   :  { %7203 = vst [vmem:[#allocation1 + $0x10] ss:$2 sm:$0xff] %v14530_v32 }
 0x655   :  { %7715 = vst [vmem:[#allocation1 + $0x30] ss:$2 sm:$0xff] %v14508_v37 }
 0x656   :  { %v14671_v45 = vld.sshfl [vmem:[#allocation1 + $0x20] sm:$0xff pattern:$0x75316420]  ;;  %v14673_v21 = vld.sshfl [vmem:[#allocation1 + $0x28] sm:$0xff pattern:$0x75316420] }
 0x657   :  { %8260 = vst [vmem:[#allocation1 + $0x20] ss:$2 sm:$0xff] %v14524_v30 }
 0x659   :  { %v14676_v16 = vld.sshfl [vmem:[#allocation1] sm:$0xff pattern:$0x75316420]  ;;  %v14678_v54 = vld.sshfl [vmem:[#allocation1 + $0x8] sm:$0xff pattern:$0x75316420]  ;;  %6690 = vrot.lane.b32.xlu1 %v6660_v22, %s11668_s2  ;;  %v14682_v40 = vpop.permute.xlu2 %5716  ;;  %6696 = vrot.lane.b32.xlu0 %v6663_v56, %s11668_s2 }
 0x65a   :  { %7190 = vst [vmem:[#allocation1] ss:$2 sm:$0xff] %v14511_v38  ;;  %7218 = vrot.lane.b32.xlu2 %v14609_v52, %s11669_s23 }
 0x65b   :  { %v14685_v43 = vld.sshfl [vmem:[#allocation1 + $0x10] sm:$0xff pattern:$0x75316420]  ;;  %v14687_v63 = vld.sshfl [vmem:[#allocation1 + $0x18] sm:$0xff pattern:$0x75316420] }
 0x65c   :  { %7711 = vst [vmem:[#allocation1 + $0x10] ss:$2 sm:$0xff] %v14489_v26  ;;  %v14704_v56 = vld.sshfl [vmem:[#allocation1 + $0x38] sm:$0xff pattern:$0x75316420] }
 0x65d   :  { %v14706_v20 = vld.sshfl [vmem:[#allocation1 + $0x30] sm:$0xff pattern:$0x75316420] }
 0x65e   :  { %v14693_v7 = vld.sshfl [vmem:[#allocation1 + $0x20] sm:$0xff pattern:$0x75316420]  ;;  %v14695_v4 = vld.sshfl [vmem:[#allocation1 + $0x28] sm:$0xff pattern:$0x75316420] }
 0x65f   :  { %16935 = vst [vmem:[#allocation43_spill] sm:$0xff] %v14695_v4 }
 0x660   :  { %8781 = vst [vmem:[#allocation1 + $0x20] ss:$2 sm:$0xff] %v14494_v15 }
 0x661   :  { %v14698_v22 = vld.sshfl [vmem:[#allocation1] sm:$0xff pattern:$0x75316420]  ;;  %v14700_v44 = vld.sshfl [vmem:[#allocation1 + $0x8] sm:$0xff pattern:$0x75316420]  ;;  %7238 = vrot.lane.b32.xlu1 %v7201_v41, %s11669_s23  ;;  %7232 = vrot.lane.b32.xlu0 %v14623_v5, %s11669_s23 }
 0x662   :  { %7202 = vst [vmem:[#allocation1] ss:$2 sm:$0xff] %v14539_v39  ;;  %v14714_v23 = vpop.permute.xlu2 %5718  ;;  %6694 = vrot.lane.b32.xlu2 %v14618_v36, %s11668_s2  ;;  %v14728_v5 = vld [vmem:[%s16745_s4 + $0x4] sm:$0xf] }
 0x663   :  { %v14708_v31 = vld.sshfl [vmem:[#allocation1 + $0x10] sm:$0xff pattern:$0x75316420]  ;;  %v14710_v52 = vld.sshfl [vmem:[#allocation1 + $0x18] sm:$0xff pattern:$0x75316420] }
 0x664   :  { %16936 = vst [vmem:[#allocation47_spill] sm:$0xff] %v14708_v31 }
 0x665   :  { %16937 = vst [vmem:[#allocation10_spill] sm:$0xff] %v14710_v52 }
 0x666   :  { %7725 = vst [vmem:[#allocation1 + $0x10] ss:$2 sm:$0xff] %v14502_v13 }
 0x667   :  { %7727 = vst [vmem:[#allocation1 + $0x30] ss:$2 sm:$0xff] %v14536_v10  ;;  %v14720_v41 = vld.sshfl [vmem:[#allocation1 + $0x20] sm:$0xff pattern:$0x75316420] }
 0x668   :  { %16938 = vst [vmem:[#allocation23_spill] sm:$0xff] %v14720_v41  ;;  %v14722_v2 = vld.sshfl [vmem:[#allocation1 + $0x28] sm:$0xff pattern:$0x75316420]  ;;  %v5709_v4 = vpop.permute.xlu0 %5708  ;;  %v5707_v52 = vpop.permute.xlu1 %5706 }
 0x669   :  { %16939 = vst [vmem:[#allocation24_spill] sm:$0xff] %v14722_v2  ;;  %v14730_v31 = vld.sshfl [vmem:[#allocation1] sm:$0xff pattern:$0x75316420]  ;;  %v5746_v36 = vsel %vm1041_vm3, %v5707_v52, %v5709_v4  ;;  %6708 = vrot.lane.b32.xlu1 %v6671_v3, %s11668_s2  ;;  %7234 = vrot.lane.b32.xlu0 %v14625_v57, %s11669_s23 }
 0x66a   :  { %8794 = vst [vmem:[#allocation1 + $0x20] ss:$2 sm:$0xff] %v14524_v30  ;;  %v14732_v17 = vld.sshfl [vmem:[#allocation1 + $0x8] sm:$0xff pattern:$0x75316420]  ;;  %10867 = vmatpush.msk.msrb.mxu3 %vm5288_vm13, %v5746_v36  ;;  %7236 = vrot.lane.b32.xlu2 %v7200_v42, %s11669_s23 }
 0x66b   :  { %16940 = vst [vmem:[#allocation60_spill] sm:$0xff] %v14730_v31  ;;  %10868 = vmatmul.msk.f32.vlgmr.msrb.gmra.mxu3 %vm926_vm0, %v14728_v5  ;;  %v14746_v31 = vpop.permute.xlu2 %5730 }
 0x66c   :  { %16941 = vst [vmem:[#allocation45_spill] sm:$0xff] %v14732_v17 }
 0x66d   :  { %7709 = vst [vmem:[#allocation1] ss:$2 sm:$0xff] %v14484_v59  ;;  %v14740_v2 = vld.sshfl [vmem:[#allocation1 + $0x10] sm:$0xff pattern:$0x75316420] }
 0x66e   :  { %16942 = vst [vmem:[#allocation59_spill] sm:$0xff] %v14740_v2  ;;  %v14742_v41 = vld.sshfl [vmem:[#allocation1 + $0x18] sm:$0xff pattern:$0x75316420] }
 0x66f   :  { %16943 = vst [vmem:[#allocation61_spill] sm:$0xff] %v14742_v41  ;;  %v14750_v52 = vld.sshfl [vmem:[#allocation1 + $0x30] sm:$0xff pattern:$0x75316420] }
 0x670   :  { %7737 = vst [vmem:[#allocation1 + $0x10] ss:$2 sm:$0xff] %v14530_v32  ;;  %v5711_v17 = vpop.permute.xlu0 %5710  ;;  %v14757_v2 = vld.sshfl [vmem:[#allocation1 + $0x38] sm:$0xff pattern:$0x75316420] }
 0x671   :  { %v14752_v36 = vld.sshfl [vmem:[#allocation1 + $0x20] sm:$0xff pattern:$0x75316420]  ;;  %v14754_v3 = vld.sshfl [vmem:[#allocation1 + $0x28] sm:$0xff pattern:$0x75316420]  ;;  %v5747_v14 = vsel %vm1041_vm3, %v5709_v4, %v5711_v17  ;;  %v5748_v42 = vsel %vm1041_vm3, %v5711_v17, %v14662_v58  ;;  %6712 = vrot.lane.b32.xlu1 %v14633_v51, %s11668_s2  ;;  %6710 = vrot.lane.b32.xlu0 %v14631_v8, %s11668_s2 }
 0x672   :  { %16944 = vst [vmem:[#allocation25_spill] sm:$0xff] %v14752_v36  ;;  %10869 = vmatpush.msk.msra.mxu0 %vm5288_vm13, %v5747_v14  ;;  %10871 = vmatpush.msk.msra.mxu1 %vm5288_vm13, %v5748_v42  ;;  %v5715_v36 = vpop.permute.xlu1 %5714 }
 0x673   :  { %16945 = vst [vmem:[#allocation30_spill] sm:$0xff] %v14754_v3  ;;  %v5751_v3 = vsel %vm1041_vm3, %v14682_v40, %v14714_v23  ;;  %v5749_v14 = vsel %vm1041_vm3, %v14662_v58, %v5715_v36  ;;  %v5750_v42 = vsel %vm1041_vm3, %v5715_v36, %v14682_v40  ;;  %10870 = vmatmul.msk.f32.vlgmr.msra.gmra.mxu0 %vm926_vm0, %v14728_v5  ;;  %v14789_v51 = vpop.permute.xlu2 %5736 }
 0x674   :  { %9315 = vst [vmem:[#allocation1 + $0x20] ss:$2 sm:$0xff] %v14494_v15  ;;  %v14759_v41 = vld.sshfl [vmem:[#allocation1] sm:$0xff pattern:$0x75316420]  ;;  %10877 = vmatpush.msk.msrb.mxu0 %vm5288_vm13, %v5751_v3  ;;  %10873 = vmatpush.msk.msra.mxu2 %vm5288_vm13, %v5749_v14 }
 0x675   :  { %v14761_v57 = vld.sshfl [vmem:[#allocation1 + $0x8] sm:$0xff pattern:$0x75316420]  ;;  %8249 = vst [vmem:[#allocation1 + $0x30] ss:$2 sm:$0xff] %v14508_v37  ;;  %10875 = vmatpush.msk.msra.mxu3 %vm5288_vm13, %v5750_v42  ;;  %6706 = vrot.lane.b32.xlu2 %v14658_v47, %s11668_s2 }
 0x676   :  { %7724 = vst [vmem:[#allocation1] ss:$2 sm:$0xff] %v14511_v38  ;;  %10872 = vmatmul.msk.f32.vlgmr.msra.gmra.mxu1 %vm926_vm0, %v14728_v5  ;;  %10874 = vmatmul.msk.f32.vlgmr.msra.gmra.mxu2 %vm926_vm0, %v14728_v5 }
 0x677   :  { %v14776_v4 = vld.sshfl [vmem:[#allocation1 + $0x10] sm:$0xff pattern:$0x75316420]  ;;  %v14778_v17 = vld.sshfl [vmem:[#allocation1 + $0x18] sm:$0xff pattern:$0x75316420]  ;;  %10876 = vmatmul.msk.f32.vlgmr.msra.gmra.mxu3 %vm926_vm0, %v14728_v5 }
 0x678   :  { %16946 = vst [vmem:[#allocation33_spill] sm:$0xff] %v14776_v4 }
 0x679   :  { %16947 = vst [vmem:[#allocation31_spill] sm:$0xff] %v14778_v17  ;;  %7750 = vrot.lane.b32.xlu1 %v14638_v61, %s11670_s24  ;;  %7210 = vrot.lane.b32.xlu0 %v14678_v54, %s11669_s23 }
 0x67a   :  { %8245 = vst [vmem:[#allocation1 + $0x10] ss:$2 sm:$0xff] %v14489_v26 }
 0x67b   :  { %v14797_v8 = vld.sshfl [vmem:[#allocation1 + $0x20] sm:$0xff pattern:$0x75316420]  ;;  %v14799_v58 = vld.sshfl [vmem:[#allocation1 + $0x28] sm:$0xff pattern:$0x75316420]  ;;  %v5721_v14 = vpop.permute.xlu1 %5720  ;;  %10878 = vmatmul.msk.f32.vlgmr.msrb.gmra.mxu0 %vm926_vm0, %v14728_v5  ;;  %v14826_v4 = vpop.permute.xlu2 %5740 }
 0x67c   :  { %16948 = vst [vmem:[#allocation32_spill] sm:$0xff] %v14797_v8  ;;  %v14811_v47 = vld.sshfl [vmem:[#allocation1 + $0x38] sm:$0xff pattern:$0x75316420]  ;;  %v5752_v8 = vsel %vm1041_vm3, %v14714_v23, %v5721_v14 }
 0x67d   :  { %16949 = vst [vmem:[#allocation48_spill] sm:$0xff] %v14799_v58  ;;  %v14806_v40 = vld.sshfl [vmem:[#allocation1] sm:$0xff pattern:$0x75316420]  ;;  %v5723_v58 = vpop.permute.xlu0 %5722  ;;  %7752 = vrot.lane.b32.xlu2 %v14640_v33, %s11670_s24  ;;  %10879 = vmatpush.msk.msrb.mxu1 %vm5288_vm13, %v5752_v8 }
 0x67e   :  { %9328 = vst [vmem:[#allocation1 + $0x20] ss:$2 sm:$0xff] %v14524_v30  ;;  %v14808_v36 = vld.sshfl [vmem:[#allocation1 + $0x8] sm:$0xff pattern:$0x75316420]  ;;  %v5753_v54 = vsel %vm1041_vm3, %v5721_v14, %v5723_v58  ;;  %10880 = vmatmul.msk.f32.vlgmr.msrb.gmra.mxu1 %vm926_vm0, %v14728_v5 }
 0x67f   :  { %7736 = vst [vmem:[#allocation1] ss:$2 sm:$0xff] %v14539_v39  ;;  %v14815_v3 = vld.sshfl [vmem:[#allocation1 + $0x30] sm:$0xff pattern:$0x75316420]  ;;  %10881 = vmatpush.msk.msrb.mxu2 %vm5288_vm13, %v5753_v54 }
 0x680   :  { %8261 = vst [vmem:[#allocation1 + $0x30] ss:$2 sm:$0xff] %v14536_v10  ;;  %10882 = vmatmul.msk.f32.vlgmr.msrb.gmra.mxu2 %vm926_vm0, %v14728_v5 }
 0x681   :  { %v14822_v42 = vld.sshfl [vmem:[#allocation1 + $0x10] sm:$0xff pattern:$0x75316420]  ;;  %v14828_v61 = vld.sshfl [vmem:[#allocation1 + $0x18] sm:$0xff pattern:$0x75316420]  ;;  %7756 = vrot.lane.b32.xlu1 %v14704_v56, %s11670_s24  ;;  %7212 = vrot.lane.b32.xlu0 %v14645_v50, %s11669_s23 }
 0x682   :  { %16950 = vst [vmem:[#allocation34_spill] sm:$0xff] %v14822_v42 }
 0x683   :  { %16951 = vst [vmem:[#allocation46_spill] sm:$0xff] %v14828_v61  ;;  %v14860_v61 = vpop.permute.xlu2 %6682 }
 0x684   :  { %8259 = vst [vmem:[#allocation1 + $0x10] ss:$2 sm:$0xff] %v14502_v13 }
 0x685   :  { %v14835_v17 = vld.sshfl [vmem:[#allocation1 + $0x28] sm:$0xff pattern:$0x75316420]  ;;  %v14840_v23 = vld.sshfl [vmem:[#allocation1 + $0x20] sm:$0xff pattern:$0x75316420]  ;;  %7754 = vrot.lane.b32.xlu2 %v14706_v20, %s11670_s24 }
 0x686   :  { %16952 = vst [vmem:[#allocation51_spill] sm:$0xff] %v14835_v17  ;;  %v14845_v33 = vld.sshfl [vmem:[#allocation1] sm:$0xff pattern:$0x75316420]  ;;  %v5725_v17 = vpop.permute.xlu1 %5724 }
 0x687   :  { %16953 = vst [vmem:[#allocation49_spill] sm:$0xff] %v14840_v23  ;;  %v14847_v14 = vld.sshfl [vmem:[#allocation1 + $0x8] sm:$0xff pattern:$0x75316420]  ;;  %v5754_v23 = vsel %vm1041_vm3, %v5723_v58, %v5725_v17 }
 0x688   :  { %9849 = vst [vmem:[#allocation1 + $0x20] ss:$2 sm:$0xff] %v14494_v15  ;;  %v14852_v8 = vld.sshfl [vmem:[#allocation1 + $0x30] sm:$0xff pattern:$0x75316420]  ;;  %v5729_v15 = vpop.permute.xlu0 %5728  ;;  %10883 = vmatpush.msk.msrb.mxu3 %vm5288_vm13, %v5754_v23 }
 0x689   :  { %16954 = vst [vmem:[#allocation63_spill] sm:$0xff] %v14847_v14  ;;  %v14854_v54 = vld.sshfl [vmem:[#allocation1 + $0x38] sm:$0xff pattern:$0x75316420]  ;;  %v5757_v56 = vsel %vm1041_vm3, %v5729_v15, %v14746_v31  ;;  %10884 = vmatmul.msk.f32.vlgmr.msrb.gmra.mxu3 %vm926_vm0, %v14728_v5  ;;  %7208 = vrot.lane.b32.xlu1 %v14676_v16, %s11669_s23 }
 0x68a   :  { %8243 = vst [vmem:[#allocation1] ss:$2 sm:$0xff] %v14484_v59  ;;  %10889 = vmatpush.msk.msra.mxu2 %vm5288_vm13, %v5757_v56  ;;  %7768 = vrot.lane.b32.xlu0 %v14655_v35, %s11670_s24 }
 0x68b   :  { %8783 = vst [vmem:[#allocation1 + $0x30] ss:$2 sm:$0xff] %v14508_v37  ;;  %v14862_v14 = vld.sshfl [vmem:[#allocation1 + $0x10] sm:$0xff pattern:$0x75316420]  ;;  %10890 = vmatmul.msk.f32.vlgmr.msra.gmra.mxu2 %vm926_vm0, %v14728_v5 }
 0x68c   :  { %16955 = vst [vmem:[#allocation62_spill] sm:$0xff] %v14862_v14  ;;  %v14864_v42 = vld.sshfl [vmem:[#allocation1 + $0x18] sm:$0xff pattern:$0x75316420] }
 0x68d   :  { %16956 = vst [vmem:[#allocation35_spill] sm:$0xff] %v14864_v42  ;;  %7214 = vrot.lane.b32.xlu2 %v14647_v46, %s11669_s23 }
 0x68e   :  { %8271 = vst [vmem:[#allocation1 + $0x10] ss:$2 sm:$0xff] %v14530_v32 }
 0x68f   :  { %v14875_v50 = vld.sshfl [vmem:[#allocation1 + $0x20] sm:$0xff pattern:$0x75316420]  ;;  %v14877_v58 = vld.sshfl [vmem:[#allocation1 + $0x28] sm:$0xff pattern:$0x75316420] }
 0x690   :  { %16957 = vst [vmem:[#allocation37_spill] sm:$0xff] %v14875_v50 }
 0x691   :  { %16958 = vst [vmem:[#allocation66_spill] sm:$0xff] %v14877_v58  ;;  %v14882_v20 = vld.sshfl [vmem:[#allocation1] sm:$0xff pattern:$0x75316420]  ;;  %v5727_v58 = vpop.permute.xlu1 %5726  ;;  %7224 = vrot.lane.b32.xlu1 %v14698_v22, %s11669_s23 }
 0x692   :  { %9862 = vst [vmem:[#allocation1 + $0x20] ss:$2 sm:$0xff] %v14524_v30  ;;  %v14884_v42 = vld.sshfl [vmem:[#allocation1 + $0x8] sm:$0xff pattern:$0x75316420]  ;;  %v5755_v30 = vsel %vm1041_vm3, %v5725_v17, %v5727_v58  ;;  %v5756_v50 = vsel %vm1041_vm3, %v5727_v58, %v5729_v15  ;;  %7770 = vrot.lane.b32.xlu0 %v14750_v52, %s11670_s24 }
 0x693   :  { %16959 = vst [vmem:[#allocation36_spill] sm:$0xff] %v14882_v20  ;;  %v14889_v23 = vld.sshfl [vmem:[#allocation1 + $0x30] sm:$0xff pattern:$0x75316420]  ;;  %10885 = vmatpush.msk.msra.mxu0 %vm5288_vm13, %v5755_v30  ;;  %10887 = vmatpush.msk.msra.mxu1 %vm5288_vm13, %v5756_v50 }
 0x694   :  { %16960 = vst [vmem:[#allocation52_spill] sm:$0xff] %v14884_v42  ;;  %v14891_v56 = vld.sshfl [vmem:[#allocation1 + $0x38] sm:$0xff pattern:$0x75316420]  ;;  %v5733_v42 = vpop.permute.xlu0 %5732  ;;  %10886 = vmatmul.msk.f32.vlgmr.msra.gmra.mxu0 %vm926_vm0, %v14728_v5  ;;  %10888 = vmatmul.msk.f32.vlgmr.msra.gmra.mxu1 %vm926_vm0, %v14728_v5 }
 0x695   :  { %8258 = vst [vmem:[#allocation1] ss:$2 sm:$0xff] %v14511_v38  ;;  %v14898_v14 = vld.sshfl [vmem:[#allocation1 + $0x10] sm:$0xff pattern:$0x75316420]  ;;  %v5758_v16 = vsel %vm1041_vm3, %v14746_v31, %v5733_v42  ;;  %7766 = vrot.lane.b32.xlu2 %v14653_v9, %s11670_s24 }
 0x696   :  { %16961 = vst [vmem:[#allocation38_spill] sm:$0xff] %v14891_v56  ;;  %v14900_v20 = vld.sshfl [vmem:[#allocation1 + $0x18] sm:$0xff pattern:$0x75316420]  ;;  %v14906_v56 = vpop.permute.xlu2 %6700  ;;  %10891 = vmatpush.msk.msra.mxu3 %vm5288_vm13, %v5758_v16 }
 0x697   :  { %8795 = vst [vmem:[#allocation1 + $0x30] ss:$2 sm:$0xff] %v14536_v10  ;;  %10892 = vmatmul.msk.f32.vlgmr.msra.gmra.mxu3 %vm926_vm0, %v14728_v5 }
 0x698   :  { %16962 = vst [vmem:[#allocation50_spill] sm:$0xff] %v14900_v20 }
 0x699   :  { %8779 = vst [vmem:[#allocation1 + $0x10] ss:$2 sm:$0xff] %v14489_v26  ;;  %v5739_v15 = vpop.permute.xlu1 %5738  ;;  %7226 = vrot.lane.b32.xlu1 %v14700_v44, %s11669_s23  ;;  %v14995_v44 = vld [vmem:[%s16745_s4] sm:$0xf] }
 0x69a   :  { %v5761_v50 = vsel %vm1041_vm3, %v14789_v51, %v5739_v15  ;;  %v5762_v58 = vsel %vm1041_vm3, %v5739_v15, %v14826_v4  ;;  %7228 = vrot.lane.b32.xlu0 %v14664_v60, %s11669_s23 }
 0x69b   :  { %10897 = vmatpush.msk.msrb.mxu2 %vm5288_vm13, %v5761_v50  ;;  %10899 = vmatpush.msk.msrb.mxu3 %vm5288_vm13, %v5762_v58 }
 0x69c   :  { %v14916_v35 = vld.sshfl [vmem:[#allocation1] sm:$0xff pattern:$0x75316420]  ;;  %v14918_v46 = vld.sshfl [vmem:[#allocation1 + $0x8] sm:$0xff pattern:$0x75316420]  ;;  %v5735_v30 = vpop.permute.xlu0 %5734  ;;  %10898 = vmatmul.msk.f32.vlgmr.msrb.gmra.mxu2 %vm926_vm0, %v14728_v5 }
 0x69d   :  { %8270 = vst [vmem:[#allocation1] ss:$2 sm:$0xff] %v14539_v39  ;;  %v5759_v20 = vsel %vm1041_vm3, %v5733_v42, %v5735_v30  ;;  %v5760_v52 = vsel %vm1041_vm3, %v5735_v30, %v14789_v51  ;;  %10905 = vmatpush.msk.msra.mxu2 %vm5288_vm13, %v14582_v6  ;;  %10907 = vmatpush.msk.msra.mxu3 %vm5288_vm13, %v14584_v34 }
 0x69e   :  { %v14925_v31 = vld.sshfl [vmem:[#allocation1 + $0x38] sm:$0xff pattern:$0x75316420]  ;;  %v14927_v17 = vld.sshfl [vmem:[#allocation1 + $0x30] sm:$0xff pattern:$0x75316420]  ;;  %10893 = vmatpush.msk.msrb.mxu0 %vm5288_vm13, %v5759_v20  ;;  %10895 = vmatpush.msk.msrb.mxu1 %vm5288_vm13, %v5760_v52  ;;  %v14949_v15 = vpop.permute.xlu2 %6704 }
 0x69f   :  { %9317 = vst [vmem:[#allocation1 + $0x30] ss:$2 sm:$0xff] %v14508_v37  ;;  %10894 = vmatmul.msk.f32.vlgmr.msrb.gmra.mxu0 %vm926_vm0, %v14728_v5  ;;  %10896 = vmatmul.msk.f32.vlgmr.msrb.gmra.mxu1 %vm926_vm0, %v14728_v5 }
 0x6a0   :  { %v14936_v16 = vld.sshfl [vmem:[#allocation1 + $0x10] sm:$0xff pattern:$0x75316420]  ;;  %v14938_v22 = vld.sshfl [vmem:[#allocation1 + $0x18] sm:$0xff pattern:$0x75316420]  ;;  %10900 = vmatmul.msk.f32.vlgmr.msrb.gmra.mxu3 %vm926_vm0, %v14728_v5  ;;  %10913 = vmatpush.msk.msrb.mxu2 %vm5288_vm13, %v14548_v19 }
 0x6a1   :  { %8793 = vst [vmem:[#allocation1 + $0x10] ss:$2 sm:$0xff] %v14502_v13  ;;  %10915 = vmatpush.msk.msrb.mxu3 %vm5288_vm13, %v14550_v62  ;;  %v5743_v50 = vpop.permute.xlu1 %5742  ;;  %7772 = vrot.lane.b32.xlu2 %v14757_v2, %s11670_s24 }
 0x6a2   :  { %v5763_v6 = vsel %vm1041_vm3, %v14826_v4, %v5743_v50  ;;  %8286 = vrot.lane.b32.xlu1 %v14673_v21, %s11671_s1  ;;  %7246 = vrot.lane.b32.xlu0 %v14687_v63, %s11669_s23 }
 0x6a3   :  { %10901 = vmatpush.msk.msra.mxu0 %vm5288_vm13, %v5763_v6  ;;  %v16966_v6 = vld [vmem:[#allocation44_spill] sm:$0xff] }
 0x6a4   :  { %v14954_v9 = vld.sshfl [vmem:[#allocation1] sm:$0xff pattern:$0x75316420]  ;;  %v14956_v42 = vld.sshfl [vmem:[#allocation1 + $0x8] sm:$0xff pattern:$0x75316420]  ;;  %v5745_v19 = vpop.permute.xlu0 %5744  ;;  %10906 = vmatmul.msk.f32.vlgmr.msra.gmra.mxu2 %vm926_vm0, %v14995_v44 }
 0x6a5   :  { %8777 = vst [vmem:[#allocation1] ss:$2 sm:$0xff] %v14484_v59  ;;  %v5764_v62 = vsel %vm1041_vm3, %v5743_v50, %v5745_v19  ;;  %10909 = vmatpush.msk.msrb.mxu0 %vm5288_vm13, %v14557_v24  ;;  %10921 = vmatpush.msk.msra.mxu2 %vm5288_vm13, %v14599_v11 }
 0x6a6   :  { %v14971_v51 = vld.sshfl [vmem:[#allocation1 + $0x38] sm:$0xff pattern:$0x75316420]  ;;  %v14973_v20 = vld.sshfl [vmem:[#allocation1 + $0x30] sm:$0xff pattern:$0x75316420]  ;;  %10903 = vmatpush.msk.msra.mxu1 %vm5288_vm13, %v5764_v62  ;;  %v15001_v60 = vpop.permute.xlu2 %6676 }
 0x6a7   :  { %9329 = vst [vmem:[#allocation1 + $0x30] ss:$2 sm:$0xff] %v14536_v10  ;;  %10902 = vmatmul.msk.f32.vlgmr.msra.gmra.mxu0 %vm926_vm0, %v14728_v5  ;;  %10904 = vmatmul.msk.f32.vlgmr.msra.gmra.mxu1 %vm926_vm0, %v14728_v5 }
 0x6a8   :  { %v14984_v34 = vld.sshfl [vmem:[#allocation1 + $0x10] sm:$0xff pattern:$0x75316420]  ;;  %v14986_v58 = vld.sshfl [vmem:[#allocation1 + $0x18] sm:$0xff pattern:$0x75316420]  ;;  %10911 = vmatpush.msk.msrb.mxu1 %vm5288_vm13, %v14559_v28  ;;  %10908 = vmatmul.msk.f32.vlgmr.msra.gmra.mxu3 %vm926_vm0, %v14995_v44 }
 0x6a9   :  { %8805 = vst [vmem:[#allocation1 + $0x10] ss:$2 sm:$0xff] %v14530_v32  ;;  %10923 = vmatpush.msk.msra.mxu3 %vm5288_vm13, %v14601_v25  ;;  %10917 = vmatpush.msk.msra.mxu0 %vm5288_vm13, %v14569_v53  ;;  %v15032_v5 = vpop.permute.xlu1 %6684 }
 0x6aa   :  { %10919 = vmatpush.msk.msra.mxu1 %vm5288_vm13, %v14571_v1  ;;  %7230 = vrot.lane.b32.xlu2 %v14666_v48, %s11669_s23 }
 0x6ab   :  { %7244 = vrot.lane.b32.xlu1 %v14685_v43, %s11669_s23  ;;  %8300 = vrot.lane.b32.xlu0 %v14693_v7, %s11671_s1  ;;  %v16965_v7 = vld [vmem:[#allocation28_spill] sm:$0xff] }
 0x6ac   :  { %v15007_v2 = vld.sshfl [vmem:[#allocation1] sm:$0xff pattern:$0x75316420]  ;;  %v15009_v4 = vld.sshfl [vmem:[#allocation1 + $0x8] sm:$0xff pattern:$0x75316420]  ;;  %v15043_v25 = vpop.permute.xlu0 %6686  ;;  %10914 = vmatmul.msk.f32.vlgmr.msrb.gmra.mxu2 %vm926_vm0, %v14995_v44 }
 0x6ad   :  { %8792 = vst [vmem:[#allocation1] ss:$2 sm:$0xff] %v14511_v38  ;;  %10929 = vmatpush.msk.msrb.mxu2 %vm5288_vm13, %v14562_v49 }
 0x6ae   :  { %v15024_v24 = vld.sshfl [vmem:[#allocation1 + $0x38] sm:$0xff pattern:$0x75316420]  ;;  %v15026_v28 = vld.sshfl [vmem:[#allocation1 + $0x30] sm:$0xff pattern:$0x75316420]  ;;  %v6675_v1 = vpop.permute.xlu2 %6674 }
 0x6af   :  { %9851 = vst [vmem:[#allocation1 + $0x30] ss:$2 sm:$0xff] %v14508_v37  ;;  %10910 = vmatmul.msk.f32.vlgmr.msrb.gmra.mxu0 %vm926_vm0, %v14995_v44  ;;  %10912 = vmatmul.msk.f32.vlgmr.msrb.gmra.mxu1 %vm926_vm0, %v14995_v44 }
 0x6b0   :  { %v15037_v11 = vld.sshfl [vmem:[#allocation1 + $0x10] sm:$0xff pattern:$0x75316420]  ;;  %v15039_v53 = vld.sshfl [vmem:[#allocation1 + $0x18] sm:$0xff pattern:$0x75316420]  ;;  %10916 = vmatmul.msk.f32.vlgmr.msrb.gmra.mxu3 %vm926_vm0, %v14995_v44  ;;  %10925 = vmatpush.msk.msrb.mxu0 %vm5288_vm13, %v14576_v29 }
 0x6b1   :  { %9313 = vst [vmem:[#allocation1 + $0x10] ss:$2 sm:$0xff] %v14489_v26  ;;  %10927 = vmatpush.msk.msrb.mxu1 %vm5288_vm13, %v14578_v27  ;;  %10931 = vmatpush.msk.msrb.mxu3 %vm5288_vm13, %v14564_v0  ;;  %v15073_v30 = vpop.permute.xlu1 %6688 }
 0x6b2   :  { %8284 = vrot.lane.b32.xlu2 %v14671_v45, %s11671_s1 }
 0x6b3   :  { %7742 = vrot.lane.b32.xlu1 %v14759_v41, %s11670_s24  ;;  %8304 = vrot.lane.b32.xlu0 %v14852_v8, %s11671_s1 }
 0x6b4   :  { %v15048_v21 = vld.sshfl [vmem:[#allocation1] sm:$0xff pattern:$0x75316420]  ;;  %v15050_v37 = vld.sshfl [vmem:[#allocation1 + $0x8] sm:$0xff pattern:$0x75316420]  ;;  %v15084_v27 = vpop.permute.xlu0 %6698  ;;  %10922 = vmatmul.msk.f32.vlgmr.msra.gmra.mxu2 %vm926_vm0, %v14995_v44 }
 0x6b5   :  { %8804 = vst [vmem:[#allocation1] ss:$2 sm:$0xff] %v14539_v39  ;;  %10937 = vmatpush.msk.msra.mxu2 %vm5288_vm13, %v14612_v18 }
 0x6b6   :  { %v15065_v63 = vld.sshfl [vmem:[#allocation1 + $0x38] sm:$0xff pattern:$0x75316420]  ;;  %v15067_v48 = vld.sshfl [vmem:[#allocation1 + $0x30] sm:$0xff pattern:$0x75316420]  ;;  %v15087_v0 = vpop.permute.xlu2 %7216 }
 0x6b7   :  { %16963 = vst [vmem:[#allocation55_spill] sm:$0xff] %v15065_v63  ;;  %10918 = vmatmul.msk.f32.vlgmr.msra.gmra.mxu0 %vm926_vm0, %v14995_v44  ;;  %10920 = vmatmul.msk.f32.vlgmr.msra.gmra.mxu1 %vm926_vm0, %v14995_v44 }
 0x6b8   :  { %16964 = vst [vmem:[#allocation53_spill] sm:$0xff] %v15067_v48  ;;  %v15078_v29 = vld.sshfl [vmem:[#allocation1 + $0x10] sm:$0xff pattern:$0x75316420]  ;;  %10924 = vmatmul.msk.f32.vlgmr.msra.gmra.mxu3 %vm926_vm0, %v14995_v44  ;;  %10933 = vmatpush.msk.msra.mxu0 %vm5288_vm13, %v14588_v12 }
 0x6b9   :  { %9863 = vst [vmem:[#allocation1 + $0x30] ss:$2 sm:$0xff] %v14536_v10  ;;  %v15080_v49 = vld.sshfl [vmem:[#allocation1 + $0x18] sm:$0xff pattern:$0x75316420]  ;;  %10935 = vmatpush.msk.msra.mxu1 %vm5288_vm13, %v14592_v55  ;;  %10939 = vmatpush.msk.msra.mxu3 %vm5288_vm13, %v16965_v7  ;;  %v15112_v45 = vpop.permute.xlu1 %6702 }
 0x6ba   :  { %9327 = vst [vmem:[#allocation1 + $0x10] ss:$2 sm:$0xff] %v14502_v13  ;;  %8288 = vrot.lane.b32.xlu2 %v14815_v3, %s11671_s1  ;;  %v6714_v3 = vsel %vm1889_vm6, %v6675_v1, %v15001_v60 }
 0x6bb   :  { %8822 = vrot.lane.b32.xlu1 %v14889_v23, %s11672_s0  ;;  %8306 = vrot.lane.b32.xlu0 %v14854_v54, %s11671_s1 }
 0x6bc   :  { %v15091_v10 = vld.sshfl [vmem:[#allocation1] sm:$0xff pattern:$0x75316420]  ;;  %v15093_v43 = vld.sshfl [vmem:[#allocation1 + $0x8] sm:$0xff pattern:$0x75316420]  ;;  %v6681_v55 = vpop.permute.xlu0 %6680  ;;  %10930 = vmatmul.msk.f32.vlgmr.msrb.gmra.mxu2 %vm926_vm0, %v14995_v44 }
 0x6bd   :  { %9311 = vst [vmem:[#allocation1] ss:$2 sm:$0xff] %v14484_v59 }
 0x6be   :  { %v15123_v18 = vpop.permute.xlu2 %7218 }
 0x6bf   :  { %10926 = vmatmul.msk.f32.vlgmr.msrb.gmra.mxu0 %vm926_vm0, %v14995_v44  ;;  %v15134_v8 = vsel %vm2372_vm7, %v15087_v0, %v15123_v18  ;;  %10928 = vmatmul.msk.f32.vlgmr.msrb.gmra.mxu1 %vm926_vm0, %v14995_v44 }
 0x6c0   :  { %10932 = vmatmul.msk.f32.vlgmr.msrb.gmra.mxu3 %vm926_vm0, %v14995_v44  ;;  %10941 = vmatpush.msk.msrb.mxu0 %vm5288_vm13, %v16966_v6  ;;  %v6717_v6 = vsel %vm1889_vm6, %v6681_v55, %v14860_v61 }
 0x6c1   :  { %v15116_v52 = vld.sshfl [vmem:[#allocation1 + $0x10] sm:$0xff pattern:$0x75316420]  ;;  %v15118_v12 = vld.sshfl [vmem:[#allocation1 + $0x18] sm:$0xff pattern:$0x75316420]  ;;  %10944 = vmatpush.msk.msrb.mxu1 %vm5288_vm13, %v6714_v3  ;;  %v6679_v19 = vpop.permute.xlu1 %6678 }
 0x6c2   :  { %9339 = vst [vmem:[#allocation1 + $0x10] ss:$2 sm:$0xff] %v14530_v32  ;;  %v6716_v62 = vsel %vm1889_vm6, %v6679_v19, %v6681_v55  ;;  %8290 = vrot.lane.b32.xlu2 %v14811_v47, %s11671_s1  ;;  %v6719_v47 = vsel %vm1889_vm6, %v15032_v5, %v15043_v25  ;;  %v6720_v55 = vsel %vm1889_vm6, %v15043_v25, %v15073_v30  ;;  %v16967_v25 = vld [vmem:[#allocation60_spill] sm:$0xff] }
 0x6c3   :  { %10948 = vmatpush.msk.msrb.mxu3 %vm5288_vm13, %v6716_v62  ;;  %7760 = vrot.lane.b32.xlu1 %v14808_v36, %s11670_s24  ;;  %v15209_v62 = vld [vmem:[%s16745_s4 + $0x8] sm:$0xf] }
 0x6c4   :  { %v15127_v41 = vld.sshfl [vmem:[#allocation1] sm:$0xff pattern:$0x75316420]  ;;  %v15129_v50 = vld.sshfl [vmem:[#allocation1 + $0x8] sm:$0xff pattern:$0x75316420]  ;;  %v15161_v3 = vpop.permute.xlu0 %7222  ;;  %10938 = vmatmul.msk.f32.vlgmr.msra.gmra.mxu2 %vm926_vm0, %v14995_v44  ;;  %7744 = vrot.lane.b32.xlu0 %v14761_v57, %s11670_s24 }
 0x6c5   :  { %9326 = vst [vmem:[#allocation1] ss:$2 sm:$0xff] %v14511_v38  ;;  %v6715_v38 = vsel %vm1889_vm6, %v15001_v60, %v6679_v19 }
 0x6c6   :  { %10946 = vmatpush.msk.msrb.mxu2 %vm5288_vm13, %v6715_v38  ;;  %v6695_v54 = vpop.permute.xlu2 %6694 }
 0x6c7   :  { %10934 = vmatmul.msk.f32.vlgmr.msra.gmra.mxu0 %vm926_vm0, %v14995_v44  ;;  %10936 = vmatmul.msk.f32.vlgmr.msra.gmra.mxu1 %vm926_vm0, %v14995_v44 }
 0x6c8   :  { %10940 = vmatmul.msk.f32.vlgmr.msra.gmra.mxu3 %vm926_vm0, %v14995_v44  ;;  %10950 = vmatpush.msk.msra.mxu0 %vm5288_vm13, %v6717_v6 }
 0x6c9   :  { %v15155_v1 = vld.sshfl [vmem:[#allocation1 + $0x18] sm:$0xff pattern:$0x75316420]  ;;  %v15157_v7 = vld.sshfl [vmem:[#allocation1 + $0x10] sm:$0xff pattern:$0x75316420]  ;;  %10954 = vmatpush.msk.msra.mxu2 %vm5288_vm13, %v6719_v47  ;;  %10956 = vmatpush.msk.msra.mxu3 %vm5288_vm13, %v6720_v55 }
 0x6ca   :  { %9847 = vst [vmem:[#allocation1 + $0x10] ss:$2 sm:$0xff] %v14489_v26  ;;  %v6718_v26 = vsel %vm1889_vm6, %v14860_v61, %v15032_v5  ;;  %v15196_v61 = vpop.permute.xlu1 %7220  ;;  %7240 = vrot.lane.b32.xlu2 %v16967_v25, %s11669_s23  ;;  %v16969_v47 = vld [vmem:[#allocation47_spill] sm:$0xff] }
 0x6cb   :  { %10952 = vmatpush.msk.msra.mxu1 %vm5288_vm13, %v6718_v26 }
 0x6cc   :  { %v15168_v23 = vld.sshfl [vmem:[#allocation1] sm:$0xff pattern:$0x75316420]  ;;  %v15170_v60 = vld.sshfl [vmem:[#allocation1 + $0x8] sm:$0xff pattern:$0x75316420]  ;;  %v6693_v38 = vpop.permute.xlu0 %6692  ;;  %10947 = vmatmul.msk.f32.vlgmr.msrb.gmra.mxu2 %vm926_vm0, %v15209_v62  ;;  %7746 = vrot.lane.b32.xlu0 %v16969_v47, %s11670_s24 }
 0x6cd   :  { %9338 = vst [vmem:[#allocation1] ss:$2 sm:$0xff] %v14539_v39  ;;  %v6723_v36 = vsel %vm1889_vm6, %v6693_v38, %v6695_v54 }
 0x6ce   :  { %v15213_v6 = vpop.permute.xlu2 %7236  ;;  %10962 = vmatpush.msk.msrb.mxu2 %vm5288_vm13, %v6723_v36  ;;  %v16972_v36 = vld [vmem:[#allocation45_spill] sm:$0xff] }
 0x6cf   :  { %10942 = vmatmul.msk.f32.vlgmr.msrb.gmra.mxu0 %vm926_vm0, %v14995_v44  ;;  %10945 = vmatmul.msk.f32.vlgmr.msrb.gmra.mxu1 %vm926_vm0, %v15209_v62 }
 0x6d0   :  { %10949 = vmatmul.msk.f32.vlgmr.msrb.gmra.mxu3 %vm926_vm0, %v15209_v62 }
 0x6d1   :  { %v15200_v5 = vld.sshfl [vmem:[#allocation1 + $0x10] sm:$0xff pattern:$0x75316420]  ;;  %v15202_v19 = vld.sshfl [vmem:[#allocation1 + $0x18] sm:$0xff pattern:$0x75316420] }
 0x6d2   :  { %9861 = vst [vmem:[#allocation1 + $0x10] ss:$2 sm:$0xff] %v14502_v13  ;;  %v16968_v13 = vld [vmem:[#allocation59_spill] sm:$0xff]  ;;  %v6691_v44 = vpop.permute.xlu1 %6690  ;;  %7242 = vrot.lane.b32.xlu2 %v16972_v36, %s11669_s23 }
 0x6d3   :  { %7762 = vrot.lane.b32.xlu1 %v16968_v13, %s11670_s24  ;;  %v6721_v55 = vsel %vm1889_vm6, %v15073_v30, %v6691_v44  ;;  %v6722_v25 = vsel %vm1889_vm6, %v6691_v44, %v6693_v38  ;;  %v6726_v38 = vsel %vm1889_vm6, %v15084_v27, %v14906_v56  ;;  %v6727_v44 = vsel %vm1889_vm6, %v14906_v56, %v15112_v45  ;;  %v16974_v36 = vld [vmem:[#allocation23_spill] sm:$0xff] }
 0x6d4   :  { %v15217_v57 = vld.sshfl [vmem:[#allocation1 + $0x8] sm:$0xff pattern:$0x75316420]  ;;  %v15223_v26 = vld.sshfl [vmem:[#allocation1] sm:$0xff pattern:$0x75316420]  ;;  %10958 = vmatpush.msk.msrb.mxu0 %vm5288_vm13, %v6721_v55  ;;  %10960 = vmatpush.msk.msrb.mxu1 %vm5288_vm13, %v6722_v25  ;;  %v6728_v25 = vsel %vm1889_vm6, %v15112_v45, %v14949_v15 }
 0x6d5   :  { %9845 = vst [vmem:[#allocation1] ss:$2 sm:$0xff] %v14484_v59  ;;  %v6697_v59 = vpop.permute.xlu0 %6696  ;;  %10955 = vmatmul.msk.f32.vlgmr.msra.gmra.mxu2 %vm926_vm0, %v15209_v62  ;;  %v11638_v55 = vld [vmem:[#allocation3 + $0x20] sm:$0xff]  ;;  %8818 = vrot.lane.b32.xlu0 %v16974_v36, %s11672_s0 }
 0x6d6   :  { %v6724_v13 = vsel %vm1889_vm6, %v6695_v54, %v6697_v59  ;;  %v6725_v47 = vsel %vm1889_vm6, %v6697_v59, %v15084_v27  ;;  %v6707_v30 = vpop.permute.xlu2 %6706  ;;  %10970 = vmatpush.msk.msra.mxu2 %vm5288_vm13, %v6727_v44  ;;  %v16973_v27 = vld [vmem:[#allocation25_spill] sm:$0xff]  ;;  %v16975_v59 = vld [vmem:[#allocation43_spill] sm:$0xff] }
 0x6d7   :  { %10964 = vmatpush.msk.msrb.mxu3 %vm5288_vm13, %v6724_v13  ;;  %10951 = vmatmul.msk.f32.vlgmr.msra.gmra.mxu0 %vm926_vm0, %v15209_v62  ;;  %v6729_v45 = vsel %vm1889_vm6, %v14949_v15, %v6707_v30 }
 0x6d8   :  { %10953 = vmatmul.msk.f32.vlgmr.msra.gmra.mxu1 %vm926_vm0, %v15209_v62  ;;  %10957 = vmatmul.msk.f32.vlgmr.msra.gmra.mxu3 %vm926_vm0, %v15209_v62 }
 0x6d9   :  { %v15236_v48 = vld.sshfl [vmem:[#allocation1 + $0x18] sm:$0xff pattern:$0x75316420]  ;;  %v15238_v63 = vld.sshfl [vmem:[#allocation1 + $0x10] sm:$0xff pattern:$0x75316420]  ;;  %10966 = vmatpush.msk.msra.mxu0 %vm5288_vm13, %v6725_v47  ;;  %10968 = vmatpush.msk.msra.mxu1 %vm5288_vm13, %v6726_v38 }
 0x6da   :  { %16970 = vst [vmem:[#allocation65_spill] sm:$0xff] %v15236_v48  ;;  %10972 = vmatpush.msk.msra.mxu3 %vm5288_vm13, %v6728_v25  ;;  %v15276_v56 = vpop.permute.xlu1 %7238  ;;  %8302 = vrot.lane.b32.xlu2 %v16975_v59, %s11671_s1  ;;  %v16976_v25 = vld [vmem:[#allocation10_spill] sm:$0xff]  ;;  %v16979_v59 = vld [vmem:[#allocation24_spill] sm:$0xff] }
 0x6db   :  { %16971 = vst [vmem:[#allocation64_spill] sm:$0xff] %v15238_v63  ;;  %8834 = vrot.lane.b32.xlu1 %v16973_v27, %s11672_s0 }
 0x6dc   :  { %9873 = vst [vmem:[#allocation1 + $0x10] ss:$2 sm:$0xff] %v14530_v32  ;;  %v15255_v32 = vld.sshfl [vmem:[#allocation1 + $0x8] sm:$0xff pattern:$0x75316420] }
 0x6dd   :  { %v15257_v54 = vld.sshfl [vmem:[#allocation1] sm:$0xff pattern:$0x75316420]  ;;  %v15282_v13 = vpop.permute.xlu0 %7232  ;;  %10963 = vmatmul.msk.f32.vlgmr.msrb.gmra.mxu2 %vm926_vm0, %v15209_v62  ;;  %7758 = vrot.lane.b32.xlu0 %v14806_v40, %s11670_s24  ;;  %v16977_v40 = vld [vmem:[#allocation36_spill] sm:$0xff] }
 0x6de   :  { %9860 = vst [vmem:[#allocation1] ss:$2 sm:$0xff] %v11638_v55  ;;  %v15286_v47 = vpop.permute.xlu2 %7752 }
 0x6df   :  { %10959 = vmatmul.msk.f32.vlgmr.msrb.gmra.mxu0 %vm926_vm0, %v15209_v62 }
 0x6e0   :  { %10974 = vmatpush.msk.msrb.mxu0 %vm5288_vm13, %v6729_v45  ;;  %10965 = vmatmul.msk.f32.vlgmr.msrb.gmra.mxu3 %vm926_vm0, %v15209_v62 }
 0x6e1   :  { %10961 = vmatmul.msk.f32.vlgmr.msrb.gmra.mxu1 %vm926_vm0, %v15209_v62 }
 0x6e2   :  { %v6709_v15 = vpop.permute.xlu1 %6708  ;;  %7748 = vrot.lane.b32.xlu2 %v16976_v25, %s11670_s24 }
 0x6e3   :  { %7774 = vrot.lane.b32.xlu1 %v14845_v33, %s11670_s24  ;;  %v6730_v55 = vsel %vm1889_vm6, %v6707_v30, %v6709_v15  ;;  %v16978_v33 = vld [vmem:[#allocation61_spill] sm:$0xff] }
 0x6e4   :  { %10976 = vmatpush.msk.msrb.mxu1 %vm5288_vm13, %v6730_v55 }
 0x6e5   :  { %v15293_v38 = vld.sshfl [vmem:[#allocation1] sm:$0xff pattern:$0x75316420]  ;;  %v15295_v44 = vld.sshfl [vmem:[#allocation1 + $0x8] sm:$0xff pattern:$0x75316420]  ;;  %v15309_v27 = vpop.permute.xlu0 %7234  ;;  %10971 = vmatmul.msk.f32.vlgmr.msra.gmra.mxu2 %vm926_vm0, %v15209_v62  ;;  %7764 = vrot.lane.b32.xlu0 %v16978_v33, %s11670_s24 }
 0x6e6   :  { %9872 = vst [vmem:[#allocation1] ss:$2 sm:$0xff] %v14539_v39  ;;  %v15312_v36 = vpop.permute.xlu2 %7754  ;;  %v16981_v33 = vld [vmem:[#allocation30_spill] sm:$0xff] }
 0x6e7   :  { %10967 = vmatmul.msk.f32.vlgmr.msra.gmra.mxu0 %vm926_vm0, %v15209_v62  ;;  %v15319_v39 = vsel %vm2855_vm8, %v15286_v47, %v15312_v36 }
 0x6e8   :  { %10973 = vmatmul.msk.f32.vlgmr.msra.gmra.mxu3 %vm926_vm0, %v15209_v62 }
 0x6e9   :  { %10969 = vmatmul.msk.f32.vlgmr.msra.gmra.mxu1 %vm926_vm0, %v15209_v62 }
 0x6ea   :  { %v6713_v30 = vpop.permute.xlu1 %6712  ;;  %8820 = vrot.lane.b32.xlu2 %v16979_v59, %s11672_s0 }
 0x6eb   :  { %8276 = vrot.lane.b32.xlu1 %v16977_v40, %s11671_s1 }
 0x6ed   :  { %v6711_v45 = vpop.permute.xlu0 %6710  ;;  %8836 = vrot.lane.b32.xlu0 %v16981_v33, %s11672_s0 }
 0x6ee   :  { %v6731_v55 = vsel %vm1889_vm6, %v6709_v15, %v6711_v45  ;;  %v6732_v25 = vsel %vm1889_vm6, %v6711_v45, %v6713_v30  ;;  %v7215_v63 = vpop.permute.xlu2 %7214  ;;  %v16980_v15 = vld [vmem:[#allocation34_spill] sm:$0xff]  ;;  %v15359_v45 = vld [vmem:[%s16745_s4 + $0xc] sm:$0xf] }
 0x6ef   :  { %10978 = vmatpush.msk.msrb.mxu2 %vm5288_vm13, %v6731_v55  ;;  %10980 = vmatpush.msk.msrb.mxu3 %vm5288_vm13, %v6732_v25  ;;  %v7251_v40 = vsel %vm2372_vm7, %v7215_v63, %v15087_v0  ;;  %v16982_v30 = vld [vmem:[#allocation38_spill] sm:$0xff] }
 0x6f0   :  { %10979 = vmatmul.msk.f32.vlgmr.msrb.gmra.mxu2 %vm926_vm0, %v15209_v62  ;;  %10975 = vmatmul.msk.f32.vlgmr.msrb.gmra.mxu0 %vm926_vm0, %v15209_v62 }
 0x6f1   :  { %10981 = vmatmul.msk.f32.vlgmr.msrb.gmra.mxu3 %vm926_vm0, %v15209_v62  ;;  %10977 = vmatmul.msk.f32.vlgmr.msrb.gmra.mxu1 %vm926_vm0, %v15209_v62 }
 0x6f2   :  { %10989 = vmatpush.msk.msra.mxu3 %vm5288_vm13, %v7251_v40  ;;  %v15352_v0 = vpop.permute.xlu1 %7750  ;;  %8824 = vrot.lane.b32.xlu2 %v16982_v30, %s11672_s0 }
 0x6f3   :  { %8280 = vrot.lane.b32.xlu1 %v16980_v15, %s11671_s1 }
 0x6f5   :  { %v7211_v59 = vpop.permute.xlu0 %7210  ;;  %8840 = vrot.lane.b32.xlu0 %v14925_v31, %s11672_s0  ;;  %v7254_v31 = vsel %vm2372_vm7, %v15196_v61, %v15161_v3 }
 0x6f6   :  { %v15361_v62 = vpop.permute.xlu2 %7766 }
 0x6f9   :  { %10990 = vmatmul.msk.f32.vlgmr.msra.gmra.mxu3 %vm926_vm0, %v15359_v45 }
 0x6fa   :  { %v15369_v55 = vpop.permute.xlu1 %7756  ;;  %8838 = vrot.lane.b32.xlu2 %v14927_v17, %s11672_s0  ;;  %v16983_v17 = vld [vmem:[#allocation31_spill] sm:$0xff] }
 0x6fb   :  { %8292 = vrot.lane.b32.xlu1 %v14916_v35, %s11671_s1  ;;  %v7253_v35 = vsel %vm2372_vm7, %v15123_v18, %v15196_v61  ;;  %v16984_v18 = vld [vmem:[#allocation63_spill] sm:$0xff] }
 0x6fd   :  { %v7213_v25 = vpop.permute.xlu0 %7212  ;;  %7780 = vrot.lane.b32.xlu0 %v16983_v17, %s11670_s24 }
 0x6fe   :  { %v7249_v40 = vsel %vm2372_vm7, %v7211_v59, %v7213_v25  ;;  %v7250_v15 = vsel %vm2372_vm7, %v7213_v25, %v7215_v63  ;;  %v15375_v33 = vpop.permute.xlu2 %7772 }
 0x6ff   :  { %10985 = vmatpush.msk.msra.mxu1 %vm5288_vm13, %v7249_v40  ;;  %10987 = vmatpush.msk.msra.mxu2 %vm5288_vm13, %v7250_v15  ;;  %v16987_v15 = vld [vmem:[#allocation33_spill] sm:$0xff] }
 0x700   :  { %10986 = vmatmul.msk.f32.vlgmr.msra.gmra.mxu1 %vm926_vm0, %v15359_v45  ;;  %10988 = vmatmul.msk.f32.vlgmr.msra.gmra.mxu2 %vm926_vm0, %v15359_v45 }
 0x701   :  { %10993 = vmatpush.msk.msrb.mxu1 %vm5288_vm13, %v7253_v35  ;;  %10995 = vmatpush.msk.msrb.mxu2 %vm5288_vm13, %v7254_v31 }
 0x702   :  { %v7209_v63 = vpop.permute.xlu1 %7208  ;;  %7776 = vrot.lane.b32.xlu2 %v16984_v18, %s11670_s24  ;;  %v16989_v18 = vld [vmem:[#allocation46_spill] sm:$0xff] }
 0x703   :  { %9358 = vrot.lane.b32.xlu1 %v14971_v51, %s11673_s25  ;;  %v7248_v30 = vsel %vm2372_vm7, %v7209_v63, %v7211_v59  ;;  %v16985_v51 = vld [vmem:[#allocation62_spill] sm:$0xff]  ;;  %v16986_v59 = vld [vmem:[#allocation52_spill] sm:$0xff] }
 0x704   :  { %10983 = vmatpush.msk.msra.mxu0 %vm5288_vm13, %v7248_v30 }
 0x705   :  { %v15397_v61 = vpop.permute.xlu0 %7768  ;;  %10984 = vmatmul.msk.f32.vlgmr.msra.gmra.mxu0 %vm926_vm0, %v15359_v45  ;;  %8278 = vrot.lane.b32.xlu0 %v16986_v59, %s11671_s1 }
 0x706   :  { %v7231_v25 = vpop.permute.xlu2 %7230  ;;  %10991 = vmatpush.msk.msrb.mxu0 %vm5288_vm13, %v15134_v8 }
 0x707   :  { %v7259_v17 = vsel %vm2372_vm7, %v7231_v25, %v15282_v13 }
 0x708   :  { %10994 = vmatmul.msk.f32.vlgmr.msrb.gmra.mxu1 %vm926_vm0, %v15359_v45  ;;  %10996 = vmatmul.msk.f32.vlgmr.msrb.gmra.mxu2 %vm926_vm0, %v15359_v45 }
 0x70a   :  { %v7225_v40 = vpop.permute.xlu1 %7224  ;;  %7778 = vrot.lane.b32.xlu2 %v16987_v15, %s11670_s24 }
 0x70b   :  { %8296 = vrot.lane.b32.xlu1 %v16985_v51, %s11671_s1  ;;  %v7255_v35 = vsel %vm2372_vm7, %v15161_v3, %v7225_v40  ;;  %v16988_v3 = vld [vmem:[#allocation35_spill] sm:$0xff] }
 0x70c   :  { %10997 = vmatpush.msk.msrb.mxu3 %vm5288_vm13, %v7255_v35 }
 0x70d   :  { %v15417_v8 = vpop.permute.xlu0 %7770  ;;  %10992 = vmatmul.msk.f32.vlgmr.msrb.gmra.mxu0 %vm926_vm0, %v15359_v45  ;;  %10998 = vmatmul.msk.f32.vlgmr.msrb.gmra.mxu3 %vm926_vm0, %v15359_v45 }
 0x70e   :  { %v15422_v31 = vsel %vm2855_vm8, %v15397_v61, %v15417_v8  ;;  %v15427_v63 = vpop.permute.xlu2 %8284  ;;  %11005 = vmatpush.msk.msra.mxu3 %vm5288_vm13, %v7259_v17  ;;  %8282 = vrot.lane.b32.xlu0 %v16989_v18, %s11671_s1  ;;  %v15463_v17 = vpop.f32.mrf.mxu3 }
 0x712   :  { %9356 = vrot.lane.b32.xlu2 %v14973_v20, %s11673_s25  ;;  %v7227_v30 = vpop.permute.xlu1 %7226  ;;  %v7260_v20 = vsel %vm2372_vm7, %v15282_v13, %v15309_v27  ;;  %v15468_v13 = vpop.f32.mrf.mxu1 }
 0x713   :  { %8298 = vrot.lane.b32.xlu1 %v16988_v3, %s11671_s1  ;;  %v7256_v51 = vsel %vm2372_vm7, %v7225_v40, %v7227_v30  ;;  %v7261_v40 = vsel %vm2372_vm7, %v15309_v27, %v15213_v6 }
 0x714   :  { %10999 = vmatpush.msk.msra.mxu0 %vm5288_vm13, %v7256_v51 }
 0x715   :  { %v7229_v59 = vpop.permute.xlu0 %7228  ;;  %11006 = vmatmul.msk.f32.vlgmr.msra.gmra.mxu3 %vm926_vm0, %v15359_v45  ;;  %11000 = vmatmul.msk.f32.vlgmr.msra.gmra.mxu0 %vm926_vm0, %v15359_v45 }
 0x716   :  { %v7257_v15 = vsel %vm2372_vm7, %v7227_v30, %v7229_v59  ;;  %v7258_v35 = vsel %vm2372_vm7, %v7229_v59, %v7231_v25  ;;  %v15443_v48 = vpop.permute.xlu2 %8288  ;;  %v7262_v25 = vsel %vm2372_vm7, %v15213_v6, %v15276_v56  ;;  %11007 = vmatpush.msk.msrb.mxu0 %vm5288_vm13, %v7260_v20  ;;  %8294 = vrot.lane.b32.xlu0 %v14918_v46, %s11671_s1  ;;  %v15476_v6 = vpop.f32.mrf.mxu0 }
 0x717   :  { %11001 = vmatpush.msk.msra.mxu1 %vm5288_vm13, %v7257_v15  ;;  %11003 = vmatpush.msk.msra.mxu2 %vm5288_vm13, %v7258_v35  ;;  %v15495_v46 = vpop.f32.mrf.mxu2 }
 0x718   :  { %11002 = vmatmul.msk.f32.vlgmr.msra.gmra.mxu1 %vm926_vm0, %v15359_v45  ;;  %11004 = vmatmul.msk.f32.vlgmr.msra.gmra.mxu2 %vm926_vm0, %v15359_v45 }
 0x719   :  { %11009 = vmatpush.msk.msrb.mxu1 %vm5288_vm13, %v7261_v40  ;;  %11011 = vmatpush.msk.msrb.mxu2 %vm5288_vm13, %v7262_v25 }
 0x71a   :  { %8308 = vrot.lane.b32.xlu2 %v14954_v9, %s11671_s1  ;;  %v15480_v27 = vpop.permute.xlu1 %8286  ;;  %v15497_v9 = vpop.f32.mrf.mxu3 }
 0x71b   :  { %8310 = vrot.lane.b32.xlu1 %v14956_v42, %s11671_s1  ;;  %v15485_v3 = vsel %vm3338_vm9, %v15480_v27, %v15443_v48  ;;  %16990 = vst [vmem:[#allocation67_spill] sm:$0xff] %v15497_v9  ;;  %v16991_v42 = vld [vmem:[#allocation32_spill] sm:$0xff]  ;;  %v15503_v51 = vpop.f32.mrf.mxu1 }
 0x71c   :  { %16992 = vst [vmem:[#allocation39_spill] sm:$0xff] %v15503_v51 }
 0x71d   :  { %v7247_v18 = vpop.permute.xlu0 %7246  ;;  %11008 = vmatmul.msk.f32.vlgmr.msrb.gmra.mxu0 %vm926_vm0, %v15359_v45 }
 0x71e   :  { %v15487_v30 = vpop.permute.xlu2 %8290  ;;  %9352 = vrot.lane.b32.xlu0 %v16991_v42, %s11673_s25  ;;  %v15510_v20 = vpop.f32.mrf.mxu0 }
 0x71f   :  { %16993 = vst [vmem:[#allocation41_spill] sm:$0xff] %v15510_v20 }
 0x720   :  { %11010 = vmatmul.msk.f32.vlgmr.msrb.gmra.mxu1 %vm926_vm0, %v15359_v45  ;;  %11012 = vmatmul.msk.f32.vlgmr.msrb.gmra.mxu2 %vm926_vm0, %v15359_v45 }
 0x722   :  { %8312 = vrot.lane.b32.xlu2 %v14898_v14, %s11671_s1  ;;  %v7245_v59 = vpop.permute.xlu1 %7244  ;;  %v16994_v14 = vld [vmem:[#allocation49_spill] sm:$0xff]  ;;  %v15528_v42 = vpop.f32.mrf.mxu3 }
 0x723   :  { %8812 = vrot.lane.b32.xlu1 %v15009_v4, %s11672_s0  ;;  %v7266_v15 = vsel %vm2372_vm7, %v7245_v59, %v7247_v18  ;;  %v15524_v4 = vpop.f32.mrf.mxu2  ;;  %v16995_v18 = vld [vmem:[#allocation50_spill] sm:$0xff] }
 0x724   :  { %11019 = vmatpush.msk.msra.mxu2 %vm5288_vm13, %v7266_v15 }
 0x725   :  { %v15508_v35 = vpop.permute.xlu0 %8300 }
 0x726   :  { %v7241_v25 = vpop.permute.xlu2 %7240  ;;  %8810 = vrot.lane.b32.xlu0 %v15007_v2, %s11672_s0  ;;  %v15536_v9 = vpop.f32.mrf.mxu0 }
 0x727   :  { %v7263_v40 = vsel %vm2372_vm7, %v15276_v56, %v7241_v25 }
 0x728   :  { %11013 = vmatpush.msk.msrb.mxu3 %vm5288_vm13, %v7263_v40  ;;  %11020 = vmatmul.msk.f32.vlgmr.msra.gmra.mxu2 %vm926_vm0, %v15359_v45  ;;  %v15532_v40 = vpop.f32.mrf.mxu1 }
 0x729   :  { %11014 = vmatmul.msk.f32.vlgmr.msrb.gmra.mxu3 %vm926_vm0, %v15359_v45 }
 0x72a   :  { %8314 = vrot.lane.b32.xlu2 %v16995_v18, %s11671_s1  ;;  %v7743_v56 = vpop.permute.xlu1 %7742 }
 0x72b   :  { %9368 = vrot.lane.b32.xlu1 %v16994_v14, %s11673_s25  ;;  %v15556_v14 = vpop.f32.mrf.mxu3 }
 0x72c   :  { %16997 = vst [vmem:[#allocation56_spill] sm:$0xff] %v15556_v14  ;;  %v15576_v14 = vld [vmem:[%s16745_s4 + $0x10] sm:$0xf] }
 0x72d   :  { %v15530_v15 = vpop.permute.xlu0 %8304 }
 0x72e   :  { %v7243_v51 = vpop.permute.xlu2 %7242  ;;  %8814 = vrot.lane.b32.xlu0 %v14936_v16, %s11672_s0 }
 0x72f   :  { %v7264_v20 = vsel %vm2372_vm7, %v7241_v25, %v7243_v51  ;;  %v7265_v2 = vsel %vm2372_vm7, %v7243_v51, %v7245_v59 }
 0x730   :  { %11015 = vmatpush.msk.msra.mxu0 %vm5288_vm13, %v7264_v20  ;;  %11017 = vmatpush.msk.msra.mxu1 %vm5288_vm13, %v7265_v2  ;;  %v15552_v20 = vpop.f32.mrf.mxu2  ;;  %v15563_v16 = vpop.f32.mrf.mxu1 }
 0x731   :  { %11016 = vmatmul.msk.f32.vlgmr.msra.gmra.mxu0 %vm926_vm0, %v15359_v45  ;;  %11018 = vmatmul.msk.f32.vlgmr.msra.gmra.mxu1 %vm926_vm0, %v15359_v45  ;;  %16996 = vst [vmem:[#allocation40_spill] sm:$0xff] %v15552_v20 }
 0x732   :  { %8826 = vrot.lane.b32.xlu2 %v15048_v21, %s11672_s0  ;;  %v8823_v51 = vpop.permute.xlu1 %8822  ;;  %16998 = vst [vmem:[#allocation54_spill] sm:$0xff] %v15563_v16  ;;  %v17000_v21 = vld [vmem:[#allocation48_spill] sm:$0xff] }
 0x733   :  { %8816 = vrot.lane.b32.xlu1 %v14938_v22, %s11672_s0  ;;  %v15565_v22 = vpop.f32.mrf.mxu0 }
 0x734   :  { %16999 = vst [vmem:[#allocation58_spill] sm:$0xff] %v15565_v22 }
 0x735   :  { %v15550_v59 = vpop.permute.xlu0 %8306 }
 0x736   :  { %v15554_v25 = vpop.permute.xlu2 %8302  ;;  %9354 = vrot.lane.b32.xlu0 %v17000_v21, %s11673_s25  ;;  %v15590_v21 = vpop.f32.mrf.mxu3 }
 0x737   :  { %v15561_v45 = vsel %vm3338_vm9, %v15554_v25, %v15530_v15  ;;  %17002 = vst [vmem:[#allocation68_spill] sm:$0xff] %v15590_v21 }
 0x73a   :  { %9374 = vrot.lane.b32.xlu2 %v15024_v24, %s11673_s25  ;;  %v7761_v18 = vpop.permute.xlu1 %7760  ;;  %v15585_v24 = vpop.f32.mrf.mxu2 }
 0x73b   :  { %8828 = vrot.lane.b32.xlu1 %v15050_v37, %s11672_s0  ;;  %v7786_v37 = vsel %vm2855_vm8, %v15352_v0, %v15286_v47  ;;  %17001 = vst [vmem:[#allocation57_spill] sm:$0xff] %v15585_v24  ;;  %v15601_v47 = vpop.f32.mrf.mxu0 }
 0x73c   :  { %17003 = vst [vmem:[#allocation28_spill] sm:$0xff] %v15601_v47 }
 0x73d   :  { %v7745_v2 = vpop.permute.xlu0 %7744 }
 0x73e   :  { %v7782_v16 = vsel %vm2855_vm8, %v7743_v56, %v7745_v2  ;;  %v7749_v20 = vpop.permute.xlu2 %7748  ;;  %v15595_v56 = vpop.f32.mrf.mxu1  ;;  %8830 = vrot.lane.b32.xlu0 %v14984_v34, %s11672_s0  ;;  %v7788_v34 = vsel %vm2855_vm8, %v15312_v36, %v15369_v55 }
 0x73f   :  { %v7785_v22 = vsel %vm2855_vm8, %v7749_v20, %v15352_v0  ;;  %11022 = vmatpush.msk.msra.mxu3 %vm5288_vm13, %v7782_v16 }
 0x740   :  { %11028 = vmatpush.msk.msrb.mxu2 %vm5288_vm13, %v7785_v22  ;;  %11023 = vmatmul.msk.f32.vlgmr.msra.gmra.mxu3 %vm926_vm0, %v15576_v14 }
 0x741   :  { %11029 = vmatmul.msk.f32.vlgmr.msrb.gmra.mxu2 %vm926_vm0, %v15576_v14  ;;  %11030 = vmatpush.msk.msrb.mxu3 %vm5288_vm13, %v7786_v37 }
 0x742   :  { %8844 = vrot.lane.b32.xlu2 %v15093_v43, %s11672_s0  ;;  %v15627_v43 = vpop.f32.mrf.mxu2 }
 0x743   :  { %8832 = vrot.lane.b32.xlu1 %v14986_v58, %s11672_s0 }
 0x745   :  { %v7763_v0 = vpop.permute.xlu1 %7762  ;;  %v7747_v16 = vpop.permute.xlu0 %7746 }
 0x746   :  { %v7783_v22 = vsel %vm2855_vm8, %v7745_v2, %v7747_v16  ;;  %v7784_v21 = vsel %vm2855_vm8, %v7747_v16, %v7749_v20  ;;  %v15607_v37 = vpop.permute.xlu2 %8820  ;;  %v7791_v58 = vsel %vm2855_vm8, %v7761_v18, %v7763_v0  ;;  %v15631_v20 = vpop.f32.mrf.mxu3  ;;  %9372 = vrot.lane.b32.xlu0 %v15026_v28, %s11673_s25 }
 0x747   :  { %v15611_v24 = vsel %vm3821_vm10, %v15607_v37, %v8823_v51  ;;  %11024 = vmatpush.msk.msrb.mxu0 %vm5288_vm13, %v7783_v22  ;;  %11026 = vmatpush.msk.msrb.mxu1 %vm5288_vm13, %v7784_v21  ;;  %v15637_v36 = vpop.f32.mrf.mxu1  ;;  %v15645_v21 = vpop.f32.mrf.mxu0 }
 0x748   :  { %11025 = vmatmul.msk.f32.vlgmr.msrb.gmra.mxu0 %vm926_vm0, %v15576_v14  ;;  %11027 = vmatmul.msk.f32.vlgmr.msrb.gmra.mxu1 %vm926_vm0, %v15576_v14 }
 0x749   :  { %11031 = vmatmul.msk.f32.vlgmr.msrb.gmra.mxu3 %vm926_vm0, %v15576_v14  ;;  %11032 = vmatpush.msk.msra.mxu0 %vm5288_vm13, %v15319_v39 }
 0x74a   :  { %11034 = vmatpush.msk.msra.mxu1 %vm5288_vm13, %v7788_v34  ;;  %8848 = vrot.lane.b32.xlu2 %v15039_v53, %s11672_s0  ;;  %v15663_v28 = vpop.f32.mrf.mxu2 }
 0x74b   :  { %11040 = vmatpush.msk.msrb.mxu0 %vm5288_vm13, %v7791_v58  ;;  %8846 = vrot.lane.b32.xlu1 %v15037_v11, %s11672_s0 }
 0x74d   :  { %v15641_v39 = vpop.permute.xlu1 %8834  ;;  %v15643_v2 = vpop.permute.xlu0 %8818 }
 0x74e   :  { %v15647_v16 = vpop.permute.xlu2 %8824  ;;  %8842 = vrot.lane.b32.xlu0 %v15091_v10, %s11672_s0  ;;  %v15667_v53 = vpop.f32.mrf.mxu3  ;;  %v7794_v10 = vsel %vm2855_vm8, %v15361_v62, %v15397_v61 }
 0x74f   :  { %v15651_v22 = vsel %vm3821_vm10, %v8823_v51, %v15647_v16  ;;  %v15669_v34 = vpop.f32.mrf.mxu1 }
 0x750   :  { %11033 = vmatmul.msk.f32.vlgmr.msra.gmra.mxu0 %vm926_vm0, %v15576_v14  ;;  %11035 = vmatmul.msk.f32.vlgmr.msra.gmra.mxu1 %vm926_vm0, %v15576_v14 }
 0x751   :  { %11048 = vmatpush.msk.msra.mxu0 %vm5288_vm13, %v15422_v31 }
 0x752   :  { %9344 = vrot.lane.b32.xlu2 %v15127_v41, %s11673_s25  ;;  %v15681_v41 = vpop.f32.mrf.mxu0 }
 0x753   :  { %9346 = vrot.lane.b32.xlu1 %v15129_v50, %s11673_s25 }
 0x755   :  { %v7775_v11 = vpop.permute.xlu1 %7774  ;;  %v7759_v51 = vpop.permute.xlu0 %7758 }
 0x756   :  { %v7789_v31 = vsel %vm2855_vm8, %v15369_v55, %v7759_v51  ;;  %v7790_v58 = vsel %vm2855_vm8, %v7759_v51, %v7761_v18  ;;  %v15674_v50 = vpop.permute.xlu2 %8838  ;;  %9350 = vrot.lane.b32.xlu0 %v15080_v49, %s11673_s25  ;;  %v17004_v55 = vld [vmem:[#allocation37_spill] sm:$0xff]  ;;  %v15698_v51 = vpop.f32.mrf.mxu2 }
 0x757   :  { %11036 = vmatpush.msk.msra.mxu2 %vm5288_vm13, %v7789_v31  ;;  %11038 = vmatpush.msk.msra.mxu3 %vm5288_vm13, %v7790_v58  ;;  %v15703_v47 = vpop.f32.mrf.mxu3  ;;  %v15708_v49 = vpop.f32.mrf.mxu1 }
 0x758   :  { %11037 = vmatmul.msk.f32.vlgmr.msra.gmra.mxu2 %vm926_vm0, %v15576_v14  ;;  %11039 = vmatmul.msk.f32.vlgmr.msra.gmra.mxu3 %vm926_vm0, %v15576_v14  ;;  %17005 = vst [vmem:[#allocation44_spill] sm:$0xff] %v15708_v49 }
 0x759   :  { %11041 = vmatmul.msk.f32.vlgmr.msrb.gmra.mxu0 %vm926_vm0, %v15576_v14  ;;  %11046 = vmatpush.msk.msrb.mxu3 %vm5288_vm13, %v7794_v10 }
 0x75a   :  { %9886 = vrot.lane.b32.xlu2 %v17004_v55, %s11674_s28  ;;  %v7797_v55 = vsel %vm2855_vm8, %v15375_v33, %v7775_v11 }
 0x75b   :  { %9348 = vrot.lane.b32.xlu1 %v15078_v29, %s11673_s25 }
 0x75d   :  { %v15696_v61 = vpop.permute.xlu1 %8276  ;;  %v7765_v18 = vpop.permute.xlu0 %7764 }
 0x75e   :  { %v7792_v31 = vsel %vm2855_vm8, %v7763_v0, %v7765_v18  ;;  %v7793_v58 = vsel %vm2855_vm8, %v7765_v18, %v15361_v62  ;;  %v7777_v10 = vpop.permute.xlu2 %7776  ;;  %v7796_v62 = vsel %vm2855_vm8, %v15417_v8, %v15375_v33  ;;  %v15720_v0 = vpop.f32.mrf.mxu0  ;;  %v17006_v8 = vld [vmem:[#allocation51_spill] sm:$0xff]  ;;  %v17007_v18 = vld [vmem:[#allocation66_spill] sm:$0xff] }
 0x75f   :  { %v7798_v29 = vsel %vm2855_vm8, %v7775_v11, %v7777_v10  ;;  %11042 = vmatpush.msk.msrb.mxu1 %vm5288_vm13, %v7792_v31  ;;  %11044 = vmatpush.msk.msrb.mxu2 %vm5288_vm13, %v7793_v58 }
 0x760   :  { %11054 = vmatpush.msk.msra.mxu3 %vm5288_vm13, %v7798_v29  ;;  %11043 = vmatmul.msk.f32.vlgmr.msrb.gmra.mxu1 %vm926_vm0, %v15576_v14 }
 0x761   :  { %11045 = vmatmul.msk.f32.vlgmr.msrb.gmra.mxu2 %vm926_vm0, %v15576_v14  ;;  %11047 = vmatmul.msk.f32.vlgmr.msrb.gmra.mxu3 %vm926_vm0, %v15576_v14 }
 0x762   :  { %11049 = vmatmul.msk.f32.vlgmr.msra.gmra.mxu0 %vm926_vm0, %v15576_v14  ;;  %11050 = vmatpush.msk.msra.mxu1 %vm5288_vm13, %v7796_v62  ;;  %v15742_v62 = vpop.f32.mrf.mxu2 }
 0x763   :  { %11052 = vmatpush.msk.msra.mxu2 %vm5288_vm13, %v7797_v55  ;;  %9370 = vrot.lane.b32.xlu1 %v17006_v8, %s11673_s25  ;;  %17008 = vst [vmem:[#allocation60_spill] sm:$0xff] %v15742_v62  ;;  %v15753_v55 = vpop.f32.mrf.mxu1 }
 0x764   :  { %9360 = vrot.lane.b32.xlu2 %v15168_v23, %s11673_s25  ;;  %9888 = vrot.lane.b32.xlu0 %v17007_v18, %s11674_s28  ;;  %v15747_v23 = vpop.f32.mrf.mxu3  ;;  %17010 = vst [vmem:[#allocation47_spill] sm:$0xff] %v15753_v55 }
 0x765   :  { %v8281_v31 = vpop.permute.xlu1 %8280  ;;  %v15734_v58 = vpop.permute.xlu0 %8836  ;;  %17009 = vst [vmem:[#allocation59_spill] sm:$0xff] %v15747_v23 }
 0x766   :  { %v15739_v33 = vsel %vm3821_vm10, %v15734_v58, %v15674_v50  ;;  %v7779_v11 = vpop.permute.xlu2 %7778 }
 0x767   :  { %v7799_v29 = vsel %vm2855_vm8, %v7777_v10, %v7779_v11  ;;  %v15759_v10 = vpop.f32.mrf.mxu0 }
 0x768   :  { %11056 = vmatpush.msk.msrb.mxu0 %vm5288_vm13, %v7799_v29  ;;  %11051 = vmatmul.msk.f32.vlgmr.msra.gmra.mxu1 %vm926_vm0, %v15576_v14  ;;  %17011 = vst [vmem:[#allocation45_spill] sm:$0xff] %v15759_v10 }
 0x769   :  { %11053 = vmatmul.msk.f32.vlgmr.msra.gmra.mxu2 %vm926_vm0, %v15576_v14  ;;  %11055 = vmatmul.msk.f32.vlgmr.msra.gmra.mxu3 %vm926_vm0, %v15576_v14 }
 0x76a   :  { %11057 = vmatmul.msk.f32.vlgmr.msrb.gmra.mxu0 %vm926_vm0, %v15576_v14  ;;  %v15771_v55 = vpop.f32.mrf.mxu2 }
 0x76b   :  { %9364 = vrot.lane.b32.xlu1 %v15116_v52, %s11673_s25  ;;  %17012 = vst [vmem:[#allocation25_spill] sm:$0xff] %v15771_v55  ;;  %v15777_v52 = vpop.f32.mrf.mxu1 }
 0x76c   :  { %9362 = vrot.lane.b32.xlu2 %v15170_v60, %s11673_s25  ;;  %9366 = vrot.lane.b32.xlu0 %v15118_v12, %s11673_s25  ;;  %v15773_v23 = vpop.f32.mrf.mxu3 }
 0x76d   :  { %v15765_v8 = vpop.permute.xlu1 %8292  ;;  %v15767_v18 = vpop.permute.xlu0 %8840  ;;  %17013 = vst [vmem:[#allocation23_spill] sm:$0xff] %v15773_v23 }
 0x76e   :  { %v15769_v29 = vpop.permute.xlu2 %9356 }
 0x76f   :  { %v15785_v10 = vpop.f32.mrf.mxu0 }
 0x773   :  { %9382 = vrot.lane.b32.xlu1 %v15155_v1, %s11673_s25  ;;  %v15795_v1 = vpop.f32.mrf.mxu2 }
 0x774   :  { %9380 = vrot.lane.b32.xlu2 %v15157_v7, %s11673_s25  ;;  %9376 = vrot.lane.b32.xlu0 %v15223_v26, %s11673_s25  ;;  %v15801_v26 = vpop.f32.mrf.mxu3 }
 0x775   :  { %v15783_v12 = vpop.permute.xlu1 %9358  ;;  %v7781_v60 = vpop.permute.xlu0 %7780 }
 0x776   :  { %v7800_v55 = vsel %vm2855_vm8, %v7779_v11, %v7781_v60  ;;  %v15788_v62 = vpop.permute.xlu2 %8308 }
 0x777   :  { %11058 = vmatpush.msk.msrb.mxu1 %vm5288_vm13, %v7800_v55  ;;  %v15806_v55 = vld [vmem:[%s16745_s4 + $0x14] sm:$0xf]  ;;  %v15820_v23 = vpop.f32.mrf.mxu0 }
 0x778   :  { %11059 = vmatmul.msk.f32.vlgmr.msrb.gmra.mxu1 %vm926_vm0, %v15576_v14  ;;  %v15808_v14 = vpop.f32.mrf.mxu1 }
 0x77b   :  { %9880 = vrot.lane.b32.xlu1 %v15255_v32, %s11674_s28  ;;  %v15838_v49 = vpop.f32.mrf.mxu2 }
 0x77c   :  { %9878 = vrot.lane.b32.xlu2 %v15257_v54, %s11674_s28  ;;  %9378 = vrot.lane.b32.xlu0 %v15217_v57, %s11673_s25  ;;  %v8320_v57 = vsel %vm3338_vm9, %v15427_v63, %v15480_v27  ;;  %v17014_v27 = vld [vmem:[#allocation55_spill] sm:$0xff] }
 0x77d   :  { %v8297_v7 = vpop.permute.xlu1 %8296  ;;  %v8279_v11 = vpop.permute.xlu0 %8278 }
 0x77e   :  { %v8316_v32 = vsel %vm3338_vm9, %v15696_v61, %v8279_v11  ;;  %v8317_v60 = vsel %vm3338_vm9, %v8279_v11, %v8281_v31  ;;  %v15813_v54 = vpop.permute.xlu2 %8312 }
 0x77f   :  { %11061 = vmatpush.msk.msrb.mxu2 %vm5288_vm13, %v8316_v32  ;;  %11063 = vmatpush.msk.msrb.mxu3 %vm5288_vm13, %v8317_v60 }
 0x780   :  { %11062 = vmatmul.msk.f32.vlgmr.msrb.gmra.mxu2 %vm926_vm0, %v15806_v55  ;;  %11064 = vmatmul.msk.f32.vlgmr.msrb.gmra.mxu3 %vm926_vm0, %v15806_v55 }
 0x781   :  { %11069 = vmatpush.msk.msra.mxu2 %vm5288_vm13, %v8320_v57  ;;  %11071 = vmatpush.msk.msra.mxu3 %vm5288_vm13, %v15485_v3  ;;  %v8323_v3 = vsel %vm3338_vm9, %v15487_v30, %v15765_v8 }
 0x783   :  { %9882 = vrot.lane.b32.xlu1 %v15200_v5, %s11674_s28  ;;  %v15842_v5 = vpop.f32.mrf.mxu3 }
 0x784   :  { %9884 = vrot.lane.b32.xlu0 %v15202_v19, %s11674_s28  ;;  %9892 = vrot.lane.b32.xlu2 %v17014_v27, %s11674_s28  ;;  %v15844_v19 = vpop.f32.mrf.mxu1 }
 0x785   :  { %v8299_v61 = vpop.permute.xlu1 %8298  ;;  %v8283_v11 = vpop.permute.xlu0 %8282 }
 0x786   :  { %v8318_v32 = vsel %vm3338_vm9, %v8281_v31, %v8283_v11  ;;  %v8319_v60 = vsel %vm3338_vm9, %v8283_v11, %v15427_v63  ;;  %v8315_v57 = vpop.permute.xlu2 %8314  ;;  %v8322_v63 = vsel %vm3338_vm9, %v15443_v48, %v15487_v30  ;;  %v15860_v31 = vpop.f32.mrf.mxu0  ;;  %v8326_v27 = vsel %vm3338_vm9, %v8297_v7, %v8299_v61  ;;  %v17015_v48 = vld [vmem:[#allocation53_spill] sm:$0xff] }
 0x787   :  { %11065 = vmatpush.msk.msra.mxu0 %vm5288_vm13, %v8318_v32  ;;  %11067 = vmatpush.msk.msra.mxu1 %vm5288_vm13, %v8319_v60  ;;  %v8327_v11 = vsel %vm3338_vm9, %v8299_v61, %v15508_v35 }
 0x788   :  { %11066 = vmatmul.msk.f32.vlgmr.msra.gmra.mxu0 %vm926_vm0, %v15806_v55  ;;  %11068 = vmatmul.msk.f32.vlgmr.msra.gmra.mxu1 %vm926_vm0, %v15806_v55 }
 0x789   :  { %11070 = vmatmul.msk.f32.vlgmr.msra.gmra.mxu2 %vm926_vm0, %v15806_v55  ;;  %11072 = vmatmul.msk.f32.vlgmr.msra.gmra.mxu3 %vm926_vm0, %v15806_v55 }
 0x78a   :  { %11073 = vmatpush.msk.msrb.mxu0 %vm5288_vm13, %v8322_v63  ;;  %11075 = vmatpush.msk.msrb.mxu1 %vm5288_vm13, %v8323_v3 }
 0x78b   :  { %9894 = vrot.lane.b32.xlu1 %v15293_v38, %s11674_s28  ;;  %v8328_v38 = vsel %vm3338_vm9, %v15508_v35, %v15554_v25  ;;  %v8331_v35 = vsel %vm3338_vm9, %v15550_v59, %v15788_v62 }
 0x78c   :  { %11081 = vmatpush.msk.msra.mxu0 %vm5288_vm13, %v8326_v27  ;;  %11083 = vmatpush.msk.msra.mxu1 %vm5288_vm13, %v8327_v11  ;;  %v15900_v3 = vpop.f32.mrf.mxu1  ;;  %v17019_v11 = vld [vmem:[#allocation65_spill] sm:$0xff] }
 0x78d   :  { %9890 = vrot.lane.b32.xlu0 %v17015_v48, %s11674_s28  ;;  %9896 = vrot.lane.b32.xlu2 %v15295_v44, %s11674_s28  ;;  %v8295_v30 = vpop.permute.xlu0 %8294  ;;  %v8311_v32 = vpop.permute.xlu1 %8310  ;;  %17017 = vst [vmem:[#allocation10_spill] sm:$0xff] %v15900_v3  ;;  %v17020_v48 = vld [vmem:[#allocation64_spill] sm:$0xff] }
 0x78e   :  { %v8324_v61 = vsel %vm3338_vm9, %v15765_v8, %v8295_v30  ;;  %v8325_v60 = vsel %vm3338_vm9, %v8295_v30, %v8297_v7  ;;  %v15878_v63 = vpop.permute.xlu2 %8826  ;;  %v15889_v44 = vpop.f32.mrf.mxu2  ;;  %v8330_v8 = vsel %vm3338_vm9, %v15530_v15, %v15550_v59  ;;  %v8332_v25 = vsel %vm3338_vm9, %v15788_v62, %v8311_v32  ;;  %v9868_v59 = vld.sshfl [vmem:[#allocation1 + $0x20] sm:$0xff pattern:$0x75316420] }
 0x78f   :  { %11077 = vmatpush.msk.msrb.mxu2 %vm5288_vm13, %v8324_v61  ;;  %11079 = vmatpush.msk.msrb.mxu3 %vm5288_vm13, %v8325_v60  ;;  %v15898_v7 = vpop.f32.mrf.mxu3  ;;  %v8333_v27 = vsel %vm3338_vm9, %v8311_v32, %v15813_v54  ;;  %v15914_v15 = vpop.f32.mrf.mxu0  ;;  %v8334_v32 = vsel %vm3338_vm9, %v15813_v54, %v8315_v57  ;;  %v9874_v54 = vld.sshfl [vmem:[#allocation1] sm:$0xff pattern:$0x75316420] }
 0x790   :  { %11074 = vmatmul.msk.f32.vlgmr.msrb.gmra.mxu0 %vm926_vm0, %v15806_v55  ;;  %11076 = vmatmul.msk.f32.vlgmr.msrb.gmra.mxu1 %vm926_vm0, %v15806_v55  ;;  %17016 = vst [vmem:[#allocation43_spill] sm:$0xff] %v15898_v7  ;;  %v6637_v7 = vadd.f32 %v15785_v10, %v15595_v56 }
 0x791   :  { %11078 = vmatmul.msk.f32.vlgmr.msrb.gmra.mxu2 %vm926_vm0, %v15806_v55  ;;  %11080 = vmatmul.msk.f32.vlgmr.msrb.gmra.mxu3 %vm926_vm0, %v15806_v55  ;;  %17018 = vst [vmem:[#allocation36_spill] sm:$0xff] %v15914_v15 }
 0x792   :  { %11085 = vmatpush.msk.msra.mxu2 %vm5288_vm13, %v8328_v38  ;;  %11087 = vmatpush.msk.msra.mxu3 %vm5288_vm13, %v15561_v45 }
 0x793   :  { %11089 = vmatpush.msk.msrb.mxu0 %vm5288_vm13, %v8330_v8  ;;  %11091 = vmatpush.msk.msrb.mxu1 %vm5288_vm13, %v8331_v35  ;;  %v9869_v8 = vld.sshfl [vmem:[#allocation1 + $0x28] sm:$0xff pattern:$0x75316420]  ;;  %v9871_v35 = vld.sshfl [vmem:[#allocation1 + $0x38] sm:$0xff pattern:$0x75316420] }
 0x794   :  { %11093 = vmatpush.msk.msrb.mxu2 %vm5288_vm13, %v8332_v25  ;;  %11095 = vmatpush.msk.msrb.mxu3 %vm5288_vm13, %v8333_v27  ;;  %v15942_v38 = vpop.f32.mrf.mxu1 }
 0x795   :  { %9900 = vrot.lane.b32.xlu1 %v17019_v11, %s11674_s28  ;;  %9902 = vrot.lane.b32.xlu0 %v9868_v59, %s11674_s28  ;;  %v15921_v45 = vpop.permute.xlu0 %9352  ;;  %v8813_v62 = vpop.permute.xlu1 %8812  ;;  %17023 = vst [vmem:[#allocation34_spill] sm:$0xff] %v15942_v38 }
 0x796   :  { %9898 = vrot.lane.b32.xlu2 %v17020_v48, %s11674_s28  ;;  %v15925_v30 = vpop.permute.xlu2 %9374  ;;  %v15938_v61 = vpop.f32.mrf.mxu2  ;;  %v8854_v48 = vsel %vm3821_vm10, %v15643_v2, %v15607_v37  ;;  %v15974_v37 = vld [vmem:[%s16745_s4 + $0x18] sm:$0xf] }
 0x797   :  { %17021 = vst [vmem:[#allocation61_spill] sm:$0xff] %v15938_v61  ;;  %v15940_v60 = vpop.f32.mrf.mxu3  ;;  %v15948_v27 = vpop.f32.mrf.mxu0 }
 0x798   :  { %11082 = vmatmul.msk.f32.vlgmr.msra.gmra.mxu0 %vm926_vm0, %v15806_v55  ;;  %11084 = vmatmul.msk.f32.vlgmr.msra.gmra.mxu1 %vm926_vm0, %v15806_v55  ;;  %17022 = vst [vmem:[#allocation24_spill] sm:$0xff] %v15940_v60 }
 0x799   :  { %11086 = vmatmul.msk.f32.vlgmr.msra.gmra.mxu2 %vm926_vm0, %v15806_v55  ;;  %11088 = vmatmul.msk.f32.vlgmr.msra.gmra.mxu3 %vm926_vm0, %v15806_v55  ;;  %17024 = vst [vmem:[#allocation30_spill] sm:$0xff] %v15948_v27 }
 0x79a   :  { %11097 = vmatpush.msk.msra.mxu0 %vm5288_vm13, %v8334_v32 }
 0x79c   :  { %v15967_v32 = vpop.f32.mrf.mxu1 }
 0x79d   :  { %9904 = vrot.lane.b32.xlu1 %v9869_v8, %s11674_s28  ;;  %9908 = vrot.lane.b32.xlu0 %v9871_v35, %s11674_s28  ;;  %v8811_v57 = vpop.permute.xlu0 %8810  ;;  %v15946_v25 = vpop.permute.xlu1 %9368  ;;  %v9875_v8 = vld.sshfl [vmem:[#allocation1 + $0x8] sm:$0xff pattern:$0x75316420]  ;;  %v9870_v35 = vld.sshfl [vmem:[#allocation1 + $0x30] sm:$0xff pattern:$0x75316420] }
 0x79e   :  { %9910 = vrot.lane.b32.xlu2 %v9874_v54, %s11674_s28  ;;  %v8850_v59 = vsel %vm3821_vm10, %v8811_v57, %v8813_v62  ;;  %v15952_v11 = vpop.permute.xlu2 %8844  ;;  %v9876_v54 = vld.sshfl [vmem:[#allocation1 + $0x10] sm:$0xff pattern:$0x75316420]  ;;  %v15976_v38 = vpop.f32.mrf.mxu2 }
 0x79f   :  { %11100 = vmatpush.msk.msra.mxu1 %vm5288_vm13, %v8850_v59  ;;  %17025 = vst [vmem:[#allocation38_spill] sm:$0xff] %v15976_v38  ;;  %v15978_v27 = vpop.f32.mrf.mxu0  ;;  %v15985_v61 = vpop.f32.mrf.mxu3 }
 0x7a0   :  { %11090 = vmatmul.msk.f32.vlgmr.msrb.gmra.mxu0 %vm926_vm0, %v15806_v55  ;;  %11092 = vmatmul.msk.f32.vlgmr.msrb.gmra.mxu1 %vm926_vm0, %v15806_v55 }
 0x7a1   :  { %11094 = vmatmul.msk.f32.vlgmr.msrb.gmra.mxu2 %vm926_vm0, %v15806_v55  ;;  %11096 = vmatmul.msk.f32.vlgmr.msrb.gmra.mxu3 %vm926_vm0, %v15806_v55 }
 0x7a2   :  { %11108 = vmatpush.msk.msrb.mxu1 %vm5288_vm13, %v8854_v48 }
 0x7a5   :  { %9912 = vrot.lane.b32.xlu0 %v9875_v8, %s11674_s28  ;;  %9906 = vrot.lane.b32.xlu1 %v9870_v35, %s11674_s28  ;;  %v8815_v57 = vpop.permute.xlu0 %8814  ;;  %v8817_v59 = vpop.permute.xlu1 %8816 }
 0x7a6   :  { %9914 = vrot.lane.b32.xlu2 %v9876_v54, %s11674_s28  ;;  %v8851_v48 = vsel %vm3821_vm10, %v8813_v62, %v8815_v57  ;;  %v8852_v8 = vsel %vm3821_vm10, %v8815_v57, %v8817_v59  ;;  %v8853_v35 = vsel %vm3821_vm10, %v8817_v59, %v15643_v2  ;;  %v8849_v3 = vpop.permute.xlu2 %8848  ;;  %v8857_v2 = vsel %vm3821_vm10, %v15647_v16, %v15878_v63  ;;  %v9877_v62 = vld.sshfl [vmem:[#allocation1 + $0x18] sm:$0xff pattern:$0x75316420]  ;;  %v16011_v57 = vpop.f32.mrf.mxu2 }
 0x7a7   :  { %11102 = vmatpush.msk.msra.mxu2 %vm5288_vm13, %v8851_v48  ;;  %11104 = vmatpush.msk.msra.mxu3 %vm5288_vm13, %v8852_v8  ;;  %v16013_v59 = vpop.f32.mrf.mxu1  ;;  %v8862_v48 = vsel %vm3821_vm10, %v15641_v39, %v15734_v58  ;;  %v16023_v8 = vpop.f32.mrf.mxu3 }
 0x7a8   :  { %11106 = vmatpush.msk.msrb.mxu0 %vm5288_vm13, %v8853_v35  ;;  %11101 = vmatmul.msk.f32.vlgmr.msra.gmra.mxu1 %vm926_vm0, %v15974_v37 }
 0x7a9   :  { %11098 = vmatmul.msk.f32.vlgmr.msra.gmra.mxu0 %vm926_vm0, %v15806_v55  ;;  %11103 = vmatmul.msk.f32.vlgmr.msra.gmra.mxu2 %vm926_vm0, %v15974_v37 }
 0x7aa   :  { %11105 = vmatmul.msk.f32.vlgmr.msra.gmra.mxu3 %vm926_vm0, %v15974_v37  ;;  %11110 = vmatpush.msk.msrb.mxu2 %vm5288_vm13, %v15611_v24  ;;  %v16016_v24 = vpop.f32.mrf.mxu0 }
 0x7ab   :  { %11112 = vmatpush.msk.msrb.mxu3 %vm5288_vm13, %v15651_v22  ;;  %11114 = vmatpush.msk.msra.mxu0 %vm5288_vm13, %v8857_v2 }
 0x7ad   :  { %9916 = vrot.lane.b32.xlu1 %v9877_v62, %s11674_s28  ;;  %v16007_v55 = vpop.permute.xlu0 %9354  ;;  %v8829_v54 = vpop.permute.xlu1 %8828 }
 0x7ae   :  { %v8858_v16 = vsel %vm3821_vm10, %v15878_v63, %v8829_v54  ;;  %v9345_v22 = vpop.permute.xlu2 %9344 }
 0x7af   :  { %11116 = vmatpush.msk.msra.mxu1 %vm5288_vm13, %v8858_v16  ;;  %v16036_v16 = vpop.f32.mrf.mxu1  ;;  %v16045_v38 = vpop.f32.mrf.mxu3 }
 0x7b0   :  { %11109 = vmatmul.msk.f32.vlgmr.msrb.gmra.mxu1 %vm926_vm0, %v15974_v37  ;;  %17026 = vst [vmem:[#allocation31_spill] sm:$0xff] %v16036_v16 }
 0x7b1   :  { %11107 = vmatmul.msk.f32.vlgmr.msrb.gmra.mxu0 %vm926_vm0, %v15974_v37  ;;  %11111 = vmatmul.msk.f32.vlgmr.msrb.gmra.mxu2 %vm926_vm0, %v15974_v37 }
 0x7b2   :  { %11113 = vmatmul.msk.f32.vlgmr.msrb.gmra.mxu3 %vm926_vm0, %v15974_v37  ;;  %11124 = vmatpush.msk.msrb.mxu1 %vm5288_vm13, %v8862_v48  ;;  %v16043_v48 = vpop.f32.mrf.mxu2 }
 0x7b5   :  { %v8831_v63 = vpop.permute.xlu0 %8830  ;;  %v8833_v35 = vpop.permute.xlu1 %8832 }
 0x7b6   :  { %v8859_v2 = vsel %vm3821_vm10, %v8829_v54, %v8831_v63  ;;  %v8860_v62 = vsel %vm3821_vm10, %v8831_v63, %v8833_v35  ;;  %v8861_v58 = vsel %vm3821_vm10, %v8833_v35, %v15641_v39  ;;  %v8864_v39 = vsel %vm3821_vm10, %v15674_v50, %v15767_v18  ;;  %v16054_v54 = vpop.f32.mrf.mxu0  ;;  %v16056_v63 = vpop.permute.xlu2 %9886 }
 0x7b7   :  { %11118 = vmatpush.msk.msra.mxu2 %vm5288_vm13, %v8859_v2  ;;  %11120 = vmatpush.msk.msra.mxu3 %vm5288_vm13, %v8860_v62  ;;  %17027 = vst [vmem:[#allocation63_spill] sm:$0xff] %v16054_v54 }
 0x7b8   :  { %11122 = vmatpush.msk.msrb.mxu0 %vm5288_vm13, %v8861_v58  ;;  %11117 = vmatmul.msk.f32.vlgmr.msra.gmra.mxu1 %vm926_vm0, %v15974_v37 }
 0x7b9   :  { %11115 = vmatmul.msk.f32.vlgmr.msra.gmra.mxu0 %vm926_vm0, %v15974_v37  ;;  %11119 = vmatmul.msk.f32.vlgmr.msra.gmra.mxu2 %vm926_vm0, %v15974_v37 }
 0x7ba   :  { %11121 = vmatmul.msk.f32.vlgmr.msra.gmra.mxu3 %vm926_vm0, %v15974_v37  ;;  %11126 = vmatpush.msk.msrb.mxu2 %vm5288_vm13, %v15739_v33  ;;  %v16072_v58 = vpop.f32.mrf.mxu2  ;;  %v16074_v33 = vpop.f32.mrf.mxu1 }
 0x7bb   :  { %11128 = vmatpush.msk.msrb.mxu3 %vm5288_vm13, %v8864_v39  ;;  %17028 = vst [vmem:[#allocation62_spill] sm:$0xff] %v16072_v58 }
 0x7bc   :  { %17029 = vst [vmem:[#allocation52_spill] sm:$0xff] %v16074_v33 }
 0x7bd   :  { %v8847_v35 = vpop.permute.xlu1 %8846  ;;  %v16063_v2 = vpop.permute.xlu0 %9372 }
 0x7be   :  { %v8867_v62 = vsel %vm3821_vm10, %v15952_v11, %v8847_v35  ;;  %v8868_v50 = vsel %vm3821_vm10, %v8847_v35, %v8849_v3  ;;  %v16082_v3 = vpop.f32.mrf.mxu3  ;;  %v16084_v39 = vpop.f32.mrf.mxu0 }
 0x7bf   :  { %11134 = vmatpush.msk.msra.mxu2 %vm5288_vm13, %v8867_v62  ;;  %11136 = vmatpush.msk.msra.mxu3 %vm5288_vm13, %v8868_v50  ;;  %17030 = vst [vmem:[#allocation33_spill] sm:$0xff] %v16082_v3  ;;  %v9361_v35 = vpop.permute.xlu2 %9360 }
 0x7c0   :  { %11125 = vmatmul.msk.f32.vlgmr.msrb.gmra.mxu1 %vm926_vm0, %v15974_v37  ;;  %17031 = vst [vmem:[#allocation35_spill] sm:$0xff] %v16084_v39  ;;  %v9388_v39 = vsel %vm4304_vm11, %v15921_v45, %v16007_v55 }
 0x7c1   :  { %11123 = vmatmul.msk.f32.vlgmr.msrb.gmra.mxu0 %vm926_vm0, %v15974_v37  ;;  %11127 = vmatmul.msk.f32.vlgmr.msrb.gmra.mxu2 %vm926_vm0, %v15974_v37 }
 0x7c2   :  { %11129 = vmatmul.msk.f32.vlgmr.msrb.gmra.mxu3 %vm926_vm0, %v15974_v37 }
 0x7c5   :  { %v9347_v62 = vpop.permute.xlu1 %9346  ;;  %v8843_v50 = vpop.permute.xlu0 %8842 }
 0x7c6   :  { %v9384_v60 = vsel %vm4304_vm11, %v9345_v22, %v9347_v62  ;;  %v8865_v33 = vsel %vm3821_vm10, %v15767_v18, %v8843_v50  ;;  %v8866_v58 = vsel %vm3821_vm10, %v8843_v50, %v15952_v11  ;;  %v16099_v22 = vpop.f32.mrf.mxu1  ;;  %v16108_v18 = vpop.f32.mrf.mxu2  ;;  %v16117_v50 = vld [vmem:[%s16745_s4 + $0x1c] sm:$0xf] }
 0x7c7   :  { %11130 = vmatpush.msk.msra.mxu0 %vm5288_vm13, %v8865_v33  ;;  %11132 = vmatpush.msk.msra.mxu1 %vm5288_vm13, %v8866_v58  ;;  %17032 = vst [vmem:[#allocation46_spill] sm:$0xff] %v16099_v22  ;;  %v16112_v11 = vpop.f32.mrf.mxu0  ;;  %v9363_v22 = vpop.permute.xlu2 %9362 }
 0x7c8   :  { %11133 = vmatmul.msk.f32.vlgmr.msra.gmra.mxu1 %vm926_vm0, %v15974_v37  ;;  %17033 = vst [vmem:[#allocation32_spill] sm:$0xff] %v16108_v18 }
 0x7c9   :  { %11139 = vmatpush.msk.msrb.mxu0 %vm5288_vm13, %v9384_v60  ;;  %11135 = vmatmul.msk.f32.vlgmr.msra.gmra.mxu2 %vm926_vm0, %v15974_v37  ;;  %v16110_v60 = vpop.f32.mrf.mxu3  ;;  %17035 = vst [vmem:[#allocation50_spill] sm:$0xff] %v16112_v11  ;;  %v9389_v11 = vsel %vm4304_vm11, %v16007_v55, %v15769_v29  ;;  %v9392_v55 = vsel %vm4304_vm11, %v9361_v35, %v9363_v22 }
 0x7ca   :  { %11131 = vmatmul.msk.f32.vlgmr.msra.gmra.mxu0 %vm926_vm0, %v15974_v37  ;;  %11137 = vmatmul.msk.f32.vlgmr.msra.gmra.mxu3 %vm926_vm0, %v15974_v37  ;;  %17034 = vst [vmem:[#allocation49_spill] sm:$0xff] %v16110_v60 }
 0x7cb   :  { %11147 = vmatpush.msk.msra.mxu0 %vm5288_vm13, %v9388_v39 }
 0x7cd   :  { %v9349_v58 = vpop.permute.xlu1 %9348  ;;  %v9351_v33 = vpop.permute.xlu0 %9350 }
 0x7ce   :  { %v9385_v3 = vsel %vm4304_vm11, %v9347_v62, %v9349_v58  ;;  %v9386_v37 = vsel %vm4304_vm11, %v9349_v58, %v9351_v33  ;;  %v9387_v39 = vsel %vm4304_vm11, %v9351_v33, %v15921_v45  ;;  %v16131_v60 = vpop.f32.mrf.mxu1  ;;  %v9390_v45 = vsel %vm4304_vm11, %v15769_v29, %v15783_v12  ;;  %v16153_v33 = vpop.f32.mrf.mxu2 }
 0x7cf   :  { %11141 = vmatpush.msk.msrb.mxu1 %vm5288_vm13, %v9385_v3  ;;  %11143 = vmatpush.msk.msrb.mxu2 %vm5288_vm13, %v9386_v37  ;;  %v9391_v3 = vsel %vm4304_vm11, %v15783_v12, %v9361_v35  ;;  %v16151_v58 = vpop.f32.mrf.mxu0  ;;  %v9381_v37 = vpop.permute.xlu2 %9380 }
 0x7d0   :  { %11145 = vmatpush.msk.msrb.mxu3 %vm5288_vm13, %v9387_v39  ;;  %11142 = vmatmul.msk.f32.vlgmr.msrb.gmra.mxu1 %vm926_vm0, %v16117_v50 }
 0x7d1   :  { %11144 = vmatmul.msk.f32.vlgmr.msrb.gmra.mxu2 %vm926_vm0, %v16117_v50  ;;  %11149 = vmatpush.msk.msra.mxu1 %vm5288_vm13, %v9389_v11  ;;  %v16148_v62 = vpop.f32.mrf.mxu3 }
 0x7d2   :  { %11140 = vmatmul.msk.f32.vlgmr.msrb.gmra.mxu0 %vm926_vm0, %v16117_v50  ;;  %11146 = vmatmul.msk.f32.vlgmr.msrb.gmra.mxu3 %vm926_vm0, %v16117_v50 }
 0x7d3   :  { %11151 = vmatpush.msk.msra.mxu2 %vm5288_vm13, %v9390_v45  ;;  %11153 = vmatpush.msk.msra.mxu3 %vm5288_vm13, %v9391_v3 }
 0x7d4   :  { %11155 = vmatpush.msk.msrb.mxu0 %vm5288_vm13, %v9392_v55 }
 0x7d5   :  { %v9371_v29 = vpop.permute.xlu1 %9370 }
 0x7d6   :  { %v16155_v12 = vpop.permute.xlu0 %9888  ;;  %v9396_v11 = vsel %vm4304_vm11, %v15946_v25, %v9371_v29  ;;  %v16168_v35 = vpop.f32.mrf.mxu1 }
 0x7d7   :  { %v16170_v45 = vpop.f32.mrf.mxu2  ;;  %v16175_v16 = vpop.f32.mrf.mxu0  ;;  %v9922_v56 = vsel %vm4787_vm12, %v16056_v63, %v16155_v12 }
 0x7d8   :  { %11150 = vmatmul.msk.f32.vlgmr.msra.gmra.mxu1 %vm926_vm0, %v16117_v50 }
 0x7d9   :  { %11152 = vmatmul.msk.f32.vlgmr.msra.gmra.mxu2 %vm926_vm0, %v16117_v50  ;;  %v16173_v18 = vpop.f32.mrf.mxu3 }
 0x7da   :  { %11148 = vmatmul.msk.f32.vlgmr.msra.gmra.mxu0 %vm926_vm0, %v16117_v50  ;;  %11154 = vmatmul.msk.f32.vlgmr.msra.gmra.mxu3 %vm926_vm0, %v16117_v50 }
 0x7db   :  { %11163 = vmatpush.msk.msra.mxu0 %vm5288_vm13, %v9396_v11  ;;  %v9397_v11 = vsel %vm4304_vm11, %v9371_v29, %v16063_v2 }
 0x7dd   :  { %v9365_v39 = vpop.permute.xlu1 %9364 }
 0x7de   :  { %v9393_v3 = vsel %vm4304_vm11, %v9363_v22, %v9365_v39  ;;  %v9367_v55 = vpop.permute.xlu0 %9366  ;;  %v9398_v22 = vsel %vm4304_vm11, %v16063_v2, %v15925_v30 }
 0x7df   :  { %v9394_v54 = vsel %vm4304_vm11, %v9365_v39, %v9367_v55  ;;  %v9395_v15 = vsel %vm4304_vm11, %v9367_v55, %v15946_v25  ;;  %11157 = vmatpush.msk.msrb.mxu1 %vm5288_vm13, %v9393_v3  ;;  %v9879_v25 = vpop.permute.xlu2 %9878  ;;  %v16201_v55 = vpop.f32.mrf.mxu2 }
 0x7e0   :  { %11159 = vmatpush.msk.msrb.mxu2 %vm5288_vm13, %v9394_v54  ;;  %11161 = vmatpush.msk.msrb.mxu3 %vm5288_vm13, %v9395_v15  ;;  %v16196_v15 = vpop.f32.mrf.mxu1 }
 0x7e1   :  { %11158 = vmatmul.msk.f32.vlgmr.msrb.gmra.mxu1 %vm926_vm0, %v16117_v50  ;;  %11160 = vmatmul.msk.f32.vlgmr.msrb.gmra.mxu2 %vm926_vm0, %v16117_v50  ;;  %17036 = vst [vmem:[#allocation48_spill] sm:$0xff] %v16196_v15  ;;  %v16203_v2 = vpop.f32.mrf.mxu3  ;;  %v16209_v15 = vpop.f32.mrf.mxu0 }
 0x7e2   :  { %11156 = vmatmul.msk.f32.vlgmr.msrb.gmra.mxu0 %vm926_vm0, %v16117_v50  ;;  %11162 = vmatmul.msk.f32.vlgmr.msrb.gmra.mxu3 %vm926_vm0, %v16117_v50  ;;  %17037 = vst [vmem:[#allocation37_spill] sm:$0xff] %v16203_v2 }
 0x7e3   :  { %11165 = vmatpush.msk.msra.mxu1 %vm5288_vm13, %v9397_v11  ;;  %11167 = vmatpush.msk.msra.mxu2 %vm5288_vm13, %v9398_v22  ;;  %17038 = vst [vmem:[#allocation51_spill] sm:$0xff] %v16209_v15  ;;  %v16228_v15 = vld [vmem:[%s16745_s4 + $0x20] sm:$0xf] }
 0x7e5   :  { %v9383_v54 = vpop.permute.xlu1 %9382 }
 0x7e6   :  { %v9402_v39 = vsel %vm4304_vm11, %v9381_v37, %v9383_v54  ;;  %v9377_v3 = vpop.permute.xlu0 %9376 }
 0x7e7   :  { %v9399_v29 = vsel %vm4304_vm11, %v15925_v30, %v9377_v3  ;;  %11175 = vmatpush.msk.msrb.mxu2 %vm5288_vm13, %v9402_v39  ;;  %v9893_v22 = vpop.permute.xlu2 %9892 }
 0x7e8   :  { %11169 = vmatpush.msk.msra.mxu3 %vm5288_vm13, %v9399_v29  ;;  %v16219_v30 = vpop.f32.mrf.mxu1 }
 0x7e9   :  { %11166 = vmatmul.msk.f32.vlgmr.msra.gmra.mxu1 %vm926_vm0, %v16117_v50  ;;  %11168 = vmatmul.msk.f32.vlgmr.msra.gmra.mxu2 %vm926_vm0, %v16117_v50  ;;  %17039 = vst [vmem:[#allocation66_spill] sm:$0xff] %v16219_v30  ;;  %v16236_v30 = vpop.f32.mrf.mxu3  ;;  %v16250_v10 = vpop.f32.mrf.mxu0 }
 0x7ea   :  { %11164 = vmatmul.msk.f32.vlgmr.msra.gmra.mxu0 %vm926_vm0, %v16117_v50  ;;  %11170 = vmatmul.msk.f32.vlgmr.msra.gmra.mxu3 %vm926_vm0, %v16117_v50  ;;  %17040 = vst [vmem:[#allocation55_spill] sm:$0xff] %v16236_v30 }
 0x7ed   :  { %v9881_v11 = vpop.permute.xlu1 %9880 }
 0x7ee   :  { %v9918_v54 = vsel %vm4787_vm12, %v9879_v25, %v9881_v11  ;;  %v9379_v39 = vpop.permute.xlu0 %9378  ;;  %v16234_v25 = vpop.f32.mrf.mxu2 }
 0x7ef   :  { %v9400_v29 = vsel %vm4304_vm11, %v9377_v3, %v9379_v39  ;;  %v9401_v2 = vsel %vm4304_vm11, %v9379_v39, %v9381_v37  ;;  %11178 = vmatpush.msk.msrb.mxu3 %vm5288_vm13, %v9918_v54  ;;  %v7172_v37 = vadd.f32 %v15985_v61, %v6637_v7  ;;  %v9897_v39 = vpop.permute.xlu2 %9896 }
 0x7f0   :  { %11171 = vmatpush.msk.msrb.mxu0 %vm5288_vm13, %v9400_v29  ;;  %11173 = vmatpush.msk.msrb.mxu1 %vm5288_vm13, %v9401_v2 }
 0x7f1   :  { %11174 = vmatmul.msk.f32.vlgmr.msrb.gmra.mxu1 %vm926_vm0, %v16117_v50  ;;  %11176 = vmatmul.msk.f32.vlgmr.msrb.gmra.mxu2 %vm926_vm0, %v16117_v50  ;;  %v7706_v3 = vadd.f32 %v16153_v33, %v7172_v37  ;;  %v6277_v33 = vadd.f32 %v15627_v43, %v15463_v17  ;;  %v6337_v37 = vadd.f32 %v15637_v36, %v15495_v46 }
 0x7f2   :  { %11172 = vmatmul.msk.f32.vlgmr.msrb.gmra.mxu0 %vm926_vm0, %v16117_v50  ;;  %11179 = vmatmul.msk.f32.vlgmr.msrb.gmra.mxu3 %vm926_vm0, %v16228_v15  ;;  %v6317_v17 = vadd.f32 %v15645_v21, %v15468_v13 }
 0x7f3   :  { %11186 = vmatpush.msk.msra.mxu3 %vm5288_vm13, %v9922_v56  ;;  %v16281_v56 = vpop.f32.mrf.mxu0  ;;  %v7154_v43 = vadd.f32 %v15777_v52, %v6277_v33 }
 0x7f4   :  { %v7156_v36 = vadd.f32 %v15801_v26, %v6317_v17  ;;  %v17043_v17 = vld [vmem:[#allocation39_spill] sm:$0xff] }
 0x7f5   :  { %v9883_v2 = vpop.permute.xlu1 %9882  ;;  %v8219_v54 = vpop.f32.mrf.mxu1  ;;  %v7688_v21 = vadd.f32 %v15978_v27, %v7154_v43  ;;  %v17041_v27 = vld [vmem:[#allocation67_spill] sm:$0xff]  ;;  %v6397_v43 = vadd.f32 %v15681_v41, %v17043_v17  ;;  %v17053_v17 = vld [vmem:[#allocation60_spill] sm:$0xff] }
 0x7f6   :  { %v9919_v7 = vsel %vm4787_vm12, %v9881_v11, %v9883_v2  ;;  %v9885_v61 = vpop.permute.xlu0 %9884  ;;  %v16255_v29 = vadd.f32 %v8219_v54, %v7706_v3  ;;  %v6297_v11 = vadd.f32 %v15631_v20, %v15476_v6 }
 0x7f7   :  { %v9920_v30 = vsel %vm4787_vm12, %v9883_v2, %v9885_v61  ;;  %v9921_v50 = vsel %vm4787_vm12, %v9885_v61, %v16056_v63  ;;  %11180 = vmatpush.msk.msra.mxu0 %vm5288_vm13, %v9919_v7  ;;  %v16273_v63 = vpop.f32.mrf.mxu2  ;;  %v7157_v2 = vadd.f32 %v15820_v23, %v6337_v37  ;;  %v9899_v52 = vpop.permute.xlu2 %9898 }
 0x7f8   :  { %11182 = vmatpush.msk.msra.mxu1 %vm5288_vm13, %v9920_v30  ;;  %11184 = vmatpush.msk.msra.mxu2 %vm5288_vm13, %v9921_v50  ;;  %v16275_v30 = vpop.f32.mrf.mxu3  ;;  %v7155_v3 = vadd.f32 %v15795_v1, %v6297_v11  ;;  %v7690_v1 = vadd.f32 %v16011_v57, %v7156_v36  ;;  %v6457_v36 = vadd.f32 %v15703_v47, %v15536_v9 }
 0x7f9   :  { %11183 = vmatmul.msk.f32.vlgmr.msra.gmra.mxu1 %vm926_vm0, %v16228_v15  ;;  %11185 = vmatmul.msk.f32.vlgmr.msra.gmra.mxu2 %vm926_vm0, %v16228_v15  ;;  %v7691_v23 = vadd.f32 %v16023_v8, %v7157_v2  ;;  %v9927_v8 = vsel %vm4787_vm12, %v9897_v39, %v9899_v52 }
 0x7fa   :  { %11181 = vmatmul.msk.f32.vlgmr.msra.gmra.mxu0 %vm926_vm0, %v16228_v15  ;;  %11187 = vmatmul.msk.f32.vlgmr.msra.gmra.mxu3 %vm926_vm0, %v16228_v15  ;;  %v7689_v13 = vadd.f32 %v15967_v32, %v7155_v3  ;;  %v6357_v32 = vadd.f32 %v15663_v28, %v17041_v27  ;;  %v17042_v28 = vld [vmem:[#allocation41_spill] sm:$0xff]  ;;  %v6417_v3 = vadd.f32 %v15669_v34, %v15524_v4  ;;  %v17046_v27 = vld [vmem:[#allocation43_spill] sm:$0xff] }
 0x7fb   :  { %v7163_v9 = vadd.f32 %v15889_v44, %v6457_v36  ;;  %v17062_v36 = vld [vmem:[#allocation47_spill] sm:$0xff] }
 0x7fc   :  { %v8223_v26 = vadd.f32 %v16151_v58, %v7689_v13  ;;  %v8225_v58 = vadd.f32 %v16170_v45, %v7691_v23  ;;  %v7158_v2 = vadd.f32 %v15808_v14, %v6357_v32 }
 0x7fd   :  { %v9895_v54 = vpop.permute.xlu1 %9894 }
 0x7fe   :  { %v9925_v61 = vsel %vm4787_vm12, %v9893_v22, %v9895_v54  ;;  %v9926_v6 = vsel %vm4787_vm12, %v9895_v54, %v9897_v39  ;;  %v6377_v39 = vadd.f32 %v15667_v53, %v17042_v28  ;;  %v7160_v53 = vadd.f32 %v15842_v5, %v6397_v43 }
 0x7ff   :  { %v9891_v7 = vpop.permute.xlu0 %9890  ;;  %11192 = vmatpush.msk.msrb.mxu2 %vm5288_vm13, %v9925_v61  ;;  %11194 = vmatpush.msk.msrb.mxu3 %vm5288_vm13, %v9926_v6  ;;  %v7161_v6 = vadd.f32 %v15860_v31, %v6417_v3  ;;  %v7692_v34 = vadd.f32 %v16016_v24, %v7158_v2  ;;  %v6437_v5 = vadd.f32 %v15698_v51, %v15528_v42  ;;  %v17054_v3 = vld [vmem:[#allocation51_spill] sm:$0xff] }
 0x800   :  { %v9923_v46 = vsel %vm4787_vm12, %v16155_v12, %v9891_v7  ;;  %v9924_v20 = vsel %vm4787_vm12, %v9891_v7, %v9893_v22  ;;  %v8222_v12 = vadd.f32 %v16148_v62, %v7688_v21  ;;  %v8224_v22 = vadd.f32 %v16131_v60, %v7690_v1 }
 0x801   :  { %11188 = vmatpush.msk.msrb.mxu0 %vm5288_vm13, %v9923_v46  ;;  %11190 = vmatpush.msk.msrb.mxu1 %vm5288_vm13, %v9924_v20  ;;  %v7159_v54 = vadd.f32 %v15838_v49, %v6377_v39  ;;  %v7694_v49 = vadd.f32 %v16043_v48, %v7160_v53  ;;  %v7695_v14 = vadd.f32 %v16045_v38, %v7161_v6  ;;  %v17051_v39 = vld [vmem:[#allocation33_spill] sm:$0xff] }
 0x802   :  { %11189 = vmatmul.msk.f32.vlgmr.msrb.gmra.mxu0 %vm926_vm0, %v16228_v15  ;;  %11191 = vmatmul.msk.f32.vlgmr.msrb.gmra.mxu1 %vm926_vm0, %v16228_v15  ;;  %v8226_v31 = vadd.f32 %v16173_v18, %v7692_v34  ;;  %v17044_v18 = vld [vmem:[#allocation40_spill] sm:$0xff]  ;;  %v17058_v34 = vld [vmem:[#allocation59_spill] sm:$0xff] }
 0x803   :  { %11193 = vmatmul.msk.f32.vlgmr.msrb.gmra.mxu2 %vm926_vm0, %v16228_v15  ;;  %11195 = vmatmul.msk.f32.vlgmr.msrb.gmra.mxu3 %vm926_vm0, %v16228_v15  ;;  %v8393_v57 = vpop.f32.mrf.mxu2  ;;  %v8413_v62 = vpop.f32.mrf.mxu3  ;;  %v7693_v4 = vadd.f32 %v16013_v59, %v7159_v54  ;;  %v8228_v24 = vadd.f32 %v16168_v35, %v7694_v49  ;;  %v8229_v38 = vadd.f32 %v16201_v55, %v7695_v14  ;;  %v17055_v54 = vld [vmem:[#allocation37_spill] sm:$0xff]  ;;  %v17059_v14 = vld [vmem:[#allocation54_spill] sm:$0xff] }
 0x804   :  { %11196 = vmatpush.msk.msra.mxu0 %vm5288_vm13, %v9927_v8  ;;  %v16318_v50 = vadd.f32 %v8393_v57, %v8222_v12  ;;  %v16320_v33 = vadd.f32 %v8413_v62, %v8223_v26  ;;  %v9911_v35 = vpop.permute.xlu2 %9910  ;;  %v7162_v12 = vadd.f32 %v15844_v19, %v6437_v5  ;;  %v17047_v8 = vld [vmem:[#allocation36_spill] sm:$0xff]  ;;  %v17048_v62 = vld [vmem:[#allocation63_spill] sm:$0xff]  ;;  %v17050_v19 = vld [vmem:[#allocation62_spill] sm:$0xff] }
 0x805   :  { %v8433_v11 = vpop.f32.mrf.mxu0  ;;  %v8453_v37 = vpop.f32.mrf.mxu1  ;;  %v8227_v59 = vadd.f32 %v16175_v16, %v7693_v4  ;;  %v6477_v16 = vadd.f32 %v15720_v0, %v15532_v40  ;;  %v17057_v4 = vld [vmem:[#allocation58_spill] sm:$0xff]  ;;  %v17060_v5 = vld [vmem:[#allocation45_spill] sm:$0xff] }
 0x806   :  { %v16328_v45 = vadd.f32 %v8433_v11, %v8224_v22  ;;  %v16330_v60 = vadd.f32 %v8453_v37, %v8225_v58  ;;  %v7696_v58 = vadd.f32 %v17048_v62, %v7162_v12  ;;  %v17049_v22 = vld [vmem:[#allocation31_spill] sm:$0xff]  ;;  %v17052_v37 = vld [vmem:[#allocation56_spill] sm:$0xff]  ;;  %v6537_v49 = vadd.f32 %v17058_v34, %v17057_v4  ;;  %v17065_v12 = vld [vmem:[#allocation61_spill] sm:$0xff] }
 0x807   :  { %v9901_v7 = vpop.permute.xlu1 %9900  ;;  %v9903_v61 = vpop.permute.xlu0 %9902  ;;  %v7164_v32 = vadd.f32 %v17046_v27, %v6477_v16  ;;  %v7697_v28 = vadd.f32 %v17049_v22, %v7163_v9  ;;  %v6517_v43 = vadd.f32 %v17053_v17, %v17052_v37  ;;  %v17063_v16 = vld [vmem:[#allocation24_spill] sm:$0xff]  ;;  %v17067_v22 = vld [vmem:[#allocation35_spill] sm:$0xff]  ;;  %v17070_v17 = vld [vmem:[#allocation49_spill] sm:$0xff] }
 0x808   :  { %v9928_v46 = vsel %vm4787_vm12, %v9899_v52, %v9901_v7  ;;  %v9929_v41 = vsel %vm4787_vm12, %v9901_v7, %v9903_v61  ;;  %v17045_v52 = vld [vmem:[#allocation44_spill] sm:$0xff]  ;;  %v8230_v7 = vadd.f32 %v17055_v54, %v7696_v58  ;;  %v7167_v9 = vadd.f32 %v17065_v12, %v6537_v49  ;;  %v17076_v4 = vld [vmem:[#allocation23_spill] sm:$0xff] }
 0x809   :  { %11198 = vmatpush.msk.msra.mxu1 %vm5288_vm13, %v9928_v46  ;;  %11200 = vmatpush.msk.msra.mxu2 %vm5288_vm13, %v9929_v41  ;;  %v6497_v23 = vadd.f32 %v17045_v52, %v17044_v18  ;;  %v7698_v44 = vadd.f32 %v17050_v19, %v7164_v32  ;;  %v8231_v2 = vadd.f32 %v17054_v3, %v7697_v28  ;;  %v17064_v52 = vld [vmem:[#allocation10_spill] sm:$0xff]  ;;  %v17068_v19 = vld [vmem:[#allocation52_spill] sm:$0xff] }
 0x80a   :  { %11197 = vmatmul.msk.f32.vlgmr.msra.gmra.mxu0 %vm926_vm0, %v16228_v15  ;;  %11199 = vmatmul.msk.f32.vlgmr.msra.gmra.mxu1 %vm926_vm0, %v16228_v15 }
 0x80b   :  { %11201 = vmatmul.msk.f32.vlgmr.msra.gmra.mxu2 %vm926_vm0, %v16228_v15  ;;  %v7165_v57 = vadd.f32 %v17047_v8, %v6497_v23  ;;  %v7166_v23 = vadd.f32 %v17064_v52, %v6517_v43  ;;  %v17066_v8 = vld [vmem:[#allocation30_spill] sm:$0xff] }
 0x80c   :  { %v8473_v48 = vpop.f32.mrf.mxu2  ;;  %v8493_v20 = vpop.f32.mrf.mxu3 }
 0x80d   :  { %v16358_v13 = vadd.f32 %v8473_v48, %v8226_v31  ;;  %v16360_v21 = vadd.f32 %v8493_v20, %v8227_v59  ;;  %v8513_v42 = vpop.f32.mrf.mxu0  ;;  %v8533_v51 = vpop.f32.mrf.mxu1  ;;  %v7699_v11 = vadd.f32 %v17051_v39, %v7165_v57  ;;  %v6557_v31 = vadd.f32 %v17060_v5, %v17059_v14  ;;  %v17061_v20 = vld [vmem:[#allocation57_spill] sm:$0xff] }
 0x80e   :  { %v16366_v1 = vadd.f32 %v8513_v42, %v8228_v24  ;;  %v16368_v55 = vadd.f32 %v8533_v51, %v8229_v38  ;;  %v6577_v42 = vadd.f32 %v17062_v36, %v17061_v20  ;;  %v7700_v28 = vadd.f32 %v17067_v22, %v7166_v23  ;;  %v17078_v36 = vld [vmem:[#allocation38_spill] sm:$0xff] }
 0x80f   :  { %v9905_v47 = vpop.permute.xlu1 %9904  ;;  %v9909_v26 = vpop.permute.xlu0 %9908  ;;  %v8233_v6 = vadd.f32 %v16234_v25, %v7699_v11  ;;  %v7168_v18 = vadd.f32 %v17063_v16, %v6557_v31  ;;  %v17069_v11 = vld [vmem:[#allocation32_spill] sm:$0xff]  ;;  %v17080_v23 = vld [vmem:[#allocation46_spill] sm:$0xff] }
 0x810   :  { %v9930_v40 = vsel %vm4787_vm12, %v9903_v61, %v9905_v47  ;;  %v9933_v0 = vsel %vm4787_vm12, %v9909_v26, %v9911_v35  ;;  %v17056_v61 = vld [vmem:[#allocation48_spill] sm:$0xff]  ;;  %v7169_v57 = vadd.f32 %v17066_v8, %v6577_v42 }
 0x811   :  { %11202 = vmatpush.msk.msra.mxu3 %vm5288_vm13, %v9930_v40  ;;  %11208 = vmatpush.msk.msrb.mxu2 %vm5288_vm13, %v9933_v0  ;;  %v8232_v53 = vadd.f32 %v17056_v61, %v7698_v44  ;;  %v9915_v40 = vpop.permute.xlu2 %9914  ;;  %v7701_v44 = vadd.f32 %v17068_v19, %v7167_v9  ;;  %v7702_v37 = vadd.f32 %v17069_v11, %v7168_v18  ;;  %v17079_v18 = vld [vmem:[#allocation50_spill] sm:$0xff] }
 0x812   :  { %11203 = vmatmul.msk.f32.vlgmr.msra.gmra.mxu3 %vm926_vm0, %v16228_v15  ;;  %v7703_v43 = vadd.f32 %v17070_v17, %v7169_v57 }
 0x813   :  { %11209 = vmatmul.msk.f32.vlgmr.msrb.gmra.mxu2 %vm926_vm0, %v16228_v15  ;;  %v8235_v3 = vadd.f32 %v16250_v10, %v7701_v44 }
 0x814   :  { %v8553_v46 = vpop.f32.mrf.mxu2  ;;  %v8573_v41 = vpop.f32.mrf.mxu3 }
 0x815   :  { %v16396_v59 = vadd.f32 %v8553_v46, %v8230_v7  ;;  %v16398_v24 = vadd.f32 %v8573_v41, %v8231_v2  ;;  %v8593_v38 = vpop.f32.mrf.mxu0  ;;  %v8613_v48 = vpop.f32.mrf.mxu1  ;;  %v17073_v2 = vld [vmem:[#allocation55_spill] sm:$0xff]  ;;  %v17074_v7 = vld [vmem:[#allocation66_spill] sm:$0xff]  ;;  %v17075_v41 = vld [vmem:[#allocation28_spill] sm:$0xff] }
 0x816   :  { %v16402_v51 = vadd.f32 %v8593_v38, %v8232_v53  ;;  %v16404_v25 = vadd.f32 %v8613_v48, %v8233_v6  ;;  %v8234_v54 = vadd.f32 %v17073_v2, %v7700_v28  ;;  %v8236_v61 = vadd.f32 %v17074_v7, %v7702_v37  ;;  %v17077_v48 = vld [vmem:[#allocation34_spill] sm:$0xff] }
 0x817   :  { %v9913_v27 = vpop.permute.xlu0 %9912  ;;  %v9907_v32 = vpop.permute.xlu1 %9906  ;;  %v8237_v53 = vadd.f32 %v16273_v63, %v7703_v43  ;;  %v6617_v34 = vadd.f32 %v17076_v4, %v17075_v41 }
 0x818   :  { %v9934_v0 = vsel %vm4787_vm12, %v9911_v35, %v9913_v27  ;;  %v9931_v62 = vsel %vm4787_vm12, %v9905_v47, %v9907_v32  ;;  %v9932_v58 = vsel %vm4787_vm12, %v9907_v32, %v9909_v26  ;;  %v9935_v39 = vsel %vm4787_vm12, %v9913_v27, %v9915_v40  ;;  %v17071_v35 = vld [vmem:[#allocation68_spill] sm:$0xff]  ;;  %v17072_v47 = vld [vmem:[#allocation25_spill] sm:$0xff] }
 0x819   :  { %11204 = vmatpush.msk.msrb.mxu0 %vm5288_vm13, %v9931_v62  ;;  %11206 = vmatpush.msk.msrb.mxu1 %vm5288_vm13, %v9932_v58  ;;  %v6597_v26 = vadd.f32 %v17072_v47, %v17071_v35  ;;  %v7171_v42 = vadd.f32 %v17078_v36, %v6617_v34 }
 0x81a   :  { %11210 = vmatpush.msk.msrb.mxu3 %vm5288_vm13, %v9934_v0  ;;  %11205 = vmatmul.msk.f32.vlgmr.msrb.gmra.mxu0 %vm926_vm0, %v16228_v15 }
 0x81b   :  { %11207 = vmatmul.msk.f32.vlgmr.msrb.gmra.mxu1 %vm926_vm0, %v16228_v15  ;;  %11211 = vmatmul.msk.f32.vlgmr.msrb.gmra.mxu3 %vm926_vm0, %v16228_v15  ;;  %v7170_v20 = vadd.f32 %v17077_v48, %v6597_v26  ;;  %v7705_v12 = vadd.f32 %v17080_v23, %v7171_v42 }
 0x81c   :  { %11212 = vmatpush.msk.msra.mxu0 %vm5288_vm13, %v9935_v39  ;;  %v8633_v6 = vpop.f32.mrf.mxu2  ;;  %v8653_v46 = vpop.f32.mrf.mxu3 }
 0x81d   :  { %v8768_v10 = vadd.f32 %v8633_v6, %v8234_v54  ;;  %v8769_v49 = vadd.f32 %v8653_v46, %v8235_v3  ;;  %v8673_v14 = vpop.f32.mrf.mxu0  ;;  %v8693_v5 = vpop.f32.mrf.mxu1  ;;  %v7704_v52 = vadd.f32 %v17079_v18, %v7170_v20  ;;  %v8239_v9 = vadd.f32 %v16281_v56, %v7705_v12 }
 0x81e   :  { %v8770_v31 = vadd.f32 %v8673_v14, %v8236_v61  ;;  %v8771_v38 = vadd.f32 %v8693_v5, %v8237_v53 }
 0x81f   :  { %v9917_v16 = vpop.permute.xlu1 %9916  ;;  %v8238_v27 = vadd.f32 %v16275_v30, %v7704_v52 }
 0x820   :  { %v9936_v63 = vsel %vm4787_vm12, %v9915_v40, %v9917_v16 }
 0x821   :  { %11214 = vmatpush.msk.msra.mxu1 %vm5288_vm13, %v9936_v63 }
 0x822   :  { %11213 = vmatmul.msk.f32.vlgmr.msra.gmra.mxu0 %vm926_vm0, %v16228_v15 }
 0x823   :  { %11215 = vmatmul.msk.f32.vlgmr.msra.gmra.mxu1 %vm926_vm0, %v16228_v15 }
 0x824   :  { %v8713_v32 = vpop.f32.mrf.mxu2  ;;  %v8733_v8 = vpop.f32.mrf.mxu3 }
 0x825   :  { %v8772_v57 = vadd.f32 %v8713_v32, %v8238_v27  ;;  %v8773_v40 = vadd.f32 %v8733_v8, %v8239_v9  ;;  %v8927_v0 = vpop.f32.mrf.mxu1 }
 0x826   :  { %v8753_v62 = vpop.f32.mrf.mxu0  ;;  %v9290_v58 = vadd.f32 %v8927_v0, %v16318_v50 }
 0x827   :  { %v8774_v22 = vadd.f32 %v8753_v62, %v16255_v29 }
 0x82c   :  { %v8947_v28 = vpop.f32.mrf.mxu2 }
 0x82d   :  { %v9291_v19 = vadd.f32 %v8947_v28, %v16320_v33  ;;  %v8967_v44 = vpop.f32.mrf.mxu3  ;;  %v9007_v56 = vpop.f32.mrf.mxu1 }
 0x82e   :  { %v9292_v30 = vadd.f32 %v8967_v44, %v16328_v45  ;;  %v8987_v39 = vpop.f32.mrf.mxu0  ;;  %v16453_v15 = vadd.f32 %v9007_v56, %v16358_v13  ;;  %v17081_v44 = vld [vmem:[#allocation11_spill] sm:$0xff] }
 0x82f   :  { %v9293_v11 = vadd.f32 %v8987_v39, %v16330_v60  ;;  %v17082_v39 = vld [vmem:[#allocation12_spill] sm:$0xff] }
 0x834   :  { %v9027_v37 = vpop.f32.mrf.mxu2 }
 0x835   :  { %v16457_v17 = vadd.f32 %v9027_v37, %v16360_v21  ;;  %v9047_v50 = vpop.f32.mrf.mxu3  ;;  %v9087_v43 = vpop.f32.mrf.mxu1 }
 0x836   :  { %v16460_v29 = vadd.f32 %v9047_v50, %v16366_v1  ;;  %v9067_v33 = vpop.f32.mrf.mxu0  ;;  %v16463_v35 = vadd.f32 %v9087_v43, %v16396_v59 }
 0x837   :  { %v16466_v45 = vadd.f32 %v9067_v33, %v16368_v55 }
 0x83c   :  { %v9107_v13 = vpop.f32.mrf.mxu2 }
 0x83d   :  { %v16469_v47 = vadd.f32 %v9107_v13, %v16398_v24  ;;  %v9127_v60 = vpop.f32.mrf.mxu3  ;;  %v9167_v26 = vpop.f32.mrf.mxu1 }
 0x83e   :  { %v16472_v21 = vadd.f32 %v9127_v60, %v16402_v51  ;;  %v9147_v3 = vpop.f32.mrf.mxu0  ;;  %v16474_v2 = vadd.f32 %v9167_v26, %v8768_v10 }
 0x83f   :  { %v16477_v1 = vadd.f32 %v9147_v3, %v16404_v25 }
 0x844   :  { %v9187_v59 = vpop.f32.mrf.mxu2 }
 0x845   :  { %v16479_v54 = vadd.f32 %v9187_v59, %v8769_v49  ;;  %v9207_v55 = vpop.f32.mrf.mxu3  ;;  %v9247_v7 = vpop.f32.mrf.mxu1 }
 0x846   :  { %v16481_v61 = vadd.f32 %v9207_v55, %v8770_v31  ;;  %v16483_v53 = vadd.f32 %v9247_v7, %v8772_v57 }
 0x847   :  { %v9227_v24 = vpop.f32.mrf.mxu0 }
 0x848   :  { %v16485_v6 = vadd.f32 %v9227_v24, %v8771_v38 }
 0x84c   :  { %v9267_v51 = vpop.f32.mrf.mxu2 }
 0x84d   :  { %v16487_v46 = vadd.f32 %v9267_v51, %v8773_v40  ;;  %v9287_v41 = vpop.f32.mrf.mxu3  ;;  %v9481_v4 = vpop.f32.mrf.mxu1 }
 0x84e   :  { %v16489_v34 = vadd.f32 %v9287_v41, %v8774_v22  ;;  %v9825_v27 = vadd.f32 %v9481_v4, %v9291_v19  ;;  %v17083_v19 = vld [vmem:[#allocation13_spill] sm:$0xff]  ;;  %v17085_v4 = vld [vmem:[#allocation14_spill] sm:$0xff] }
 0x84f   :  { %v9461_v25 = vpop.f32.mrf.mxu0 }
 0x850   :  { %v9824_v9 = vadd.f32 %v9461_v25, %v9290_v58 }
 0x854   :  { %v9501_v10 = vpop.f32.mrf.mxu2 }
 0x855   :  { %v9521_v49 = vpop.f32.mrf.mxu3  ;;  %v9561_v14 = vpop.f32.mrf.mxu1  ;;  %v9826_v32 = vadd.f32 %v9501_v10, %v9292_v30 }
 0x856   :  { %v9827_v50 = vadd.f32 %v9521_v49, %v9293_v11  ;;  %v9829_v3 = vadd.f32 %v9561_v14, %v16457_v17  ;;  %v17084_v11 = vld [vmem:[#allocation7_spill] sm:$0xff] }
 0x857   :  { %v9541_v5 = vpop.f32.mrf.mxu0  ;;  %v17086_v14 = vld [vmem:[#allocation15_spill] sm:$0xff] }
 0x858   :  { %v9828_v43 = vadd.f32 %v9541_v5, %v16453_v15 }
 0x85c   :  { %v9581_v48 = vpop.f32.mrf.mxu2 }
 0x85d   :  { %v9601_v31 = vpop.f32.mrf.mxu3  ;;  %v9830_v59 = vadd.f32 %v9581_v48, %v16460_v29 }
 0x85e   :  { %v9641_v36 = vpop.f32.mrf.mxu1 }
 0x85f   :  { %v9621_v20 = vpop.f32.mrf.mxu0 }
 0x864   :  { %v9661_v42 = vpop.f32.mrf.mxu2 }
 0x865   :  { %v16491_v16 = vpop.f32.mrf.mxu3 }
 0x866   :  { %v16495_v63 = vpop.f32.mrf.mxu1 }
 0x867   :  { %v16493_v38 = vpop.f32.mrf.mxu0 }
 0x86c   :  { %v16497_v18 = vpop.f32.mrf.mxu2 }
 0x86d   :  { %v16499_v52 = vpop.f32.mrf.mxu3 }
 0x86e   :  { %v16503_v12 = vpop.f32.mrf.mxu1 }
 0x86f   :  { %v16501_v23 = vpop.f32.mrf.mxu0 }
 0x874   :  { %v16505_v8 = vpop.f32.mrf.mxu2 }
 0x875   :  { %v9995_v57 = vpop.f32.mrf.mxu3 }
 0x876   :  { %v16507_v40 = vadd.f32 %v9995_v57, %v9824_v9  ;;  %v10035_v62 = vpop.f32.mrf.mxu1  ;;  %v9831_v57 = vadd.f32 %v9601_v31, %v16466_v45  ;;  %v17088_v31 = vld [vmem:[#allocation17_spill] sm:$0xff] }
 0x877   :  { %v10015_v0 = vpop.f32.mrf.mxu0  ;;  %v16511_v28 = vadd.f32 %v10035_v62, %v9826_v32 }
 0x878   :  { %v16509_v22 = vadd.f32 %v10015_v0, %v9825_v27  ;;  %v10377_v56 = vmul.f32 %v16507_v40, %v17081_v44  ;;  %v17087_v27 = vld [vmem:[#allocation42_spill] sm:$0xff]  ;;  %v9832_v0 = vadd.f32 %v9621_v20, %v16463_v35  ;;  %v17089_v20 = vld [vmem:[#allocation16_spill] sm:$0xff] }
 0x879   :  { %v10379_v30 = vmul.f32 %v16511_v28, %v17083_v19 }
 0x87a   :  { %v10378_v37 = vmul.f32 %v16509_v22, %v17082_v39  ;;  %v10396_v33 = vsel %vm5288_vm13, %v10377_v56, 0.0  ;;  %v9833_v56 = vadd.f32 %v9641_v36, %v16469_v47 }
 0x87b   :  { %v10399_v24 = vsel %vm5288_vm13, %v10379_v30, 0.0 }
 0x87c   :  { %v10397_v58 = vsel %vm5288_vm13, %v10378_v37, 0.0  ;;  %v10055_v60 = vpop.f32.mrf.mxu2 }
 0x87d   :  { %v10398_v13 = vadd.f32 %v10397_v58, %v10396_v33  ;;  %v10075_v26 = vpop.f32.mrf.mxu3  ;;  %v16524_v55 = vadd.f32 %v10055_v60, %v9827_v50 }
 0x87e   :  { %v16526_v7 = vadd.f32 %v10075_v26, %v9828_v43 }
 0x87f   :  { %v10095_v51 = vpop.f32.mrf.mxu0  ;;  %v10115_v41 = vpop.f32.mrf.mxu1  ;;  %v10380_v15 = vmul.f32 %v16524_v55, %v17084_v11  ;;  %v10400_v17 = vadd.f32 %v10399_v24, %v10398_v13 }
 0x880   :  { %v10381_v25 = vmul.f32 %v16526_v7, %v17085_v4  ;;  %v16533_v10 = vadd.f32 %v10095_v51, %v9829_v3  ;;  %v16535_v49 = vadd.f32 %v10115_v41, %v9830_v59  ;;  %v9834_v3 = vadd.f32 %v9661_v42, %v16472_v21  ;;  %v17090_v51 = vld [vmem:[#allocation18_spill] sm:$0xff]  ;;  %v17091_v21 = vld [vmem:[#allocation8_spill] sm:$0xff] }
 0x881   :  { %v10401_v29 = vsel %vm5288_vm13, %v10380_v15, 0.0 }
 0x882   :  { %v10382_v5 = vmul.f32 %v16533_v10, %v17086_v14  ;;  %v10402_v48 = vadd.f32 %v10401_v29, %v10400_v17  ;;  %v10403_v9 = vsel %vm5288_vm13, %v10381_v25, 0.0  ;;  %v10383_v32 = vmul.f32 %v16535_v49, %v17087_v27 }
 0x883   :  { %v9835_v25 = vadd.f32 %v16491_v16, %v16477_v1 }
 0x884   :  { %v10404_v62 = vadd.f32 %v10403_v9, %v10402_v48  ;;  %v10405_v37 = vsel %vm5288_vm13, %v10382_v5, 0.0  ;;  %v10407_v60 = vsel %vm5288_vm13, %v10383_v32, 0.0 }
 0x886   :  { %v10135_v58 = vpop.f32.mrf.mxu2  ;;  %v10155_v30 = vpop.f32.mrf.mxu3  ;;  %v10406_v50 = vadd.f32 %v10405_v37, %v10404_v62  ;;  %v9836_v62 = vadd.f32 %v16493_v38, %v16474_v2  ;;  %v9837_v37 = vadd.f32 %v16495_v63, %v16479_v54  ;;  %v17093_v2 = vld [vmem:[#allocation19_spill] sm:$0xff] }
 0x887   :  { %v16547_v43 = vadd.f32 %v10135_v58, %v9831_v57  ;;  %v16549_v33 = vadd.f32 %v10155_v30, %v9832_v0  ;;  %v10175_v13 = vpop.f32.mrf.mxu0  ;;  %v10195_v36 = vpop.f32.mrf.mxu1  ;;  %v17092_v57 = vld [vmem:[#allocation20_spill] sm:$0xff]  ;;  %v9839_v58 = vadd.f32 %v16499_v52, %v16485_v6  ;;  %v17094_v52 = vld [vmem:[#allocation29_spill] sm:$0xff] }
 0x888   :  { %v16552_v26 = vadd.f32 %v10175_v13, %v9833_v56  ;;  %v10408_v45 = vadd.f32 %v10407_v60, %v10406_v50  ;;  %v16562_v15 = vadd.f32 %v10195_v36, %v9834_v3  ;;  %v9838_v60 = vadd.f32 %v16497_v18, %v16481_v61  ;;  %v17096_v18 = vld [vmem:[#allocation26_spill] sm:$0xff] }
 0x889   :  { %v10384_v35 = vmul.f32 %v16547_v43, %v17088_v31  ;;  %v10385_v47 = vmul.f32 %v16549_v33, %v17089_v20 }
 0x88a   :  { %v10386_v41 = vmul.f32 %v16552_v26, %v17090_v51  ;;  %v10387_v42 = vmul.f32 %v16562_v15, %v17091_v21 }
 0x88b   :  { %v10409_v59 = vsel %vm5288_vm13, %v10384_v35, 0.0  ;;  %v10411_v17 = vsel %vm5288_vm13, %v10385_v47, 0.0 }
 0x88c   :  { %v10410_v24 = vadd.f32 %v10409_v59, %v10408_v45  ;;  %v10413_v9 = vsel %vm5288_vm13, %v10386_v41, 0.0  ;;  %v10415_v1 = vsel %vm5288_vm13, %v10387_v42, 0.0 }
 0x88e   :  { %v10412_v29 = vadd.f32 %v10411_v17, %v10410_v24  ;;  %v10215_v5 = vpop.f32.mrf.mxu2  ;;  %v17095_v24 = vld [vmem:[#allocation9_spill] sm:$0xff]  ;;  %v9840_v17 = vadd.f32 %v16501_v23, %v16483_v53 }
 0x88f   :  { %v16567_v48 = vadd.f32 %v10215_v5, %v9835_v25  ;;  %v9841_v5 = vadd.f32 %v16503_v12, %v16487_v46  ;;  %v17097_v53 = vld [vmem:[#allocation21_spill] sm:$0xff]  ;;  %v17098_v12 = vld [vmem:[#allocation27_spill] sm:$0xff] }
 0x890   :  { %v10414_v32 = vadd.f32 %v10413_v9, %v10412_v29 }
 0x891   :  { %v10388_v0 = vmul.f32 %v16567_v48, %v17092_v57 }
 0x892   :  { %v10416_v16 = vadd.f32 %v10415_v1, %v10414_v32  ;;  %v9842_v32 = vadd.f32 %v16505_v8, %v16489_v34  ;;  %v17099_v8 = vld [vmem:[#allocation22_spill] sm:$0xff] }
 0x893   :  { %v10417_v30 = vsel %vm5288_vm13, %v10388_v0, 0.0 }
 0x894   :  { %v10418_v63 = vadd.f32 %v10417_v30, %v10416_v16 }
 0x895   :  { %v10235_v56 = vpop.f32.mrf.mxu3 }
 0x896   :  { %v16582_v50 = vadd.f32 %v10235_v56, %v9836_v62  ;;  %v10295_v13 = vpop.f32.mrf.mxu2 }
 0x897   :  { %v10255_v45 = vpop.f32.mrf.mxu0  ;;  %v16588_v35 = vadd.f32 %v10295_v13, %v9839_v58 }
 0x898   :  { %v10389_v38 = vmul.f32 %v16582_v50, %v17093_v2  ;;  %v16590_v47 = vadd.f32 %v10255_v45, %v9837_v37  ;;  %v10275_v54 = vpop.f32.mrf.mxu1 }
 0x899   :  { %v16592_v36 = vadd.f32 %v10275_v54, %v9838_v60  ;;  %v10392_v41 = vmul.f32 %v16588_v35, %v17096_v18 }
 0x89a   :  { %v10419_v6 = vsel %vm5288_vm13, %v10389_v38, 0.0  ;;  %v10390_v3 = vmul.f32 %v16590_v47, %v17094_v52 }
 0x89b   :  { %v10420_v59 = vadd.f32 %v10419_v6, %v10418_v63  ;;  %v10391_v61 = vmul.f32 %v16592_v36, %v17095_v24  ;;  %v10425_v16 = vsel %vm5288_vm13, %v10392_v41, 0.0 }
 0x89c   :  { %v10421_v25 = vsel %vm5288_vm13, %v10390_v3, 0.0 }
 0x89d   :  { %v10422_v29 = vadd.f32 %v10421_v25, %v10420_v59  ;;  %v10423_v9 = vsel %vm5288_vm13, %v10391_v61, 0.0 }
 0x89e   :  { %v10315_v42 = vpop.f32.mrf.mxu3 }
 0x89f   :  { %v10424_v0 = vadd.f32 %v10423_v9, %v10422_v29  ;;  %v16609_v62 = vadd.f32 %v10315_v42, %v9840_v17  ;;  %v10335_v1 = vpop.f32.mrf.mxu0 }
 0x8a0   :  { %v16612_v56 = vadd.f32 %v10335_v1, %v9841_v5  ;;  %v10355_v37 = vpop.f32.mrf.mxu1 }
 0x8a1   :  { %v10393_v23 = vmul.f32 %v16609_v62, %v17097_v53  ;;  %v16616_v58 = vadd.f32 %v10355_v37, %v9842_v32  ;;  %v10426_v46 = vadd.f32 %v10425_v16, %v10424_v0 }
 0x8a2   :  { %v10394_v30 = vmul.f32 %v16612_v56, %v17098_v12 }
 0x8a3   :  { %v10427_v34 = vsel %vm5288_vm13, %v10393_v23, 0.0  ;;  %v10395_v13 = vmul.f32 %v16616_v58, %v17099_v8 }
 0x8a4   :  { %v10428_v60 = vadd.f32 %v10427_v34, %v10426_v46  ;;  %v10429_v45 = vsel %vm5288_vm13, %v10394_v30, 0.0 }
 0x8a5   :  { %v10431_v54 = vsel %vm5288_vm13, %v10395_v13, 0.0 }
 0x8a6   :  { %v10430_v38 = vadd.f32 %v10429_v45, %v10428_v60 }
 0x8a8   :  { %v10432_v63 = vadd.f32 %v10431_v54, %v10430_v38 }
 0x8aa   :  { %10433 = vadd.xlane.f32.xlu0 %v10432_v63 }
 0x91d   :  { %v10434_v6 = vpop.xlane.xlu0 %10433 }
 0x91e   :  { %v16625_v3 = vmul.f32 0.00048828125, %v10434_v6 }
 0x920   :  { %v10436_v59 = vsub.f32 %v16507_v40, %v16625_v3  ;;  %v10437_v61 = vsub.f32 %v16509_v22, %v16625_v3  ;;  %v10438_v41 = vsub.f32 %v16511_v28, %v16625_v3  ;;  %v10439_v25 = vsub.f32 %v16524_v55, %v16625_v3 }
 0x921   :  { %v10440_v5 = vsub.f32 %v16526_v7, %v16625_v3  ;;  %v10441_v42 = vsub.f32 %v16533_v10, %v16625_v3  ;;  %v10442_v16 = vsub.f32 %v16535_v49, %v16625_v3  ;;  %v10445_v38 = vsub.f32 %v16552_v26, %v16625_v3 }
 0x922   :  { %v10455_v17 = vmul.f32 %v10436_v59, %v17081_v44  ;;  %v10456_v29 = vmul.f32 %v10437_v61, %v17082_v39  ;;  %v10457_v9 = vmul.f32 %v10438_v41, %v17083_v19  ;;  %v10458_v32 = vmul.f32 %v10439_v25, %v17084_v11 }
 0x923   :  { %v10459_v37 = vmul.f32 %v10440_v5, %v17085_v4  ;;  %v10443_v39 = vsub.f32 %v16547_v43, %v16625_v3  ;;  %v10460_v23 = vmul.f32 %v10441_v42, %v17086_v14  ;;  %v10444_v11 = vsub.f32 %v16549_v33, %v16625_v3 }
 0x924   :  { %v10474_v0 = vmul.f32 %v10455_v17, %v10455_v17  ;;  %v10475_v1 = vmul.f32 %v10456_v29, %v10456_v29  ;;  %v10476_v44 = vmul.f32 %v10457_v9, %v10457_v9  ;;  %v10477_v46 = vmul.f32 %v10458_v32, %v10458_v32 }
 0x925   :  { %v10461_v13 = vmul.f32 %v10442_v16, %v17087_v27  ;;  %v10478_v60 = vmul.f32 %v10459_v37, %v10459_v37  ;;  %v10462_v14 = vmul.f32 %v10443_v39, %v17088_v31  ;;  %v10479_v54 = vmul.f32 %v10460_v23, %v10460_v23 }
 0x926   :  { %v10493_v19 = vsel %vm5288_vm13, %v10474_v0, 0.0  ;;  %v10494_v30 = vsel %vm5288_vm13, %v10475_v1, 0.0  ;;  %v10496_v4 = vsel %vm5288_vm13, %v10476_v44, 0.0  ;;  %v10498_v63 = vsel %vm5288_vm13, %v10477_v46, 0.0 }
 0x927   :  { %v10495_v34 = vadd.f32 %v10494_v30, %v10493_v19  ;;  %v10446_v59 = vsub.f32 %v16562_v15, %v16625_v3  ;;  %v10463_v61 = vmul.f32 %v10444_v11, %v17089_v20  ;;  %v10480_v41 = vmul.f32 %v10461_v13, %v10461_v13 }
 0x928   :  { %v10500_v27 = vsel %vm5288_vm13, %v10478_v60, 0.0  ;;  %v10447_v17 = vsub.f32 %v16567_v48, %v16625_v3  ;;  %v10464_v29 = vmul.f32 %v10445_v38, %v17090_v51  ;;  %v10481_v5 = vmul.f32 %v10462_v14, %v10462_v14 }
 0x929   :  { %v10497_v45 = vadd.f32 %v10496_v4, %v10495_v34  ;;  %v10502_v31 = vsel %vm5288_vm13, %v10479_v54, 0.0  ;;  %v10448_v42 = vsub.f32 %v16582_v50, %v16625_v3  ;;  %v10465_v32 = vmul.f32 %v10446_v59, %v17091_v21 }
 0x92a   :  { %v10482_v0 = vmul.f32 %v10463_v61, %v10463_v61  ;;  %v10504_v20 = vsel %vm5288_vm13, %v10480_v41, 0.0  ;;  %v10449_v16 = vsub.f32 %v16590_v47, %v16625_v3  ;;  %v10466_v37 = vmul.f32 %v10447_v17, %v17092_v57 }
 0x92b   :  { %v10499_v6 = vadd.f32 %v10498_v63, %v10497_v45  ;;  %v10483_v44 = vmul.f32 %v10464_v29, %v10464_v29  ;;  %v10506_v51 = vsel %vm5288_vm13, %v10481_v5, 0.0  ;;  %v10450_v23 = vsub.f32 %v16592_v36, %v16625_v3 }
 0x92c   :  { %v10467_v46 = vmul.f32 %v10448_v42, %v17093_v2  ;;  %v10484_v19 = vmul.f32 %v10465_v32, %v10465_v32  ;;  %v10508_v21 = vsel %vm5288_vm13, %v10482_v0, 0.0  ;;  %v10451_v34 = vsub.f32 %v16588_v35, %v16625_v3 }
 0x92d   :  { %v10501_v25 = vadd.f32 %v10500_v27, %v10499_v6  ;;  %v10468_v11 = vmul.f32 %v10449_v16, %v17094_v52  ;;  %v10485_v13 = vmul.f32 %v10466_v37, %v10466_v37  ;;  %v10510_v57 = vsel %vm5288_vm13, %v10483_v44, 0.0 }
 0x92e   :  { %v10452_v4 = vsub.f32 %v16609_v62, %v16625_v3  ;;  %v10469_v45 = vmul.f32 %v10450_v23, %v17095_v24  ;;  %v10486_v38 = vmul.f32 %v10467_v46, %v10467_v46  ;;  %v10512_v2 = vsel %vm5288_vm13, %v10484_v19, 0.0 }
 0x92f   :  { %v10503_v9 = vadd.f32 %v10502_v31, %v10501_v25  ;;  %v10453_v54 = vsub.f32 %v16612_v56, %v16625_v3  ;;  %v10470_v63 = vmul.f32 %v10451_v34, %v17096_v18  ;;  %v10487_v6 = vmul.f32 %v10468_v11, %v10468_v11 }
 0x930   :  { %v10514_v52 = vsel %vm5288_vm13, %v10485_v13, 0.0  ;;  %v10454_v61 = vsub.f32 %v16616_v58, %v16625_v3  ;;  %v10471_v41 = vmul.f32 %v10452_v4, %v17097_v53  ;;  %v10488_v27 = vmul.f32 %v10469_v45, %v10469_v45 }
 0x931   :  { %v10505_v1 = vadd.f32 %v10504_v20, %v10503_v9  ;;  %v10516_v24 = vsel %vm5288_vm13, %v10486_v38, 0.0  ;;  %v10472_v17 = vmul.f32 %v10453_v54, %v17098_v12  ;;  %v10489_v29 = vmul.f32 %v10470_v63, %v10470_v63  ;;  %v10546_v38 = vld [vmem:[%s16749_s8] sm:$0xf] }
 0x932   :  { %v10518_v5 = vsel %vm5288_vm13, %v10487_v6, 0.0  ;;  %v10473_v18 = vmul.f32 %v10454_v61, %v17099_v8  ;;  %v10490_v9 = vmul.f32 %v10471_v41, %v10471_v41  ;;  %v10520_v42 = vsel %vm5288_vm13, %v10488_v27, 0.0 }
 0x933   :  { %v10507_v39 = vadd.f32 %v10506_v51, %v10505_v1  ;;  %v10491_v0 = vmul.f32 %v10472_v17, %v10472_v17  ;;  %v10522_v20 = vsel %vm5288_vm13, %v10489_v29, 0.0 }
 0x934   :  { %v10492_v1 = vmul.f32 %v10473_v18, %v10473_v18  ;;  %v10524_v16 = vsel %vm5288_vm13, %v10490_v9, 0.0 }
 0x935   :  { %v10509_v30 = vadd.f32 %v10508_v21, %v10507_v39  ;;  %v10526_v12 = vsel %vm5288_vm13, %v10491_v0, 0.0 }
 0x936   :  { %v10528_v51 = vsel %vm5288_vm13, %v10492_v1, 0.0 }
 0x937   :  { %v10511_v60 = vadd.f32 %v10510_v57, %v10509_v30  ;;  %v10533_v57 = vld [vmem:[%s16748_s7] sm:$0xf]  ;;  %s11677_s7 = smov [#allocation4]  }
 0x938   :  { %s10676_s8 = sshll.u32 %s11677_s7, 4  ;;  %s10677_s8 = int_to_ptr.vmem [resolvable:$true] %s10676_s8 }
 0x939   :  { %v10513_v14 = vadd.f32 %v10512_v2, %v10511_v60 }
 0x93b   :  { %v10515_v59 = vadd.f32 %v10514_v52, %v10513_v14 }
 0x93d   :  { %v10517_v25 = vadd.f32 %v10516_v24, %v10515_v59 }
 0x93f   :  { %v10519_v31 = vadd.f32 %v10518_v5, %v10517_v25 }
 0x941   :  { %v10521_v32 = vadd.f32 %v10520_v42, %v10519_v31 }
 0x943   :  { %v10523_v53 = vadd.f32 %v10522_v20, %v10521_v32 }
 0x945   :  { %v10525_v37 = vadd.f32 %v10524_v16, %v10523_v53 }
 0x947   :  { %v10527_v44 = vadd.f32 %v10526_v12, %v10525_v37 }
 0x949   :  { %v10529_v39 = vadd.f32 %v10528_v51, %v10527_v44 }
 0x94b   :  { %10530 = vadd.xlane.f32.xlu2 %v10529_v39 }
 0x9be   :  { %v10531_v8 = vpop.xlane.xlu2 %10530 }
 0x9bf   :  { %v10532_v23 = vmul.f32 0.00048828125, %v10531_v8 }
 0x9c1   :  { %v10534_v46 = vadd.f32 1e-05, %v10532_v23 }
 0x9c3   :  { %11634 = vrsqrt.f32 %v10534_v46  ;;  %vm10541_vm3 = vweird.f32 %v10534_v46 }
 0x9c9   :  { %v11635_v19 = vpop.eup %11634 }
 0x9ca   :  { %v10536_v21 = vmul.f32 %v11635_v19, %v10534_v46  ;;  %vm10542_vm0 = vweird.f32 %v11635_v19 }
 0x9cb   :  { %vm10543_vm6 = vmor %vm10541_vm3, %vm10542_vm0 }
 0x9cc   :  { %v10537_v30 = vmul.f32 %v11635_v19, %v10536_v21 }
 0x9ce   :  { %v10538_v34 = vmul.f32 0.5, %v10537_v30 }
 0x9d0   :  { %v10539_v11 = vsub.f32 1.5, %v10538_v34 }
 0x9d2   :  { %v10540_v13 = vmul.f32 %v11635_v19, %v10539_v11 }
 0x9d4   :  { %v10544_v60 = vsel %vm10543_vm6, %v11635_v19, %v10540_v13 }
 0x9d5   :  { %v10545_v4 = vmul.f32 %v10544_v60, %v10533_v57 }
 0x9d7   :  { %10551 = vperm.xlu1 %11630, %v10545_v4   ;;  %v10547_v45 = vmul.f32 %v10545_v4, %v16625_v3 }
 0x9d9   :  { %v10548_v2 = vsub.f32 %v10546_v38, %v10547_v45 }
 0x9df   :  { %10575 = vperm.xlu1 %11630, %v10548_v2  }
 0xa49   :  { %v10552_v14 = vpop.permute.xlu1 %10551 }
 0xa4a   :  { %v10554_v54 = vmul.f32 %v10552_v14, %v16507_v40  ;;  %v10555_v63 = vmul.f32 %v10552_v14, %v16509_v22  ;;  %v10556_v6 = vmul.f32 %v10552_v14, %v16511_v28  ;;  %v10557_v52 = vmul.f32 %v10552_v14, %v16524_v55 }
 0xa4b   :  { %v10558_v59 = vmul.f32 %v10552_v14, %v16526_v7  ;;  %v10559_v61 = vmul.f32 %v10552_v14, %v16533_v10  ;;  %v10560_v3 = vmul.f32 %v10552_v14, %v16535_v49  ;;  %v10561_v41 = vmul.f32 %v10552_v14, %v16547_v43 }
 0xa4c   :  { %v10562_v27 = vmul.f32 %v10552_v14, %v16549_v33  ;;  %v10563_v24 = vmul.f32 %v10552_v14, %v16552_v26  ;;  %v10564_v40 = vmul.f32 %v10552_v14, %v16562_v15  ;;  %v10565_v22 = vmul.f32 %v10552_v14, %v16567_v48 }
 0xa4d   :  { %v10566_v28 = vmul.f32 %v10552_v14, %v16582_v50  ;;  %v10567_v55 = vmul.f32 %v10552_v14, %v16590_v47  ;;  %v10568_v7 = vmul.f32 %v10552_v14, %v16592_v36  ;;  %v10569_v10 = vmul.f32 %v10552_v14, %v16588_v35 }
 0xa4e   :  { %v10570_v49 = vmul.f32 %v10552_v14, %v16609_v62  ;;  %v10571_v43 = vmul.f32 %v10552_v14, %v16612_v56  ;;  %v10572_v33 = vmul.f32 %v10552_v14, %v16616_v58 }
 0xa51   :  { %v10576_v25 = vpop.permute.xlu1 %10575 }
 0xa52   :  { %v10578_v26 = vadd.f32 %v10576_v25, %v10554_v54  ;;  %v10579_v17 = vadd.f32 %v10576_v25, %v10555_v63  ;;  %v10581_v29 = vadd.f32 %v10576_v25, %v10557_v52  ;;  %v10580_v15 = vadd.f32 %v10576_v25, %v10556_v6 }
 0xa53   :  { %v10582_v5 = vadd.f32 %v10576_v25, %v10558_v59  ;;  %v10583_v48 = vadd.f32 %v10576_v25, %v10559_v61  ;;  %v10585_v31 = vadd.f32 %v10576_v25, %v10561_v41  ;;  %v10584_v50 = vadd.f32 %v10576_v25, %v10560_v3 }
 0xa54   :  { %v10586_v18 = vadd.f32 %v10576_v25, %v10562_v27  ;;  %v10587_v47 = vadd.f32 %v10576_v25, %v10563_v24  ;;  %v10589_v9 = vadd.f32 %v10576_v25, %v10565_v22  ;;  %v10588_v36 = vadd.f32 %v10576_v25, %v10564_v40 }
 0xa55   :  { %v10590_v42 = vadd.f32 %v10576_v25, %v10566_v28  ;;  %v10591_v35 = vadd.f32 %v10576_v25, %v10567_v55  ;;  %v10593_v32 = vadd.f32 %v10576_v25, %v10569_v10  ;;  %v10595_v62 = vadd.f32 %v10576_v25, %v10571_v43 }
 0xa56   :  { %v10596_v0 = vadd.f32 %v10576_v25, %v10572_v33  ;;  %v10598_v56 = vmax.f32 %v10579_v17, 0.0  ;;  %v10600_v20 = vmax.f32 %v10581_v29, 0.0  ;;  %v10592_v58 = vadd.f32 %v10576_v25, %v10568_v7 }
 0xa57   :  { %v10594_v53 = vadd.f32 %v10576_v25, %v10570_v49  ;;  %v10602_v1 = vmax.f32 %v10583_v48, 0.0  ;;  %v10604_v16 = vmax.f32 %v10585_v31, 0.0  ;;  %v10597_v37 = vmax.f32 %v10578_v26, 0.0 }
 0xa58   :  { %v10599_v12 = vmax.f32 %v10580_v15, 0.0  ;;  %v10606_v44 = vmax.f32 %v10587_v47, 0.0  ;;  %v10608_v51 = vmax.f32 %v10589_v9, 0.0  ;;  %v10601_v39 = vmax.f32 %v10582_v5, 0.0 }
 0xa59   :  { %v10603_v8 = vmax.f32 %v10584_v50, 0.0  ;;  %v10610_v23 = vmax.f32 %v10591_v35, 0.0  ;;  %v10612_v46 = vmax.f32 %v10593_v32, 0.0  ;;  %v10614_v19 = vmax.f32 %v10595_v62, 0.0 }
 0xa5a   :  { %v10615_v21 = vmax.f32 %v10596_v0, 0.0  ;;  %v10634_v30 = vrot.slane %v10598_v56, 4  ;;  %v10635_v34 = vrot.slane %v10600_v20, 4  ;;  %v10636_v11 = vrot.slane %v10602_v1, 4 }
 0xa5b   :  { %v10637_v13 = vrot.slane %v10604_v16, 4  ;;  %v10638_v57 = vrot.slane %v10606_v44, 4  ;;  %v10639_v60 = vrot.slane %v10608_v51, 4  ;;  %v10605_v4 = vmax.f32 %v10586_v18, 0.0 }
 0xa5c   :  { %v10607_v45 = vmax.f32 %v10588_v36, 0.0  ;;  %v10640_v38 = vrot.slane %v10610_v23, 4  ;;  %v10643_v2 = vsel %vm5288_vm13, %v10597_v37, %v10634_v30  ;;  %10670 = vst [vmem:[#allocation4 + $0x48] sm:$0xf] %v10615_v21  ;;  %v10641_v14 = vrot.slane %v10612_v46, 4 }
 0xa5d   :  { %v10644_v54 = vsel %vm5288_vm13, %v10599_v12, %v10635_v34  ;;  %v10645_v63 = vsel %vm5288_vm13, %v10601_v39, %v10636_v11  ;;  %v10646_v6 = vsel %vm5288_vm13, %v10603_v8, %v10637_v13  ;;  %10661 = vst [vmem:[#allocation4] sm:$0xff] %v10643_v2  ;;  %v10609_v52 = vmax.f32 %v10590_v42, 0.0 }
 0xa5e   :  { %v10642_v59 = vrot.slane %v10614_v19, 4  ;;  %v10647_v61 = vsel %vm5288_vm13, %v10605_v4, %v10638_v57  ;;  %10662 = vst [vmem:[#allocation4 + $0x8] sm:$0xff] %v10644_v54  ;;  %v10611_v3 = vmax.f32 %v10592_v58, 0.0  ;;  %v10648_v41 = vsel %vm5288_vm13, %v10607_v45, %v10639_v60 }
 0xa5f   :  { %10663 = vst [vmem:[#allocation4 + $0x10] sm:$0xff] %v10645_v63  ;;  %v10613_v27 = vmax.f32 %v10594_v53, 0.0  ;;  %v10649_v24 = vsel %vm5288_vm13, %v10609_v52, %v10640_v38 }
 0xa60   :  { %10664 = vst [vmem:[#allocation4 + $0x18] sm:$0xff] %v10646_v6  ;;  %v10650_v25 = vsel %vm5288_vm13, %v10611_v3, %v10641_v14 }
 0xa61   :  { %10665 = vst [vmem:[#allocation4 + $0x20] sm:$0xff] %v10647_v61  ;;  %v10651_v40 = vsel %vm5288_vm13, %v10613_v27, %v10642_v59 }
 0xa62   :  { %10666 = vst [vmem:[#allocation4 + $0x28] sm:$0xff] %v10648_v41 }
 0xa63   :  { %10667 = vst [vmem:[#allocation4 + $0x30] sm:$0xff] %v10649_v24 }
 0xa64   :  { %10668 = vst [vmem:[#allocation4 + $0x38] sm:$0xff] %v10650_v25 }
 0xa65   :  { %10669 = vst [vmem:[#allocation4 + $0x40] sm:$0xff] %v10651_v40 }
 0xa66   :  { %10681 = dma.vmem_to_hbm [thread:$0]  %s10677_s8, 1216, %s10679_s13, [#allocation5]  }
 0xa67   :  { %11663 = dma.done.wait [#allocation5], 1216  }
 0xa68   :  { %11664 = vsyncadd [#allocation5], 4294966080 }
 0xa69   :  { %10686 = vsyncpa [#allocation5], 1 }

</bundles_post_ra>
